<compile_context>
chip_gen: v7x
topology: tpu7x:2x2x1
jax: 0.10.0
libtpu: 0.0.40
codegen_flags: <defaults>
</compile_context>

<pallas_src>
import functools

import numpy as np
import jax
import jax.numpy as jnp
from jax import lax
from jax.experimental import pallas as pl
from jax.experimental.pallas import tpu as pltpu

EPS = 1e-5            # PyTorch BatchNorm default eps
NCLASS_PAD = 128      # lane-dense classifier output width (sliced back in wrapper)
CIN_PAD = 8           # K-pad for the layer-1 (Cin=3) MXU matmul


def _round_up(v, m):
    return ((v + m - 1) // m) * m


# ----------------------------------------------------------------------------
# Fused Pallas kernel: backbone + max-pool + classifier, everything in VMEM
# ----------------------------------------------------------------------------
def _fused_scores_kernel(nv_ref, x_ref, w1_ref, g1_ref, b1_ref,
                         w2_ref, g2_ref, b2_ref,
                         w3_ref, g3_ref, b3_ref,
                         w4_ref, g4_ref, b4_ref,
                         fc1w_ref, fc1b_ref, cg_ref, cb_ref,
                         fc2w_ref, fc2b_ref,
                         o_ref, *, n_bpad, n_points, emb, use_bf16):
    f32 = jnp.float32
    m_rows = n_bpad * n_points

    nv = nv_ref[...]                         # (1,1) int32: number of VALID batch rows
    m_valid = nv * n_points                  # (1,1) int32: valid B*N rows
    inv_m = 1.0 / m_valid.astype(f32)        # backbone BN reduces over valid B*N rows
    inv_b = 1.0 / nv.astype(f32)             # classifier BN reduces over valid B rows

    # Row-validity masks: padded rows (zero-padded batch elements) are excluded
    # from every BN statistic, so the padded forward equals the unpadded one.
    row_ids = lax.broadcasted_iota(jnp.int32, (1, m_rows), 1)
    mrow = (row_ids < m_valid).astype(f32)                     # (1, M)
    b_ids = lax.broadcasted_iota(jnp.int32, (1, n_bpad), 1)
    brow = (b_ids < nv).astype(f32)                            # (1, Bpad)

    def mm(a, b):
        # bf16 MXU operands, f32 accumulate; activations stay f32 outside the dot.
        if use_bf16:
            a = a.astype(jnp.bfloat16)
            b = b.astype(jnp.bfloat16)
        return jnp.dot(a, b, preferred_element_type=f32)

    def bn_relu(y, g, b, mask_row, inv_n):
        # Training-mode BatchNorm1d (momentum=1, biased var) + ReLU.
        # Stats as (1,M)@(M,C) MXU matmuls with the validity mask folded into the
        # left operand -> reductions leave the XLU and stay f32 even in bf16 mode.
        s = jnp.dot(mask_row, y, preferred_element_type=f32)          # (1, C)
        ss = jnp.dot(mask_row, y * y, preferred_element_type=f32)     # (1, C)
        mean = s * inv_n
        var = jnp.maximum(ss * inv_n - mean * mean, 0.0)              # clamp cancellation
        return jnp.maximum(g * (y - mean) * lax.rsqrt(var + EPS) + b, 0.0)

    # Backbone: 4 x [1x1 Conv1d (== matmul, channels-last) -> BN -> ReLU]
    h = bn_relu(mm(x_ref[...], w1_ref[...]), g1_ref[...], b1_ref[...], mrow, inv_m)  # (M,64)
    h = bn_relu(mm(h, w2_ref[...]), g2_ref[...], b2_ref[...], mrow, inv_m)           # (M,64)
    h = bn_relu(mm(h, w3_ref[...]), g3_ref[...], b3_ref[...], mrow, inv_m)           # (M,128)
    h = bn_relu(mm(h, w4_ref[...]), g4_ref[...], b4_ref[...], mrow, inv_m)           # (M,emb)

    # Fused global max-pool over the points axis (p_fea.max(-1) in NCW layout).
    g_fea = jnp.max(jnp.reshape(h, (n_bpad, n_points, emb)), axis=1)                 # (Bpad,emb)

    # Classifier: fc1 -> BN -> (dropout identity) -> ReLU -> fc2 (lane-padded).
    yc = mm(g_fea, fc1w_ref[...]) + fc1b_ref[...]                                    # (Bpad,256)
    hc = bn_relu(yc, cg_ref[...], cb_ref[...], brow, inv_b)
    # TODO(synk): Dropout(0.3) is treated as identity (eval-mode) for determinism.
    o_ref[...] = mm(hc, fc2w_ref[...]) + fc2b_ref[...]                               # (Bpad,128)


def _scores_pallas(params, x_pad, nvalid, *, use_bf16=True):
    """x_pad: (Bpad, N, 3) zero-padded point cloud; nvalid: (1,1) int32 valid rows."""
    Bpad, N, cin = x_pad.shape
    emb = params["w4t"].shape[1]
    nclass = params["fc2_wt"].shape[1]
    M = Bpad * N

    # K=8 padded layer-1 matmul (replaces lane-slice broadcast FMAs).
    x2d = jnp.pad(jnp.reshape(x_pad, (M, cin)), ((0, 0), (0, CIN_PAD - cin)))
    w1p = jnp.pad(params["w1t"], ((0, CIN_PAD - cin), (0, 0)))
    # Lane-dense fc2: zero-pad output channels nclass -> NCLASS_PAD (unmasked vst).
    fc2w = jnp.pad(params["fc2_wt"], ((0, 0), (0, NCLASS_PAD - nclass)))
    fc2b = jnp.pad(params["fc2_b"].reshape(1, -1), ((0, 0), (0, NCLASS_PAD - nclass)))

    args = (
        jnp.reshape(nvalid, (1, 1)).astype(jnp.int32),
        x2d,
        w1p, params["g1"].reshape(1, -1), params["b1"].reshape(1, -1),
        params["w2t"], params["g2"].reshape(1, -1), params["b2"].reshape(1, -1),
        params["w3t"], params["g3"].reshape(1, -1), params["b3"].reshape(1, -1),
        params["w4t"], params["g4"].reshape(1, -1), params["b4"].reshape(1, -1),
        params["fc1_wt"], params["fc1_b"].reshape(1, -1),
        params["cbn_g"].reshape(1, -1), params["cbn_b"].reshape(1, -1),
        fc2w, fc2b,
    )

    kernel = functools.partial(_fused_scores_kernel, n_bpad=Bpad, n_points=N,
                               emb=emb, use_bf16=use_bf16)
    scores_pad = pl.pallas_call(
        kernel,
        out_shape=jax.ShapeDtypeStruct((Bpad, NCLASS_PAD), jnp.float32),
        # No grid: whole (tiny) arrays live in VMEM for the single fused invocation.
        in_specs=[pl.BlockSpec(memory_space=pltpu.MemorySpace.VMEM)
                  for _ in range(len(args))],
        out_specs=pl.BlockSpec(memory_space=pltpu.MemorySpace.VMEM),
        compiler_params=pltpu.CompilerParams(
            vmem_limit_bytes=32 * 1024 * 1024,   # safe on v5e/v6e/v7x scoped budgets
        ),
    )(*args)
    return scores_pad[:, :nclass]


# ----------------------------------------------------------------------------
# Pure-JAX masked reference (inner-loop VJP + correctness check)
# ----------------------------------------------------------------------------
def _scores_ref(params, x_pad, nvalid):
    f32 = jnp.float32
    Bpad, N, cin = x_pad.shape
    M = Bpad * N
    nv = nvalid.reshape(()).astype(f32)
    mrow = (jnp.arange(M, dtype=f32)[:, None] < nv * N).astype(f32)     # (M,1)
    brow = (jnp.arange(Bpad, dtype=f32)[:, None] < nv).astype(f32)      # (Bpad,1)
    inv_m = 1.0 / (nv * N)
    inv_b = 1.0 / nv

    def dot32(a, b):
        return jnp.dot(a, b, precision=lax.Precision.HIGHEST)

    def bn_relu(y, g, b, mask, inv_n):
        s = jnp.sum(y * mask, axis=0, keepdims=True)
        ss = jnp.sum(y * y * mask, axis=0, keepdims=True)
        mean = s * inv_n
        var = jnp.maximum(ss * inv_n - mean * mean, 0.0)
        return jnp.maximum(g * (y - mean) * lax.rsqrt(var + EPS) + b, 0.0)

    h = jnp.reshape(x_pad, (M, cin))
    h = bn_relu(dot32(h, params["w1t"]), params["g1"], params["b1"], mrow, inv_m)
    h = bn_relu(dot32(h, params["w2t"]), params["g2"], params["b2"], mrow, inv_m)
    h = bn_relu(dot32(h, params["w3t"]), params["g3"], params["b3"], mrow, inv_m)
    h = bn_relu(dot32(h, params["w4t"]), params["g4"], params["b4"], mrow, inv_m)
    g_fea = jnp.max(jnp.reshape(h, (Bpad, N, -1)), axis=1)
    y = dot32(g_fea, params["fc1_wt"]) + params["fc1_b"]
    hc = bn_relu(y, params["cbn_g"], params["cbn_b"], brow, inv_b)
    return dot32(hc, params["fc2_wt"]) + params["fc2_b"]


@jax.custom_vjp
def scores_fn(params, x_pad, nvalid):
    return _scores_pallas(params, x_pad, nvalid)


def _scores_fwd(params, x_pad, nvalid):
    return _scores_pallas(params, x_pad, nvalid), (params, x_pad, nvalid)


def _scores_bwd(res, g):
    params, x_pad, nvalid = res
    _, vjp = jax.vjp(lambda p, x: _scores_ref(p, x, nvalid), params, x_pad)
    dp, dx = vjp(g)
    return dp, dx, jnp.zeros_like(nvalid)


scores_fn.defvjp(_scores_fwd, _scores_bwd)


def cross_entropy(scores, labels):
    logp = jax.nn.log_softmax(scores, axis=1)
    return -jnp.mean(logp[jnp.arange(scores.shape[0]), labels])


# ----------------------------------------------------------------------------
# Whole episode (inner-loop adaptation + query eval) in one jit
# ----------------------------------------------------------------------------
@functools.partial(jax.jit,
                   static_argnames=("n_way", "n_shot", "n_query", "n_step", "lr_f"))
def _episode(params, sx, sy, s_nv, qx, qy, q_nv, *, n_way, n_shot, n_query,
             n_step, lr_f):
    ns = n_way * n_shot
    nq = n_way * n_query

    def support_loss(p):
        return cross_entropy(scores_fn(p, sx, s_nv)[:ns], sy)

    # inner loop: weight.fast = weight - lr * grad
    fast = params
    for _ in range(n_step):
        grads = jax.grad(support_loss)(fast)
        fast = jax.tree_util.tree_map(lambda w, g: w - lr_f * g, fast, grads)

    scores_q = scores_fn(fast, qx, q_nv)[:nq]
    loss = cross_entropy(scores_q, qy)
    log_p_y = jax.nn.log_softmax(scores_q, axis=1)
    y_hat = jnp.argmax(log_p_y, axis=1).reshape(n_way, n_query)
    acc_cla = jnp.mean((y_hat == qy.reshape(n_way, n_query)).astype(jnp.float32),
                       axis=1)
    return loss, jnp.mean(acc_cla), acc_cla, y_hat


def maml_forward(params, x, y, *, n_way, n_shot, n_query, n_step, lr_f):
    y_np = np.asarray(y)
    cl = np.unique(y_np)                                       # torch.unique(y)
    s_idx = np.concatenate([np.where(y_np == c)[0][:n_shot] for c in cl])
    q_idx = np.concatenate(
        [np.where(y_np == c)[0][n_shot:n_shot + n_query] for c in cl])

    ns, nq = n_way * n_shot, n_way * n_query
    bpad = _round_up(max(ns, nq), 8)        # unified padded batch -> one kernel variant

    sx = jnp.pad(x[s_idx], ((0, bpad - ns), (0, 0), (0, 0)))
    qx = jnp.pad(x[q_idx], ((0, bpad - nq), (0, 0), (0, 0)))
    sy = jnp.asarray(np.repeat(np.arange(n_way), n_shot), jnp.int32)
    qy = jnp.asarray(np.repeat(np.arange(n_way), n_query), jnp.int32)
    s_nv = jnp.full((1, 1), ns, jnp.int32)
    q_nv = jnp.full((1, 1), nq, jnp.int32)

    loss, acc_val, acc_cla, y_hat = _episode(
        params, sx, sy, s_nv, qx, qy, q_nv,
        n_way=n_way, n_shot=n_shot, n_query=n_query, n_step=n_step, lr_f=lr_f)

    acc_cla_np = np.asarray(acc_cla)
    acc_dict = dict(zip(cl.tolist(), acc_cla_np.tolist()))
    y_hat_np = np.asarray(y_hat)
    remapped = y_hat_np.copy()
    for i in range(n_way):
        remapped[y_hat_np == i] = cl[i]
    return loss, acc_val, acc_dict, remapped


# ----------------------------------------------------------------------------
# Deterministic parameter init (mirrors module __init__; PointNet backbone)
# ----------------------------------------------------------------------------
def init_params(key, emb_dims, nclass=5):
    ks = jax.random.split(key, 6)

    def conv_w(k, cin, cout):                    # Conv1d default (kaiming-uniform bound)
        bound = 1.0 / np.sqrt(cin)
        return jax.random.uniform(k, (cin, cout), jnp.float32, -bound, bound)

    def xavier(k, cin, cout):                    # maml_init_ -> xavier_uniform, bias=0
        limit = np.sqrt(6.0 / (cin + cout))
        return jax.random.uniform(k, (cin, cout), jnp.float32, -limit, limit)

    f32 = jnp.float32
    return {
        "w1t": conv_w(ks[0], 3, 64), "g1": jnp.ones((64,), f32), "b1": jnp.zeros((64,), f32),
        "w2t": conv_w(ks[1], 64, 64), "g2": jnp.ones((64,), f32), "b2": jnp.zeros((64,), f32),
        "w3t": conv_w(ks[2], 64, 128), "g3": jnp.ones((128,), f32), "b3": jnp.zeros((128,), f32),
        "w4t": conv_w(ks[3], 128, emb_dims),
        "g4": jnp.ones((emb_dims,), f32), "b4": jnp.zeros((emb_dims,), f32),
        "fc1_wt": xavier(ks[4], emb_dims, 256), "fc1_b": jnp.zeros((256,), f32),
        "cbn_g": jnp.ones((256,), f32), "cbn_b": jnp.zeros((256,), f32),
        "fc2_wt": xavier(ks[5], 256, nclass), "fc2_b": jnp.zeros((nclass,), f32),
    }


if __name__ == "__main__":
    key = jax.random.PRNGKey(0)
    kx, kp = jax.random.split(key)

    # args: backbone='PointNet', way=5, shot=1, query=3, emb_dims=64, n_step=1, lr_f=0.01
    n_way, n_shot, n_query = 5, 1, 3
    num_points, emb_dims = 32, 64            # num_points multiple of 8 (sublane tile)
    total = n_way * (n_shot + n_query)

    x = jax.random.normal(kx, (total, num_points, 3), jnp.float32)   # (B, N, 3) clouds
    y = np.repeat(np.arange(n_way), n_shot + n_query)                # episode labels
    params = init_params(kp, emb_dims)

    # --- correctness spot check: f32 Pallas kernel vs masked pure-JAX reference ---
    nq = n_way * n_query
    bpad = _round_up(max(n_way * n_shot, nq), 8)
    cl = np.unique(y)
    q_idx = np.concatenate([np.where(y == c)[0][n_shot:n_shot + n_query] for c in cl])
    qx = jnp.pad(x[q_idx], ((0, bpad - nq), (0, 0), (0, 0)))
    q_nv = jnp.full((1, 1), nq, jnp.int32)
    s_pal = np.asarray(_scores_pallas(params, qx, q_nv, use_bf16=False))
    s_ref = np.asarray(_scores_ref(params, qx, q_nv))
    np.testing.assert_allclose(s_pal[:nq], s_ref[:nq], rtol=5e-2, atol=5e-2)

    # --- full MAML episode (bf16 MXU forward, jitted inner loop + query eval) ---
    loss, acc_val, acc_dict, y_hat = maml_forward(
        params, x, y,
        n_way=n_way, n_shot=n_shot, n_query=n_query, n_step=1, lr_f=0.01,
    )
    jax.block_until_ready(loss)
    jax.block_until_ready(acc_val)
    assert np.isfinite(float(loss)) and y_hat.shape == (n_way, n_query)
    print("KERNEL_OK")
</pallas_src>

<mosaic_0001>
module attributes {stable_mosaic.version = 11 : i64} {
  func.func @_fused_scores_kernel(%arg0: memref<1x1xi32, #tpu.memory_space<vmem>>, %arg1: memref<512x8xf32, #tpu.memory_space<vmem>>, %arg2: memref<8x64xf32, #tpu.memory_space<vmem>>, %arg3: memref<1x64xf32, #tpu.memory_space<vmem>>, %arg4: memref<1x64xf32, #tpu.memory_space<vmem>>, %arg5: memref<64x64xf32, #tpu.memory_space<vmem>>, %arg6: memref<1x64xf32, #tpu.memory_space<vmem>>, %arg7: memref<1x64xf32, #tpu.memory_space<vmem>>, %arg8: memref<64x128xf32, #tpu.memory_space<vmem>>, %arg9: memref<1x128xf32, #tpu.memory_space<vmem>>, %arg10: memref<1x128xf32, #tpu.memory_space<vmem>>, %arg11: memref<128x64xf32, #tpu.memory_space<vmem>>, %arg12: memref<1x64xf32, #tpu.memory_space<vmem>>, %arg13: memref<1x64xf32, #tpu.memory_space<vmem>>, %arg14: memref<64x256xf32, #tpu.memory_space<vmem>>, %arg15: memref<1x256xf32, #tpu.memory_space<vmem>>, %arg16: memref<1x256xf32, #tpu.memory_space<vmem>>, %arg17: memref<1x256xf32, #tpu.memory_space<vmem>>, %arg18: memref<256x128xf32, #tpu.memory_space<vmem>>, %arg19: memref<1x128xf32, #tpu.memory_space<vmem>>, %arg20: memref<16x128xf32, #tpu.memory_space<vmem>>) attributes {dimension_semantics = [], scalar_prefetch = 0 : i64, scratch_operands = 0 : i64, tpu.core_type = #tpu.core_type<tc>} {
    %c0 = arith.constant 0 : index
    %c0_0 = arith.constant 0 : index
    %0 = vector.load %arg0[%c0, %c0_0] : memref<1x1xi32, #tpu.memory_space<vmem>>, vector<1x1xi32>
    %c32_i32 = arith.constant 32 : i32
    %1 = vector.broadcast %c32_i32 : i32 to vector<1x1xi32>
    %2 = arith.muli %0, %1 : vector<1x1xi32>
    %3 = arith.sitofp %2 : vector<1x1xi32> to vector<1x1xf32>
    %cst = arith.constant 1.000000e+00 : f32
    %4 = vector.broadcast %cst : f32 to vector<1x1xf32>
    %5 = arith.divf %4, %3 : vector<1x1xf32>
    %6 = arith.sitofp %0 : vector<1x1xi32> to vector<1x1xf32>
    %cst_1 = arith.constant 1.000000e+00 : f32
    %7 = vector.broadcast %cst_1 : f32 to vector<1x1xf32>
    %8 = arith.divf %7, %6 : vector<1x1xf32>
    %9 = tpu.iota {dimensions = array<i32: 1>} : vector<1x512xi32>
    %10 = vector.broadcast %2 : vector<1x1xi32> to vector<1x512xi32>
    %11 = arith.cmpi slt, %9, %10 : vector<1x512xi32>
    %12 = arith.extui %11 : vector<1x512xi1> to vector<1x512xi32>
    %13 = arith.sitofp %12 : vector<1x512xi32> to vector<1x512xf32>
    %14 = tpu.iota {dimensions = array<i32: 1>} : vector<1x16xi32>
    %15 = vector.broadcast %0 : vector<1x1xi32> to vector<1x16xi32>
    %16 = arith.cmpi slt, %14, %15 : vector<1x16xi32>
    %17 = arith.extui %16 : vector<1x16xi1> to vector<1x16xi32>
    %18 = arith.sitofp %17 : vector<1x16xi32> to vector<1x16xf32>
    %c0_2 = arith.constant 0 : index
    %c0_3 = arith.constant 0 : index
    %19 = vector.load %arg1[%c0_2, %c0_3] : memref<512x8xf32, #tpu.memory_space<vmem>>, vector<512x8xf32>
    %c0_4 = arith.constant 0 : index
    %c0_5 = arith.constant 0 : index
    %20 = vector.load %arg2[%c0_4, %c0_5] : memref<8x64xf32, #tpu.memory_space<vmem>>, vector<8x64xf32>
    %cst_6 = arith.constant dense<0.000000e+00> : vector<512x64xf32>
    %21 = tpu.matmul %19, %20, %cst_6 {dimension_numbers = #tpu.dot_dimension_numbers<[1], [0], [0], [1], [0, 0, 1, 1], [], []>} : vector<512x8xf32>, vector<8x64xf32>, vector<512x64xf32> -> vector<512x64xf32>
    %c0_7 = arith.constant 0 : index
    %c0_8 = arith.constant 0 : index
    %22 = vector.load %arg3[%c0_7, %c0_8] : memref<1x64xf32, #tpu.memory_space<vmem>>, vector<1x64xf32>
    %c0_9 = arith.constant 0 : index
    %c0_10 = arith.constant 0 : index
    %23 = vector.load %arg4[%c0_9, %c0_10] : memref<1x64xf32, #tpu.memory_space<vmem>>, vector<1x64xf32>
    %cst_11 = arith.constant dense<0.000000e+00> : vector<1x64xf32>
    %24 = tpu.matmul %13, %21, %cst_11 {dimension_numbers = #tpu.dot_dimension_numbers<[1], [0], [0], [1], [0, 0, 1, 1], [], []>} : vector<1x512xf32>, vector<512x64xf32>, vector<1x64xf32> -> vector<1x64xf32>
    %25 = arith.mulf %21, %21 : vector<512x64xf32>
    %cst_12 = arith.constant dense<0.000000e+00> : vector<1x64xf32>
    %26 = tpu.matmul %13, %25, %cst_12 {dimension_numbers = #tpu.dot_dimension_numbers<[1], [0], [0], [1], [0, 0, 1, 1], [], []>} : vector<1x512xf32>, vector<512x64xf32>, vector<1x64xf32> -> vector<1x64xf32>
    %27 = vector.broadcast %5 : vector<1x1xf32> to vector<1x64xf32>
    %28 = arith.mulf %24, %27 : vector<1x64xf32>
    %29 = vector.broadcast %5 : vector<1x1xf32> to vector<1x64xf32>
    %30 = arith.mulf %26, %29 : vector<1x64xf32>
    %31 = arith.mulf %28, %28 : vector<1x64xf32>
    %32 = arith.subf %30, %31 : vector<1x64xf32>
    %cst_13 = arith.constant 0.000000e+00 : f32
    %33 = vector.broadcast %cst_13 : f32 to vector<1x64xf32>
    %34 = arith.maximumf %32, %33 : vector<1x64xf32>
    %35 = vector.broadcast %28 : vector<1x64xf32> to vector<512x64xf32>
    %36 = arith.subf %21, %35 : vector<512x64xf32>
    %37 = vector.broadcast %22 : vector<1x64xf32> to vector<512x64xf32>
    %38 = arith.mulf %37, %36 : vector<512x64xf32>
    %cst_14 = arith.constant 9.99999974E-6 : f32
    %39 = vector.broadcast %cst_14 : f32 to vector<1x64xf32>
    %40 = arith.addf %34, %39 : vector<1x64xf32>
    %41 = math.rsqrt %40 : vector<1x64xf32>
    %42 = vector.broadcast %41 : vector<1x64xf32> to vector<512x64xf32>
    %43 = arith.mulf %38, %42 : vector<512x64xf32>
    %44 = vector.broadcast %23 : vector<1x64xf32> to vector<512x64xf32>
    %45 = arith.addf %43, %44 : vector<512x64xf32>
    %cst_15 = arith.constant 0.000000e+00 : f32
    %46 = vector.broadcast %cst_15 : f32 to vector<512x64xf32>
    %47 = arith.maximumf %45, %46 : vector<512x64xf32>
    %c0_16 = arith.constant 0 : index
    %c0_17 = arith.constant 0 : index
    %48 = vector.load %arg5[%c0_16, %c0_17] : memref<64x64xf32, #tpu.memory_space<vmem>>, vector<64x64xf32>
    %cst_18 = arith.constant dense<0.000000e+00> : vector<512x64xf32>
    %49 = tpu.matmul %47, %48, %cst_18 {dimension_numbers = #tpu.dot_dimension_numbers<[1], [0], [0], [1], [0, 0, 1, 1], [], []>} : vector<512x64xf32>, vector<64x64xf32>, vector<512x64xf32> -> vector<512x64xf32>
    %c0_19 = arith.constant 0 : index
    %c0_20 = arith.constant 0 : index
    %50 = vector.load %arg6[%c0_19, %c0_20] : memref<1x64xf32, #tpu.memory_space<vmem>>, vector<1x64xf32>
    %c0_21 = arith.constant 0 : index
    %c0_22 = arith.constant 0 : index
    %51 = vector.load %arg7[%c0_21, %c0_22] : memref<1x64xf32, #tpu.memory_space<vmem>>, vector<1x64xf32>
    %cst_23 = arith.constant dense<0.000000e+00> : vector<1x64xf32>
    %52 = tpu.matmul %13, %49, %cst_23 {dimension_numbers = #tpu.dot_dimension_numbers<[1], [0], [0], [1], [0, 0, 1, 1], [], []>} : vector<1x512xf32>, vector<512x64xf32>, vector<1x64xf32> -> vector<1x64xf32>
    %53 = arith.mulf %49, %49 : vector<512x64xf32>
    %cst_24 = arith.constant dense<0.000000e+00> : vector<1x64xf32>
    %54 = tpu.matmul %13, %53, %cst_24 {dimension_numbers = #tpu.dot_dimension_numbers<[1], [0], [0], [1], [0, 0, 1, 1], [], []>} : vector<1x512xf32>, vector<512x64xf32>, vector<1x64xf32> -> vector<1x64xf32>
    %55 = vector.broadcast %5 : vector<1x1xf32> to vector<1x64xf32>
    %56 = arith.mulf %52, %55 : vector<1x64xf32>
    %57 = vector.broadcast %5 : vector<1x1xf32> to vector<1x64xf32>
    %58 = arith.mulf %54, %57 : vector<1x64xf32>
    %59 = arith.mulf %56, %56 : vector<1x64xf32>
    %60 = arith.subf %58, %59 : vector<1x64xf32>
    %cst_25 = arith.constant 0.000000e+00 : f32
    %61 = vector.broadcast %cst_25 : f32 to vector<1x64xf32>
    %62 = arith.maximumf %60, %61 : vector<1x64xf32>
    %63 = vector.broadcast %56 : vector<1x64xf32> to vector<512x64xf32>
    %64 = arith.subf %49, %63 : vector<512x64xf32>
    %65 = vector.broadcast %50 : vector<1x64xf32> to vector<512x64xf32>
    %66 = arith.mulf %65, %64 : vector<512x64xf32>
    %cst_26 = arith.constant 9.99999974E-6 : f32
    %67 = vector.broadcast %cst_26 : f32 to vector<1x64xf32>
    %68 = arith.addf %62, %67 : vector<1x64xf32>
    %69 = math.rsqrt %68 : vector<1x64xf32>
    %70 = vector.broadcast %69 : vector<1x64xf32> to vector<512x64xf32>
    %71 = arith.mulf %66, %70 : vector<512x64xf32>
    %72 = vector.broadcast %51 : vector<1x64xf32> to vector<512x64xf32>
    %73 = arith.addf %71, %72 : vector<512x64xf32>
    %cst_27 = arith.constant 0.000000e+00 : f32
    %74 = vector.broadcast %cst_27 : f32 to vector<512x64xf32>
    %75 = arith.maximumf %73, %74 : vector<512x64xf32>
    %c0_28 = arith.constant 0 : index
    %c0_29 = arith.constant 0 : index
    %76 = vector.load %arg8[%c0_28, %c0_29] : memref<64x128xf32, #tpu.memory_space<vmem>>, vector<64x128xf32>
    %cst_30 = arith.constant dense<0.000000e+00> : vector<512x128xf32>
    %77 = tpu.matmul %75, %76, %cst_30 {dimension_numbers = #tpu.dot_dimension_numbers<[1], [0], [0], [1], [0, 0, 1, 1], [], []>} : vector<512x64xf32>, vector<64x128xf32>, vector<512x128xf32> -> vector<512x128xf32>
    %c0_31 = arith.constant 0 : index
    %c0_32 = arith.constant 0 : index
    %78 = vector.load %arg9[%c0_31, %c0_32] : memref<1x128xf32, #tpu.memory_space<vmem>>, vector<1x128xf32>
    %c0_33 = arith.constant 0 : index
    %c0_34 = arith.constant 0 : index
    %79 = vector.load %arg10[%c0_33, %c0_34] : memref<1x128xf32, #tpu.memory_space<vmem>>, vector<1x128xf32>
    %cst_35 = arith.constant dense<0.000000e+00> : vector<1x128xf32>
    %80 = tpu.matmul %13, %77, %cst_35 {dimension_numbers = #tpu.dot_dimension_numbers<[1], [0], [0], [1], [0, 0, 1, 1], [], []>} : vector<1x512xf32>, vector<512x128xf32>, vector<1x128xf32> -> vector<1x128xf32>
    %81 = arith.mulf %77, %77 : vector<512x128xf32>
    %cst_36 = arith.constant dense<0.000000e+00> : vector<1x128xf32>
    %82 = tpu.matmul %13, %81, %cst_36 {dimension_numbers = #tpu.dot_dimension_numbers<[1], [0], [0], [1], [0, 0, 1, 1], [], []>} : vector<1x512xf32>, vector<512x128xf32>, vector<1x128xf32> -> vector<1x128xf32>
    %83 = vector.broadcast %5 : vector<1x1xf32> to vector<1x128xf32>
    %84 = arith.mulf %80, %83 : vector<1x128xf32>
    %85 = vector.broadcast %5 : vector<1x1xf32> to vector<1x128xf32>
    %86 = arith.mulf %82, %85 : vector<1x128xf32>
    %87 = arith.mulf %84, %84 : vector<1x128xf32>
    %88 = arith.subf %86, %87 : vector<1x128xf32>
    %cst_37 = arith.constant 0.000000e+00 : f32
    %89 = vector.broadcast %cst_37 : f32 to vector<1x128xf32>
    %90 = arith.maximumf %88, %89 : vector<1x128xf32>
    %91 = vector.broadcast %84 : vector<1x128xf32> to vector<512x128xf32>
    %92 = arith.subf %77, %91 : vector<512x128xf32>
    %93 = vector.broadcast %78 : vector<1x128xf32> to vector<512x128xf32>
    %94 = arith.mulf %93, %92 : vector<512x128xf32>
    %cst_38 = arith.constant 9.99999974E-6 : f32
    %95 = vector.broadcast %cst_38 : f32 to vector<1x128xf32>
    %96 = arith.addf %90, %95 : vector<1x128xf32>
    %97 = math.rsqrt %96 : vector<1x128xf32>
    %98 = vector.broadcast %97 : vector<1x128xf32> to vector<512x128xf32>
    %99 = arith.mulf %94, %98 : vector<512x128xf32>
    %100 = vector.broadcast %79 : vector<1x128xf32> to vector<512x128xf32>
    %101 = arith.addf %99, %100 : vector<512x128xf32>
    %cst_39 = arith.constant 0.000000e+00 : f32
    %102 = vector.broadcast %cst_39 : f32 to vector<512x128xf32>
    %103 = arith.maximumf %101, %102 : vector<512x128xf32>
    %c0_40 = arith.constant 0 : index
    %c0_41 = arith.constant 0 : index
    %104 = vector.load %arg11[%c0_40, %c0_41] : memref<128x64xf32, #tpu.memory_space<vmem>>, vector<128x64xf32>
    %cst_42 = arith.constant dense<0.000000e+00> : vector<512x64xf32>
    %105 = tpu.matmul %103, %104, %cst_42 {dimension_numbers = #tpu.dot_dimension_numbers<[1], [0], [0], [1], [0, 0, 1, 1], [], []>} : vector<512x128xf32>, vector<128x64xf32>, vector<512x64xf32> -> vector<512x64xf32>
    %c0_43 = arith.constant 0 : index
    %c0_44 = arith.constant 0 : index
    %106 = vector.load %arg12[%c0_43, %c0_44] : memref<1x64xf32, #tpu.memory_space<vmem>>, vector<1x64xf32>
    %c0_45 = arith.constant 0 : index
    %c0_46 = arith.constant 0 : index
    %107 = vector.load %arg13[%c0_45, %c0_46] : memref<1x64xf32, #tpu.memory_space<vmem>>, vector<1x64xf32>
    %cst_47 = arith.constant dense<0.000000e+00> : vector<1x64xf32>
    %108 = tpu.matmul %13, %105, %cst_47 {dimension_numbers = #tpu.dot_dimension_numbers<[1], [0], [0], [1], [0, 0, 1, 1], [], []>} : vector<1x512xf32>, vector<512x64xf32>, vector<1x64xf32> -> vector<1x64xf32>
    %109 = arith.mulf %105, %105 : vector<512x64xf32>
    %cst_48 = arith.constant dense<0.000000e+00> : vector<1x64xf32>
    %110 = tpu.matmul %13, %109, %cst_48 {dimension_numbers = #tpu.dot_dimension_numbers<[1], [0], [0], [1], [0, 0, 1, 1], [], []>} : vector<1x512xf32>, vector<512x64xf32>, vector<1x64xf32> -> vector<1x64xf32>
    %111 = vector.broadcast %5 : vector<1x1xf32> to vector<1x64xf32>
    %112 = arith.mulf %108, %111 : vector<1x64xf32>
    %113 = vector.broadcast %5 : vector<1x1xf32> to vector<1x64xf32>
    %114 = arith.mulf %110, %113 : vector<1x64xf32>
    %115 = arith.mulf %112, %112 : vector<1x64xf32>
    %116 = arith.subf %114, %115 : vector<1x64xf32>
    %cst_49 = arith.constant 0.000000e+00 : f32
    %117 = vector.broadcast %cst_49 : f32 to vector<1x64xf32>
    %118 = arith.maximumf %116, %117 : vector<1x64xf32>
    %119 = vector.broadcast %112 : vector<1x64xf32> to vector<512x64xf32>
    %120 = arith.subf %105, %119 : vector<512x64xf32>
    %121 = vector.broadcast %106 : vector<1x64xf32> to vector<512x64xf32>
    %122 = arith.mulf %121, %120 : vector<512x64xf32>
    %cst_50 = arith.constant 9.99999974E-6 : f32
    %123 = vector.broadcast %cst_50 : f32 to vector<1x64xf32>
    %124 = arith.addf %118, %123 : vector<1x64xf32>
    %125 = math.rsqrt %124 : vector<1x64xf32>
    %126 = vector.broadcast %125 : vector<1x64xf32> to vector<512x64xf32>
    %127 = arith.mulf %122, %126 : vector<512x64xf32>
    %128 = vector.broadcast %107 : vector<1x64xf32> to vector<512x64xf32>
    %129 = arith.addf %127, %128 : vector<512x64xf32>
    %cst_51 = arith.constant 0.000000e+00 : f32
    %130 = vector.broadcast %cst_51 : f32 to vector<512x64xf32>
    %131 = arith.maximumf %129, %130 : vector<512x64xf32>
    %132 = vector.shape_cast %131 : vector<512x64xf32> to vector<16x32x64xf32>
    %cst_52 = arith.constant dense<0xFF800000> : vector<16x64xf32>
    %133 = vector.multi_reduction <maximumf>, %132, %cst_52 [1] : vector<16x32x64xf32> to vector<16x64xf32>
    %c0_53 = arith.constant 0 : index
    %c0_54 = arith.constant 0 : index
    %134 = vector.load %arg14[%c0_53, %c0_54] : memref<64x256xf32, #tpu.memory_space<vmem>>, vector<64x256xf32>
    %cst_55 = arith.constant dense<0.000000e+00> : vector<16x256xf32>
    %135 = tpu.matmul %133, %134, %cst_55 {dimension_numbers = #tpu.dot_dimension_numbers<[1], [0], [0], [1], [0, 0, 1, 1], [], []>} : vector<16x64xf32>, vector<64x256xf32>, vector<16x256xf32> -> vector<16x256xf32>
    %c0_56 = arith.constant 0 : index
    %c0_57 = arith.constant 0 : index
    %136 = vector.load %arg15[%c0_56, %c0_57] : memref<1x256xf32, #tpu.memory_space<vmem>>, vector<1x256xf32>
    %137 = vector.broadcast %136 : vector<1x256xf32> to vector<16x256xf32>
    %138 = arith.addf %135, %137 : vector<16x256xf32>
    %c0_58 = arith.constant 0 : index
    %c0_59 = arith.constant 0 : index
    %139 = vector.load %arg16[%c0_58, %c0_59] : memref<1x256xf32, #tpu.memory_space<vmem>>, vector<1x256xf32>
    %c0_60 = arith.constant 0 : index
    %c0_61 = arith.constant 0 : index
    %140 = vector.load %arg17[%c0_60, %c0_61] : memref<1x256xf32, #tpu.memory_space<vmem>>, vector<1x256xf32>
    %cst_62 = arith.constant dense<0.000000e+00> : vector<1x256xf32>
    %141 = tpu.matmul %18, %138, %cst_62 {dimension_numbers = #tpu.dot_dimension_numbers<[1], [0], [0], [1], [0, 0, 1, 1], [], []>} : vector<1x16xf32>, vector<16x256xf32>, vector<1x256xf32> -> vector<1x256xf32>
    %142 = arith.mulf %138, %138 : vector<16x256xf32>
    %cst_63 = arith.constant dense<0.000000e+00> : vector<1x256xf32>
    %143 = tpu.matmul %18, %142, %cst_63 {dimension_numbers = #tpu.dot_dimension_numbers<[1], [0], [0], [1], [0, 0, 1, 1], [], []>} : vector<1x16xf32>, vector<16x256xf32>, vector<1x256xf32> -> vector<1x256xf32>
    %144 = vector.broadcast %8 : vector<1x1xf32> to vector<1x256xf32>
    %145 = arith.mulf %141, %144 : vector<1x256xf32>
    %146 = vector.broadcast %8 : vector<1x1xf32> to vector<1x256xf32>
    %147 = arith.mulf %143, %146 : vector<1x256xf32>
    %148 = arith.mulf %145, %145 : vector<1x256xf32>
    %149 = arith.subf %147, %148 : vector<1x256xf32>
    %cst_64 = arith.constant 0.000000e+00 : f32
    %150 = vector.broadcast %cst_64 : f32 to vector<1x256xf32>
    %151 = arith.maximumf %149, %150 : vector<1x256xf32>
    %152 = vector.broadcast %145 : vector<1x256xf32> to vector<16x256xf32>
    %153 = arith.subf %138, %152 : vector<16x256xf32>
    %154 = vector.broadcast %139 : vector<1x256xf32> to vector<16x256xf32>
    %155 = arith.mulf %154, %153 : vector<16x256xf32>
    %cst_65 = arith.constant 9.99999974E-6 : f32
    %156 = vector.broadcast %cst_65 : f32 to vector<1x256xf32>
    %157 = arith.addf %151, %156 : vector<1x256xf32>
    %158 = math.rsqrt %157 : vector<1x256xf32>
    %159 = vector.broadcast %158 : vector<1x256xf32> to vector<16x256xf32>
    %160 = arith.mulf %155, %159 : vector<16x256xf32>
    %161 = vector.broadcast %140 : vector<1x256xf32> to vector<16x256xf32>
    %162 = arith.addf %160, %161 : vector<16x256xf32>
    %cst_66 = arith.constant 0.000000e+00 : f32
    %163 = vector.broadcast %cst_66 : f32 to vector<16x256xf32>
    %164 = arith.maximumf %162, %163 : vector<16x256xf32>
    %c0_67 = arith.constant 0 : index
    %c0_68 = arith.constant 0 : index
    %165 = vector.load %arg18[%c0_67, %c0_68] : memref<256x128xf32, #tpu.memory_space<vmem>>, vector<256x128xf32>
    %cst_69 = arith.constant dense<0.000000e+00> : vector<16x128xf32>
    %166 = tpu.matmul %164, %165, %cst_69 {dimension_numbers = #tpu.dot_dimension_numbers<[1], [0], [0], [1], [0, 0, 1, 1], [], []>} : vector<16x256xf32>, vector<256x128xf32>, vector<16x128xf32> -> vector<16x128xf32>
    %c0_70 = arith.constant 0 : index
    %c0_71 = arith.constant 0 : index
    %167 = vector.load %arg19[%c0_70, %c0_71] : memref<1x128xf32, #tpu.memory_space<vmem>>, vector<1x128xf32>
    %168 = vector.broadcast %167 : vector<1x128xf32> to vector<16x128xf32>
    %169 = arith.addf %166, %168 : vector<16x128xf32>
    %c0_72 = arith.constant 0 : index
    %c0_73 = arith.constant 0 : index
    %170 = vector.load %arg20[%c0_72, %c0_73] : memref<16x128xf32, #tpu.memory_space<vmem>>, vector<16x128xf32>
    tpu.vector_store %arg20[%c0_72, %c0_73], %169 {strides = array<i32>} : memref<16x128xf32, #tpu.memory_space<vmem>>, vector<16x128xf32>,
    return
  }
}

</mosaic_0001>

<bundles_post_ra>
// kernel: tpu_custom_call.1
= control target key start
LH: loop header
LB: loop body
LE: loop exit
PB: predicated region body
PF: predicated region fallthrough
CT: control target
= control target key end

     0   :  { %s15036_s0 = inlined_call_operand.<no memory space> [shape: s32[1,1], index: 0, kind: input, shape index: {}]   ;;  %s15037_s1 = inlined_call_operand.vmem [shape: f32[512,8], index: 1, kind: input, shape index: {}]   ;;  %s15038_s2 = inlined_call_operand.vmem [shape: f32[8,64], index: 2, kind: input, shape index: {}]   ;;  %s15039_s3 = inlined_call_operand.vmem [shape: f32[1,64], index: 3, kind: input, shape index: {}]   ;;  %s15040_s4 = inlined_call_operand.vmem [shape: f32[1,64], index: 4, kind: input, shape index: {}]   ;;  %s15041_s5 = inlined_call_operand.vmem [shape: f32[64,64], index: 5, kind: input, shape index: {}]   ;;  %s15042_s6 = inlined_call_operand.vmem [shape: f32[1,64], index: 6, kind: input, shape index: {}]   ;;  %s15043_s7 = inlined_call_operand.vmem [shape: f32[1,64], index: 7, kind: input, shape index: {}]   ;;  %s15044_s8 = inlined_call_operand.vmem [shape: f32[64,128], index: 8, kind: input, shape index: {}]   ;;  %s15045_s9 = inlined_call_operand.vmem [shape: f32[1,128], index: 9, kind: input, shape index: {}]   ;;  %s15046_s10 = inlined_call_operand.vmem [shape: f32[1,128], index: 10, kind: input, shape index: {}]   ;;  %s15047_s11 = inlined_call_operand.vmem [shape: f32[128,64], index: 11, kind: input, shape index: {}]   ;;  %s15048_s12 = inlined_call_operand.vmem [shape: f32[1,64], index: 12, kind: input, shape index: {}]   ;;  %s15049_s13 = inlined_call_operand.vmem [shape: f32[1,64], index: 13, kind: input, shape index: {}]   ;;  %s15050_s14 = inlined_call_operand.vmem [shape: f32[64,256], index: 14, kind: input, shape index: {}]   ;;  %s15051_s15 = inlined_call_operand.vmem [shape: f32[1,256], index: 15, kind: input, shape index: {}]   ;;  %s15052_s16 = inlined_call_operand.vmem [shape: f32[1,256], index: 16, kind: input, shape index: {}]   ;;  %s15053_s17 = inlined_call_operand.vmem [shape: f32[1,256], index: 17, kind: input, shape index: {}]   ;;  %s15054_s18 = inlined_call_operand.vmem [shape: f32[256,128], index: 18, kind: input, shape index: {}]   ;;  %s15055_s19 = inlined_call_operand.vmem [shape: f32[1,128], index: 19, kind: input, shape index: {}]   ;;  %s15056_s20 = inlined_call_operand.hbm [shape: f32[16,128], index: 20, kind: output, shape index: {}]  }
   0x1   :  { %15556 = sst [smem:[#allocation86_spill]] %s15036_s0 }
   0x2   :  { %15557 = sst [smem:[#allocation87_spill]] %s15037_s1  ;;  %s15561_s23 = sld [smem:[#allocation86_spill]] }
   0x3   :  { %15558 = sst [smem:[#allocation88_spill]] %s15038_s2 }
   0x4   :  { %15559 = sst [smem:[#allocation89_spill]] %s15039_s3 }
   0x5   :  { %15560 = sst [smem:[#allocation90_spill]] %s15040_s4 }
   0x8   :  { %v25_v0 = vstv %s15561_s23 }
   0x9   :  { %26 = vst [vmem:[#allocation2] sm:$0x1] %v25_v0 }
   0xa   :  { %s15562_s25 = sld [smem:[#allocation88_spill]]  ;;  %s15563_s27 = sld [smem:[#allocation87_spill]]  ;;  %vm175_vm0 = vcmask 64512   ;;  %v8084_v5 = vmov 0  }
   0xb   :  { %8042 = vset.pattern.permute.xlu0 %v8084_v5  ;;  %8043 = vset.pattern.permute.xlu1 %v8084_v5 }
  0x10   :  { %v174_v1 = vld [vmem:[%s15562_s25] sm:$0xff]  ;;  %v111_v3 = vld [vmem:[%s15563_s27 + $0x8] sm:$0xff]  ;;  %v112_v4 = vld [vmem:[%s15563_s27 + $0x10] sm:$0xff] }
  0x11   :  { %v110_v2 = vld [vmem:[%s15563_s27] sm:$0xff]  ;;  %6954 = vmatprep.subr.mxu0 %v174_v1  ;;  %v113_v6 = vld [vmem:[%s15563_s27 + $0x18] sm:$0xff]  ;;  %v115_v8 = vld [vmem:[%s15563_s27 + $0x28] sm:$0xff] }
  0x12   :  { %6956 = vmatprep.mubr.msk.f32.mxu0 %vm175_vm0, %v110_v2  ;;  %6955 = vmatpush3.msra.mxu0 %v174_v1  ;;  %v114_v7 = vld [vmem:[%s15563_s27 + $0x20] sm:$0xff]  ;;  %v116_v9 = vld [vmem:[%s15563_s27 + $0x30] sm:$0xff]  ;;  %v117_v10 = vld [vmem:[%s15563_s27 + $0x38] sm:$0xff] }
  0x13   :  { %6957 = vmatmul.mubr.msk.f32.vlgmr.msra.gmra.mrb[0].mxu0 %vm175_vm0, %v111_v3  ;;  %v118_v11 = vld [vmem:[%s15563_s27 + $0x40] sm:$0xff]  ;;  %v119_v12 = vld [vmem:[%s15563_s27 + $0x48] sm:$0xff]  ;;  %v120_v13 = vld [vmem:[%s15563_s27 + $0x50] sm:$0xff] }
  0x14   :  { %6959 = vmatprep.mubr.msk.f32.mxu0 %vm175_vm0, %v112_v4  ;;  %v121_v14 = vld [vmem:[%s15563_s27 + $0x58] sm:$0xff]  ;;  %v122_v15 = vld [vmem:[%s15563_s27 + $0x60] sm:$0xff] }
  0x15   :  { %v68_v16 = vld [vmem:[#allocation2] sm:$0x1] }
  0x16   :  { %v69_v17 = vmul.u32 32, %v68_v16  ;;  %v73_v18 = vcvt.s32.f32 %v68_v16  ;;  %101 = vperm.xlu1 %8043, %v68_v16  }
  0x17   :  { %6960 = vmatmul.mubr.msk.f32.gmra.mrb[2].mxu0 %vm175_vm0, %v113_v6 }
  0x18   :  { %6962 = vmatprep.mubr.msk.f32.mxu0 %vm175_vm0, %v114_v7 }
  0x1b   :  { %6963 = vmatmul.mubr.msk.f32.gmra.mrb[4].mxu0 %vm175_vm0, %v115_v8 }
  0x1c   :  { %6965 = vmatprep.mubr.msk.f32.mxu0 %vm175_vm0, %v116_v9 }
  0x1f   :  { %6966 = vmatmul.mubr.msk.f32.gmra.mrb[6].mxu0 %vm175_vm0, %v117_v10 }
  0x20   :  { %6968 = vmatprep.mubr.msk.f32.mxu0 %vm175_vm0, %v118_v11 }
  0x23   :  { %6969 = vmatmul.mubr.msk.f32.gmra.mrb[8].mxu0 %vm175_vm0, %v119_v12 }
  0x24   :  { %6971 = vmatprep.mubr.msk.f32.mxu0 %vm175_vm0, %v120_v13 }
  0x25   :  { %27 = vsyncpa [#allocation4], 0  ;;  %v123_v19 = vld [vmem:[%s15563_s27 + $0x68] sm:$0xff]  ;;  %8044 = vrcp.f32 %v73_v18  ;;  %82 = vperm.xlu0 %8042, %v69_v17   ;;  %v70_v20 = vcvt.s32.f32 %v69_v17  ;;  %v124_v21 = vld [vmem:[%s15563_s27 + $0x70] sm:$0xff]  ;;  %v76_v9 = vlaneseq  ;;  %s15759_s4 = sld [smem:[#allocation89_spill]]  ;;  %s15831_s0 = sld [smem:[#allocation90_spill]] }
  0x26   :  { %v125_v22 = vld [vmem:[%s15563_s27 + $0x78] sm:$0xff]  ;;  %v126_v23 = vld [vmem:[%s15563_s27 + $0x80] sm:$0xff]  ;;  %v127_v24 = vld [vmem:[%s15563_s27 + $0x88] sm:$0xff]  ;;  %vm1463_vm5 = vcmask 523264   ;;  %vm5358_vm6 = vcmask 1041409   ;;  %vm5360_vm7 = vcmask 1042434  }
  0x27   :  { %6972 = vmatmul.mubr.msk.f32.gmra.mrb[10].mxu0 %vm175_vm0, %v121_v14  ;;  %8046 = vrcp.f32 %v70_v20  ;;  %v128_v25 = vld [vmem:[%s15563_s27 + $0x90] sm:$0xff]  ;;  %v129_v28 = vld [vmem:[%s15563_s27 + $0x98] sm:$0xff]  ;;  %v130_v29 = vld [vmem:[%s15563_s27 + $0xa0] sm:$0xff]  ;;  %v8457_v10 = vshrl.u32 %v76_v9, 7  ;;  %v8459_v11 = vand.u32 127, %v76_v9  ;;  %v15569_v20 = vmov 0 }
  0x28   :  { %6974 = vmatprep.mubr.msk.f32.mxu0 %vm175_vm0, %v122_v15  ;;  %v131_v30 = vld [vmem:[%s15563_s27 + $0xa8] sm:$0xff]  ;;  %v132_v31 = vld [vmem:[%s15563_s27 + $0xb0] sm:$0xff]  ;;  %v133_v32 = vld [vmem:[%s15563_s27 + $0xb8] sm:$0xff]  ;;  %vm5362_vm8 = vcmask 1043459   ;;  %vm5364_vm9 = vcmask 1044484   ;;  %vm5366_vm10 = vcmask 1045509  }
  0x29   :  { %v134_v33 = vld [vmem:[%s15563_s27 + $0xc0] sm:$0xff]  ;;  %v135_v34 = vld [vmem:[%s15563_s27 + $0xc8] sm:$0xff]  ;;  %v136_v35 = vld [vmem:[%s15563_s27 + $0xd0] sm:$0xff]  ;;  %15564 = vst [vmem:[#allocation6_spill] sm:$0xff] %v8457_v10  ;;  %v8462_v12 = vsub.s32 0, %v8457_v10  ;;  %v78_v14 = vadd.s32 128, %v8459_v11 }
  0x2a   :  { %v137_v36 = vld [vmem:[%s15563_s27 + $0xd8] sm:$0xff]  ;;  %v138_v37 = vld [vmem:[%s15563_s27 + $0xe0] sm:$0xff]  ;;  %v139_v38 = vld [vmem:[%s15563_s27 + $0xe8] sm:$0xff]  ;;  %15565 = vst [vmem:[#allocation7_spill] sm:$0xff] %v8459_v11  ;;  %v80_v15 = vadd.s32 384, %v8459_v11  ;;  %vm5368_vm11 = vcmask 1046534  }
  0x2b   :  { %6975 = vmatmul.mubr.msk.f32.gmra.mrb[12].mxu0 %vm175_vm0, %v123_v19  ;;  %v140_v39 = vld [vmem:[%s15563_s27 + $0xf0] sm:$0xff]  ;;  %v141_v40 = vld [vmem:[%s15563_s27 + $0xf8] sm:$0xff]  ;;  %v142_v41 = vld [vmem:[%s15563_s27 + $0x100] sm:$0xff]  ;;  %15566 = vst [vmem:[#allocation8_spill] sm:$0xff] %v8462_v12  ;;  %vm5370_vm12 = vcmask 1047559   ;;  %vm5462_vm14 = vcmask 130048  }
  0x2c   :  { %6977 = vmatprep.mubr.msk.f32.mxu0 %vm175_vm0, %v124_v21  ;;  %v143_v42 = vld [vmem:[%s15563_s27 + $0x108] sm:$0xff]  ;;  %v144_v43 = vld [vmem:[%s15563_s27 + $0x110] sm:$0xff]  ;;  %v145_v44 = vld [vmem:[%s15563_s27 + $0x118] sm:$0xff]  ;;  %s8087_s23 = smov [#allocation3]  }
  0x2d   :  { %v146_v45 = vld [vmem:[%s15563_s27 + $0x120] sm:$0xff]  ;;  %v147_v46 = vld [vmem:[%s15563_s27 + $0x128] sm:$0xff]  ;;  %v148_v47 = vld [vmem:[%s15563_s27 + $0x130] sm:$0xff]  ;;  %s5814_s24 = sshll.u32 %s8087_s23, 4  ;;  %s5815_s24 = int_to_ptr.vmem [resolvable:$true] %s5814_s24 }
  0x2e   :  { %v149_v48 = vld [vmem:[%s15563_s27 + $0x138] sm:$0xff]  ;;  %v150_v49 = vld [vmem:[%s15563_s27 + $0x140] sm:$0xff]  ;;  %v151_v50 = vld [vmem:[%s15563_s27 + $0x148] sm:$0xff]  ;;  %s8060_s2 = scalar_lea.vmem %s5815_s24, 256  ;;  %p8065_p1 = scmp.lt.s32.totalorder %s5815_s24, %s5815_s24 }
  0x2f   :  { %6978 = vmatmul.mubr.msk.f32.gmra.mrb[14].mxu0 %vm175_vm0, %v125_v22  ;;  %v8045_v26 = vpop.eup %8044  ;;  %v152_v51 = vld [vmem:[%s15563_s27 + $0x150] sm:$0xff]  ;;  %v153_v52 = vld [vmem:[%s15563_s27 + $0x158] sm:$0xff]  ;;  %v154_v53 = vld [vmem:[%s15563_s27 + $0x160] sm:$0xff]  ;;  %p8061_p0 = scmp.ne.s32.totalorder %s5815_s24, %s8060_s2  ;;  %p8066_p2 = scmp.lt.s32.totalorder %s8060_s2, %s8060_s2 }
  0x30   :  { %6980 = vmatprep.mubr.msk.f32.mxu0 %vm175_vm0, %v126_v23  ;;  %5614 = vperm.xlu1 %8043, %v8045_v26   ;;  %v155_v54 = vld [vmem:[%s15563_s27 + $0x168] sm:$0xff]  ;;  %v156_v55 = vld [vmem:[%s15563_s27 + $0x170] sm:$0xff]  ;;  %v157_v56 = vld [vmem:[%s15563_s27 + $0x178] sm:$0xff]  ;;  %v15572_v23 = vmov 0 }
  0x31   :  { %v8047_v27 = vpop.eup %8046  ;;  %v158_v57 = vld [vmem:[%s15563_s27 + $0x180] sm:$0xff]  ;;  %v159_v58 = vld [vmem:[%s15563_s27 + $0x188] sm:$0xff]  ;;  %v160_v59 = vld [vmem:[%s15563_s27 + $0x190] sm:$0xff]  ;;  %p8067_p3 = por %p8066_p2, %p8065_p1 }
  0x32   :  { %1101 = vperm.xlu0 %8042, %v8047_v27   ;;  %v161_v60 = vld [vmem:[%s15563_s27 + $0x198] sm:$0xff]  ;;  %v162_v61 = vld [vmem:[%s15563_s27 + $0x1a0] sm:$0xff]  ;;  %v163_v62 = vld [vmem:[%s15563_s27 + $0x1a8] sm:$0xff] }
  0x33   :  { %6981 = vmatmul.mubr.msk.f32.gmra.mrb[16].mxu0 %vm175_vm0, %v127_v24  ;;  %v164_v63 = vld [vmem:[%s15563_s27 + $0x1b0] sm:$0xff]  ;;  %v165_v0 = vld [vmem:[%s15563_s27 + $0x1b8] sm:$0xff]  ;;  %v166_v1 = vld [vmem:[%s15563_s27 + $0x1c0] sm:$0xff]  ;;  %p8068_p4 = pnand %p8067_p3, %p8061_p0 }
  0x34   :  { %6983 = vmatprep.mubr.msk.f32.mxu0 %vm175_vm0, %v128_v25  ;;  %v167_v2 = vld [vmem:[%s15563_s27 + $0x1c8] sm:$0xff]  ;;  %v168_v3 = vld [vmem:[%s15563_s27 + $0x1d0] sm:$0xff]  ;;  %v169_v4 = vld [vmem:[%s15563_s27 + $0x1d8] sm:$0xff]  ;;  %v15058_v25 = vmov 1.0  }
  0x35   :  { %v170_v5 = vld [vmem:[%s15563_s27 + $0x1e0] sm:$0xff]  ;;  %v171_v6 = vld [vmem:[%s15563_s27 + $0x1e8] sm:$0xff]  ;;  %v172_v7 = vld [vmem:[%s15563_s27 + $0x1f0] sm:$0xff] }
  0x36   :  { %v173_v8 = vld [vmem:[%s15563_s27 + $0x1f8] sm:$0xff] }
  0x37   :  { %6984 = vmatmul.mubr.msk.f32.gmra.mrb[18].mxu0 %vm175_vm0, %v129_v28 }
  0x38   :  { %6986 = vmatprep.mubr.msk.f32.mxu0 %vm175_vm0, %v130_v29 }
  0x3b   :  { %6987 = vmatmul.mubr.msk.f32.gmra.mrb[20].mxu0 %vm175_vm0, %v131_v30 }
  0x3c   :  { %6989 = vmatprep.mubr.msk.f32.mxu0 %vm175_vm0, %v132_v31 }
  0x3f   :  { %6990 = vmatmul.mubr.msk.f32.gmra.mrb[22].mxu0 %vm175_vm0, %v133_v32 }
  0x40   :  { %6992 = vmatprep.mubr.msk.f32.mxu0 %vm175_vm0, %v134_v33 }
  0x43   :  { %6993 = vmatmul.mubr.msk.f32.gmra.mrb[24].mxu0 %vm175_vm0, %v135_v34 }
  0x44   :  { %6995 = vmatprep.mubr.msk.f32.mxu0 %vm175_vm0, %v136_v35 }
  0x47   :  { %6996 = vmatmul.mubr.msk.f32.gmra.mrb[26].mxu0 %vm175_vm0, %v137_v36 }
  0x48   :  { %6998 = vmatprep.mubr.msk.f32.mxu0 %vm175_vm0, %v138_v37 }
  0x4b   :  { %6999 = vmatmul.mubr.msk.f32.gmra.mrb[28].mxu0 %vm175_vm0, %v139_v38 }
  0x4c   :  { %7001 = vmatprep.mubr.msk.f32.mxu0 %vm175_vm0, %v140_v39 }
  0x4f   :  { %7002 = vmatmul.mubr.msk.f32.gmra.mrb[30].mxu0 %vm175_vm0, %v141_v40 }
  0x50   :  { %7004 = vmatprep.mubr.msk.f32.mxu0 %vm175_vm0, %v142_v41 }
  0x53   :  { %7005 = vmatmul.mubr.msk.f32.gmra.mrb[32].mxu0 %vm175_vm0, %v143_v42 }
  0x54   :  { %7007 = vmatprep.mubr.msk.f32.mxu0 %vm175_vm0, %v144_v43 }
  0x57   :  { %7008 = vmatmul.mubr.msk.f32.gmra.mrb[34].mxu0 %vm175_vm0, %v145_v44 }
  0x58   :  { %7010 = vmatprep.mubr.msk.f32.mxu0 %vm175_vm0, %v146_v45 }
  0x5b   :  { %7011 = vmatmul.mubr.msk.f32.gmra.mrb[36].mxu0 %vm175_vm0, %v147_v46 }
  0x5c   :  { %7013 = vmatprep.mubr.msk.f32.mxu0 %vm175_vm0, %v148_v47 }
  0x5f   :  { %7014 = vmatmul.mubr.msk.f32.gmra.mrb[38].mxu0 %vm175_vm0, %v149_v48 }
  0x60   :  { %7016 = vmatprep.mubr.msk.f32.mxu0 %vm175_vm0, %v150_v49 }
  0x63   :  { %7017 = vmatmul.mubr.msk.f32.gmra.mrb[40].mxu0 %vm175_vm0, %v151_v50 }
  0x64   :  { %7019 = vmatprep.mubr.msk.f32.mxu0 %vm175_vm0, %v152_v51 }
  0x67   :  { %7020 = vmatmul.mubr.msk.f32.gmra.mrb[42].mxu0 %vm175_vm0, %v153_v52 }
  0x68   :  { %7022 = vmatprep.mubr.msk.f32.mxu0 %vm175_vm0, %v154_v53 }
  0x6b   :  { %7023 = vmatmul.mubr.msk.f32.gmra.mrb[44].mxu0 %vm175_vm0, %v155_v54 }
  0x6c   :  { %7025 = vmatprep.mubr.msk.f32.mxu0 %vm175_vm0, %v156_v55 }
  0x6f   :  { %7026 = vmatmul.mubr.msk.f32.gmra.mrb[46].mxu0 %vm175_vm0, %v157_v56 }
  0x70   :  { %7028 = vmatprep.mubr.msk.f32.mxu0 %vm175_vm0, %v158_v57 }
  0x73   :  { %7029 = vmatmul.mubr.msk.f32.gmra.mrb[48].mxu0 %vm175_vm0, %v159_v58 }
  0x74   :  { %7031 = vmatprep.mubr.msk.f32.mxu0 %vm175_vm0, %v160_v59 }
  0x77   :  { %7032 = vmatmul.mubr.msk.f32.gmra.mrb[50].mxu0 %vm175_vm0, %v161_v60 }
  0x78   :  { %7034 = vmatprep.mubr.msk.f32.mxu0 %vm175_vm0, %v162_v61 }
  0x7b   :  { %7035 = vmatmul.mubr.msk.f32.gmra.mrb[52].mxu0 %vm175_vm0, %v163_v62 }
  0x7c   :  { %7037 = vmatprep.mubr.msk.f32.mxu0 %vm175_vm0, %v164_v63 }
  0x7f   :  { %7038 = vmatmul.mubr.msk.f32.gmra.mrb[54].mxu0 %vm175_vm0, %v165_v0 }
  0x80   :  { %7040 = vmatprep.mubr.msk.f32.mxu0 %vm175_vm0, %v166_v1 }
  0x83   :  { %7041 = vmatmul.mubr.msk.f32.gmra.mrb[56].mxu0 %vm175_vm0, %v167_v2 }
  0x84   :  { %7043 = vmatprep.mubr.msk.f32.mxu0 %vm175_vm0, %v168_v3 }
  0x87   :  { %7044 = vmatmul.mubr.msk.f32.gmra.mrb[58].mxu0 %vm175_vm0, %v169_v4 }
  0x88   :  { %7046 = vmatprep.mubr.msk.f32.mxu0 %vm175_vm0, %v170_v5 }
  0x8b   :  { %7047 = vmatmul.mubr.msk.f32.gmra.mrb[60].mxu0 %vm175_vm0, %v171_v6 }
  0x8c   :  { %7049 = vmatprep.mubr.msk.f32.mxu0 %vm175_vm0, %v172_v7 }
  0x8f   :  { %7050 = vmatmul.mubr.msk.f32.gmra.mrb[62].mxu0 %vm175_vm0, %v173_v8 }
  0xa4   :  { %v83_v13 = vpop.permute.xlu0 %82 }
  0xa5   :  { %v8467_v16 = vrot.slane %v83_v13, %v8462_v12 }
  0xa7   :  { %vm8478_vm1 = vcmp.lt.s32.totalorder %v78_v14, %v8467_v16  ;;  %vm8489_vm2 = vcmp.lt.s32.totalorder %v80_v15, %v8467_v16  ;;  %vm8760_vm3 = vcmp.lt.s32.totalorder %v8459_v11, %v8467_v16 }
  0xa8   :  { %v15570_v20 = vsel %vm8478_vm1, 4294967295, %v15569_v20  ;;  %v15573_v23 = vsel %vm8489_vm2, 4294967295, %v15572_v23  ;;  %5894 = vmatprep.mubr.msk.f32.mxu0 %vm8478_vm1, %v15058_v25  ;;  %5896 = vmatprep.mubr.msk.f32.mxu1 %vm8489_vm2, %v15058_v25 }
  0xa9   :  { %15571 = vst [vmem:[#allocation11_spill] sm:$0xff] %v15570_v20  ;;  %15574 = vst [vmem:[#allocation12_spill] sm:$0xff] %v15573_v23 }
  0xe6   :  { %v8469_v17 = vpop.f32.mrb[0].mxu0 }
  0xe7   :  { %15567 = vst [vmem:[#allocation9_spill] sm:$0xff] %v8469_v17  ;;  %v8473_v18 = vmul.f32 %v8469_v17, %v8469_v17  ;;  %v8475_v19 = vpop.f32.mrb[1].mxu0 }
  0xe8   :  { %15568 = vst [vmem:[#allocation10_spill] sm:$0xff] %v8475_v19  ;;  %v8484_v21 = vmul.f32 %v8475_v19, %v8475_v19  ;;  %v7406_v22 = vpack.c.bf16 %v8469_v17, %v8475_v19 }
  0xea   :  { %v8493_v24 = vpop.f32.mrb[2].mxu0 }
  0xeb   :  { %15575 = vst [vmem:[#allocation13_spill] sm:$0xff] %v8493_v24  ;;  %v8505_v27 = vmul.f32 %v8493_v24, %v8493_v24  ;;  %v8507_v28 = vpop.f32.mrb[3].mxu0 }
  0xec   :  { %15576 = vst [vmem:[#allocation14_spill] sm:$0xff] %v8507_v28  ;;  %v8511_v29 = vmul.f32 %v8507_v28, %v8507_v28  ;;  %v7410_v30 = vpack.c.bf16 %v8493_v24, %v8507_v28 }
  0xee   :  { %v8515_v31 = vpop.f32.mrb[4].mxu0 }
  0xef   :  { %15577 = vst [vmem:[#allocation15_spill] sm:$0xff] %v8515_v31  ;;  %v8521_v33 = vmul.f32 %v8515_v31, %v8515_v31  ;;  %v8523_v34 = vpop.f32.mrb[5].mxu0 }
  0xf0   :  { %15578 = vst [vmem:[#allocation16_spill] sm:$0xff] %v8523_v34  ;;  %v8527_v35 = vmul.f32 %v8523_v34, %v8523_v34  ;;  %v7414_v36 = vpack.c.bf16 %v8515_v31, %v8523_v34 }
  0xf2   :  { %v8531_v37 = vpop.f32.mrb[6].mxu0 }
  0xf3   :  { %15579 = vst [vmem:[#allocation17_spill] sm:$0xff] %v8531_v37  ;;  %v8537_v39 = vmul.f32 %v8531_v37, %v8531_v37  ;;  %v8539_v40 = vpop.f32.mrb[7].mxu0 }
  0xf4   :  { %15580 = vst [vmem:[#allocation18_spill] sm:$0xff] %v8539_v40  ;;  %v7418_v41 = vpack.c.bf16 %v8531_v37, %v8539_v40  ;;  %v8545_v42 = vmul.f32 %v8539_v40, %v8539_v40 }
  0xf6   :  { %v8549_v44 = vpop.f32.mrb[8].mxu0 }
  0xf7   :  { %15581 = vst [vmem:[#allocation19_spill] sm:$0xff] %v8549_v44  ;;  %v8553_v45 = vmul.f32 %v8549_v44, %v8549_v44  ;;  %v8555_v46 = vpop.f32.mrb[9].mxu0 }
  0xf8   :  { %15582 = vst [vmem:[#allocation20_spill] sm:$0xff] %v8555_v46  ;;  %v7422_v47 = vpack.c.bf16 %v8549_v44, %v8555_v46  ;;  %v8561_v48 = vmul.f32 %v8555_v46, %v8555_v46 }
  0xfa   :  { %v8565_v50 = vpop.f32.mrb[10].mxu0 }
  0xfb   :  { %15583 = vst [vmem:[#allocation21_spill] sm:$0xff] %v8565_v50  ;;  %v8569_v51 = vmul.f32 %v8565_v50, %v8565_v50  ;;  %v8571_v52 = vpop.f32.mrb[11].mxu0 }
  0xfc   :  { %15584 = vst [vmem:[#allocation22_spill] sm:$0xff] %v8571_v52  ;;  %v8577_v54 = vmul.f32 %v8571_v52, %v8571_v52 }
  0xfe   :  { %v8581_v56 = vpop.f32.mrb[12].mxu0 }
  0xff   :  { %15585 = vst [vmem:[#allocation23_spill] sm:$0xff] %v8581_v56  ;;  %v8585_v57 = vmul.f32 %v8581_v56, %v8581_v56  ;;  %v8587_v58 = vpop.f32.mrb[13].mxu0 }
 0x100   :  { %15586 = vst [vmem:[#allocation24_spill] sm:$0xff] %v8587_v58  ;;  %v8593_v60 = vmul.f32 %v8587_v58, %v8587_v58 }
 0x102   :  { %v8597_v62 = vpop.f32.mrb[14].mxu0 }
 0x103   :  { %15587 = vst [vmem:[#allocation25_spill] sm:$0xff] %v8597_v62  ;;  %v8601_v63 = vmul.f32 %v8597_v62, %v8597_v62  ;;  %v8603_v0 = vpop.f32.mrb[15].mxu0 }
 0x104   :  { %15588 = vst [vmem:[#allocation26_spill] sm:$0xff] %v8603_v0  ;;  %v8609_v2 = vmul.f32 %v8603_v0, %v8603_v0 }
 0x106   :  { %v8613_v4 = vpop.f32.mrb[16].mxu0 }
 0x107   :  { %15589 = vst [vmem:[#allocation27_spill] sm:$0xff] %v8613_v4  ;;  %v8617_v5 = vmul.f32 %v8613_v4, %v8613_v4  ;;  %v8619_v6 = vpop.f32.mrb[17].mxu0 }
 0x108   :  { %15590 = vst [vmem:[#allocation28_spill] sm:$0xff] %v8619_v6  ;;  %v7404_v7 = vpack.c.bf16 %v8613_v4, %v8619_v6  ;;  %v8625_v8 = vmul.f32 %v8619_v6, %v8619_v6  ;;  %v15614_v4 = vmov 1.0  }
 0x10a   :  { %v8627_v9 = vpop.f32.mrb[18].mxu0  ;;  %7405 = vmatprep.subr.bf16.mxu0 %v7404_v7 }
 0x10b   :  { %15591 = vst [vmem:[#allocation29_spill] sm:$0xff] %v8627_v9  ;;  %v8633_v14 = vmul.f32 %v8627_v9, %v8627_v9  ;;  %v8635_v15 = vpop.f32.mrb[19].mxu0  ;;  %7407 = vmatpush3.bf16.msra.mxu0 %v7406_v22 }
 0x10c   :  { %15592 = vst [vmem:[#allocation30_spill] sm:$0xff] %v8635_v15  ;;  %v7408_v3 = vpack.c.bf16 %v8627_v9, %v8635_v15  ;;  %v8641_v61 = vmul.f32 %v8635_v15, %v8635_v15 }
 0x10e   :  { %v8643_v55 = vpop.f32.mrb[20].mxu0  ;;  %7409 = vmatprep.subr.bf16.mxu0 %v7408_v3 }
 0x10f   :  { %15593 = vst [vmem:[#allocation31_spill] sm:$0xff] %v8643_v55  ;;  %v8649_v49 = vmul.f32 %v8643_v55, %v8643_v55  ;;  %v8651_v43 = vpop.f32.mrb[21].mxu0  ;;  %7411 = vmatpush3.bf16.msra.mxu0 %v7410_v30 }
 0x110   :  { %15594 = vst [vmem:[#allocation32_spill] sm:$0xff] %v8651_v43  ;;  %v7412_v22 = vpack.c.bf16 %v8643_v55, %v8651_v43  ;;  %v8657_v38 = vmul.f32 %v8651_v43, %v8651_v43 }
 0x112   :  { %v8659_v32 = vpop.f32.mrb[22].mxu0  ;;  %7413 = vmatprep.subr.bf16.mxu0 %v7412_v22 }
 0x113   :  { %15595 = vst [vmem:[#allocation33_spill] sm:$0xff] %v8659_v32  ;;  %v8665_v7 = vmul.f32 %v8659_v32, %v8659_v32  ;;  %v8667_v26 = vpop.f32.mrb[23].mxu0  ;;  %7415 = vmatpush3.bf16.msra.mxu0 %v7414_v36 }
 0x114   :  { %15596 = vst [vmem:[#allocation34_spill] sm:$0xff] %v8667_v26  ;;  %v7416_v30 = vpack.c.bf16 %v8659_v32, %v8667_v26  ;;  %v8673_v13 = vmul.f32 %v8667_v26, %v8667_v26 }
 0x116   :  { %v8675_v25 = vpop.f32.mrb[24].mxu0  ;;  %7417 = vmatprep.subr.bf16.mxu0 %v7416_v30 }
 0x117   :  { %15597 = vst [vmem:[#allocation35_spill] sm:$0xff] %v8675_v25  ;;  %v8681_v3 = vmul.f32 %v8675_v25, %v8675_v25  ;;  %v8683_v1 = vpop.f32.mrb[25].mxu0  ;;  %7419 = vmatpush3.bf16.msra.mxu0 %v7418_v41 }
 0x118   :  { %15598 = vst [vmem:[#allocation36_spill] sm:$0xff] %v8683_v1  ;;  %v7420_v36 = vpack.c.bf16 %v8675_v25, %v8683_v1  ;;  %v8689_v59 = vmul.f32 %v8683_v1, %v8683_v1 }
 0x11a   :  { %v8691_v53 = vpop.f32.mrb[26].mxu0  ;;  %7421 = vmatprep.subr.bf16.mxu0 %v7420_v36 }
 0x11b   :  { %15599 = vst [vmem:[#allocation37_spill] sm:$0xff] %v8691_v53  ;;  %v8697_v22 = vmul.f32 %v8691_v53, %v8691_v53  ;;  %v8699_v10 = vpop.f32.mrb[27].mxu0  ;;  %7423 = vmatpush3.bf16.msra.mxu0 %v7422_v47  ;;  %v15603_v47 = vpack.c.bf16 %v8565_v50, %v8571_v52 }
 0x11c   :  { %15600 = vst [vmem:[#allocation38_spill] sm:$0xff] %v8699_v10  ;;  %v7424_v41 = vpack.c.bf16 %v8691_v53, %v8699_v10  ;;  %v8705_v25 = vmul.f32 %v8699_v10, %v8699_v10 }
 0x11e   :  { %v8707_v1 = vpop.f32.mrb[28].mxu0  ;;  %7425 = vmatprep.subr.bf16.mxu0 %v7424_v41 }
 0x11f   :  { %15601 = vst [vmem:[#allocation39_spill] sm:$0xff] %v8707_v1  ;;  %v8713_v30 = vmul.f32 %v8707_v1, %v8707_v1  ;;  %v8715_v32 = vpop.f32.mrb[29].mxu0  ;;  %7427 = vmatpush3.bf16.msra.mxu0 %v15603_v47  ;;  %v15606_v47 = vpack.c.bf16 %v8581_v56, %v8587_v58 }
 0x120   :  { %15602 = vst [vmem:[#allocation40_spill] sm:$0xff] %v8715_v32  ;;  %v7428_v53 = vpack.c.bf16 %v8707_v1, %v8715_v32  ;;  %v8724_v10 = vmul.f32 %v8715_v32, %v8715_v32 }
 0x122   :  { %v8726_v41 = vpop.f32.mrb[30].mxu0  ;;  %7429 = vmatprep.subr.bf16.mxu0 %v7428_v53 }
 0x123   :  { %15604 = vst [vmem:[#allocation41_spill] sm:$0xff] %v8726_v41  ;;  %v8732_v26 = vmul.f32 %v8726_v41, %v8726_v41  ;;  %v8734_v55 = vpop.f32.mrb[31].mxu0  ;;  %7431 = vmatpush3.bf16.msra.mxu0 %v15606_v47  ;;  %v15609_v47 = vpack.c.bf16 %v8597_v62, %v8603_v0 }
 0x124   :  { %15605 = vst [vmem:[#allocation42_spill] sm:$0xff] %v8734_v55  ;;  %v7432_v1 = vpack.c.bf16 %v8726_v41, %v8734_v55  ;;  %v8743_v32 = vmul.f32 %v8734_v55, %v8734_v55  ;;  %v15610_v41 = vmov 0 }
 0x125   :  { %v15611_v41 = vsel %vm8760_vm3, 4294967295, %v15610_v41 }
 0x126   :  { %v8745_v53 = vpop.f32.mrb[32].mxu0  ;;  %7433 = vmatprep.subr.bf16.mxu0 %v7432_v1  ;;  %15612 = vst [vmem:[#allocation45_spill] sm:$0xff] %v15611_v41 }
 0x127   :  { %15607 = vst [vmem:[#allocation43_spill] sm:$0xff] %v8745_v53  ;;  %v8751_v43 = vmul.f32 %v8745_v53, %v8745_v53  ;;  %v8753_v9 = vpop.f32.mrb[33].mxu0  ;;  %7435 = vmatpush3.bf16.msra.mxu0 %v15609_v47 }
 0x128   :  { %15608 = vst [vmem:[#allocation44_spill] sm:$0xff] %v8753_v9  ;;  %v8766_v1 = vmul.f32 %v8753_v9, %v8753_v9  ;;  %v7438_v36 = vpack.c.bf16 %v8745_v53, %v8753_v9 }
 0x12a   :  { %v8772_v15 = vpop.f32.mrb[34].mxu0  ;;  %5895 = vmatmul.mubr.msk.f32.vlgmr.msra.gmra.mrb[64].mxu0 %vm8760_vm3, %v15614_v4 }
 0x12b   :  { %15613 = vst [vmem:[#allocation46_spill] sm:$0xff] %v8772_v15  ;;  %v8779_v47 = vmul.f32 %v8772_v15, %v8772_v15  ;;  %v8781_v6 = vpop.f32.mrb[35].mxu0 }
 0x12c   :  { %15616 = vst [vmem:[#allocation48_spill] sm:$0xff] %v8781_v6  ;;  %v7442_v62 = vpack.c.bf16 %v8772_v15, %v8781_v6  ;;  %v8787_v53 = vmul.f32 %v8781_v6, %v8781_v6 }
 0x12d   :  { %15615 = vst [vmem:[#allocation47_spill] sm:$0xff] %v8779_v47 }
 0x12e   :  { %15617 = vst [vmem:[#allocation49_spill] sm:$0xff] %v8787_v53  ;;  %v8791_v9 = vpop.f32.mrb[36].mxu0 }
 0x12f   :  { %15618 = vst [vmem:[#allocation50_spill] sm:$0xff] %v8791_v9  ;;  %v8795_v0 = vmul.f32 %v8791_v9, %v8791_v9  ;;  %v8797_v56 = vpop.f32.mrb[37].mxu0 }
 0x130   :  { %15620 = vst [vmem:[#allocation52_spill] sm:$0xff] %v8797_v56  ;;  %v7446_v58 = vpack.c.bf16 %v8791_v9, %v8797_v56  ;;  %v8803_v15 = vmul.f32 %v8797_v56, %v8797_v56 }
 0x131   :  { %15619 = vst [vmem:[#allocation51_spill] sm:$0xff] %v8795_v0 }
 0x132   :  { %15621 = vst [vmem:[#allocation53_spill] sm:$0xff] %v8803_v15  ;;  %v8807_v50 = vpop.f32.mrb[38].mxu0 }
 0x133   :  { %15622 = vst [vmem:[#allocation54_spill] sm:$0xff] %v8807_v50  ;;  %v8811_v55 = vmul.f32 %v8807_v50, %v8807_v50  ;;  %v8813_v52 = vpop.f32.mrb[39].mxu0 }
 0x134   :  { %15624 = vst [vmem:[#allocation56_spill] sm:$0xff] %v8813_v52  ;;  %v7450_v44 = vpack.c.bf16 %v8807_v50, %v8813_v52  ;;  %v8819_v9 = vmul.f32 %v8813_v52, %v8813_v52 }
 0x135   :  { %15623 = vst [vmem:[#allocation55_spill] sm:$0xff] %v8811_v55 }
 0x136   :  { %15625 = vst [vmem:[#allocation57_spill] sm:$0xff] %v8819_v9  ;;  %v8823_v46 = vpop.f32.mrb[40].mxu0 }
 0x137   :  { %15626 = vst [vmem:[#allocation58_spill] sm:$0xff] %v8823_v46  ;;  %v8827_v6 = vmul.f32 %v8823_v46, %v8823_v46  ;;  %v8829_v37 = vpop.f32.mrb[41].mxu0 }
 0x138   :  { %15628 = vst [vmem:[#allocation60_spill] sm:$0xff] %v8829_v37  ;;  %v7454_v40 = vpack.c.bf16 %v8823_v46, %v8829_v37  ;;  %v8835_v50 = vmul.f32 %v8829_v37, %v8829_v37 }
 0x139   :  { %15627 = vst [vmem:[#allocation59_spill] sm:$0xff] %v8827_v6 }
 0x13a   :  { %15629 = vst [vmem:[#allocation61_spill] sm:$0xff] %v8835_v50  ;;  %v8839_v31 = vpop.f32.mrb[42].mxu0 }
 0x13b   :  { %v8843_v56 = vmul.f32 %v8839_v31, %v8839_v31  ;;  %v8845_v34 = vpop.f32.mrb[43].mxu0 }
 0x13c   :  { %v8851_v46 = vmul.f32 %v8845_v34, %v8845_v34 }
 0x13d   :  { %15630 = vst [vmem:[#allocation62_spill] sm:$0xff] %v8843_v56 }
 0x13e   :  { %15631 = vst [vmem:[#allocation63_spill] sm:$0xff] %v8851_v46  ;;  %v8855_v28 = vpop.f32.mrb[44].mxu0 }
 0x13f   :  { %v8859_v52 = vmul.f32 %v8855_v28, %v8855_v28  ;;  %v8861_v17 = vpop.f32.mrb[45].mxu0 }
 0x140   :  { %v8867_v24 = vmul.f32 %v8861_v17, %v8861_v17 }
 0x141   :  { %15632 = vst [vmem:[#allocation64_spill] sm:$0xff] %v8859_v52 }
 0x142   :  { %15633 = vst [vmem:[#allocation65_spill] sm:$0xff] %v8867_v24  ;;  %v8871_v50 = vpop.f32.mrb[46].mxu0 }
 0x143   :  { %v8875_v37 = vmul.f32 %v8871_v50, %v8871_v50  ;;  %v8877_v46 = vpop.f32.mrb[47].mxu0 }
 0x144   :  { %v8883_v19 = vmul.f32 %v8877_v46, %v8877_v46 }
 0x145   :  { %15634 = vst [vmem:[#allocation66_spill] sm:$0xff] %v8875_v37 }
 0x146   :  { %15635 = vst [vmem:[#allocation67_spill] sm:$0xff] %v8883_v19  ;;  %v8887_v9 = vpop.f32.mrb[48].mxu0 }
 0x147   :  { %15636 = vst [vmem:[#allocation68_spill] sm:$0xff] %v8887_v9  ;;  %v8891_v12 = vmul.f32 %v8887_v9, %v8887_v9  ;;  %v8893_v24 = vpop.f32.mrb[49].mxu0 }
 0x148   :  { %15637 = vst [vmem:[#allocation69_spill] sm:$0xff] %v8893_v24  ;;  %v8897_v52 = vmul.f32 %v8893_v24, %v8893_v24  ;;  %v7436_v56 = vpack.c.bf16 %v8887_v9, %v8893_v24 }
 0x14a   :  { %v8901_v55 = vpop.f32.mrb[50].mxu0  ;;  %7437 = vmatprep.subr.bf16.mxu1 %v7436_v56 }
 0x14b   :  { %15638 = vst [vmem:[#allocation70_spill] sm:$0xff] %v8901_v55  ;;  %v8907_v19 = vmul.f32 %v8901_v55, %v8901_v55  ;;  %v8909_v37 = vpop.f32.mrb[51].mxu0  ;;  %7439 = vmatpush3.bf16.msra.mxu1 %v7438_v36 }
 0x14c   :  { %15639 = vst [vmem:[#allocation71_spill] sm:$0xff] %v8909_v37  ;;  %v7440_v15 = vpack.c.bf16 %v8901_v55, %v8909_v37  ;;  %v8915_v0 = vmul.f32 %v8909_v37, %v8909_v37 }
 0x14e   :  { %v8917_v9 = vpop.f32.mrb[52].mxu0  ;;  %7441 = vmatprep.subr.bf16.mxu1 %v7440_v15 }
 0x14f   :  { %15640 = vst [vmem:[#allocation72_spill] sm:$0xff] %v8917_v9  ;;  %v8923_v6 = vmul.f32 %v8917_v9, %v8917_v9  ;;  %v8925_v24 = vpop.f32.mrb[53].mxu0  ;;  %7443 = vmatpush3.bf16.msra.mxu1 %v7442_v62 }
 0x150   :  { %15642 = vst [vmem:[#allocation74_spill] sm:$0xff] %v8925_v24  ;;  %v7444_v36 = vpack.c.bf16 %v8917_v9, %v8925_v24  ;;  %v8931_v55 = vmul.f32 %v8925_v24, %v8925_v24 }
 0x151   :  { %15641 = vst [vmem:[#allocation73_spill] sm:$0xff] %v8923_v6 }
 0x152   :  { %15643 = vst [vmem:[#allocation75_spill] sm:$0xff] %v8931_v55  ;;  %v8933_v37 = vpop.f32.mrb[54].mxu0  ;;  %7445 = vmatprep.subr.bf16.mxu1 %v7444_v36 }
 0x153   :  { %15644 = vst [vmem:[#allocation76_spill] sm:$0xff] %v8933_v37  ;;  %v8939_v56 = vmul.f32 %v8933_v37, %v8933_v37  ;;  %v8941_v53 = vpop.f32.mrb[55].mxu0  ;;  %7447 = vmatpush3.bf16.msra.mxu1 %v7446_v58 }
 0x154   :  { %15645 = vst [vmem:[#allocation77_spill] sm:$0xff] %v8941_v53  ;;  %v7448_v62 = vpack.c.bf16 %v8933_v37, %v8941_v53  ;;  %v8947_v9 = vmul.f32 %v8941_v53, %v8941_v53 }
 0x156   :  { %v8949_v24 = vpop.f32.mrb[56].mxu0  ;;  %7449 = vmatprep.subr.bf16.mxu1 %v7448_v62  ;;  %v7512_v36 = vpack.c.bf16 %v8939_v56, %v8947_v9 }
 0x157   :  { %15646 = vst [vmem:[#allocation78_spill] sm:$0xff] %v8949_v24  ;;  %v952_v15 = vmul.f32 %v8949_v24, %v8949_v24  ;;  %v8955_v55 = vpop.f32.mrb[57].mxu0  ;;  %7451 = vmatpush3.bf16.msra.mxu1 %v7450_v44 }
 0x158   :  { %15647 = vst [vmem:[#allocation79_spill] sm:$0xff] %v8955_v55  ;;  %v7452_v58 = vpack.c.bf16 %v8949_v24, %v8955_v55  ;;  %v951_v37 = vmul.f32 %v8955_v55, %v8955_v55 }
 0x15a   :  { %v8961_v53 = vpop.f32.mrb[58].mxu0  ;;  %7453 = vmatprep.subr.bf16.mxu1 %v7452_v58  ;;  %v7516_v6 = vpack.c.bf16 %v952_v15, %v951_v37  ;;  %v15652_v15 = vpack.c.bf16 %v8839_v31, %v8845_v34 }
 0x15b   :  { %15648 = vst [vmem:[#allocation80_spill] sm:$0xff] %v8961_v53  ;;  %v954_v62 = vmul.f32 %v8961_v53, %v8961_v53  ;;  %v8965_v9 = vpop.f32.mrb[59].mxu0  ;;  %7455 = vmatpush3.bf16.msra.mxu1 %v7454_v40 }
 0x15c   :  { %15649 = vst [vmem:[#allocation81_spill] sm:$0xff] %v8965_v9  ;;  %v7456_v56 = vpack.c.bf16 %v8961_v53, %v8965_v9  ;;  %v953_v44 = vmul.f32 %v8965_v9, %v8965_v9 }
 0x15e   :  { %v8971_v24 = vpop.f32.mrb[60].mxu0  ;;  %7457 = vmatprep.subr.bf16.mxu1 %v7456_v56  ;;  %v7520_v55 = vpack.c.bf16 %v954_v62, %v953_v44  ;;  %v79_v44 = vadd.s32 256, %v8459_v11 }
 0x15f   :  { %15650 = vst [vmem:[#allocation82_spill] sm:$0xff] %v8971_v24  ;;  %v956_v58 = vmul.f32 %v8971_v24, %v8971_v24  ;;  %v8975_v37 = vpop.f32.mrb[61].mxu0  ;;  %7459 = vmatpush3.bf16.msra.mxu1 %v15652_v15  ;;  %v15653_v15 = vpack.c.bf16 %v8855_v28, %v8861_v17 }
 0x160   :  { %15651 = vst [vmem:[#allocation83_spill] sm:$0xff] %v8975_v37  ;;  %v7460_v40 = vpack.c.bf16 %v8971_v24, %v8975_v37  ;;  %v955_v53 = vmul.f32 %v8975_v37, %v8975_v37  ;;  %vm8999_vm4 = vcmp.lt.s32.totalorder %v79_v44, %v8467_v16  ;;  %v15660_v16 = vpack.c.bf16 %v8633_v14, %v8641_v61  ;;  %v15693_v14 = vld [vmem:[#allocation63_spill] sm:$0xff]  ;;  %v1456_v44 = vld [vmem:[%s15041_s5 + $0x8] sm:$0xff] }
 0x161   :  { %v15665_v61 = vpack.c.bf16 %v8537_v39, %v8545_v42  ;;  %v15671_v39 = vpack.c.bf16 %v8585_v57, %v8593_v60  ;;  %v15672_v42 = vpack.c.bf16 %v8732_v26, %v8743_v32  ;;  %v15676_v26 = vpack.c.bf16 %v8907_v19, %v8915_v0  ;;  %v15677_v32 = vld [vmem:[#allocation47_spill] sm:$0xff]  ;;  %v15684_v57 = vld [vmem:[#allocation53_spill] sm:$0xff] }
 0x162   :  { %v8984_v9 = vpop.f32.mrb[62].mxu0  ;;  %7461 = vmatprep.subr.bf16.mxu1 %v7460_v40  ;;  %v7524_v56 = vpack.c.bf16 %v956_v58, %v955_v53  ;;  %v15654_v53 = vmov 0  ;;  %v15657_v58 = vpack.c.bf16 %v8871_v50, %v8877_v46  ;;  %v15687_v60 = vld [vmem:[#allocation57_spill] sm:$0xff]  ;;  %v15689_v19 = vld [vmem:[#allocation59_spill] sm:$0xff] }
 0x163   :  { %v958_v62 = vmul.f32 %v8984_v9, %v8984_v9  ;;  %v8989_v47 = vpop.f32.mrb[63].mxu0  ;;  %7463 = vmatpush3.bf16.msra.mxu1 %v15653_v15  ;;  %v15655_v53 = vsel %vm8999_vm4, 4294967295, %v15654_v53  ;;  %v15658_v15 = vpack.c.bf16 %v8617_v5, %v8625_v8  ;;  %v15661_v5 = vpack.c.bf16 %v8505_v27, %v8511_v29  ;;  %v15690_v0 = vld [vmem:[#allocation61_spill] sm:$0xff] }
 0x164   :  { %v7464_v24 = vpack.c.bf16 %v8984_v9, %v8989_v47  ;;  %v957_v37 = vmul.f32 %v8989_v47, %v8989_v47  ;;  %15656 = vst [vmem:[#allocation84_spill] sm:$0xff] %v15655_v53  ;;  %v15662_v8 = vpack.c.bf16 %v8649_v49, %v8657_v38  ;;  %v15666_v27 = vpack.c.bf16 %v8681_v3, %v8689_v59  ;;  %v15680_v49 = vld [vmem:[#allocation73_spill] sm:$0xff]  ;;  %v15686_v59 = vld [vmem:[#allocation55_spill] sm:$0xff]  ;;  %v15695_v3 = vld [vmem:[#allocation64_spill] sm:$0xff] }
 0x165   :  { %v15667_v29 = vpack.c.bf16 %v8553_v45, %v8561_v48  ;;  %v15670_v38 = vpack.c.bf16 %v8713_v30, %v8724_v10  ;;  %v15674_v45 = vpack.c.bf16 %v8891_v12, %v8897_v52  ;;  %v15675_v10 = vpack.c.bf16 %v8751_v43, %v8766_v1  ;;  %v15678_v48 = vld [vmem:[#allocation49_spill] sm:$0xff]  ;;  %v15698_v1 = vld [vmem:[#allocation66_spill] sm:$0xff] }
 0x166   :  { %7465 = vmatprep.subr.bf16.mxu1 %v7464_v24  ;;  %v7528_v40 = vpack.c.bf16 %v958_v62, %v957_v37  ;;  %v15659_v24 = vpack.c.bf16 %v8473_v18, %v8484_v21  ;;  %v15663_v18 = vpack.c.bf16 %v8521_v33, %v8527_v35  ;;  %v15664_v21 = vpack.c.bf16 %v8665_v7, %v8673_v13  ;;  %v15692_v13 = vld [vmem:[#allocation62_spill] sm:$0xff]  ;;  %v1455_v62 = vld [vmem:[%s15041_s5] sm:$0xff] }
 0x167   :  { %7467 = vmatpush3.bf16.msra.mxu1 %v15657_v58  ;;  %v15668_v33 = vpack.c.bf16 %v8697_v22, %v8705_v25  ;;  %v15669_v35 = vpack.c.bf16 %v8569_v51, %v8577_v54  ;;  %v15673_v25 = vpack.c.bf16 %v8601_v63, %v8609_v2  ;;  %v15679_v12 = vpack.c.bf16 %v15677_v32, %v15678_v48  ;;  %v15681_v51 = vld [vmem:[#allocation75_spill] sm:$0xff]  ;;  %v15696_v22 = vld [vmem:[#allocation65_spill] sm:$0xff] }
 0x168   :  { %7469 = vmatprep.subr.bf16.mxu1 %v15658_v15  ;;  %v15682_v52 = vpack.c.bf16 %v15680_v49, %v15681_v51  ;;  %v15683_v54 = vld [vmem:[#allocation51_spill] sm:$0xff]  ;;  %v15688_v63 = vpack.c.bf16 %v15686_v59, %v15687_v60  ;;  %v15691_v2 = vpack.c.bf16 %v15689_v19, %v15690_v0  ;;  %v15694_v7 = vpack.c.bf16 %v15692_v13, %v15693_v14  ;;  %v15704_v32 = vld [vmem:[#allocation9_spill] sm:$0xff]  ;;  %v15709_v60 = vld [vmem:[#allocation18_spill] sm:$0xff] }
 0x169   :  { %v15685_v43 = vpack.c.bf16 %v15683_v54, %v15684_v57  ;;  %v15697_v30 = vpack.c.bf16 %v15695_v3, %v15696_v22  ;;  %v7532_v58 = vpack.c.bf16 %v1456_v44, %v1455_v62  ;;  %v1458_v15 = vld [vmem:[%s15041_s5 + $0x18] sm:$0xff]  ;;  %v15706_v51 = vld [vmem:[#allocation13_spill] sm:$0xff]  ;;  %v15707_v54 = vld [vmem:[#allocation16_spill] sm:$0xff] }
 0x16a   :  { %5897 = vmatmul.mubr.msk.f32.vlgmr.msra.gmra.mrb[0].mxu1 %vm8999_vm4, %v15614_v4  ;;  %v15710_v19 = vld [vmem:[#allocation17_spill] sm:$0xff]  ;;  %v15712_v14 = vld [vmem:[#allocation19_spill] sm:$0xff]  ;;  %v15713_v3 = vld [vmem:[#allocation22_spill] sm:$0xff] }
 0x16b   :  { %7471 = vmatpush3.bf16.msra.mxu1 %v15659_v24  ;;  %5898 = vmatprep.mubr.msk.f32.mxu1 %vm8478_vm1, %v15614_v4  ;;  %v15718_v44 = vld [vmem:[#allocation25_spill] sm:$0xff]  ;;  %v15738_v22 = vld [vmem:[#allocation46_spill] sm:$0xff]  ;;  %v15741_v0 = vld [vmem:[#allocation56_spill] sm:$0xff] }
 0x16c   :  { %7473 = vmatprep.subr.bf16.mxu1 %v15660_v16  ;;  %v1459_v16 = vld [vmem:[%s15041_s5 + $0x20] sm:$0xff]  ;;  %7533 = vmatprep.subr.bf16.mxu0 %v7532_v58  ;;  %v15740_v13 = vld [vmem:[#allocation50_spill] sm:$0xff] }
 0x16d   :  { %7535 = vmatpush3.bf16.msra.mxu0 %v7532_v58  ;;  %v15719_v58 = vld [vmem:[#allocation28_spill] sm:$0xff] }
 0x16f   :  { %7475 = vmatpush3.bf16.msra.mxu1 %v15661_v5  ;;  %v1460_v5 = vld [vmem:[%s15041_s5 + $0x28] sm:$0xff] }
 0x170   :  { %7477 = vmatprep.subr.bf16.mxu1 %v15662_v8  ;;  %v7540_v8 = vpack.c.bf16 %v1460_v5, %v1459_v16  ;;  %v15721_v5 = vld [vmem:[#allocation30_spill] sm:$0xff] }
 0x173   :  { %7479 = vmatpush3.bf16.msra.mxu1 %v15663_v18  ;;  %v1461_v18 = vld [vmem:[%s15041_s5 + $0x30] sm:$0xff] }
 0x174   :  { %7481 = vmatprep.subr.bf16.mxu1 %v15664_v21  ;;  %v1462_v21 = vld [vmem:[%s15041_s5 + $0x38] sm:$0xff] }
 0x177   :  { %7483 = vmatpush3.bf16.msra.mxu1 %v15665_v61  ;;  %v7544_v61 = vpack.c.bf16 %v1462_v21, %v1461_v18  ;;  %v15722_v18 = vld [vmem:[#allocation29_spill] sm:$0xff] }
 0x178   :  { %7485 = vmatprep.subr.bf16.mxu1 %v15666_v27 }
 0x17b   :  { %7487 = vmatpush3.bf16.msra.mxu1 %v15667_v29  ;;  %v1102_v29 = vpop.permute.xlu0 %1101 }
 0x17c   :  { %7489 = vmatprep.subr.bf16.mxu1 %v15668_v33 }
 0x17f   :  { %7491 = vmatpush3.bf16.msra.mxu1 %v15669_v35 }
 0x180   :  { %7493 = vmatprep.subr.bf16.mxu1 %v15670_v38  ;;  %v15701_v38 = vld [vmem:[#allocation8_spill] sm:$0xff] }
 0x183   :  { %7495 = vmatpush3.bf16.msra.mxu1 %v15671_v39  ;;  %v9130_v39 = vrot.slane %v1102_v29, %v15701_v38 }
 0x184   :  { %7497 = vmatprep.subr.bf16.mxu1 %v15672_v42 }
 0x185   :  { %15702 = vst [vmem:[#allocation47_spill] sm:$0xff] %v9130_v39 }
 0x187   :  { %7499 = vmatpush3.bf16.msra.mxu1 %v15673_v25 }
 0x188   :  { %7501 = vmatprep.subr.bf16.mxu1 %v15674_v45 }
 0x18a   :  { %5899 = vmatmul.mubr.msk.f32.vlgmr.msra.gmra.mrb[2].mxu1 %vm8760_vm3, %v15614_v4 }
 0x18b   :  { %7503 = vmatpush3.bf16.msra.mxu1 %v15675_v10  ;;  %5900 = vmatprep.mubr.msk.f32.mxu1 %vm8489_vm2, %v15614_v4  ;;  %v15703_v10 = vld [vmem:[#allocation10_spill] sm:$0xff] }
 0x18c   :  { %7505 = vmatprep.subr.bf16.mxu1 %v15676_v26 }
 0x18f   :  { %7507 = vmatpush3.bf16.msra.mxu1 %v15679_v12  ;;  %v15705_v12 = vld [vmem:[#allocation14_spill] sm:$0xff] }
 0x190   :  { %7509 = vmatprep.subr.bf16.mxu1 %v15682_v52 }
 0x193   :  { %7511 = vmatpush3.bf16.msra.mxu1 %v15685_v43  ;;  %v15708_v43 = vld [vmem:[#allocation15_spill] sm:$0xff] }
 0x194   :  { %7513 = vmatprep.subr.bf16.mxu1 %v7512_v36  ;;  %v15699_v36 = vld [vmem:[#allocation67_spill] sm:$0xff] }
 0x195   :  { %v15700_v37 = vpack.c.bf16 %v15698_v1, %v15699_v36  ;;  %v15715_v36 = vld [vmem:[#allocation24_spill] sm:$0xff] }
 0x196   :  { %v15737_v1 = vld [vmem:[#allocation48_spill] sm:$0xff] }
 0x197   :  { %7515 = vmatpush3.bf16.msra.mxu1 %v15688_v63  ;;  %v15742_v63 = vld [vmem:[#allocation54_spill] sm:$0xff] }
 0x198   :  { %7517 = vmatprep.subr.bf16.mxu1 %v7516_v6 }
 0x19b   :  { %7519 = vmatpush3.bf16.msra.mxu1 %v15691_v2  ;;  %v15711_v2 = vld [vmem:[#allocation20_spill] sm:$0xff] }
 0x19c   :  { %7521 = vmatprep.subr.bf16.mxu1 %v7520_v55 }
 0x19f   :  { %7523 = vmatpush3.bf16.msra.mxu1 %v15694_v7  ;;  %v15739_v7 = vld [vmem:[#allocation52_spill] sm:$0xff] }
 0x1a0   :  { %7525 = vmatprep.subr.bf16.mxu1 %v7524_v56 }
 0x1a3   :  { %7527 = vmatpush3.bf16.msra.mxu1 %v15697_v30  ;;  %v15714_v30 = vld [vmem:[#allocation21_spill] sm:$0xff] }
 0x1a4   :  { %7529 = vmatprep.subr.bf16.mxu1 %v7528_v40  ;;  %v1457_v40 = vld [vmem:[%s15041_s5 + $0x10] sm:$0xff] }
 0x1a5   :  { %v7536_v24 = vpack.c.bf16 %v1458_v15, %v1457_v40 }
 0x1a7   :  { %7531 = vmatpush3.bf16.msra.mxu1 %v15700_v37  ;;  %7537 = vmatprep.subr.bf16.mxu0 %v7536_v24  ;;  %v15736_v37 = vld [vmem:[#allocation43_spill] sm:$0xff] }
 0x1a8   :  { %7539 = vmatpush3.bf16.msra.mxu0 %v7536_v24  ;;  %v15720_v24 = vld [vmem:[#allocation27_spill] sm:$0xff] }
 0x1a9   :  { %7541 = vmatprep.subr.bf16.mxu0 %v7540_v8 }
 0x1aa   :  { %5901 = vmatmul.mubr.msk.f32.vlgmr.msra.gmra.mrb[4].mxu1 %vm8999_vm4, %v15614_v4 }
 0x1ab   :  { %5968 = vmatprep.mubr.msk.f32.mxu1 %vm8478_vm1, %v15614_v4 }
 0x1ac   :  { %7543 = vmatpush3.bf16.msra.mxu0 %v7540_v8 }
 0x1ad   :  { %7545 = vmatprep.subr.bf16.mxu0 %v7544_v61 }
 0x1b0   :  { %7547 = vmatpush3.bf16.msra.mxu0 %v7544_v61 }
 0x1fd   :  { %v6164_v55 = vpop.f32.mrb[64].mxu0 }
 0x1fe   :  { %v6165_v6 = vpop.f32.mrb[65].mxu0 }
 0x1ff   :  { %v6166_v56 = vadd.f32 %v6165_v6, %v6164_v55  ;;  %v15716_v55 = vld [vmem:[#allocation23_spill] sm:$0xff] }
 0x23d   :  { %v6199_v27 = vpop.f32.mrb[0].mxu1 }
 0x23e   :  { %v6200_v33 = vpop.f32.mrb[1].mxu1 }
 0x23f   :  { %v6201_v35 = vadd.f32 %v6200_v33, %v6199_v27 }
 0x241   :  { %v892_v42 = vadd.f32 %v6201_v35, %v6166_v56  ;;  %v15717_v56 = vld [vmem:[#allocation26_spill] sm:$0xff] }
 0x243   :  { %v9133_v25 = vmul.f32 %v9130_v39, %v892_v42 }
 0x245   :  { %v9137_v45 = vrot.slane %v9133_v25, %v15701_v38 }
 0x247   :  { %v1150_v59 = vsub.f32 %v15736_v37, %v9137_v45  ;;  %v1151_v57 = vsub.f32 %v15737_v1, %v9137_v45  ;;  %v1152_v52 = vsub.f32 %v15738_v22, %v9137_v45  ;;  %v1153_v49 = vsub.f32 %v15739_v7, %v9137_v45  ;;  %v15743_v37 = vld [vmem:[#allocation60_spill] sm:$0xff]  ;;  %v15744_v1 = vld [vmem:[#allocation58_spill] sm:$0xff] }
 0x248   :  { %v1154_v48 = vsub.f32 %v15740_v13, %v9137_v45  ;;  %v1155_v26 = vsub.f32 %v15741_v0, %v9137_v45  ;;  %v1156_v11 = vsub.f32 %v15742_v63, %v9137_v45  ;;  %v1157_v20 = vsub.f32 %v15743_v37, %v9137_v45 }
 0x249   :  { %v1158_v53 = vsub.f32 %v15744_v1, %v9137_v45  ;;  %v1159_v22 = vsub.f32 %v8845_v34, %v9137_v45  ;;  %v1160_v7 = vsub.f32 %v8839_v31, %v9137_v45  ;;  %v1161_v13 = vsub.f32 %v8861_v17, %v9137_v45  ;;  %v15745_v1 = vld [vmem:[#allocation69_spill] sm:$0xff]  ;;  %v15746_v34 = vld [vmem:[#allocation68_spill] sm:$0xff]  ;;  %v15747_v31 = vld [vmem:[#allocation71_spill] sm:$0xff] }
 0x24a   :  { %v1162_v0 = vsub.f32 %v8855_v28, %v9137_v45  ;;  %v1163_v63 = vsub.f32 %v8877_v46, %v9137_v45  ;;  %v1164_v37 = vsub.f32 %v8871_v50, %v9137_v45  ;;  %v1165_v23 = vsub.f32 %v15745_v1, %v9137_v45  ;;  %v15748_v17 = vld [vmem:[#allocation70_spill] sm:$0xff]  ;;  %v15750_v46 = vld [vmem:[#allocation72_spill] sm:$0xff]  ;;  %v15751_v50 = vld [vmem:[#allocation77_spill] sm:$0xff] }
 0x24b   :  { %v1166_v41 = vsub.f32 %v15746_v34, %v9137_v45  ;;  %v1167_v4 = vsub.f32 %v15747_v31, %v9137_v45  ;;  %v1168_v6 = vsub.f32 %v15748_v17, %v9137_v45  ;;  %v15749_v28 = vld [vmem:[#allocation74_spill] sm:$0xff]  ;;  %v1170_v40 = vsub.f32 %v15750_v46, %v9137_v45  ;;  %v15752_v1 = vld [vmem:[#allocation76_spill] sm:$0xff]  ;;  %v15753_v34 = vld [vmem:[#allocation79_spill] sm:$0xff] }
 0x24c   :  { %v1169_v62 = vsub.f32 %v15749_v28, %v9137_v45  ;;  %v1171_v42 = vsub.f32 %v15751_v50, %v9137_v45  ;;  %v1172_v38 = vsub.f32 %v15752_v1, %v9137_v45  ;;  %v1173_v33 = vsub.f32 %v15753_v34, %v9137_v45  ;;  %v15754_v31 = vld [vmem:[#allocation78_spill] sm:$0xff]  ;;  %v15755_v17 = vld [vmem:[#allocation81_spill] sm:$0xff]  ;;  %v15756_v28 = vld [vmem:[#allocation80_spill] sm:$0xff] }
 0x24d   :  { %v1174_v27 = vsub.f32 %v15754_v31, %v9137_v45  ;;  %v1175_v21 = vsub.f32 %v15755_v17, %v9137_v45  ;;  %v1176_v8 = vsub.f32 %v15756_v28, %v9137_v45  ;;  %v15757_v46 = vld [vmem:[#allocation83_spill] sm:$0xff]  ;;  %v15758_v50 = vld [vmem:[#allocation82_spill] sm:$0xff]  ;;  %v1179_v1 = vsub.f32 %v8989_v47, %v9137_v45 }
 0x24e   :  { %v1177_v16 = vsub.f32 %v15757_v46, %v9137_v45  ;;  %v1178_v15 = vsub.f32 %v15758_v50, %v9137_v45  ;;  %v1180_v34 = vsub.f32 %v8984_v9, %v9137_v45  ;;  %v9270_v31 = vld [vmem:[%s15759_s4] ss:$0 sm:$0xff] }
 0x24f   :  { %v9273_v28 = vmul.f32 %v9270_v31, %v1150_v59  ;;  %v9276_v46 = vmul.f32 %v9270_v31, %v1151_v57  ;;  %v9279_v50 = vmul.f32 %v9270_v31, %v1152_v52  ;;  %v9282_v47 = vmul.f32 %v9270_v31, %v1153_v49 }
 0x250   :  { %v9285_v9 = vmul.f32 %v9270_v31, %v1154_v48  ;;  %v9288_v29 = vmul.f32 %v9270_v31, %v1155_v26  ;;  %v9291_v61 = vmul.f32 %v9270_v31, %v1156_v11  ;;  %v9294_v59 = vmul.f32 %v9270_v31, %v1157_v20 }
 0x251   :  { %v9297_v57 = vmul.f32 %v9270_v31, %v1158_v53  ;;  %v9300_v52 = vmul.f32 %v9270_v31, %v1159_v22  ;;  %v9303_v49 = vmul.f32 %v9270_v31, %v1160_v7  ;;  %v9306_v48 = vmul.f32 %v9270_v31, %v1161_v13 }
 0x252   :  { %v9309_v26 = vmul.f32 %v9270_v31, %v1162_v0  ;;  %v9312_v11 = vmul.f32 %v9270_v31, %v1163_v63  ;;  %v9315_v20 = vmul.f32 %v9270_v31, %v1164_v37  ;;  %v9318_v53 = vmul.f32 %v9270_v31, %v1165_v23 }
 0x253   :  { %v9321_v22 = vmul.f32 %v9270_v31, %v1166_v41  ;;  %v9324_v7 = vmul.f32 %v9270_v31, %v1167_v4  ;;  %v9327_v13 = vmul.f32 %v9270_v31, %v1168_v6  ;;  %v9330_v0 = vmul.f32 %v9270_v31, %v1169_v62 }
 0x254   :  { %v9333_v63 = vmul.f32 %v9270_v31, %v1170_v40  ;;  %v9336_v37 = vmul.f32 %v9270_v31, %v1171_v42  ;;  %v9339_v23 = vmul.f32 %v9270_v31, %v1172_v38  ;;  %v9342_v41 = vmul.f32 %v9270_v31, %v1173_v33 }
 0x255   :  { %v9345_v4 = vmul.f32 %v9270_v31, %v1174_v27  ;;  %v9348_v6 = vmul.f32 %v9270_v31, %v1175_v21  ;;  %v9351_v62 = vmul.f32 %v9270_v31, %v1176_v8  ;;  %v9354_v40 = vmul.f32 %v9270_v31, %v1177_v16 }
 0x256   :  { %15760 = vst [vmem:[#allocation49_spill] sm:$0xff] %v9342_v41  ;;  %v9357_v42 = vmul.f32 %v9270_v31, %v1178_v15  ;;  %v9360_v38 = vmul.f32 %v9270_v31, %v1179_v1  ;;  %v9363_v33 = vmul.f32 %v9270_v31, %v1180_v34  ;;  %v1110_v8 = vmul.f32 %v9133_v25, %v9133_v25 }
 0x257   :  { %15761 = vst [vmem:[#allocation73_spill] sm:$0xff] %v9345_v4  ;;  %15762 = vst [vmem:[#allocation75_spill] sm:$0xff] %v9348_v6  ;;  %v15767_v1 = vsub.f32 %v15703_v10, %v9137_v45  ;;  %v15770_v25 = vsub.f32 %v15705_v12, %v9137_v45  ;;  %v15774_v10 = vsub.f32 %v15707_v54, %v9137_v45 }
 0x258   :  { %15763 = vst [vmem:[#allocation51_spill] sm:$0xff] %v9351_v62  ;;  %15764 = vst [vmem:[#allocation53_spill] sm:$0xff] %v9354_v40  ;;  %v15780_v54 = vsub.f32 %v15711_v2, %v9137_v45  ;;  %v15784_v2 = vsub.f32 %v15715_v36, %v9137_v45  ;;  %v15788_v36 = vsub.f32 %v15719_v58, %v9137_v45 }
 0x259   :  { %15765 = vst [vmem:[#allocation55_spill] sm:$0xff] %v9360_v38  ;;  %15766 = vst [vmem:[#allocation57_spill] sm:$0xff] %v9363_v33  ;;  %v9372_v34 = vmul.f32 %v9270_v31, %v15767_v1  ;;  %v15815_v33 = vld [vmem:[#allocation41_spill] sm:$0xff]  ;;  %v15817_v38 = vld [vmem:[#allocation44_spill] sm:$0xff] }
 0x25b   :  { %15768 = vst [vmem:[#allocation59_spill] sm:$0xff] %v9372_v34  ;;  %v15813_v34 = vld [vmem:[#allocation42_spill] sm:$0xff] }
 0x25d   :  { %v6234_v17 = vpop.f32.mrb[2].mxu1 }
 0x25e   :  { %v6235_v35 = vpop.f32.mrb[3].mxu1 }
 0x25f   :  { %v6236_v27 = vadd.f32 %v6235_v35, %v6234_v17  ;;  %v15769_v35 = vsub.f32 %v15704_v32, %v9137_v45  ;;  %v15776_v32 = vsub.f32 %v15708_v43, %v9137_v45  ;;  %v15781_v43 = vsub.f32 %v15712_v14, %v9137_v45 }
 0x260   :  { %v15785_v14 = vsub.f32 %v15716_v55, %v9137_v45  ;;  %v15789_v55 = vsub.f32 %v15720_v24, %v9137_v45 }
 0x261   :  { %v1188_v17 = vmul.f32 %v9270_v31, %v15769_v35  ;;  %v9400_v12 = vmul.f32 %v9270_v31, %v15776_v32  ;;  %v1199_v35 = vmul.f32 %v9270_v31, %v15784_v2  ;;  %v1203_v32 = vmul.f32 %v9270_v31, %v15788_v36  ;;  %v15798_v36 = vld [vmem:[#allocation33_spill] sm:$0xff] }
 0x263   :  { %15777 = vst [vmem:[#allocation64_spill] sm:$0xff] %v9400_v12  ;;  %v15806_v12 = vld [vmem:[#allocation37_spill] sm:$0xff] }
 0x27d   :  { %v6269_v4 = vpop.f32.mrb[4].mxu1 }
 0x27e   :  { %v6270_v41 = vpop.f32.mrb[5].mxu1 }
 0x27f   :  { %v6271_v21 = vadd.f32 %v6270_v41, %v6269_v4  ;;  %v9382_v41 = vmul.f32 %v9270_v31, %v15770_v25  ;;  %v15772_v4 = vsub.f32 %v15706_v51, %v9137_v45  ;;  %v1200_v25 = vmul.f32 %v9270_v31, %v15785_v14 }
 0x281   :  { %v1096_v6 = vadd.f32 %v6271_v21, %v6236_v27  ;;  %15771 = vst [vmem:[#allocation61_spill] sm:$0xff] %v9382_v41  ;;  %v15779_v27 = vsub.f32 %v15710_v19, %v9137_v45  ;;  %v15783_v19 = vsub.f32 %v15714_v30, %v9137_v45  ;;  %v15787_v30 = vsub.f32 %v15718_v44, %v9137_v45 }
 0x282   :  { %v15791_v44 = vsub.f32 %v15722_v18, %v9137_v45  ;;  %v15799_v18 = vsub.f32 %v15798_v36, %v9137_v45  ;;  %v15807_v36 = vsub.f32 %v15806_v12, %v9137_v45 }
 0x283   :  { %v1109_v16 = vmul.f32 %v9130_v39, %v1096_v6  ;;  %v9388_v6 = vmul.f32 %v9270_v31, %v15772_v4  ;;  %v1194_v21 = vmul.f32 %v9270_v31, %v15779_v27  ;;  %v1198_v1 = vmul.f32 %v9270_v31, %v15783_v19  ;;  %v15794_v19 = vld [vmem:[#allocation31_spill] sm:$0xff]  ;;  %v15804_v39 = vld [vmem:[#allocation38_spill] sm:$0xff] }
 0x284   :  { %v15795_v24 = vsub.f32 %v15794_v19, %v9137_v45 }
 0x285   :  { %v1111_v40 = vsub.f32 %v1109_v16, %v1110_v8  ;;  %15773 = vst [vmem:[#allocation62_spill] sm:$0xff] %v9388_v6  ;;  %v1195_v8 = vmul.f32 %v9270_v31, %v15780_v54  ;;  %v1196_v16 = vmul.f32 %v9270_v31, %v15781_v43  ;;  %v1206_v54 = vmul.f32 %v9270_v31, %v15791_v44  ;;  %v15792_v43 = vld [vmem:[#allocation32_spill] sm:$0xff] }
 0x286   :  { %v15793_v58 = vsub.f32 %v15792_v43, %v9137_v45  ;;  %v1208_v2 = vmul.f32 %v9270_v31, %v15795_v24  ;;  %v15810_v6 = vld [vmem:[#allocation8_spill] sm:$0xff] }
 0x287   :  { %v1112_v62 = vmax.f32 %v1111_v40, 0.0  ;;  %v15778_v40 = vsub.f32 %v15709_v60, %v9137_v45  ;;  %v15782_v60 = vsub.f32 %v15713_v3, %v9137_v45  ;;  %v15786_v3 = vsub.f32 %v15717_v56, %v9137_v45 }
 0x288   :  { %v15790_v56 = vsub.f32 %v15721_v5, %v9137_v45 }
 0x289   :  { %v1251_v15 = vadd.f32 1e-05, %v1112_v62  ;;  %v9394_v62 = vmul.f32 %v9270_v31, %v15774_v10  ;;  %v1193_v51 = vmul.f32 %v9270_v31, %v15778_v40  ;;  %v1201_v4 = vmul.f32 %v9270_v31, %v15786_v3  ;;  %v15796_v3 = vld [vmem:[#allocation34_spill] sm:$0xff] }
 0x28a   :  { %v1202_v10 = vmul.f32 %v9270_v31, %v15787_v30  ;;  %v1204_v40 = vmul.f32 %v9270_v31, %v15789_v55  ;;  %v1205_v27 = vmul.f32 %v9270_v31, %v15790_v56  ;;  %v15797_v5 = vsub.f32 %v15796_v3, %v9137_v45  ;;  %v15800_v56 = vld [vmem:[#allocation36_spill] sm:$0xff] }
 0x28b   :  { %8048 = vrsqrt.f32 %v1251_v15  ;;  %15775 = vst [vmem:[#allocation63_spill] sm:$0xff] %v9394_v62  ;;  %v1197_v15 = vmul.f32 %v9270_v31, %v15782_v60  ;;  %v1207_v60 = vmul.f32 %v9270_v31, %v15793_v58  ;;  %v1210_v55 = vmul.f32 %v9270_v31, %v15799_v18  ;;  %v15802_v58 = vld [vmem:[#allocation35_spill] sm:$0xff]  ;;  %v15808_v62 = vld [vmem:[#allocation40_spill] sm:$0xff] }
 0x28c   :  { %v1209_v30 = vmul.f32 %v9270_v31, %v15797_v5  ;;  %v15801_v44 = vsub.f32 %v15800_v56, %v9137_v45  ;;  %v15803_v19 = vsub.f32 %v15802_v58, %v9137_v45  ;;  %v15805_v3 = vsub.f32 %v15804_v39, %v9137_v45  ;;  %v15811_v58 = vld [vmem:[#allocation39_spill] sm:$0xff] }
 0x28d   :  { %v1214_v18 = vmul.f32 %v9270_v31, %v15807_v36  ;;  %v15809_v56 = vsub.f32 %v15808_v62, %v9137_v45  ;;  %v15816_v36 = vsub.f32 %v15815_v33, %v9137_v45 }
 0x28e   :  { %v1211_v43 = vmul.f32 %v9270_v31, %v15801_v44  ;;  %v1212_v24 = vmul.f32 %v9270_v31, %v15803_v19  ;;  %v1213_v5 = vmul.f32 %v9270_v31, %v15805_v3  ;;  %v15812_v19 = vsub.f32 %v15811_v58, %v9137_v45 }
 0x28f   :  { %v1215_v44 = vmul.f32 %v9270_v31, %v15809_v56  ;;  %v15814_v3 = vsub.f32 %v15813_v34, %v9137_v45  ;;  %v1218_v62 = vmul.f32 %v9270_v31, %v15816_v36  ;;  %v15818_v56 = vsub.f32 %v15817_v38, %v9137_v45  ;;  %v15833_v36 = vld [vmem:[#allocation75_spill] sm:$0xff] }
 0x290   :  { %v1216_v39 = vmul.f32 %v9270_v31, %v15812_v19 }
 0x291   :  { %v1217_v12 = vmul.f32 %v9270_v31, %v15814_v3 }
 0x295   :  { %v8049_v14 = vpop.eup %8048 }
 0x296   :  { %v9495_v41 = vrot.slane %v8049_v14, %v15810_v6  ;;  %v1219_v14 = vmul.f32 %v9270_v31, %v15818_v56  ;;  %v15835_v56 = vld [vmem:[#allocation53_spill] sm:$0xff] }
 0x298   :  { %v1258_v6 = vmul.f32 %v9495_v41, %v1188_v17  ;;  %v9515_v58 = vmul.f32 %v9495_v41, %v1193_v51  ;;  %v9518_v19 = vmul.f32 %v9495_v41, %v1194_v21  ;;  %v9521_v34 = vmul.f32 %v9495_v41, %v1195_v8 }
 0x299   :  { %v9524_v33 = vmul.f32 %v9495_v41, %v1196_v16  ;;  %v9527_v3 = vmul.f32 %v9495_v41, %v1197_v15  ;;  %v9530_v45 = vmul.f32 %v9495_v41, %v1198_v1  ;;  %v9533_v31 = vmul.f32 %v9495_v41, %v1199_v35 }
 0x29a   :  { %v9536_v38 = vmul.f32 %v9495_v41, %v1200_v25  ;;  %v9539_v17 = vmul.f32 %v9495_v41, %v1201_v4  ;;  %v9542_v51 = vmul.f32 %v9495_v41, %v1202_v10  ;;  %v9545_v21 = vmul.f32 %v9495_v41, %v1203_v32 }
 0x29b   :  { %v9548_v8 = vmul.f32 %v9495_v41, %v1204_v40  ;;  %v9551_v16 = vmul.f32 %v9495_v41, %v1205_v27  ;;  %v9554_v15 = vmul.f32 %v9495_v41, %v1206_v54  ;;  %v9557_v1 = vmul.f32 %v9495_v41, %v1207_v60 }
 0x29c   :  { %v9560_v35 = vmul.f32 %v9495_v41, %v1208_v2  ;;  %v9563_v25 = vmul.f32 %v9495_v41, %v1209_v30  ;;  %v9566_v4 = vmul.f32 %v9495_v41, %v1210_v55  ;;  %v9569_v10 = vmul.f32 %v9495_v41, %v1211_v43 }
 0x29d   :  { %v9572_v32 = vmul.f32 %v9495_v41, %v1212_v24  ;;  %v9575_v40 = vmul.f32 %v9495_v41, %v1213_v5  ;;  %v9578_v27 = vmul.f32 %v9495_v41, %v1214_v18  ;;  %v9581_v54 = vmul.f32 %v9495_v41, %v1215_v44 }
 0x29e   :  { %15819 = vst [vmem:[#allocation65_spill] sm:$0xff] %v9563_v25  ;;  %15820 = vst [vmem:[#allocation66_spill] sm:$0xff] %v9566_v4  ;;  %v9584_v60 = vmul.f32 %v9495_v41, %v1216_v39  ;;  %v9587_v2 = vmul.f32 %v9495_v41, %v1217_v12  ;;  %v9590_v30 = vmul.f32 %v9495_v41, %v1218_v62  ;;  %v15830_v39 = vld [vmem:[#allocation49_spill] sm:$0xff]  ;;  %v15834_v62 = vld [vmem:[#allocation51_spill] sm:$0xff] }
 0x29f   :  { %15821 = vst [vmem:[#allocation67_spill] sm:$0xff] %v9569_v10  ;;  %15822 = vst [vmem:[#allocation10_spill] sm:$0xff] %v9572_v32  ;;  %v9593_v55 = vmul.f32 %v9495_v41, %v1219_v14  ;;  %v9597_v43 = vmul.f32 %v9495_v41, %v9273_v28  ;;  %v9601_v24 = vmul.f32 %v9495_v41, %v9276_v46  ;;  %v15832_v12 = vld [vmem:[#allocation73_spill] sm:$0xff]  ;;  %v15842_v10 = vld [vmem:[#allocation64_spill] sm:$0xff] }
 0x2a0   :  { %15823 = vst [vmem:[#allocation9_spill] sm:$0xff] %v9575_v40  ;;  %15824 = vst [vmem:[#allocation14_spill] sm:$0xff] %v9578_v27  ;;  %v9605_v5 = vmul.f32 %v9495_v41, %v9279_v50  ;;  %v9609_v18 = vmul.f32 %v9495_v41, %v9282_v47  ;;  %v9613_v44 = vmul.f32 %v9495_v41, %v9285_v9  ;;  %v15840_v27 = vld [vmem:[#allocation62_spill] sm:$0xff]  ;;  %v15841_v40 = vld [vmem:[#allocation63_spill] sm:$0xff] }
 0x2a1   :  { %15825 = vst [vmem:[#allocation13_spill] sm:$0xff] %v9581_v54  ;;  %15826 = vst [vmem:[#allocation16_spill] sm:$0xff] %v9584_v60  ;;  %v9617_v28 = vmul.f32 %v9495_v41, %v9288_v29  ;;  %v9621_v46 = vmul.f32 %v9495_v41, %v9291_v61  ;;  %v9625_v50 = vmul.f32 %v9495_v41, %v9294_v59  ;;  %v15839_v54 = vld [vmem:[#allocation61_spill] sm:$0xff] }
 0x2a2   :  { %15827 = vst [vmem:[#allocation15_spill] sm:$0xff] %v9587_v2  ;;  %15828 = vst [vmem:[#allocation18_spill] sm:$0xff] %v9590_v30  ;;  %v9629_v47 = vmul.f32 %v9495_v41, %v9297_v57  ;;  %v9633_v9 = vmul.f32 %v9495_v41, %v9300_v52  ;;  %v9637_v29 = vmul.f32 %v9495_v41, %v9303_v49  ;;  %v15837_v30 = vld [vmem:[#allocation57_spill] sm:$0xff]  ;;  %v15838_v2 = vld [vmem:[#allocation59_spill] sm:$0xff] }
 0x2a3   :  { %15829 = vst [vmem:[#allocation17_spill] sm:$0xff] %v9593_v55  ;;  %v9641_v61 = vmul.f32 %v9495_v41, %v9306_v48  ;;  %v9645_v59 = vmul.f32 %v9495_v41, %v9309_v26  ;;  %v9649_v57 = vmul.f32 %v9495_v41, %v9312_v11  ;;  %v9653_v52 = vmul.f32 %v9495_v41, %v9315_v20  ;;  %v15836_v55 = vld [vmem:[#allocation55_spill] sm:$0xff] }
 0x2a4   :  { %v9657_v49 = vmul.f32 %v9495_v41, %v9318_v53  ;;  %v9661_v48 = vmul.f32 %v9495_v41, %v9321_v22  ;;  %v9665_v26 = vmul.f32 %v9495_v41, %v9324_v7  ;;  %v9669_v11 = vmul.f32 %v9495_v41, %v9327_v13 }
 0x2a5   :  { %v9673_v20 = vmul.f32 %v9495_v41, %v9330_v0  ;;  %v9677_v53 = vmul.f32 %v9495_v41, %v9333_v63  ;;  %v9681_v22 = vmul.f32 %v9495_v41, %v9336_v37  ;;  %v9685_v7 = vmul.f32 %v9495_v41, %v9339_v23  ;;  %v9694_v0 = vld [vmem:[%s15831_s0] ss:$0 sm:$0xff] }
 0x2a6   :  { %v9689_v13 = vmul.f32 %v9495_v41, %v15830_v39  ;;  %v9698_v63 = vmul.f32 %v9495_v41, %v15832_v12  ;;  %v9702_v37 = vmul.f32 %v9495_v41, %v15833_v36  ;;  %v9706_v23 = vmul.f32 %v9495_v41, %v15834_v62 }
 0x2a7   :  { %v9710_v14 = vmul.f32 %v9495_v41, %v15835_v56  ;;  %v9714_v39 = vmul.f32 %v9495_v41, %v9357_v42  ;;  %v9718_v12 = vmul.f32 %v9495_v41, %v15836_v55  ;;  %v9722_v36 = vmul.f32 %v9495_v41, %v15837_v30 }
 0x2a8   :  { %v1257_v62 = vmul.f32 %v9495_v41, %v15838_v2  ;;  %v1328_v60 = vadd.f32 %v9694_v0, %v1258_v6  ;;  %v1259_v56 = vmul.f32 %v9495_v41, %v15839_v54  ;;  %v1260_v42 = vmul.f32 %v9495_v41, %v15840_v27 }
 0x2a9   :  { %v1261_v32 = vmul.f32 %v9495_v41, %v15841_v40  ;;  %v1262_v30 = vmul.f32 %v9495_v41, %v15842_v10  ;;  %v1333_v10 = vadd.f32 %v9694_v0, %v9515_v58  ;;  %v1336_v58 = vadd.f32 %v9694_v0, %v9524_v33 }
 0x2aa   :  { %v1327_v55 = vadd.f32 %v9694_v0, %v1257_v62  ;;  %v1392_v4 = vmax.f32 %v1328_v60, 0.0  ;;  %v1329_v2 = vadd.f32 %v9694_v0, %v1259_v56  ;;  %v1330_v6 = vadd.f32 %v9694_v0, %v1260_v42 }
 0x2ab   :  { %v1331_v27 = vadd.f32 %v9694_v0, %v1261_v32  ;;  %v1332_v62 = vadd.f32 %v9694_v0, %v1262_v30  ;;  %v1397_v32 = vmax.f32 %v1333_v10, 0.0  ;;  %v1337_v42 = vadd.f32 %v9694_v0, %v9527_v3 }
 0x2ac   :  { %v1391_v25 = vmax.f32 %v1327_v55, 0.0  ;;  %v1393_v54 = vmax.f32 %v1329_v2, 0.0  ;;  %v1394_v40 = vmax.f32 %v1330_v6, 0.0  ;;  %v9759_v30 = vadd.f32 %v9694_v0, %v9597_v43 }
 0x2ad   :  { %v1395_v41 = vmax.f32 %v1331_v27, 0.0  ;;  %v1396_v60 = vmax.f32 %v1332_v62, 0.0  ;;  %v9772_v33 = vadd.f32 %v9694_v0, %v9609_v18  ;;  %v9776_v3 = vadd.f32 %v9694_v0, %v9613_v44 }
 0x2ae   :  { %7068 = vmatprep.mubr.msk.f32.mxu0 %vm1463_vm5, %v1391_v25  ;;  %v1334_v25 = vadd.f32 %v9694_v0, %v9518_v19  ;;  %v9763_v19 = vadd.f32 %v9694_v0, %v9601_v24  ;;  %v9780_v43 = vadd.f32 %v9694_v0, %v9617_v28  ;;  %v9785_v24 = vadd.f32 %v9694_v0, %v9621_v46 }
 0x2af   :  { %7069 = vmatmul.mubr.msk.f32.vlgmr.msra.gmra.mrb[66].mxu0 %vm1463_vm5, %v1392_v4  ;;  %v1335_v4 = vadd.f32 %v9694_v0, %v9521_v34  ;;  %v9767_v34 = vadd.f32 %v9694_v0, %v9605_v5  ;;  %v1400_v5 = vmax.f32 %v1336_v58, 0.0  ;;  %v1338_v2 = vadd.f32 %v9694_v0, %v9530_v45 }
 0x2b0   :  { %7071 = vmatprep.mubr.msk.f32.mxu0 %vm1463_vm5, %v1393_v54  ;;  %v1398_v56 = vmax.f32 %v1334_v25, 0.0  ;;  %v1339_v18 = vadd.f32 %v9694_v0, %v9533_v31  ;;  %v9793_v44 = vadd.f32 %v9694_v0, %v9625_v50  ;;  %v1401_v6 = vmax.f32 %v1337_v42, 0.0  ;;  %v15845_v42 = vld [vmem:[#allocation67_spill] sm:$0xff] }
 0x2b1   :  { %v1399_v55 = vmax.f32 %v1335_v4, 0.0  ;;  %v9797_v28 = vadd.f32 %v9694_v0, %v9629_v47  ;;  %v9801_v46 = vadd.f32 %v9694_v0, %v9633_v9  ;;  %v9805_v54 = vadd.f32 %v9694_v0, %v9637_v29 }
 0x2b2   :  { %v9810_v45 = vadd.f32 %v9694_v0, %v9641_v61  ;;  %v9814_v31 = vadd.f32 %v9694_v0, %v9645_v59  ;;  %v9818_v50 = vadd.f32 %v9694_v0, %v9649_v57  ;;  %v9823_v47 = vadd.f32 %v9694_v0, %v9653_v52 }
 0x2b3   :  { %7072 = vmatmul.mubr.msk.f32.gmra.mrb[68].mxu0 %vm1463_vm5, %v1394_v40  ;;  %v1402_v9 = vmax.f32 %v1338_v2, 0.0  ;;  %v1340_v29 = vadd.f32 %v9694_v0, %v9536_v38  ;;  %v1341_v61 = vadd.f32 %v9694_v0, %v9539_v17  ;;  %v9831_v59 = vadd.f32 %v9694_v0, %v9657_v49 }
 0x2b4   :  { %7074 = vmatprep.mubr.msk.f32.mxu0 %vm1463_vm5, %v1395_v41  ;;  %v1403_v27 = vmax.f32 %v1339_v18, 0.0  ;;  %v9835_v57 = vadd.f32 %v9694_v0, %v9661_v48  ;;  %v9839_v52 = vadd.f32 %v9694_v0, %v9665_v26  ;;  %v9843_v40 = vadd.f32 %v9694_v0, %v9669_v11 }
 0x2b5   :  { %v9848_v38 = vadd.f32 %v9694_v0, %v9673_v20  ;;  %v9852_v17 = vadd.f32 %v9694_v0, %v9677_v53  ;;  %v9856_v49 = vadd.f32 %v9694_v0, %v9681_v22  ;;  %v9861_v48 = vadd.f32 %v9694_v0, %v9685_v7 }
 0x2b6   :  { %v1404_v26 = vmax.f32 %v1340_v29, 0.0  ;;  %v1405_v11 = vmax.f32 %v1341_v61, 0.0  ;;  %v1342_v20 = vadd.f32 %v9694_v0, %v9542_v51  ;;  %v9867_v62 = vadd.f32 %v9694_v0, %v9689_v13  ;;  %v15848_v61 = vld [vmem:[#allocation14_spill] sm:$0xff] }
 0x2b7   :  { %7075 = vmatmul.mubr.msk.f32.gmra.mrb[70].mxu0 %vm1463_vm5, %v1396_v60  ;;  %v1343_v53 = vadd.f32 %v9694_v0, %v9545_v21  ;;  %v9873_v22 = vadd.f32 %v9694_v0, %v9698_v63  ;;  %v9877_v7 = vadd.f32 %v9694_v0, %v9702_v37  ;;  %v9881_v41 = vadd.f32 %v9694_v0, %v9706_v23 }
 0x2b8   :  { %7077 = vmatprep.mubr.msk.f32.mxu0 %vm1463_vm5, %v1397_v32  ;;  %v9886_v51 = vadd.f32 %v9694_v0, %v9710_v14  ;;  %v9890_v21 = vadd.f32 %v9694_v0, %v9714_v39  ;;  %v9894_v13 = vadd.f32 %v9694_v0, %v9718_v12  ;;  %v9899_v63 = vadd.f32 %v9694_v0, %v9722_v36  ;;  %v15843_v32 = vld [vmem:[#allocation65_spill] sm:$0xff] }
 0x2b9   :  { %v1406_v37 = vmax.f32 %v1342_v20, 0.0  ;;  %v1344_v23 = vadd.f32 %v9694_v0, %v9548_v8  ;;  %v1407_v14 = vmax.f32 %v1343_v53, 0.0  ;;  %v1345_v10 = vadd.f32 %v9694_v0, %v9551_v16 }
 0x2ba   :  { %v1346_v12 = vadd.f32 %v9694_v0, %v9554_v15  ;;  %v1347_v36 = vadd.f32 %v9694_v0, %v9557_v1  ;;  %v1348_v16 = vadd.f32 %v9694_v0, %v9560_v35  ;;  %v1349_v4 = vadd.f32 %v9694_v0, %v15843_v32 }
 0x2bb   :  { %7078 = vmatmul.mubr.msk.f32.gmra.mrb[72].mxu0 %vm1463_vm5, %v1398_v56  ;;  %v1408_v39 = vmax.f32 %v1344_v23, 0.0  ;;  %v1409_v60 = vmax.f32 %v1345_v10, 0.0  ;;  %v15844_v56 = vld [vmem:[#allocation66_spill] sm:$0xff]  ;;  %v15851_v10 = vld [vmem:[#allocation15_spill] sm:$0xff] }
 0x2bc   :  { %7080 = vmatprep.mubr.msk.f32.mxu0 %vm1463_vm5, %v1399_v55  ;;  %v1410_v8 = vmax.f32 %v1346_v12, 0.0  ;;  %v1411_v25 = vmax.f32 %v1347_v36, 0.0  ;;  %v1412_v15 = vmax.f32 %v1348_v16, 0.0  ;;  %v1350_v1 = vadd.f32 %v9694_v0, %v15844_v56  ;;  %v15853_v16 = vld [vmem:[#allocation17_spill] sm:$0xff] }
 0x2bd   :  { %v1413_v58 = vmax.f32 %v1349_v4, 0.0  ;;  %v1351_v55 = vadd.f32 %v9694_v0, %v15845_v42  ;;  %v1425_v56 = vmax.f32 %v9763_v19, 0.0  ;;  %v1429_v42 = vmax.f32 %v9780_v43, 0.0 }
 0x2be   :  { %v1414_v35 = vmax.f32 %v1350_v1, 0.0  ;;  %v1427_v1 = vmax.f32 %v9772_v33, 0.0  ;;  %v1431_v19 = vmax.f32 %v9793_v44, 0.0  ;;  %v1433_v33 = vmax.f32 %v9801_v46, 0.0 }
 0x2bf   :  { %7081 = vmatmul.mubr.msk.f32.gmra.mrb[74].mxu0 %vm1463_vm5, %v1400_v5  ;;  %v15846_v5 = vld [vmem:[#allocation10_spill] sm:$0xff]  ;;  %v1415_v18 = vmax.f32 %v1351_v55, 0.0  ;;  %v1435_v43 = vmax.f32 %v9810_v45, 0.0  ;;  %v1437_v44 = vmax.f32 %v9818_v50, 0.0  ;;  %v1439_v46 = vmax.f32 %v9831_v59, 0.0 }
 0x2c0   :  { %7083 = vmatprep.mubr.msk.f32.mxu0 %vm1463_vm5, %v1401_v6  ;;  %v1352_v2 = vadd.f32 %v9694_v0, %v15846_v5  ;;  %v15847_v6 = vld [vmem:[#allocation9_spill] sm:$0xff]  ;;  %v1441_v45 = vmax.f32 %v9839_v52, 0.0  ;;  %v1443_v50 = vmax.f32 %v9848_v38, 0.0  ;;  %v1445_v59 = vmax.f32 %v9856_v49, 0.0 }
 0x2c1   :  { %v1447_v52 = vmax.f32 %v9867_v62, 0.0  ;;  %v1449_v38 = vmax.f32 %v9877_v7, 0.0  ;;  %v1451_v49 = vmax.f32 %v9886_v51, 0.0  ;;  %v1453_v62 = vmax.f32 %v9894_v13, 0.0 }
 0x2c2   :  { %v1416_v29 = vmax.f32 %v1352_v2, 0.0 }
 0x2c3   :  { %7084 = vmatmul.mubr.msk.f32.gmra.mrb[76].mxu0 %vm1463_vm5, %v1402_v9  ;;  %v1353_v9 = vadd.f32 %v9694_v0, %v15847_v6 }
 0x2c4   :  { %7086 = vmatprep.mubr.msk.f32.mxu0 %vm1463_vm5, %v1403_v27  ;;  %v1354_v27 = vadd.f32 %v9694_v0, %v15848_v61 }
 0x2c6   :  { %v1418_v53 = vmax.f32 %v1354_v27, 0.0 }
 0x2c7   :  { %7087 = vmatmul.mubr.msk.f32.gmra.mrb[78].mxu0 %vm1463_vm5, %v1404_v26  ;;  %v1417_v26 = vmax.f32 %v1353_v9, 0.0 }
 0x2c8   :  { %7089 = vmatprep.mubr.msk.f32.mxu0 %vm1463_vm5, %v1405_v11  ;;  %v15849_v11 = vld [vmem:[#allocation13_spill] sm:$0xff] }
 0x2c9   :  { %v1355_v20 = vadd.f32 %v9694_v0, %v15849_v11 }
 0x2cb   :  { %7090 = vmatmul.mubr.msk.f32.gmra.mrb[80].mxu0 %vm1463_vm5, %v1406_v37  ;;  %v15850_v37 = vld [vmem:[#allocation16_spill] sm:$0xff] }
 0x2cc   :  { %7092 = vmatprep.mubr.msk.f32.mxu0 %vm1463_vm5, %v1407_v14  ;;  %v1356_v23 = vadd.f32 %v9694_v0, %v15850_v37  ;;  %v1419_v14 = vmax.f32 %v1355_v20, 0.0 }
 0x2ce   :  { %v1420_v12 = vmax.f32 %v1356_v23, 0.0 }
 0x2cf   :  { %7093 = vmatmul.mubr.msk.f32.gmra.mrb[82].mxu0 %vm1463_vm5, %v1408_v39  ;;  %v1357_v39 = vadd.f32 %v9694_v0, %v15851_v10 }
 0x2d0   :  { %7095 = vmatprep.mubr.msk.f32.mxu0 %vm1463_vm5, %v1409_v60  ;;  %v15852_v60 = vld [vmem:[#allocation18_spill] sm:$0xff] }
 0x2d1   :  { %v1358_v36 = vadd.f32 %v9694_v0, %v15852_v60 }
 0x2d3   :  { %7096 = vmatmul.mubr.msk.f32.gmra.mrb[84].mxu0 %vm1463_vm5, %v1410_v8  ;;  %v1421_v8 = vmax.f32 %v1357_v39, 0.0  ;;  %v1422_v32 = vmax.f32 %v1358_v36, 0.0 }
 0x2d4   :  { %7098 = vmatprep.mubr.msk.f32.mxu0 %vm1463_vm5, %v1411_v25  ;;  %v1359_v25 = vadd.f32 %v9694_v0, %v15853_v16  ;;  %v1426_v0 = vmax.f32 %v9767_v34, 0.0  ;;  %v1432_v34 = vmax.f32 %v9797_v28, 0.0  ;;  %v1438_v28 = vmax.f32 %v9823_v47, 0.0 }
 0x2d5   :  { %v1444_v47 = vmax.f32 %v9852_v17, 0.0  ;;  %v1450_v17 = vmax.f32 %v9881_v41, 0.0 }
 0x2d6   :  { %v1423_v4 = vmax.f32 %v1359_v25, 0.0 }
 0x2d7   :  { %7099 = vmatmul.mubr.msk.f32.gmra.mrb[86].mxu0 %vm1463_vm5, %v1412_v15  ;;  %v1424_v15 = vmax.f32 %v9759_v30, 0.0  ;;  %v1430_v30 = vmax.f32 %v9785_v24, 0.0  ;;  %v1436_v24 = vmax.f32 %v9814_v31, 0.0  ;;  %v1442_v31 = vmax.f32 %v9843_v40, 0.0 }
 0x2d8   :  { %7101 = vmatprep.mubr.msk.f32.mxu0 %vm1463_vm5, %v1413_v58  ;;  %v1428_v58 = vmax.f32 %v9776_v3, 0.0  ;;  %v1434_v3 = vmax.f32 %v9805_v54, 0.0  ;;  %v1440_v54 = vmax.f32 %v9835_v57, 0.0  ;;  %v1446_v57 = vmax.f32 %v9861_v48, 0.0 }
 0x2d9   :  { %v1448_v40 = vmax.f32 %v9873_v22, 0.0  ;;  %v1452_v48 = vmax.f32 %v9890_v21, 0.0  ;;  %v1454_v22 = vmax.f32 %v9899_v63, 0.0 }
 0x2db   :  { %7102 = vmatmul.mubr.msk.f32.gmra.mrb[88].mxu0 %vm1463_vm5, %v1414_v35 }
 0x2dc   :  { %7104 = vmatprep.mubr.msk.f32.mxu0 %vm1463_vm5, %v1415_v18 }
 0x2df   :  { %7105 = vmatmul.mubr.msk.f32.gmra.mrb[90].mxu0 %vm1463_vm5, %v1416_v29 }
 0x2e0   :  { %7107 = vmatprep.mubr.msk.f32.mxu0 %vm1463_vm5, %v1417_v26 }
 0x2e3   :  { %7108 = vmatmul.mubr.msk.f32.gmra.mrb[92].mxu0 %vm1463_vm5, %v1418_v53 }
 0x2e4   :  { %7110 = vmatprep.mubr.msk.f32.mxu0 %vm1463_vm5, %v1419_v14 }
 0x2e7   :  { %7111 = vmatmul.mubr.msk.f32.gmra.mrb[94].mxu0 %vm1463_vm5, %v1420_v12 }
 0x2e8   :  { %7113 = vmatprep.mubr.msk.f32.mxu0 %vm1463_vm5, %v1421_v8 }
 0x2eb   :  { %7114 = vmatmul.mubr.msk.f32.gmra.mrb[96].mxu0 %vm1463_vm5, %v1422_v32 }
 0x2ec   :  { %7116 = vmatprep.mubr.msk.f32.mxu0 %vm1463_vm5, %v1423_v4 }
 0x2ef   :  { %7117 = vmatmul.mubr.msk.f32.gmra.mrb[98].mxu0 %vm1463_vm5, %v1424_v15 }
 0x2f0   :  { %7119 = vmatprep.mubr.msk.f32.mxu0 %vm1463_vm5, %v1425_v56 }
 0x2f3   :  { %7120 = vmatmul.mubr.msk.f32.gmra.mrb[100].mxu0 %vm1463_vm5, %v1426_v0 }
 0x2f4   :  { %7122 = vmatprep.mubr.msk.f32.mxu0 %vm1463_vm5, %v1427_v1 }
 0x2f7   :  { %7123 = vmatmul.mubr.msk.f32.gmra.mrb[102].mxu0 %vm1463_vm5, %v1428_v58 }
 0x2f8   :  { %7125 = vmatprep.mubr.msk.f32.mxu0 %vm1463_vm5, %v1429_v42 }
 0x2fb   :  { %7126 = vmatmul.mubr.msk.f32.gmra.mrb[104].mxu0 %vm1463_vm5, %v1430_v30 }
 0x2fc   :  { %7128 = vmatprep.mubr.msk.f32.mxu0 %vm1463_vm5, %v1431_v19 }
 0x2ff   :  { %7129 = vmatmul.mubr.msk.f32.gmra.mrb[106].mxu0 %vm1463_vm5, %v1432_v34 }
 0x300   :  { %7131 = vmatprep.mubr.msk.f32.mxu0 %vm1463_vm5, %v1433_v33 }
 0x303   :  { %7132 = vmatmul.mubr.msk.f32.gmra.mrb[108].mxu0 %vm1463_vm5, %v1434_v3 }
 0x304   :  { %7134 = vmatprep.mubr.msk.f32.mxu0 %vm1463_vm5, %v1435_v43 }
 0x307   :  { %7135 = vmatmul.mubr.msk.f32.gmra.mrb[110].mxu0 %vm1463_vm5, %v1436_v24 }
 0x308   :  { %7137 = vmatprep.mubr.msk.f32.mxu0 %vm1463_vm5, %v1437_v44 }
 0x30b   :  { %7138 = vmatmul.mubr.msk.f32.gmra.mrb[112].mxu0 %vm1463_vm5, %v1438_v28 }
 0x30c   :  { %7140 = vmatprep.mubr.msk.f32.mxu0 %vm1463_vm5, %v1439_v46 }
 0x30f   :  { %7141 = vmatmul.mubr.msk.f32.gmra.mrb[114].mxu0 %vm1463_vm5, %v1440_v54 }
 0x310   :  { %7143 = vmatprep.mubr.msk.f32.mxu0 %vm1463_vm5, %v1441_v45 }
 0x313   :  { %7144 = vmatmul.mubr.msk.f32.gmra.mrb[116].mxu0 %vm1463_vm5, %v1442_v31 }
 0x314   :  { %7146 = vmatprep.mubr.msk.f32.mxu0 %vm1463_vm5, %v1443_v50 }
 0x317   :  { %7147 = vmatmul.mubr.msk.f32.gmra.mrb[118].mxu0 %vm1463_vm5, %v1444_v47 }
 0x318   :  { %7149 = vmatprep.mubr.msk.f32.mxu0 %vm1463_vm5, %v1445_v59 }
 0x31b   :  { %7150 = vmatmul.mubr.msk.f32.gmra.mrb[120].mxu0 %vm1463_vm5, %v1446_v57 }
 0x31c   :  { %7152 = vmatprep.mubr.msk.f32.mxu0 %vm1463_vm5, %v1447_v52 }
 0x31f   :  { %7153 = vmatmul.mubr.msk.f32.gmra.mrb[122].mxu0 %vm1463_vm5, %v1448_v40 }
 0x320   :  { %7155 = vmatprep.mubr.msk.f32.mxu0 %vm1463_vm5, %v1449_v38 }
 0x323   :  { %7156 = vmatmul.mubr.msk.f32.gmra.mrb[124].mxu0 %vm1463_vm5, %v1450_v17 }
 0x324   :  { %7158 = vmatprep.mubr.msk.f32.mxu0 %vm1463_vm5, %v1451_v49 }
 0x327   :  { %7159 = vmatmul.mubr.msk.f32.gmra.mrb[126].mxu0 %vm1463_vm5, %v1452_v48 }
 0x328   :  { %7161 = vmatprep.mubr.msk.f32.mxu0 %vm1463_vm5, %v1453_v62 }
 0x32b   :  { %7162 = vmatmul.mubr.msk.f32.gmra.mrb[128].mxu0 %vm1463_vm5, %v1454_v22 }
 0x382   :  { %v10013_v7 = vpop.f32.mrb[66].mxu0 }
 0x383   :  { %15854 = vst [vmem:[#allocation20_spill] sm:$0xff] %v10013_v7  ;;  %v10017_v41 = vmul.f32 %v10013_v7, %v10013_v7  ;;  %v10019_v51 = vpop.f32.mrb[67].mxu0 }
 0x384   :  { %15855 = vst [vmem:[#allocation19_spill] sm:$0xff] %v10019_v51  ;;  %v7550_v21 = vpack.c.bf16 %v10013_v7, %v10019_v51  ;;  %v10025_v13 = vmul.f32 %v10019_v51, %v10019_v51 }
 0x386   :  { %v10029_v55 = vpop.f32.mrb[68].mxu0 }
 0x387   :  { %15856 = vst [vmem:[#allocation22_spill] sm:$0xff] %v10029_v55  ;;  %v10033_v35 = vmul.f32 %v10029_v55, %v10029_v55  ;;  %v10035_v5 = vpop.f32.mrb[69].mxu0 }
 0x388   :  { %15857 = vst [vmem:[#allocation21_spill] sm:$0xff] %v10035_v5  ;;  %v7554_v2 = vpack.c.bf16 %v10029_v55, %v10035_v5  ;;  %v10041_v18 = vmul.f32 %v10035_v5, %v10035_v5 }
 0x38a   :  { %v10045_v9 = vpop.f32.mrb[70].mxu0 }
 0x38b   :  { %15858 = vst [vmem:[#allocation24_spill] sm:$0xff] %v10045_v9  ;;  %v10049_v29 = vmul.f32 %v10045_v9, %v10045_v9  ;;  %v10051_v61 = vpop.f32.mrb[71].mxu0 }
 0x38c   :  { %15859 = vst [vmem:[#allocation23_spill] sm:$0xff] %v10051_v61  ;;  %v7558_v27 = vpack.c.bf16 %v10045_v9, %v10051_v61  ;;  %v10057_v26 = vmul.f32 %v10051_v61, %v10051_v61 }
 0x38e   :  { %v10061_v20 = vpop.f32.mrb[72].mxu0 }
 0x38f   :  { %15860 = vst [vmem:[#allocation26_spill] sm:$0xff] %v10061_v20  ;;  %v10065_v53 = vmul.f32 %v10061_v20, %v10061_v20  ;;  %v10067_v37 = vpop.f32.mrb[73].mxu0 }
 0x390   :  { %15861 = vst [vmem:[#allocation25_spill] sm:$0xff] %v10067_v37  ;;  %v7562_v23 = vpack.c.bf16 %v10061_v20, %v10067_v37  ;;  %v10073_v14 = vmul.f32 %v10067_v37, %v10067_v37 }
 0x392   :  { %v10077_v39 = vpop.f32.mrb[74].mxu0 }
 0x393   :  { %15862 = vst [vmem:[#allocation28_spill] sm:$0xff] %v10077_v39  ;;  %v10081_v12 = vmul.f32 %v10077_v39, %v10077_v39  ;;  %v10083_v60 = vpop.f32.mrb[75].mxu0 }
 0x394   :  { %15863 = vst [vmem:[#allocation27_spill] sm:$0xff] %v10083_v60  ;;  %v7566_v36 = vpack.c.bf16 %v10077_v39, %v10083_v60  ;;  %v10089_v8 = vmul.f32 %v10083_v60, %v10083_v60 }
 0x396   :  { %v10093_v25 = vpop.f32.mrb[76].mxu0 }
 0x397   :  { %15864 = vst [vmem:[#allocation30_spill] sm:$0xff] %v10093_v25  ;;  %v10097_v32 = vmul.f32 %v10093_v25, %v10093_v25  ;;  %v10099_v4 = vpop.f32.mrb[77].mxu0 }
 0x398   :  { %15865 = vst [vmem:[#allocation29_spill] sm:$0xff] %v10099_v4  ;;  %v7570_v15 = vpack.c.bf16 %v10093_v25, %v10099_v4  ;;  %v10105_v56 = vmul.f32 %v10099_v4, %v10099_v4 }
 0x39a   :  { %v10109_v1 = vpop.f32.mrb[78].mxu0 }
 0x39b   :  { %15866 = vst [vmem:[#allocation43_spill] sm:$0xff] %v10109_v1  ;;  %v10113_v58 = vmul.f32 %v10109_v1, %v10109_v1  ;;  %v10115_v42 = vpop.f32.mrb[79].mxu0 }
 0x39c   :  { %15867 = vst [vmem:[#allocation48_spill] sm:$0xff] %v10115_v42  ;;  %v10121_v19 = vmul.f32 %v10115_v42, %v10115_v42 }
 0x39e   :  { %v10125_v33 = vpop.f32.mrb[80].mxu0 }
 0x39f   :  { %15868 = vst [vmem:[#allocation46_spill] sm:$0xff] %v10125_v33  ;;  %v10129_v3 = vmul.f32 %v10125_v33, %v10125_v33  ;;  %v10131_v43 = vpop.f32.mrb[81].mxu0 }
 0x3a0   :  { %15869 = vst [vmem:[#allocation52_spill] sm:$0xff] %v10131_v43  ;;  %v10137_v44 = vmul.f32 %v10131_v43, %v10131_v43 }
 0x3a2   :  { %v10141_v46 = vpop.f32.mrb[82].mxu0 }
 0x3a3   :  { %15870 = vst [vmem:[#allocation50_spill] sm:$0xff] %v10141_v46  ;;  %v10145_v54 = vmul.f32 %v10141_v46, %v10141_v46  ;;  %v10147_v45 = vpop.f32.mrb[83].mxu0 }
 0x3a4   :  { %15871 = vst [vmem:[#allocation56_spill] sm:$0xff] %v10147_v45  ;;  %v7548_v31 = vpack.c.bf16 %v10141_v46, %v10147_v45  ;;  %v10153_v50 = vmul.f32 %v10147_v45, %v10147_v45 }
 0x3a6   :  { %v10155_v47 = vpop.f32.mrb[84].mxu0  ;;  %7549 = vmatprep.subr.bf16.mxu1 %v7548_v31 }
 0x3a7   :  { %15872 = vst [vmem:[#allocation54_spill] sm:$0xff] %v10155_v47  ;;  %v10161_v57 = vmul.f32 %v10155_v47, %v10155_v47  ;;  %v10163_v52 = vpop.f32.mrb[85].mxu0  ;;  %7551 = vmatpush3.bf16.msra.mxu1 %v7550_v21 }
 0x3a8   :  { %15873 = vst [vmem:[#allocation60_spill] sm:$0xff] %v10163_v52  ;;  %v7552_v40 = vpack.c.bf16 %v10155_v47, %v10163_v52  ;;  %v10169_v38 = vmul.f32 %v10163_v52, %v10163_v52 }
 0x3aa   :  { %v10171_v17 = vpop.f32.mrb[86].mxu0  ;;  %7553 = vmatprep.subr.bf16.mxu1 %v7552_v40 }
 0x3ab   :  { %15874 = vst [vmem:[#allocation58_spill] sm:$0xff] %v10171_v17  ;;  %v10177_v48 = vmul.f32 %v10171_v17, %v10171_v17  ;;  %v10179_v62 = vpop.f32.mrb[87].mxu0  ;;  %7555 = vmatpush3.bf16.msra.mxu1 %v7554_v2 }
 0x3ac   :  { %15875 = vst [vmem:[#allocation69_spill] sm:$0xff] %v10179_v62  ;;  %v7556_v22 = vpack.c.bf16 %v10171_v17, %v10179_v62  ;;  %v10185_v21 = vmul.f32 %v10179_v62, %v10179_v62 }
 0x3ae   :  { %v10187_v31 = vpop.f32.mrb[88].mxu0  ;;  %7557 = vmatprep.subr.bf16.mxu1 %v7556_v22 }
 0x3af   :  { %15876 = vst [vmem:[#allocation68_spill] sm:$0xff] %v10187_v31  ;;  %v10193_v28 = vmul.f32 %v10187_v31, %v10187_v31  ;;  %v10195_v34 = vpop.f32.mrb[89].mxu0  ;;  %7559 = vmatpush3.bf16.msra.mxu1 %v7558_v27 }
 0x3b0   :  { %15877 = vst [vmem:[#allocation71_spill] sm:$0xff] %v10195_v34  ;;  %v7560_v2 = vpack.c.bf16 %v10187_v31, %v10195_v34  ;;  %v10201_v0 = vmul.f32 %v10195_v34, %v10195_v34  ;;  %v15891_v31 = vmov 1.0  }
 0x3b2   :  { %v10203_v16 = vpop.f32.mrb[90].mxu0  ;;  %7561 = vmatprep.subr.bf16.mxu1 %v7560_v2 }
 0x3b3   :  { %15878 = vst [vmem:[#allocation70_spill] sm:$0xff] %v10203_v16  ;;  %v10209_v10 = vmul.f32 %v10203_v16, %v10203_v16  ;;  %v10211_v11 = vpop.f32.mrb[91].mxu0  ;;  %7563 = vmatpush3.bf16.msra.mxu1 %v7562_v23 }
 0x3b4   :  { %15879 = vst [vmem:[#allocation74_spill] sm:$0xff] %v10211_v11  ;;  %v7564_v27 = vpack.c.bf16 %v10203_v16, %v10211_v11  ;;  %v10217_v40 = vmul.f32 %v10211_v11, %v10211_v11 }
 0x3b6   :  { %v10219_v6 = vpop.f32.mrb[92].mxu0  ;;  %7565 = vmatprep.subr.bf16.mxu1 %v7564_v27 }
 0x3b7   :  { %15880 = vst [vmem:[#allocation72_spill] sm:$0xff] %v10219_v6  ;;  %v10225_v22 = vmul.f32 %v10219_v6, %v10219_v6  ;;  %v10227_v49 = vpop.f32.mrb[93].mxu0  ;;  %7567 = vmatpush3.bf16.msra.mxu1 %v7566_v36 }
 0x3b8   :  { %15881 = vst [vmem:[#allocation77_spill] sm:$0xff] %v10227_v49  ;;  %v7568_v23 = vpack.c.bf16 %v10219_v6, %v10227_v49  ;;  %v10233_v63 = vmul.f32 %v10227_v49, %v10227_v49 }
 0x3ba   :  { %v10235_v59 = vpop.f32.mrb[94].mxu0  ;;  %7569 = vmatprep.subr.bf16.mxu1 %v7568_v23 }
 0x3bb   :  { %15882 = vst [vmem:[#allocation76_spill] sm:$0xff] %v10235_v59  ;;  %v10241_v2 = vmul.f32 %v10235_v59, %v10235_v59  ;;  %v10243_v24 = vpop.f32.mrb[95].mxu0  ;;  %7571 = vmatpush3.bf16.msra.mxu1 %v7570_v15  ;;  %v15886_v15 = vpack.c.bf16 %v10109_v1, %v10115_v42 }
 0x3bc   :  { %15883 = vst [vmem:[#allocation79_spill] sm:$0xff] %v10243_v24  ;;  %v7572_v36 = vpack.c.bf16 %v10235_v59, %v10243_v24  ;;  %v10252_v30 = vmul.f32 %v10243_v24, %v10243_v24 }
 0x3be   :  { %v10254_v23 = vpop.f32.mrb[96].mxu0  ;;  %7573 = vmatprep.subr.bf16.mxu1 %v7572_v36 }
 0x3bf   :  { %15884 = vst [vmem:[#allocation78_spill] sm:$0xff] %v10254_v23  ;;  %v10260_v6 = vmul.f32 %v10254_v23, %v10254_v23  ;;  %v10262_v49 = vpop.f32.mrb[97].mxu0  ;;  %7575 = vmatpush3.bf16.msra.mxu1 %v15886_v15  ;;  %v15889_v15 = vpack.c.bf16 %v10125_v33, %v10131_v43 }
 0x3c0   :  { %15885 = vst [vmem:[#allocation81_spill] sm:$0xff] %v10262_v49  ;;  %v7576_v59 = vpack.c.bf16 %v10254_v23, %v10262_v49  ;;  %v10271_v24 = vmul.f32 %v10262_v49, %v10262_v49 }
 0x3c2   :  { %v10273_v36 = vpop.f32.mrb[98].mxu0  ;;  %7577 = vmatprep.subr.bf16.mxu1 %v7576_v59 }
 0x3c3   :  { %15887 = vst [vmem:[#allocation80_spill] sm:$0xff] %v10273_v36  ;;  %v10279_v16 = vmul.f32 %v10273_v36, %v10273_v36  ;;  %v10281_v11 = vpop.f32.mrb[99].mxu0  ;;  %7579 = vmatpush3.bf16.msra.mxu1 %v15889_v15 }
 0x3c4   :  { %15888 = vst [vmem:[#allocation83_spill] sm:$0xff] %v10281_v11  ;;  %v7582_v23 = vpack.c.bf16 %v10273_v36, %v10281_v11  ;;  %v10290_v49 = vmul.f32 %v10281_v11, %v10281_v11 }
 0x3c6   :  { %v10294_v27 = vpop.f32.mrb[100].mxu0  ;;  %5969 = vmatmul.mubr.msk.f32.vlgmr.msra.gmra.mrb[6].mxu1 %vm8760_vm3, %v15891_v31 }
 0x3c7   :  { %15890 = vst [vmem:[#allocation82_spill] sm:$0xff] %v10294_v27  ;;  %v10301_v17 = vmul.f32 %v10294_v27, %v10294_v27  ;;  %v10303_v15 = vpop.f32.mrb[101].mxu0  ;;  %5970 = vmatprep.mubr.msk.f32.mxu1 %vm8489_vm2, %v15891_v31 }
 0x3c8   :  { %15893 = vst [vmem:[#allocation32_spill] sm:$0xff] %v10303_v15  ;;  %v7586_v11 = vpack.c.bf16 %v10294_v27, %v10303_v15  ;;  %v10312_v59 = vmul.f32 %v10303_v15, %v10303_v15 }
 0x3ca   :  { %v10316_v47 = vpop.f32.mrb[102].mxu0 }
 0x3cb   :  { %15895 = vst [vmem:[#allocation31_spill] sm:$0xff] %v10316_v47  ;;  %v10320_v52 = vmul.f32 %v10316_v47, %v10316_v47  ;;  %v10322_v46 = vpop.f32.mrb[103].mxu0 }
 0x3cc   :  { %15897 = vst [vmem:[#allocation33_spill] sm:$0xff] %v10322_v46  ;;  %v7590_v45 = vpack.c.bf16 %v10316_v47, %v10322_v46  ;;  %v10328_v27 = vmul.f32 %v10322_v46, %v10322_v46 }
 0x3cd   :  { %15896 = vst [vmem:[#allocation34_spill] sm:$0xff] %v10320_v52 }
 0x3ce   :  { %15898 = vst [vmem:[#allocation36_spill] sm:$0xff] %v10328_v27  ;;  %v10332_v33 = vpop.f32.mrb[104].mxu0 }
 0x3cf   :  { %15899 = vst [vmem:[#allocation35_spill] sm:$0xff] %v10332_v33  ;;  %v10336_v62 = vmul.f32 %v10332_v33, %v10332_v33  ;;  %v10338_v43 = vpop.f32.mrb[105].mxu0 }
 0x3d0   :  { %15901 = vst [vmem:[#allocation37_spill] sm:$0xff] %v10338_v43  ;;  %v7594_v1 = vpack.c.bf16 %v10332_v33, %v10338_v43  ;;  %v10344_v47 = vmul.f32 %v10338_v43, %v10338_v43 }
 0x3d1   :  { %15900 = vst [vmem:[#allocation38_spill] sm:$0xff] %v10336_v62 }
 0x3d2   :  { %15902 = vst [vmem:[#allocation40_spill] sm:$0xff] %v10344_v47  ;;  %v10348_v42 = vpop.f32.mrb[106].mxu0 }
 0x3d3   :  { %15903 = vst [vmem:[#allocation39_spill] sm:$0xff] %v10348_v42  ;;  %v10352_v15 = vmul.f32 %v10348_v42, %v10348_v42  ;;  %v10354_v25 = vpop.f32.mrb[107].mxu0 }
 0x3d4   :  { %15905 = vst [vmem:[#allocation41_spill] sm:$0xff] %v10354_v25  ;;  %v7598_v4 = vpack.c.bf16 %v10348_v42, %v10354_v25  ;;  %v10360_v33 = vmul.f32 %v10354_v25, %v10354_v25 }
 0x3d5   :  { %15904 = vst [vmem:[#allocation42_spill] sm:$0xff] %v10352_v15 }
 0x3d6   :  { %15906 = vst [vmem:[#allocation44_spill] sm:$0xff] %v10360_v33  ;;  %v10364_v39 = vpop.f32.mrb[108].mxu0 }
 0x3d7   :  { %v10368_v46 = vmul.f32 %v10364_v39, %v10364_v39  ;;  %v10370_v60 = vpop.f32.mrb[109].mxu0 }
 0x3d8   :  { %v10376_v42 = vmul.f32 %v10370_v60, %v10370_v60 }
 0x3d9   :  { %15907 = vst [vmem:[#allocation49_spill] sm:$0xff] %v10368_v46 }
 0x3da   :  { %15908 = vst [vmem:[#allocation73_spill] sm:$0xff] %v10376_v42  ;;  %v10380_v37 = vpop.f32.mrb[110].mxu0 }
 0x3db   :  { %v10384_v43 = vmul.f32 %v10380_v37, %v10380_v37  ;;  %v10386_v9 = vpop.f32.mrb[111].mxu0 }
 0x3dc   :  { %v10392_v20 = vmul.f32 %v10386_v9, %v10386_v9  ;;  %v15931_v52 = vpack.c.bf16 %v10380_v37, %v10386_v9 }
 0x3dd   :  { %15909 = vst [vmem:[#allocation75_spill] sm:$0xff] %v10384_v43 }
 0x3de   :  { %15910 = vst [vmem:[#allocation51_spill] sm:$0xff] %v10392_v20  ;;  %v10396_v5 = vpop.f32.mrb[112].mxu0 }
 0x3df   :  { %v10400_v25 = vmul.f32 %v10396_v5, %v10396_v5  ;;  %v10402_v7 = vpop.f32.mrb[113].mxu0 }
 0x3e0   :  { %v10408_v61 = vmul.f32 %v10402_v7, %v10402_v7 }
 0x3e1   :  { %15911 = vst [vmem:[#allocation53_spill] sm:$0xff] %v10400_v25 }
 0x3e2   :  { %15912 = vst [vmem:[#allocation55_spill] sm:$0xff] %v10408_v61  ;;  %v10412_v46 = vpop.f32.mrb[114].mxu0 }
 0x3e3   :  { %15913 = vst [vmem:[#allocation57_spill] sm:$0xff] %v10412_v46  ;;  %v10416_v55 = vmul.f32 %v10412_v46, %v10412_v46  ;;  %v10418_v20 = vpop.f32.mrb[115].mxu0 }
 0x3e4   :  { %15914 = vst [vmem:[#allocation59_spill] sm:$0xff] %v10418_v20  ;;  %v7580_v43 = vpack.c.bf16 %v10412_v46, %v10418_v20  ;;  %v10424_v51 = vmul.f32 %v10418_v20, %v10418_v20 }
 0x3e6   :  { %v10426_v33 = vpop.f32.mrb[116].mxu0  ;;  %7581 = vmatprep.subr.bf16.mxu1 %v7580_v43 }
 0x3e7   :  { %15915 = vst [vmem:[#allocation61_spill] sm:$0xff] %v10426_v33  ;;  %v10432_v61 = vmul.f32 %v10426_v33, %v10426_v33  ;;  %v10434_v25 = vpop.f32.mrb[117].mxu0  ;;  %7583 = vmatpush3.bf16.msra.mxu1 %v7582_v23 }
 0x3e8   :  { %15916 = vst [vmem:[#allocation62_spill] sm:$0xff] %v10434_v25  ;;  %v7584_v46 = vpack.c.bf16 %v10426_v33, %v10434_v25  ;;  %v10440_v20 = vmul.f32 %v10434_v25, %v10434_v25 }
 0x3ea   :  { %v10442_v15 = vpop.f32.mrb[118].mxu0  ;;  %7585 = vmatprep.subr.bf16.mxu1 %v7584_v46 }
 0x3eb   :  { %15917 = vst [vmem:[#allocation63_spill] sm:$0xff] %v10442_v15  ;;  %v10448_v42 = vmul.f32 %v10442_v15, %v10442_v15  ;;  %v10450_v47 = vpop.f32.mrb[119].mxu0  ;;  %7587 = vmatpush3.bf16.msra.mxu1 %v7586_v11 }
 0x3ec   :  { %15918 = vst [vmem:[#allocation64_spill] sm:$0xff] %v10450_v47  ;;  %v7588_v23 = vpack.c.bf16 %v10442_v15, %v10450_v47  ;;  %v10456_v33 = vmul.f32 %v10450_v47, %v10450_v47 }
 0x3ee   :  { %v10458_v25 = vpop.f32.mrb[120].mxu0  ;;  %7589 = vmatprep.subr.bf16.mxu1 %v7588_v23 }
 0x3ef   :  { %15919 = vst [vmem:[#allocation65_spill] sm:$0xff] %v10458_v25  ;;  %v10464_v43 = vmul.f32 %v10458_v25, %v10458_v25  ;;  %v10466_v62 = vpop.f32.mrb[121].mxu0  ;;  %7591 = vmatpush3.bf16.msra.mxu1 %v7590_v45 }
 0x3f0   :  { %15921 = vst [vmem:[#allocation67_spill] sm:$0xff] %v10466_v62  ;;  %v7592_v11 = vpack.c.bf16 %v10458_v25, %v10466_v62  ;;  %v10472_v15 = vmul.f32 %v10466_v62, %v10466_v62 }
 0x3f1   :  { %15920 = vst [vmem:[#allocation66_spill] sm:$0xff] %v10464_v43 }
 0x3f2   :  { %15922 = vst [vmem:[#allocation10_spill] sm:$0xff] %v10472_v15  ;;  %v10474_v47 = vpop.f32.mrb[122].mxu0  ;;  %7593 = vmatprep.subr.bf16.mxu1 %v7592_v11 }
 0x3f3   :  { %15923 = vst [vmem:[#allocation9_spill] sm:$0xff] %v10474_v47  ;;  %v10480_v46 = vmul.f32 %v10474_v47, %v10474_v47  ;;  %v10482_v27 = vpop.f32.mrb[123].mxu0  ;;  %7595 = vmatpush3.bf16.msra.mxu1 %v7594_v1 }
 0x3f4   :  { %15924 = vst [vmem:[#allocation14_spill] sm:$0xff] %v10482_v27  ;;  %v7596_v45 = vpack.c.bf16 %v10474_v47, %v10482_v27  ;;  %v2239_v25 = vmul.f32 %v10482_v27, %v10482_v27 }
 0x3f6   :  { %v10488_v62 = vpop.f32.mrb[124].mxu0  ;;  %7597 = vmatprep.subr.bf16.mxu1 %v7596_v45  ;;  %v7660_v11 = vpack.c.bf16 %v10480_v46, %v2239_v25  ;;  %v15929_v46 = vpack.c.bf16 %v10364_v39, %v10370_v60 }
 0x3f7   :  { %15925 = vst [vmem:[#allocation13_spill] sm:$0xff] %v10488_v62  ;;  %v2242_v23 = vmul.f32 %v10488_v62, %v10488_v62  ;;  %v10493_v15 = vpop.f32.mrb[125].mxu0  ;;  %7599 = vmatpush3.bf16.msra.mxu1 %v7598_v4 }
 0x3f8   :  { %15926 = vst [vmem:[#allocation16_spill] sm:$0xff] %v10493_v15  ;;  %v7600_v1 = vpack.c.bf16 %v10488_v62, %v10493_v15  ;;  %v2241_v47 = vmul.f32 %v10493_v15, %v10493_v15 }
 0x3fa   :  { %v10499_v43 = vpop.f32.mrb[126].mxu0  ;;  %7601 = vmatprep.subr.bf16.mxu1 %v7600_v1  ;;  %v7664_v27 = vpack.c.bf16 %v2242_v23, %v2241_v47 }
 0x3fb   :  { %15927 = vst [vmem:[#allocation15_spill] sm:$0xff] %v10499_v43  ;;  %v2244_v45 = vmul.f32 %v10499_v43, %v10499_v43  ;;  %v10503_v25 = vpop.f32.mrb[127].mxu0  ;;  %7603 = vmatpush3.bf16.msra.mxu1 %v15929_v46 }
 0x3fc   :  { %15928 = vst [vmem:[#allocation18_spill] sm:$0xff] %v10503_v25  ;;  %v7604_v4 = vpack.c.bf16 %v10499_v43, %v10503_v25  ;;  %v2243_v62 = vmul.f32 %v10503_v25, %v10503_v25 }
 0x3fe   :  { %v10512_v15 = vpop.f32.mrb[128].mxu0  ;;  %7605 = vmatprep.subr.bf16.mxu1 %v7604_v4  ;;  %v7668_v1 = vpack.c.bf16 %v2244_v45, %v2243_v62  ;;  %v15932_v62 = vpack.c.bf16 %v10396_v5, %v10402_v7  ;;  %v15933_v45 = vpack.c.bf16 %v10145_v54, %v10153_v50  ;;  %v15938_v54 = vpack.c.bf16 %v10033_v35, %v10041_v18 }
 0x3ff   :  { %15930 = vst [vmem:[#allocation17_spill] sm:$0xff] %v10512_v15  ;;  %v2246_v47 = vmul.f32 %v10512_v15, %v10512_v15  ;;  %v10516_v23 = vpop.f32.mrb[129].mxu0  ;;  %7607 = vmatpush3.bf16.msra.mxu1 %v15931_v52  ;;  %v15935_v52 = vpack.c.bf16 %v10017_v41, %v10025_v13  ;;  %v15939_v50 = vpack.c.bf16 %v10177_v48, %v10185_v21  ;;  %v15971_v48 = vld [vmem:[#allocation75_spill] sm:$0xff] }
 0x400   :  { %v7608_v46 = vpack.c.bf16 %v10512_v15, %v10516_v23  ;;  %v2245_v43 = vmul.f32 %v10516_v23, %v10516_v23  ;;  %v15940_v41 = vpack.c.bf16 %v10049_v29, %v10057_v26  ;;  %v15941_v13 = vpack.c.bf16 %v10193_v28, %v10201_v0  ;;  %v15963_v28 = vld [vmem:[#allocation40_spill] sm:$0xff]  ;;  %v15972_v21 = vld [vmem:[#allocation51_spill] sm:$0xff] }
 0x401   :  { %v15943_v35 = vpack.c.bf16 %v10209_v10, %v10217_v40  ;;  %v15944_v18 = vpack.c.bf16 %v10081_v12, %v10089_v8  ;;  %v15945_v29 = vpack.c.bf16 %v10225_v22, %v10233_v63  ;;  %v15946_v26 = vpack.c.bf16 %v10097_v32, %v10105_v56  ;;  %v15974_v22 = vld [vmem:[#allocation53_spill] sm:$0xff] }
 0x402   :  { %7609 = vmatprep.subr.bf16.mxu1 %v7608_v46  ;;  %v7672_v25 = vpack.c.bf16 %v2246_v47, %v2245_v43  ;;  %v15937_v43 = vpack.c.bf16 %v10161_v57, %v10169_v38  ;;  %v15942_v57 = vpack.c.bf16 %v10065_v53, %v10073_v14  ;;  %v2734_v53 = vld [vmem:[%s15044_s8] sm:$0xff]  ;;  %v2735_v14 = vld [vmem:[%s15044_s8 + $0x8] sm:$0xff]  ;;  %v15947_v10 = vpack.c.bf16 %v10241_v2, %v10252_v30 }
 0x403   :  { %7611 = vmatpush3.bf16.msra.mxu1 %v15932_v62  ;;  %v7676_v12 = vpack.c.bf16 %v2735_v14, %v2734_v53  ;;  %v15948_v63 = vpack.c.bf16 %v10113_v58, %v10121_v19  ;;  %v15949_v8 = vpack.c.bf16 %v10260_v6, %v10271_v24  ;;  %v15950_v32 = vpack.c.bf16 %v10129_v3, %v10137_v44  ;;  %v15956_v58 = vld [vmem:[#allocation34_spill] sm:$0xff]  ;;  %v15957_v30 = vld [vmem:[#allocation36_spill] sm:$0xff]  ;;  %v15975_v2 = vld [vmem:[#allocation55_spill] sm:$0xff] }
 0x404   :  { %7613 = vmatprep.subr.bf16.mxu1 %v15933_v45  ;;  %v15951_v56 = vpack.c.bf16 %v10416_v55, %v10424_v51  ;;  %v15952_v0 = vpack.c.bf16 %v10279_v16, %v10290_v49  ;;  %v15953_v6 = vpack.c.bf16 %v10432_v61, %v10440_v20  ;;  %v15954_v51 = vpack.c.bf16 %v10301_v17, %v10312_v59  ;;  %v15959_v19 = vld [vmem:[#allocation66_spill] sm:$0xff]  ;;  %v15966_v38 = vld [vmem:[#allocation44_spill] sm:$0xff]  ;;  %v15979_v14 = vld [vmem:[#allocation19_spill] sm:$0xff] }
 0x405   :  { %7677 = vmatprep.subr.bf16.mxu0 %v7676_v12  ;;  %v15955_v55 = vpack.c.bf16 %v10448_v42, %v10456_v33  ;;  %v15958_v16 = vpack.c.bf16 %v15956_v58, %v15957_v30  ;;  %v15960_v3 = vld [vmem:[#allocation10_spill] sm:$0xff]  ;;  %v15968_v42 = vld [vmem:[#allocation49_spill] sm:$0xff]  ;;  %v15973_v40 = vpack.c.bf16 %v15971_v48, %v15972_v21  ;;  %v15976_v59 = vpack.c.bf16 %v15974_v22, %v15975_v2  ;;  %v15992_v48 = vld [vmem:[#allocation43_spill] sm:$0xff] }
 0x406   :  { %5971 = vmatmul.mubr.msk.f32.vlgmr.msra.gmra.mrb[8].mxu1 %vm8999_vm4, %v15891_v31  ;;  %7679 = vmatpush3.bf16.msra.mxu0 %v7676_v12  ;;  %v15961_v24 = vpack.c.bf16 %v15959_v19, %v15960_v3  ;;  %v15962_v44 = vld [vmem:[#allocation38_spill] sm:$0xff]  ;;  %v15969_v33 = vld [vmem:[#allocation73_spill] sm:$0xff]  ;;  %v15980_v12 = vld [vmem:[#allocation20_spill] sm:$0xff] }
 0x407   :  { %7615 = vmatpush3.bf16.msra.mxu1 %v15935_v52  ;;  %5972 = vmatprep.mubr.msk.f32.mxu1 %vm8478_vm1, %v15891_v31  ;;  %v15964_v61 = vpack.c.bf16 %v15962_v44, %v15963_v28  ;;  %v15965_v20 = vld [vmem:[#allocation42_spill] sm:$0xff]  ;;  %v15970_v49 = vpack.c.bf16 %v15968_v42, %v15969_v33  ;;  %v2739_v47 = vld [vmem:[%s15044_s8 + $0x28] sm:$0xff]  ;;  %v16018_v44 = vld [vmem:[#allocation35_spill] sm:$0xff] }
 0x408   :  { %7617 = vmatprep.subr.bf16.mxu1 %v15937_v43  ;;  %v15967_v17 = vpack.c.bf16 %v15965_v20, %v15966_v38  ;;  %v2740_v43 = vld [vmem:[%s15044_s8 + $0x30] sm:$0xff]  ;;  %v15988_v28 = vld [vmem:[#allocation28_spill] sm:$0xff]  ;;  %v16016_v38 = vld [vmem:[#allocation31_spill] sm:$0xff] }
 0x409   :  { %v15985_v30 = vld [vmem:[#allocation25_spill] sm:$0xff]  ;;  %v15986_v19 = vld [vmem:[#allocation26_spill] sm:$0xff]  ;;  %v15991_v33 = vld [vmem:[#allocation48_spill] sm:$0xff] }
 0x40a   :  { %v15989_v20 = vld [vmem:[#allocation29_spill] sm:$0xff]  ;;  %v15994_v2 = vld [vmem:[#allocation46_spill] sm:$0xff]  ;;  %v16012_v22 = vld [vmem:[#allocation80_spill] sm:$0xff] }
 0x40b   :  { %7619 = vmatpush3.bf16.msra.mxu1 %v15938_v54  ;;  %v2741_v54 = vld [vmem:[%s15044_s8 + $0x38] sm:$0xff]  ;;  %v16013_v21 = vld [vmem:[#allocation32_spill] sm:$0xff]  ;;  %v16015_v42 = vld [vmem:[#allocation33_spill] sm:$0xff] }
 0x40c   :  { %7621 = vmatprep.subr.bf16.mxu1 %v15939_v50  ;;  %v7688_v50 = vpack.c.bf16 %v2741_v54, %v2740_v43 }
 0x40f   :  { %7623 = vmatpush3.bf16.msra.mxu1 %v15940_v41 }
 0x410   :  { %7625 = vmatprep.subr.bf16.mxu1 %v15941_v13 }
 0x413   :  { %7627 = vmatpush3.bf16.msra.mxu1 %v15942_v57 }
 0x414   :  { %7629 = vmatprep.subr.bf16.mxu1 %v15943_v35 }
 0x417   :  { %7631 = vmatpush3.bf16.msra.mxu1 %v15944_v18  ;;  %v15977_v18 = vld [vmem:[#allocation47_spill] sm:$0xff] }
 0x418   :  { %7633 = vmatprep.subr.bf16.mxu1 %v15945_v29 }
 0x41b   :  { %7635 = vmatpush3.bf16.msra.mxu1 %v15946_v26  ;;  %v15978_v26 = vld [vmem:[#allocation8_spill] sm:$0xff] }
 0x41c   :  { %7637 = vmatprep.subr.bf16.mxu1 %v15947_v10 }
 0x41f   :  { %7639 = vmatpush3.bf16.msra.mxu1 %v15948_v63 }
 0x420   :  { %7641 = vmatprep.subr.bf16.mxu1 %v15949_v8  ;;  %v15981_v8 = vld [vmem:[#allocation21_spill] sm:$0xff] }
 0x423   :  { %7643 = vmatpush3.bf16.msra.mxu1 %v15950_v32 }
 0x424   :  { %7645 = vmatprep.subr.bf16.mxu1 %v15951_v56  ;;  %v15982_v56 = vld [vmem:[#allocation22_spill] sm:$0xff] }
 0x426   :  { %5973 = vmatmul.mubr.msk.f32.vlgmr.msra.gmra.mrb[10].mxu1 %vm8760_vm3, %v15891_v31 }
 0x427   :  { %7647 = vmatpush3.bf16.msra.mxu1 %v15952_v0  ;;  %5974 = vmatprep.mubr.msk.f32.mxu1 %vm8489_vm2, %v15891_v31 }
 0x428   :  { %7649 = vmatprep.subr.bf16.mxu1 %v15953_v6  ;;  %v15983_v6 = vld [vmem:[#allocation23_spill] sm:$0xff] }
 0x42b   :  { %7651 = vmatpush3.bf16.msra.mxu1 %v15954_v51 }
 0x42c   :  { %7653 = vmatprep.subr.bf16.mxu1 %v15955_v55  ;;  %v15984_v55 = vld [vmem:[#allocation24_spill] sm:$0xff] }
 0x42f   :  { %7655 = vmatpush3.bf16.msra.mxu1 %v15958_v16 }
 0x430   :  { %7657 = vmatprep.subr.bf16.mxu1 %v15961_v24  ;;  %v15987_v24 = vld [vmem:[#allocation27_spill] sm:$0xff] }
 0x433   :  { %7659 = vmatpush3.bf16.msra.mxu1 %v15964_v61  ;;  %v16017_v61 = vld [vmem:[#allocation37_spill] sm:$0xff] }
 0x434   :  { %7661 = vmatprep.subr.bf16.mxu1 %v7660_v11  ;;  %v2737_v11 = vld [vmem:[%s15044_s8 + $0x18] sm:$0xff] }
 0x437   :  { %7663 = vmatpush3.bf16.msra.mxu1 %v15967_v17  ;;  %v15990_v17 = vld [vmem:[#allocation30_spill] sm:$0xff] }
 0x438   :  { %7665 = vmatprep.subr.bf16.mxu1 %v7664_v27  ;;  %v2736_v27 = vld [vmem:[%s15044_s8 + $0x10] sm:$0xff] }
 0x43b   :  { %7667 = vmatpush3.bf16.msra.mxu1 %v15970_v49  ;;  %v16014_v49 = vld [vmem:[#allocation82_spill] sm:$0xff] }
 0x43c   :  { %7669 = vmatprep.subr.bf16.mxu1 %v7668_v1  ;;  %v2738_v1 = vld [vmem:[%s15044_s8 + $0x20] sm:$0xff] }
 0x43d   :  { %v7684_v46 = vpack.c.bf16 %v2739_v47, %v2738_v1  ;;  %v15997_v47 = vld [vmem:[#allocation60_spill] sm:$0xff] }
 0x43f   :  { %7671 = vmatpush3.bf16.msra.mxu1 %v15973_v40  ;;  %v15993_v40 = vld [vmem:[#allocation52_spill] sm:$0xff] }
 0x440   :  { %7673 = vmatprep.subr.bf16.mxu1 %v7672_v25  ;;  %v7680_v25 = vpack.c.bf16 %v2737_v11, %v2736_v27  ;;  %v15995_v27 = vld [vmem:[#allocation56_spill] sm:$0xff] }
 0x442   :  { %7681 = vmatprep.subr.bf16.mxu0 %v7680_v25 }
 0x443   :  { %7675 = vmatpush3.bf16.msra.mxu1 %v15976_v59  ;;  %7683 = vmatpush3.bf16.msra.mxu0 %v7680_v25  ;;  %v15996_v25 = vld [vmem:[#allocation50_spill] sm:$0xff] }
 0x444   :  { %7685 = vmatprep.subr.bf16.mxu0 %v7684_v46 }
 0x446   :  { %5975 = vmatmul.mubr.msk.f32.vlgmr.msra.gmra.mrb[12].mxu1 %vm8999_vm4, %v15891_v31 }
 0x447   :  { %6042 = vmatprep.mubr.msk.f32.mxu1 %vm8478_vm1, %v15891_v31  ;;  %7687 = vmatpush3.bf16.msra.mxu0 %v7684_v46 }
 0x448   :  { %7689 = vmatprep.subr.bf16.mxu0 %v7688_v50 }
 0x44b   :  { %7691 = vmatpush3.bf16.msra.mxu0 %v7688_v50 }
 0x499   :  { %v6376_v62 = vpop.f32.mrb[6].mxu1 }
 0x49a   :  { %v6377_v45 = vpop.f32.mrb[7].mxu1 }
 0x49b   :  { %v6378_v52 = vadd.f32 %v6377_v45, %v6376_v62  ;;  %v15998_v62 = vld [vmem:[#allocation54_spill] sm:$0xff] }
 0x4d9   :  { %v6411_v41 = vpop.f32.mrb[8].mxu1 }
 0x4da   :  { %v6412_v13 = vpop.f32.mrb[9].mxu1 }
 0x4db   :  { %v6413_v57 = vadd.f32 %v6412_v13, %v6411_v41 }
 0x4dd   :  { %v2180_v35 = vadd.f32 %v6413_v57, %v6378_v52 }
 0x4df   :  { %v10655_v29 = vmul.f32 %v2180_v35, %v15977_v18 }
 0x4e1   :  { %v10659_v53 = vrot.slane %v10655_v29, %v15978_v26 }
 0x4e3   :  { %v2429_v3 = vsub.f32 %v16012_v22, %v10659_v53  ;;  %v2430_v16 = vsub.f32 %v16013_v21, %v10659_v53  ;;  %v2431_v58 = vsub.f32 %v16014_v49, %v10659_v53  ;;  %v2432_v51 = vsub.f32 %v16015_v42, %v10659_v53  ;;  %v16019_v22 = vld [vmem:[#allocation41_spill] sm:$0xff]  ;;  %v16020_v21 = vld [vmem:[#allocation39_spill] sm:$0xff] }
 0x4e4   :  { %v2433_v0 = vsub.f32 %v16016_v38, %v10659_v53  ;;  %v2434_v32 = vsub.f32 %v16017_v61, %v10659_v53  ;;  %v2435_v63 = vsub.f32 %v16018_v44, %v10659_v53  ;;  %v2436_v10 = vsub.f32 %v16019_v22, %v10659_v53 }
 0x4e5   :  { %v2437_v15 = vsub.f32 %v16020_v21, %v10659_v53  ;;  %v2438_v49 = vsub.f32 %v10370_v60, %v10659_v53  ;;  %v2439_v42 = vsub.f32 %v10364_v39, %v10659_v53  ;;  %v2440_v38 = vsub.f32 %v10386_v9, %v10659_v53  ;;  %v16021_v21 = vld [vmem:[#allocation59_spill] sm:$0xff]  ;;  %v16022_v60 = vld [vmem:[#allocation57_spill] sm:$0xff]  ;;  %v16023_v39 = vld [vmem:[#allocation62_spill] sm:$0xff] }
 0x4e6   :  { %v2441_v61 = vsub.f32 %v10380_v37, %v10659_v53  ;;  %v2442_v44 = vsub.f32 %v10402_v7, %v10659_v53  ;;  %v2443_v22 = vsub.f32 %v10396_v5, %v10659_v53  ;;  %v2444_v4 = vsub.f32 %v16021_v21, %v10659_v53  ;;  %v16024_v9 = vld [vmem:[#allocation61_spill] sm:$0xff]  ;;  %v16025_v37 = vld [vmem:[#allocation64_spill] sm:$0xff]  ;;  %v16026_v7 = vld [vmem:[#allocation63_spill] sm:$0xff] }
 0x4e7   :  { %v2445_v36 = vsub.f32 %v16022_v60, %v10659_v53  ;;  %v2446_v34 = vsub.f32 %v16023_v39, %v10659_v53  ;;  %v2447_v31 = vsub.f32 %v16024_v9, %v10659_v53  ;;  %v2448_v59 = vsub.f32 %v16025_v37, %v10659_v53  ;;  %v16027_v5 = vld [vmem:[#allocation67_spill] sm:$0xff]  ;;  %v16028_v21 = vld [vmem:[#allocation65_spill] sm:$0xff]  ;;  %v16029_v60 = vld [vmem:[#allocation14_spill] sm:$0xff] }
 0x4e8   :  { %v2449_v11 = vsub.f32 %v16026_v7, %v10659_v53  ;;  %v2450_v35 = vsub.f32 %v16027_v5, %v10659_v53  ;;  %v2451_v13 = vsub.f32 %v16028_v21, %v10659_v53  ;;  %v2452_v26 = vsub.f32 %v16029_v60, %v10659_v53  ;;  %v16030_v39 = vld [vmem:[#allocation9_spill] sm:$0xff]  ;;  %v16031_v9 = vld [vmem:[#allocation16_spill] sm:$0xff]  ;;  %v16033_v7 = vld [vmem:[#allocation18_spill] sm:$0xff] }
 0x4e9   :  { %v2453_v50 = vsub.f32 %v16030_v39, %v10659_v53  ;;  %v2454_v43 = vsub.f32 %v16031_v9, %v10659_v53  ;;  %v16032_v37 = vld [vmem:[#allocation13_spill] sm:$0xff]  ;;  %v2456_v46 = vsub.f32 %v16033_v7, %v10659_v53  ;;  %v16034_v5 = vld [vmem:[#allocation15_spill] sm:$0xff]  ;;  %v2458_v21 = vsub.f32 %v10516_v23, %v10659_v53 }
 0x4ea   :  { %v2455_v45 = vsub.f32 %v16032_v37, %v10659_v53  ;;  %v2457_v1 = vsub.f32 %v16034_v5, %v10659_v53  ;;  %v16035_v60 = vld [vmem:[#allocation17_spill] sm:$0xff]  ;;  %v10792_v39 = vld [vmem:[%s15042_s6] ss:$0 sm:$0xff] }
 0x4eb   :  { %v2459_v57 = vsub.f32 %v16035_v60, %v10659_v53  ;;  %v10795_v37 = vmul.f32 %v10792_v39, %v2429_v3  ;;  %v10798_v7 = vmul.f32 %v10792_v39, %v2430_v16  ;;  %v10801_v5 = vmul.f32 %v10792_v39, %v2431_v58 }
 0x4ec   :  { %v10804_v23 = vmul.f32 %v10792_v39, %v2432_v51  ;;  %v10807_v60 = vmul.f32 %v10792_v39, %v2433_v0  ;;  %v10810_v54 = vmul.f32 %v10792_v39, %v2434_v32  ;;  %v10813_v52 = vmul.f32 %v10792_v39, %v2435_v63 }
 0x4ed   :  { %v10816_v3 = vmul.f32 %v10792_v39, %v2436_v10  ;;  %v10819_v16 = vmul.f32 %v10792_v39, %v2437_v15  ;;  %v10822_v58 = vmul.f32 %v10792_v39, %v2438_v49  ;;  %v10825_v51 = vmul.f32 %v10792_v39, %v2439_v42 }
 0x4ee   :  { %v10828_v0 = vmul.f32 %v10792_v39, %v2440_v38  ;;  %v10831_v32 = vmul.f32 %v10792_v39, %v2441_v61  ;;  %v10834_v63 = vmul.f32 %v10792_v39, %v2442_v44  ;;  %v10837_v10 = vmul.f32 %v10792_v39, %v2443_v22 }
 0x4ef   :  { %v10840_v15 = vmul.f32 %v10792_v39, %v2444_v4  ;;  %v10843_v49 = vmul.f32 %v10792_v39, %v2445_v36  ;;  %v10846_v42 = vmul.f32 %v10792_v39, %v2446_v34  ;;  %v10849_v38 = vmul.f32 %v10792_v39, %v2447_v31 }
 0x4f0   :  { %v10852_v61 = vmul.f32 %v10792_v39, %v2448_v59  ;;  %v10855_v44 = vmul.f32 %v10792_v39, %v2449_v11  ;;  %v10858_v22 = vmul.f32 %v10792_v39, %v2450_v35  ;;  %v10861_v4 = vmul.f32 %v10792_v39, %v2451_v13 }
 0x4f1   :  { %v10864_v36 = vmul.f32 %v10792_v39, %v2452_v26  ;;  %v10867_v34 = vmul.f32 %v10792_v39, %v2453_v50  ;;  %v10870_v31 = vmul.f32 %v10792_v39, %v2454_v43  ;;  %v10873_v59 = vmul.f32 %v10792_v39, %v2455_v45 }
 0x4f2   :  { %16036 = vst [vmem:[#allocation34_spill] sm:$0xff] %v10852_v61  ;;  %16037 = vst [vmem:[#allocation36_spill] sm:$0xff] %v10855_v44  ;;  %v10876_v11 = vmul.f32 %v10792_v39, %v2456_v46  ;;  %v10879_v35 = vmul.f32 %v10792_v39, %v2457_v1  ;;  %v10882_v13 = vmul.f32 %v10792_v39, %v2458_v21  ;;  %v16091_v44 = vld [vmem:[#allocation78_spill] sm:$0xff]  ;;  %v16093_v61 = vld [vmem:[#allocation83_spill] sm:$0xff] }
 0x4f3   :  { %16038 = vst [vmem:[#allocation66_spill] sm:$0xff] %v10858_v22  ;;  %16039 = vst [vmem:[#allocation10_spill] sm:$0xff] %v10861_v4  ;;  %v10885_v26 = vmul.f32 %v10792_v39, %v2459_v57  ;;  %v2389_v45 = vmul.f32 %v10655_v29, %v10655_v29  ;;  %v16048_v21 = vsub.f32 %v15979_v14, %v10659_v53  ;;  %v16089_v22 = vld [vmem:[#allocation81_spill] sm:$0xff] }
 0x4f4   :  { %16040 = vst [vmem:[#allocation38_spill] sm:$0xff] %v10864_v36  ;;  %16041 = vst [vmem:[#allocation40_spill] sm:$0xff] %v10867_v34  ;;  %v16052_v14 = vsub.f32 %v15983_v6, %v10659_v53  ;;  %v16056_v6 = vsub.f32 %v15987_v24, %v10659_v53  ;;  %v16060_v24 = vsub.f32 %v15991_v33, %v10659_v53 }
 0x4f5   :  { %16042 = vst [vmem:[#allocation42_spill] sm:$0xff] %v10870_v31  ;;  %16043 = vst [vmem:[#allocation44_spill] sm:$0xff] %v10873_v59  ;;  %v2466_v57 = vmul.f32 %v10792_v39, %v16048_v21  ;;  %v16064_v33 = vsub.f32 %v15995_v27, %v10659_v53 }
 0x4f6   :  { %16044 = vst [vmem:[#allocation49_spill] sm:$0xff] %v10876_v11  ;;  %16045 = vst [vmem:[#allocation73_spill] sm:$0xff] %v10879_v35  ;;  %v16086_v35 = vld [vmem:[#allocation8_spill] sm:$0xff] }
 0x4f7   :  { %16046 = vst [vmem:[#allocation75_spill] sm:$0xff] %v10882_v13  ;;  %16047 = vst [vmem:[#allocation51_spill] sm:$0xff] %v10885_v26  ;;  %v16082_v26 = vld [vmem:[#allocation72_spill] sm:$0xff]  ;;  %v16084_v13 = vld [vmem:[#allocation79_spill] sm:$0xff] }
 0x4f9   :  { %v6446_v9 = vpop.f32.mrb[10].mxu1 }
 0x4fa   :  { %v6447_v41 = vpop.f32.mrb[11].mxu1 }
 0x4fb   :  { %v6448_v50 = vadd.f32 %v6447_v41, %v6446_v9  ;;  %v16049_v41 = vsub.f32 %v15980_v12, %v10659_v53  ;;  %v16053_v12 = vsub.f32 %v15984_v55, %v10659_v53  ;;  %v16057_v55 = vsub.f32 %v15988_v28, %v10659_v53 }
 0x4fc   :  { %v16061_v28 = vsub.f32 %v15992_v48, %v10659_v53  ;;  %v16065_v48 = vsub.f32 %v15996_v25, %v10659_v53 }
 0x4fd   :  { %v2467_v9 = vmul.f32 %v10792_v39, %v16049_v41  ;;  %v2478_v41 = vmul.f32 %v10792_v39, %v16060_v24 }
 0x519   :  { %v6481_v34 = vpop.f32.mrb[12].mxu1 }
 0x51a   :  { %v6482_v36 = vpop.f32.mrb[13].mxu1 }
 0x51b   :  { %v6483_v43 = vadd.f32 %v6482_v36, %v6481_v34  ;;  %v16050_v36 = vsub.f32 %v15981_v8, %v10659_v53  ;;  %v16051_v34 = vsub.f32 %v15982_v56, %v10659_v53  ;;  %v16054_v8 = vsub.f32 %v15985_v30, %v10659_v53 }
 0x51c   :  { %v16055_v56 = vsub.f32 %v15986_v19, %v10659_v53  ;;  %v16058_v30 = vsub.f32 %v15989_v20, %v10659_v53  ;;  %v16059_v19 = vsub.f32 %v15990_v17, %v10659_v53  ;;  %v16062_v20 = vsub.f32 %v15993_v40, %v10659_v53 }
 0x51d   :  { %v2384_v31 = vadd.f32 %v6483_v43, %v6448_v50  ;;  %v2468_v29 = vmul.f32 %v10792_v39, %v16050_v36  ;;  %v2472_v50 = vmul.f32 %v10792_v39, %v16054_v8  ;;  %v2479_v36 = vmul.f32 %v10792_v39, %v16061_v28 }
 0x51e   :  { %v2473_v43 = vmul.f32 %v10792_v39, %v16055_v56  ;;  %v2477_v21 = vmul.f32 %v10792_v39, %v16059_v19  ;;  %v16063_v17 = vsub.f32 %v15994_v2, %v10659_v53  ;;  %v2483_v8 = vmul.f32 %v10792_v39, %v16065_v48  ;;  %v16070_v19 = vld [vmem:[#allocation58_spill] sm:$0xff] }
 0x51f   :  { %v2388_v46 = vmul.f32 %v2384_v31, %v15977_v18  ;;  %v2469_v31 = vmul.f32 %v10792_v39, %v16051_v34  ;;  %v2480_v34 = vmul.f32 %v10792_v39, %v16062_v20  ;;  %v16066_v40 = vsub.f32 %v15997_v47, %v10659_v53  ;;  %v16072_v20 = vld [vmem:[#allocation71_spill] sm:$0xff]  ;;  %v16080_v18 = vld [vmem:[#allocation77_spill] sm:$0xff] }
 0x520   :  { %v16067_v2 = vsub.f32 %v15998_v62, %v10659_v53  ;;  %v16071_v25 = vsub.f32 %v16070_v19, %v10659_v53  ;;  %v16073_v47 = vsub.f32 %v16072_v20, %v10659_v53  ;;  %v16081_v20 = vsub.f32 %v16080_v18, %v10659_v53 }
 0x521   :  { %v2390_v11 = vsub.f32 %v2388_v46, %v2389_v45  ;;  %v2474_v45 = vmul.f32 %v10792_v39, %v16056_v6  ;;  %v2475_v46 = vmul.f32 %v10792_v39, %v16057_v55  ;;  %v2484_v56 = vmul.f32 %v10792_v39, %v16066_v40  ;;  %v16068_v55 = vld [vmem:[#allocation69_spill] sm:$0xff]  ;;  %v16076_v40 = vld [vmem:[#allocation74_spill] sm:$0xff] }
 0x522   :  { %v2485_v6 = vmul.f32 %v10792_v39, %v16067_v2  ;;  %v16069_v27 = vsub.f32 %v16068_v55, %v10659_v53  ;;  %v2487_v24 = vmul.f32 %v10792_v39, %v16071_v25  ;;  %v16077_v2 = vsub.f32 %v16076_v40, %v10659_v53 }
 0x523   :  { %v2391_v59 = vmax.f32 %v2390_v11, 0.0  ;;  %v2471_v11 = vmul.f32 %v10792_v39, %v16053_v12  ;;  %v2482_v12 = vmul.f32 %v10792_v39, %v16064_v33  ;;  %v16074_v33 = vld [vmem:[#allocation68_spill] sm:$0xff]  ;;  %v16085_v40 = vsub.f32 %v16084_v13, %v10659_v53 }
 0x524   :  { %v16075_v62 = vsub.f32 %v16074_v33, %v10659_v53  ;;  %v2490_v55 = vmul.f32 %v10792_v39, %v16077_v2  ;;  %v16083_v33 = vsub.f32 %v16082_v26, %v10659_v53 }
 0x525   :  { %v2530_v1 = vadd.f32 1e-05, %v2391_v59  ;;  %v2470_v59 = vmul.f32 %v10792_v39, %v16052_v14  ;;  %v2481_v14 = vmul.f32 %v10792_v39, %v16063_v17  ;;  %v2488_v17 = vmul.f32 %v10792_v39, %v16073_v47 }
 0x526   :  { %v2489_v48 = vmul.f32 %v10792_v39, %v16075_v62  ;;  %v2492_v47 = vmul.f32 %v10792_v39, %v16081_v20  ;;  %v2493_v62 = vmul.f32 %v10792_v39, %v16083_v33  ;;  %v2494_v2 = vmul.f32 %v10792_v39, %v16085_v40 }
 0x527   :  { %8050 = vrsqrt.f32 %v2530_v1  ;;  %v2476_v1 = vmul.f32 %v10792_v39, %v16058_v30  ;;  %v2486_v30 = vmul.f32 %v10792_v39, %v16069_v27  ;;  %v16078_v27 = vld [vmem:[#allocation70_spill] sm:$0xff]  ;;  %v16090_v20 = vsub.f32 %v16089_v22, %v10659_v53 }
 0x528   :  { %v16079_v19 = vsub.f32 %v16078_v27, %v10659_v53  ;;  %v16087_v27 = vld [vmem:[#allocation76_spill] sm:$0xff]  ;;  %v16092_v33 = vsub.f32 %v16091_v44, %v10659_v53  ;;  %v16094_v40 = vsub.f32 %v16093_v61, %v10659_v53 }
 0x529   :  { %v2496_v26 = vmul.f32 %v10792_v39, %v16090_v20 }
 0x52a   :  { %v2491_v25 = vmul.f32 %v10792_v39, %v16079_v19  ;;  %v16088_v19 = vsub.f32 %v16087_v27, %v10659_v53  ;;  %v2497_v13 = vmul.f32 %v10792_v39, %v16092_v33  ;;  %v16107_v33 = vld [vmem:[#allocation66_spill] sm:$0xff] }
 0x52c   :  { %v2495_v18 = vmul.f32 %v10792_v39, %v16088_v19 }
 0x531   :  { %v8051_v28 = vpop.eup %8050 }
 0x532   :  { %v11007_v4 = vrot.slane %v8051_v28, %v16086_v35  ;;  %v2498_v28 = vmul.f32 %v10792_v39, %v16094_v40  ;;  %v16109_v40 = vld [vmem:[#allocation38_spill] sm:$0xff] }
 0x534   :  { %v11026_v35 = vmul.f32 %v11007_v4, %v2466_v57  ;;  %v11029_v27 = vmul.f32 %v11007_v4, %v2467_v9  ;;  %v11032_v22 = vmul.f32 %v11007_v4, %v2468_v29  ;;  %v11035_v19 = vmul.f32 %v11007_v4, %v2469_v31 }
 0x535   :  { %v11038_v44 = vmul.f32 %v11007_v4, %v2470_v59  ;;  %v11041_v20 = vmul.f32 %v11007_v4, %v2471_v11  ;;  %v11044_v53 = vmul.f32 %v11007_v4, %v2472_v50  ;;  %v11047_v39 = vmul.f32 %v11007_v4, %v2473_v43 }
 0x536   :  { %v11050_v61 = vmul.f32 %v11007_v4, %v2474_v45  ;;  %v11053_v57 = vmul.f32 %v11007_v4, %v2475_v46  ;;  %v11056_v9 = vmul.f32 %v11007_v4, %v2476_v1  ;;  %v11059_v29 = vmul.f32 %v11007_v4, %v2477_v21 }
 0x537   :  { %v11062_v31 = vmul.f32 %v11007_v4, %v2478_v41  ;;  %v11065_v59 = vmul.f32 %v11007_v4, %v2479_v36  ;;  %v11068_v11 = vmul.f32 %v11007_v4, %v2480_v34  ;;  %v11071_v50 = vmul.f32 %v11007_v4, %v2481_v14 }
 0x538   :  { %v11074_v43 = vmul.f32 %v11007_v4, %v2482_v12  ;;  %v11077_v45 = vmul.f32 %v11007_v4, %v2483_v8  ;;  %v11080_v46 = vmul.f32 %v11007_v4, %v2484_v56  ;;  %v11083_v1 = vmul.f32 %v11007_v4, %v2485_v6 }
 0x539   :  { %v11086_v21 = vmul.f32 %v11007_v4, %v2486_v30  ;;  %v11089_v41 = vmul.f32 %v11007_v4, %v2487_v24  ;;  %v11092_v36 = vmul.f32 %v11007_v4, %v2488_v17  ;;  %v11095_v34 = vmul.f32 %v11007_v4, %v2489_v48 }
 0x53a   :  { %v11098_v14 = vmul.f32 %v11007_v4, %v2490_v55  ;;  %v11101_v12 = vmul.f32 %v11007_v4, %v2491_v25  ;;  %v11104_v8 = vmul.f32 %v11007_v4, %v2492_v47  ;;  %v11107_v56 = vmul.f32 %v11007_v4, %v2493_v62 }
 0x53b   :  { %16095 = vst [vmem:[#allocation53_spill] sm:$0xff] %v11095_v34  ;;  %v11110_v6 = vmul.f32 %v11007_v4, %v2494_v2  ;;  %v11113_v30 = vmul.f32 %v11007_v4, %v2495_v18  ;;  %v11116_v24 = vmul.f32 %v11007_v4, %v2496_v26  ;;  %v11119_v17 = vmul.f32 %v11007_v4, %v2497_v13  ;;  %v16108_v13 = vld [vmem:[#allocation10_spill] sm:$0xff] }
 0x53c   :  { %16096 = vst [vmem:[#allocation55_spill] sm:$0xff] %v11098_v14  ;;  %16097 = vst [vmem:[#allocation19_spill] sm:$0xff] %v11101_v12  ;;  %v11122_v48 = vmul.f32 %v11007_v4, %v2498_v28  ;;  %v2569_v55 = vmul.f32 %v11007_v4, %v10795_v37  ;;  %v2570_v25 = vmul.f32 %v11007_v4, %v10798_v7 }
 0x53d   :  { %16098 = vst [vmem:[#allocation20_spill] sm:$0xff] %v11104_v8  ;;  %16099 = vst [vmem:[#allocation21_spill] sm:$0xff] %v11107_v56  ;;  %v2571_v47 = vmul.f32 %v11007_v4, %v10801_v5  ;;  %v2572_v62 = vmul.f32 %v11007_v4, %v10804_v23  ;;  %v2573_v2 = vmul.f32 %v11007_v4, %v10807_v60  ;;  %v16115_v56 = vld [vmem:[#allocation75_spill] sm:$0xff] }
 0x53e   :  { %16100 = vst [vmem:[#allocation22_spill] sm:$0xff] %v11110_v6  ;;  %16101 = vst [vmem:[#allocation23_spill] sm:$0xff] %v11113_v30  ;;  %v2574_v18 = vmul.f32 %v11007_v4, %v10810_v54  ;;  %v2575_v26 = vmul.f32 %v11007_v4, %v10813_v52  ;;  %v11140_v37 = vmul.f32 %v11007_v4, %v10816_v3  ;;  %v16113_v30 = vld [vmem:[#allocation49_spill] sm:$0xff]  ;;  %v16116_v8 = vld [vmem:[#allocation51_spill] sm:$0xff] }
 0x53f   :  { %16102 = vst [vmem:[#allocation24_spill] sm:$0xff] %v11116_v24  ;;  %16103 = vst [vmem:[#allocation25_spill] sm:$0xff] %v11119_v17  ;;  %v11144_v7 = vmul.f32 %v11007_v4, %v10819_v16  ;;  %v11148_v5 = vmul.f32 %v11007_v4, %v10822_v58  ;;  %v11152_v23 = vmul.f32 %v11007_v4, %v10825_v51  ;;  %v16111_v17 = vld [vmem:[#allocation42_spill] sm:$0xff]  ;;  %v16112_v24 = vld [vmem:[#allocation44_spill] sm:$0xff] }
 0x540   :  { %16104 = vst [vmem:[#allocation26_spill] sm:$0xff] %v11122_v48  ;;  %v11156_v54 = vmul.f32 %v11007_v4, %v10828_v0  ;;  %v11160_v52 = vmul.f32 %v11007_v4, %v10831_v32  ;;  %v11164_v60 = vmul.f32 %v11007_v4, %v10834_v63  ;;  %v11168_v3 = vmul.f32 %v11007_v4, %v10837_v10  ;;  %v11189_v32 = vld [vmem:[%s15043_s7] ss:$0 sm:$0xff]  ;;  %v16105_v63 = vld [vmem:[#allocation34_spill] sm:$0xff]  ;;  %v16110_v48 = vld [vmem:[#allocation40_spill] sm:$0xff] }
 0x541   :  { %v11172_v16 = vmul.f32 %v11007_v4, %v10840_v15  ;;  %v11176_v58 = vmul.f32 %v11007_v4, %v10843_v49  ;;  %v11180_v51 = vmul.f32 %v11007_v4, %v10846_v42  ;;  %v11184_v0 = vmul.f32 %v11007_v4, %v10849_v38  ;;  %v16106_v15 = vld [vmem:[#allocation36_spill] sm:$0xff]  ;;  %v16114_v6 = vld [vmem:[#allocation73_spill] sm:$0xff] }
 0x542   :  { %v11193_v10 = vmul.f32 %v11007_v4, %v16105_v63  ;;  %v11197_v49 = vmul.f32 %v11007_v4, %v16106_v15  ;;  %v11201_v42 = vmul.f32 %v11007_v4, %v16107_v33  ;;  %v11205_v38 = vmul.f32 %v11007_v4, %v16108_v13 }
 0x543   :  { %v11209_v28 = vmul.f32 %v11007_v4, %v16109_v40  ;;  %v11213_v63 = vmul.f32 %v11007_v4, %v16110_v48  ;;  %v11217_v15 = vmul.f32 %v11007_v4, %v16111_v17  ;;  %v11221_v33 = vmul.f32 %v11007_v4, %v16112_v24 }
 0x544   :  { %v11225_v13 = vmul.f32 %v11007_v4, %v16113_v30  ;;  %v11229_v40 = vmul.f32 %v11007_v4, %v16114_v6  ;;  %v11233_v48 = vmul.f32 %v11007_v4, %v16115_v56  ;;  %v11237_v17 = vmul.f32 %v11007_v4, %v16116_v8 }
 0x545   :  { %v2607_v24 = vadd.f32 %v11189_v32, %v11029_v27  ;;  %v2606_v12 = vadd.f32 %v11189_v32, %v11026_v35  ;;  %v2608_v30 = vadd.f32 %v11189_v32, %v11032_v22  ;;  %v2609_v34 = vadd.f32 %v11189_v32, %v11035_v19 }
 0x546   :  { %v2610_v4 = vadd.f32 %v11189_v32, %v11038_v44  ;;  %v2611_v35 = vadd.f32 %v11189_v32, %v11041_v20  ;;  %v2613_v44 = vadd.f32 %v11189_v32, %v11047_v39  ;;  %v11272_v39 = vadd.f32 %v11189_v32, %v2570_v25 }
 0x547   :  { %v2671_v14 = vmax.f32 %v2607_v24, 0.0  ;;  %v2670_v6 = vmax.f32 %v2606_v12, 0.0  ;;  %v2672_v56 = vmax.f32 %v2608_v30, 0.0  ;;  %v2673_v27 = vmax.f32 %v2609_v34, 0.0 }
 0x548   :  { %v2674_v22 = vmax.f32 %v2610_v4, 0.0  ;;  %v2612_v12 = vadd.f32 %v11189_v32, %v11044_v53  ;;  %v2675_v19 = vmax.f32 %v2611_v35, 0.0  ;;  %v2677_v20 = vmax.f32 %v2613_v44, 0.0 }
 0x549   :  { %7180 = vmatprep.mubr.msk.f32.mxu0 %vm1463_vm5, %v2670_v6  ;;  %v2615_v53 = vadd.f32 %v11189_v32, %v11053_v57  ;;  %v2616_v34 = vadd.f32 %v11189_v32, %v11056_v9  ;;  %v11269_v30 = vadd.f32 %v11189_v32, %v2569_v55  ;;  %v11279_v6 = vadd.f32 %v11189_v32, %v2572_v62 }
 0x54a   :  { %7181 = vmatmul.mubr.msk.f32.vlgmr.msra.gmra.mrb[130].mxu0 %vm1463_vm5, %v2671_v14  ;;  %v2676_v8 = vmax.f32 %v2612_v12, 0.0  ;;  %v2614_v14 = vadd.f32 %v11189_v32, %v11050_v61  ;;  %v11275_v61 = vadd.f32 %v11189_v32, %v2571_v47  ;;  %v11282_v57 = vadd.f32 %v11189_v32, %v2573_v2 }
 0x54b   :  { %7183 = vmatprep.mubr.msk.f32.mxu0 %vm1463_vm5, %v2672_v56  ;;  %v11285_v9 = vadd.f32 %v11189_v32, %v2574_v18  ;;  %v11288_v55 = vadd.f32 %v11189_v32, %v2575_v26  ;;  %v2679_v25 = vmax.f32 %v2615_v53, 0.0  ;;  %v2680_v56 = vmax.f32 %v2616_v34, 0.0  ;;  %v16118_v34 = vld [vmem:[#allocation55_spill] sm:$0xff] }
 0x54c   :  { %v2678_v24 = vmax.f32 %v2614_v14, 0.0  ;;  %v2617_v47 = vadd.f32 %v11189_v32, %v11059_v29  ;;  %v2618_v62 = vadd.f32 %v11189_v32, %v11062_v31  ;;  %v11297_v2 = vadd.f32 %v11189_v32, %v11140_v37 }
 0x54d   :  { %v11301_v18 = vadd.f32 %v11189_v32, %v11144_v7  ;;  %v11305_v26 = vadd.f32 %v11189_v32, %v11148_v5  ;;  %v11309_v4 = vadd.f32 %v11189_v32, %v11152_v23  ;;  %v11314_v29 = vadd.f32 %v11189_v32, %v11156_v54 }
 0x54e   :  { %7184 = vmatmul.mubr.msk.f32.gmra.mrb[132].mxu0 %vm1463_vm5, %v2673_v27  ;;  %v11318_v31 = vadd.f32 %v11189_v32, %v11160_v52  ;;  %v11322_v37 = vadd.f32 %v11189_v32, %v11164_v60  ;;  %v11326_v7 = vadd.f32 %v11189_v32, %v11168_v3  ;;  %v2681_v5 = vmax.f32 %v2617_v47, 0.0  ;;  %v16120_v47 = vld [vmem:[#allocation20_spill] sm:$0xff] }
 0x54f   :  { %7186 = vmatprep.mubr.msk.f32.mxu0 %vm1463_vm5, %v2674_v22  ;;  %v2682_v23 = vmax.f32 %v2618_v62, 0.0  ;;  %v2619_v54 = vadd.f32 %v11189_v32, %v11065_v59  ;;  %v2620_v27 = vadd.f32 %v11189_v32, %v11068_v11  ;;  %v11335_v52 = vadd.f32 %v11189_v32, %v11172_v16 }
 0x550   :  { %v11339_v60 = vadd.f32 %v11189_v32, %v11176_v58  ;;  %v11343_v3 = vadd.f32 %v11189_v32, %v11180_v51  ;;  %v11347_v35 = vadd.f32 %v11189_v32, %v11184_v0  ;;  %v11352_v59 = vadd.f32 %v11189_v32, %v11193_v10 }
 0x551   :  { %v11356_v11 = vadd.f32 %v11189_v32, %v11197_v49  ;;  %v11360_v16 = vadd.f32 %v11189_v32, %v11201_v42  ;;  %v11364_v58 = vadd.f32 %v11189_v32, %v11205_v38  ;;  %v2683_v51 = vmax.f32 %v2619_v54, 0.0 }
 0x552   :  { %7187 = vmatmul.mubr.msk.f32.gmra.mrb[134].mxu0 %vm1463_vm5, %v2675_v19  ;;  %v2684_v0 = vmax.f32 %v2620_v27, 0.0  ;;  %v2621_v10 = vadd.f32 %v11189_v32, %v11071_v50  ;;  %v2622_v22 = vadd.f32 %v11189_v32, %v11074_v43  ;;  %v11373_v49 = vadd.f32 %v11189_v32, %v11209_v28 }
 0x553   :  { %7189 = vmatprep.mubr.msk.f32.mxu0 %vm1463_vm5, %v2676_v8  ;;  %v11377_v42 = vadd.f32 %v11189_v32, %v11213_v63  ;;  %v11381_v38 = vadd.f32 %v11189_v32, %v11217_v15  ;;  %v11385_v12 = vadd.f32 %v11189_v32, %v11221_v33  ;;  %v11390_v50 = vadd.f32 %v11189_v32, %v11225_v13 }
 0x554   :  { %v11394_v43 = vadd.f32 %v11189_v32, %v11229_v40  ;;  %v11398_v28 = vadd.f32 %v11189_v32, %v11233_v48  ;;  %v11402_v63 = vadd.f32 %v11189_v32, %v11237_v17  ;;  %v2685_v15 = vmax.f32 %v2621_v10, 0.0 }
 0x555   :  { %v2623_v33 = vadd.f32 %v11189_v32, %v11077_v45  ;;  %v2686_v13 = vmax.f32 %v2622_v22, 0.0  ;;  %v2624_v19 = vadd.f32 %v11189_v32, %v11080_v46  ;;  %v2625_v48 = vadd.f32 %v11189_v32, %v11083_v1  ;;  %v16123_v22 = vld [vmem:[#allocation23_spill] sm:$0xff] }
 0x556   :  { %7190 = vmatmul.mubr.msk.f32.gmra.mrb[136].mxu0 %vm1463_vm5, %v2677_v20  ;;  %v2626_v44 = vadd.f32 %v11189_v32, %v11086_v21  ;;  %v2627_v46 = vadd.f32 %v11189_v32, %v11089_v41  ;;  %v2628_v14 = vadd.f32 %v11189_v32, %v11092_v36  ;;  %v16117_v20 = vld [vmem:[#allocation53_spill] sm:$0xff]  ;;  %v2632_v62 = vadd.f32 %v11189_v32, %v16120_v47 }
 0x557   :  { %7192 = vmatprep.mubr.msk.f32.mxu0 %vm1463_vm5, %v2678_v24  ;;  %v2687_v40 = vmax.f32 %v2623_v33, 0.0  ;;  %v2688_v17 = vmax.f32 %v2624_v19, 0.0  ;;  %v2689_v45 = vmax.f32 %v2625_v48, 0.0  ;;  %v2629_v21 = vadd.f32 %v11189_v32, %v16117_v20  ;;  %v16125_v48 = vld [vmem:[#allocation25_spill] sm:$0xff] }
 0x558   :  { %v2690_v8 = vmax.f32 %v2626_v44, 0.0  ;;  %v2691_v1 = vmax.f32 %v2627_v46, 0.0  ;;  %v2692_v53 = vmax.f32 %v2628_v14, 0.0  ;;  %v2630_v24 = vadd.f32 %v11189_v32, %v16118_v34 }
 0x559   :  { %v2693_v41 = vmax.f32 %v2629_v21, 0.0  ;;  %v2696_v27 = vmax.f32 %v2632_v62, 0.0  ;;  %v2704_v20 = vmax.f32 %v11272_v39, 0.0  ;;  %v2706_v21 = vmax.f32 %v11279_v6, 0.0 }
 0x55a   :  { %7193 = vmatmul.mubr.msk.f32.gmra.mrb[138].mxu0 %vm1463_vm5, %v2679_v25  ;;  %v16119_v25 = vld [vmem:[#allocation19_spill] sm:$0xff]  ;;  %v2708_v34 = vmax.f32 %v11285_v9, 0.0  ;;  %v2710_v39 = vmax.f32 %v11297_v2, 0.0  ;;  %v2712_v6 = vmax.f32 %v11305_v26, 0.0  ;;  %v2714_v9 = vmax.f32 %v11314_v29, 0.0 }
 0x55b   :  { %7195 = vmatprep.mubr.msk.f32.mxu0 %vm1463_vm5, %v2680_v56  ;;  %v2631_v36 = vadd.f32 %v11189_v32, %v16119_v25  ;;  %v2694_v56 = vmax.f32 %v2630_v24, 0.0  ;;  %v2716_v2 = vmax.f32 %v11322_v37, 0.0  ;;  %v2718_v26 = vmax.f32 %v11335_v52, 0.0 }
 0x55c   :  { %v2720_v29 = vmax.f32 %v11343_v3, 0.0  ;;  %v2722_v37 = vmax.f32 %v11352_v59, 0.0  ;;  %v2724_v52 = vmax.f32 %v11360_v16, 0.0  ;;  %v2726_v3 = vmax.f32 %v11373_v49, 0.0 }
 0x55d   :  { %v2728_v59 = vmax.f32 %v11381_v38, 0.0  ;;  %v2730_v16 = vmax.f32 %v11390_v50, 0.0  ;;  %v2732_v49 = vmax.f32 %v11398_v28, 0.0 }
 0x55e   :  { %7196 = vmatmul.mubr.msk.f32.gmra.mrb[140].mxu0 %vm1463_vm5, %v2681_v5  ;;  %v2695_v5 = vmax.f32 %v2631_v36, 0.0 }
 0x55f   :  { %7198 = vmatprep.mubr.msk.f32.mxu0 %vm1463_vm5, %v2682_v23  ;;  %v16121_v23 = vld [vmem:[#allocation21_spill] sm:$0xff] }
 0x560   :  { %v2633_v54 = vadd.f32 %v11189_v32, %v16121_v23 }
 0x562   :  { %7199 = vmatmul.mubr.msk.f32.gmra.mrb[142].mxu0 %vm1463_vm5, %v2683_v51  ;;  %v16122_v51 = vld [vmem:[#allocation22_spill] sm:$0xff]  ;;  %v2697_v10 = vmax.f32 %v2633_v54, 0.0 }
 0x563   :  { %7201 = vmatprep.mubr.msk.f32.mxu0 %vm1463_vm5, %v2684_v0  ;;  %v2634_v0 = vadd.f32 %v11189_v32, %v16122_v51 }
 0x565   :  { %v2698_v33 = vmax.f32 %v2634_v0, 0.0 }
 0x566   :  { %7202 = vmatmul.mubr.msk.f32.gmra.mrb[144].mxu0 %vm1463_vm5, %v2685_v15  ;;  %v2635_v15 = vadd.f32 %v11189_v32, %v16123_v22 }
 0x567   :  { %7204 = vmatprep.mubr.msk.f32.mxu0 %vm1463_vm5, %v2686_v13  ;;  %v16124_v13 = vld [vmem:[#allocation24_spill] sm:$0xff] }
 0x568   :  { %v2636_v19 = vadd.f32 %v11189_v32, %v16124_v13 }
 0x56a   :  { %7205 = vmatmul.mubr.msk.f32.gmra.mrb[146].mxu0 %vm1463_vm5, %v2687_v40  ;;  %v2699_v40 = vmax.f32 %v2635_v15, 0.0  ;;  %v2700_v44 = vmax.f32 %v2636_v19, 0.0 }
 0x56b   :  { %7207 = vmatprep.mubr.msk.f32.mxu0 %vm1463_vm5, %v2688_v17  ;;  %v2637_v17 = vadd.f32 %v11189_v32, %v16125_v48 }
 0x56e   :  { %7208 = vmatmul.mubr.msk.f32.gmra.mrb[148].mxu0 %vm1463_vm5, %v2689_v45  ;;  %v16126_v45 = vld [vmem:[#allocation26_spill] sm:$0xff] }
 0x56f   :  { %7210 = vmatprep.mubr.msk.f32.mxu0 %vm1463_vm5, %v2690_v8  ;;  %v2638_v46 = vadd.f32 %v11189_v32, %v16126_v45  ;;  %v2701_v8 = vmax.f32 %v2637_v17, 0.0  ;;  %v2705_v32 = vmax.f32 %v11275_v61, 0.0  ;;  %v2711_v61 = vmax.f32 %v11301_v18, 0.0 }
 0x570   :  { %v2717_v18 = vmax.f32 %v11326_v7, 0.0  ;;  %v2723_v7 = vmax.f32 %v11356_v11, 0.0  ;;  %v2729_v11 = vmax.f32 %v11385_v12, 0.0 }
 0x571   :  { %v2702_v14 = vmax.f32 %v2638_v46, 0.0 }
 0x572   :  { %7211 = vmatmul.mubr.msk.f32.gmra.mrb[150].mxu0 %vm1463_vm5, %v2691_v1  ;;  %v2703_v1 = vmax.f32 %v11269_v30, 0.0  ;;  %v2709_v30 = vmax.f32 %v11288_v55, 0.0  ;;  %v2715_v55 = vmax.f32 %v11318_v31, 0.0  ;;  %v2721_v31 = vmax.f32 %v11347_v35, 0.0 }
 0x573   :  { %7213 = vmatprep.mubr.msk.f32.mxu0 %vm1463_vm5, %v2692_v53  ;;  %v2707_v53 = vmax.f32 %v11282_v57, 0.0  ;;  %v2713_v57 = vmax.f32 %v11309_v4, 0.0  ;;  %v2719_v4 = vmax.f32 %v11339_v60, 0.0  ;;  %v2725_v60 = vmax.f32 %v11364_v58, 0.0 }
 0x574   :  { %v2727_v35 = vmax.f32 %v11377_v42, 0.0  ;;  %v2731_v58 = vmax.f32 %v11394_v43, 0.0  ;;  %v2733_v42 = vmax.f32 %v11402_v63, 0.0 }
 0x576   :  { %7214 = vmatmul.mubr.msk.f32.gmra.mrb[152].mxu0 %vm1463_vm5, %v2693_v41 }
 0x577   :  { %7216 = vmatprep.mubr.msk.f32.mxu0 %vm1463_vm5, %v2694_v56 }
 0x57a   :  { %7217 = vmatmul.mubr.msk.f32.gmra.mrb[154].mxu0 %vm1463_vm5, %v2695_v5 }
 0x57b   :  { %7219 = vmatprep.mubr.msk.f32.mxu0 %vm1463_vm5, %v2696_v27 }
 0x57e   :  { %7220 = vmatmul.mubr.msk.f32.gmra.mrb[156].mxu0 %vm1463_vm5, %v2697_v10 }
 0x57f   :  { %7222 = vmatprep.mubr.msk.f32.mxu0 %vm1463_vm5, %v2698_v33 }
 0x582   :  { %7223 = vmatmul.mubr.msk.f32.gmra.mrb[158].mxu0 %vm1463_vm5, %v2699_v40 }
 0x583   :  { %7225 = vmatprep.mubr.msk.f32.mxu0 %vm1463_vm5, %v2700_v44 }
 0x586   :  { %7226 = vmatmul.mubr.msk.f32.gmra.mrb[160].mxu0 %vm1463_vm5, %v2701_v8 }
 0x587   :  { %7228 = vmatprep.mubr.msk.f32.mxu0 %vm1463_vm5, %v2702_v14 }
 0x58a   :  { %7229 = vmatmul.mubr.msk.f32.gmra.mrb[162].mxu0 %vm1463_vm5, %v2703_v1 }
 0x58b   :  { %7231 = vmatprep.mubr.msk.f32.mxu0 %vm1463_vm5, %v2704_v20 }
 0x58e   :  { %7232 = vmatmul.mubr.msk.f32.gmra.mrb[164].mxu0 %vm1463_vm5, %v2705_v32 }
 0x58f   :  { %7234 = vmatprep.mubr.msk.f32.mxu0 %vm1463_vm5, %v2706_v21 }
 0x592   :  { %7235 = vmatmul.mubr.msk.f32.gmra.mrb[166].mxu0 %vm1463_vm5, %v2707_v53 }
 0x593   :  { %7237 = vmatprep.mubr.msk.f32.mxu0 %vm1463_vm5, %v2708_v34 }
 0x596   :  { %7238 = vmatmul.mubr.msk.f32.gmra.mrb[168].mxu0 %vm1463_vm5, %v2709_v30 }
 0x597   :  { %7240 = vmatprep.mubr.msk.f32.mxu0 %vm1463_vm5, %v2710_v39 }
 0x59a   :  { %7241 = vmatmul.mubr.msk.f32.gmra.mrb[170].mxu0 %vm1463_vm5, %v2711_v61 }
 0x59b   :  { %7243 = vmatprep.mubr.msk.f32.mxu0 %vm1463_vm5, %v2712_v6 }
 0x59e   :  { %7244 = vmatmul.mubr.msk.f32.gmra.mrb[172].mxu0 %vm1463_vm5, %v2713_v57 }
 0x59f   :  { %7246 = vmatprep.mubr.msk.f32.mxu0 %vm1463_vm5, %v2714_v9 }
 0x5a2   :  { %7247 = vmatmul.mubr.msk.f32.gmra.mrb[174].mxu0 %vm1463_vm5, %v2715_v55 }
 0x5a3   :  { %7249 = vmatprep.mubr.msk.f32.mxu0 %vm1463_vm5, %v2716_v2 }
 0x5a6   :  { %7250 = vmatmul.mubr.msk.f32.gmra.mrb[176].mxu0 %vm1463_vm5, %v2717_v18 }
 0x5a7   :  { %7252 = vmatprep.mubr.msk.f32.mxu0 %vm1463_vm5, %v2718_v26 }
 0x5aa   :  { %7253 = vmatmul.mubr.msk.f32.gmra.mrb[178].mxu0 %vm1463_vm5, %v2719_v4 }
 0x5ab   :  { %7255 = vmatprep.mubr.msk.f32.mxu0 %vm1463_vm5, %v2720_v29 }
 0x5ae   :  { %7256 = vmatmul.mubr.msk.f32.gmra.mrb[180].mxu0 %vm1463_vm5, %v2721_v31 }
 0x5af   :  { %7258 = vmatprep.mubr.msk.f32.mxu0 %vm1463_vm5, %v2722_v37 }
 0x5b2   :  { %7259 = vmatmul.mubr.msk.f32.gmra.mrb[182].mxu0 %vm1463_vm5, %v2723_v7 }
 0x5b3   :  { %7261 = vmatprep.mubr.msk.f32.mxu0 %vm1463_vm5, %v2724_v52 }
 0x5b6   :  { %7262 = vmatmul.mubr.msk.f32.gmra.mrb[184].mxu0 %vm1463_vm5, %v2725_v60 }
 0x5b7   :  { %7264 = vmatprep.mubr.msk.f32.mxu0 %vm1463_vm5, %v2726_v3 }
 0x5ba   :  { %7265 = vmatmul.mubr.msk.f32.gmra.mrb[186].mxu0 %vm1463_vm5, %v2727_v35 }
 0x5bb   :  { %7267 = vmatprep.mubr.msk.f32.mxu0 %vm1463_vm5, %v2728_v59 }
 0x5be   :  { %7268 = vmatmul.mubr.msk.f32.gmra.mrb[188].mxu0 %vm1463_vm5, %v2729_v11 }
 0x5bf   :  { %7270 = vmatprep.mubr.msk.f32.mxu0 %vm1463_vm5, %v2730_v16 }
 0x5c2   :  { %7271 = vmatmul.mubr.msk.f32.gmra.mrb[190].mxu0 %vm1463_vm5, %v2731_v58 }
 0x5c3   :  { %7273 = vmatprep.mubr.msk.f32.mxu0 %vm1463_vm5, %v2732_v49 }
 0x5c6   :  { %7274 = vmatmul.mubr.msk.f32.gmra.mrb[192].mxu0 %vm1463_vm5, %v2733_v42 }
 0x61d   :  { %v11517_v38 = vpop.f32.mrb[130].mxu0 }
 0x61e   :  { %16127 = vst [vmem:[#allocation27_spill] sm:$0xff] %v11517_v38  ;;  %v11521_v12 = vmul.f32 %v11517_v38, %v11517_v38  ;;  %v11523_v50 = vpop.f32.mrb[131].mxu0 }
 0x61f   :  { %16128 = vst [vmem:[#allocation28_spill] sm:$0xff] %v11523_v50  ;;  %v7694_v43 = vpack.c.bf16 %v11517_v38, %v11523_v50  ;;  %v11529_v28 = vmul.f32 %v11523_v50, %v11523_v50 }
 0x621   :  { %v11533_v24 = vpop.f32.mrb[132].mxu0 }
 0x622   :  { %16129 = vst [vmem:[#allocation29_spill] sm:$0xff] %v11533_v24  ;;  %v11537_v41 = vmul.f32 %v11533_v24, %v11533_v24  ;;  %v11539_v25 = vpop.f32.mrb[133].mxu0 }
 0x623   :  { %16130 = vst [vmem:[#allocation30_spill] sm:$0xff] %v11539_v25  ;;  %v7698_v36 = vpack.c.bf16 %v11533_v24, %v11539_v25  ;;  %v11545_v56 = vmul.f32 %v11539_v25, %v11539_v25 }
 0x625   :  { %v11549_v62 = vpop.f32.mrb[134].mxu0 }
 0x626   :  { %16131 = vst [vmem:[#allocation48_spill] sm:$0xff] %v11549_v62  ;;  %v11553_v5 = vmul.f32 %v11549_v62, %v11549_v62  ;;  %v11555_v23 = vpop.f32.mrb[135].mxu0 }
 0x627   :  { %16132 = vst [vmem:[#allocation43_spill] sm:$0xff] %v11555_v23  ;;  %v7702_v54 = vpack.c.bf16 %v11549_v62, %v11555_v23  ;;  %v11561_v27 = vmul.f32 %v11555_v23, %v11555_v23 }
 0x629   :  { %v11565_v0 = vpop.f32.mrb[136].mxu0 }
 0x62a   :  { %16133 = vst [vmem:[#allocation52_spill] sm:$0xff] %v11565_v0  ;;  %v11569_v10 = vmul.f32 %v11565_v0, %v11565_v0  ;;  %v11571_v22 = vpop.f32.mrb[137].mxu0 }
 0x62b   :  { %16134 = vst [vmem:[#allocation46_spill] sm:$0xff] %v11571_v22  ;;  %v7706_v15 = vpack.c.bf16 %v11565_v0, %v11571_v22  ;;  %v11577_v33 = vmul.f32 %v11571_v22, %v11571_v22 }
 0x62d   :  { %v11581_v19 = vpop.f32.mrb[138].mxu0 }
 0x62e   :  { %16135 = vst [vmem:[#allocation56_spill] sm:$0xff] %v11581_v19  ;;  %v11585_v40 = vmul.f32 %v11581_v19, %v11581_v19  ;;  %v11587_v48 = vpop.f32.mrb[139].mxu0 }
 0x62f   :  { %16136 = vst [vmem:[#allocation50_spill] sm:$0xff] %v11587_v48  ;;  %v7710_v17 = vpack.c.bf16 %v11581_v19, %v11587_v48  ;;  %v11593_v44 = vmul.f32 %v11587_v48, %v11587_v48 }
 0x631   :  { %v11597_v46 = vpop.f32.mrb[140].mxu0 }
 0x632   :  { %16137 = vst [vmem:[#allocation60_spill] sm:$0xff] %v11597_v46  ;;  %v11601_v8 = vmul.f32 %v11597_v46, %v11597_v46  ;;  %v11603_v14 = vpop.f32.mrb[141].mxu0 }
 0x633   :  { %16138 = vst [vmem:[#allocation54_spill] sm:$0xff] %v11603_v14  ;;  %v7714_v1 = vpack.c.bf16 %v11597_v46, %v11603_v14  ;;  %v11609_v20 = vmul.f32 %v11603_v14, %v11603_v14 }
 0x635   :  { %v11613_v21 = vpop.f32.mrb[142].mxu0 }
 0x636   :  { %16139 = vst [vmem:[#allocation80_spill] sm:$0xff] %v11613_v21  ;;  %v11617_v53 = vmul.f32 %v11613_v21, %v11613_v21  ;;  %v11619_v34 = vpop.f32.mrb[143].mxu0 }
 0x637   :  { %16140 = vst [vmem:[#allocation32_spill] sm:$0xff] %v11619_v34  ;;  %v11625_v39 = vmul.f32 %v11619_v34, %v11619_v34 }
 0x639   :  { %v11629_v6 = vpop.f32.mrb[144].mxu0 }
 0x63a   :  { %16141 = vst [vmem:[#allocation82_spill] sm:$0xff] %v11629_v6  ;;  %v11633_v57 = vmul.f32 %v11629_v6, %v11629_v6  ;;  %v11635_v9 = vpop.f32.mrb[145].mxu0 }
 0x63b   :  { %16142 = vst [vmem:[#allocation33_spill] sm:$0xff] %v11635_v9  ;;  %v11641_v2 = vmul.f32 %v11635_v9, %v11635_v9 }
 0x63d   :  { %v11645_v26 = vpop.f32.mrb[146].mxu0 }
 0x63e   :  { %16143 = vst [vmem:[#allocation31_spill] sm:$0xff] %v11645_v26  ;;  %v11649_v4 = vmul.f32 %v11645_v26, %v11645_v26  ;;  %v11651_v29 = vpop.f32.mrb[147].mxu0 }
 0x63f   :  { %16144 = vst [vmem:[#allocation37_spill] sm:$0xff] %v11651_v29  ;;  %v7692_v31 = vpack.c.bf16 %v11645_v26, %v11651_v29  ;;  %v11657_v37 = vmul.f32 %v11651_v29, %v11651_v29 }
 0x641   :  { %v11659_v7 = vpop.f32.mrb[148].mxu0  ;;  %7693 = vmatprep.subr.bf16.mxu1 %v7692_v31 }
 0x642   :  { %16145 = vst [vmem:[#allocation35_spill] sm:$0xff] %v11659_v7  ;;  %v11665_v60 = vmul.f32 %v11659_v7, %v11659_v7  ;;  %v11667_v3 = vpop.f32.mrb[149].mxu0  ;;  %7695 = vmatpush3.bf16.msra.mxu1 %v7694_v43 }
 0x643   :  { %16146 = vst [vmem:[#allocation41_spill] sm:$0xff] %v11667_v3  ;;  %v7696_v35 = vpack.c.bf16 %v11659_v7, %v11667_v3  ;;  %v11673_v59 = vmul.f32 %v11667_v3, %v11667_v3 }
 0x645   :  { %v11675_v11 = vpop.f32.mrb[150].mxu0  ;;  %7697 = vmatprep.subr.bf16.mxu1 %v7696_v35 }
 0x646   :  { %16147 = vst [vmem:[#allocation39_spill] sm:$0xff] %v11675_v11  ;;  %v11681_v58 = vmul.f32 %v11675_v11, %v11675_v11  ;;  %v11683_v49 = vpop.f32.mrb[151].mxu0  ;;  %7699 = vmatpush3.bf16.msra.mxu1 %v7698_v36 }
 0x647   :  { %16148 = vst [vmem:[#allocation59_spill] sm:$0xff] %v11683_v49  ;;  %v7700_v42 = vpack.c.bf16 %v11675_v11, %v11683_v49  ;;  %v11689_v43 = vmul.f32 %v11683_v49, %v11683_v49 }
 0x649   :  { %v11691_v31 = vpop.f32.mrb[152].mxu0  ;;  %7701 = vmatprep.subr.bf16.mxu1 %v7700_v42 }
 0x64a   :  { %16149 = vst [vmem:[#allocation57_spill] sm:$0xff] %v11691_v31  ;;  %v11697_v18 = vmul.f32 %v11691_v31, %v11691_v31  ;;  %v11699_v61 = vpop.f32.mrb[153].mxu0  ;;  %7703 = vmatpush3.bf16.msra.mxu1 %v7702_v54 }
 0x64b   :  { %16150 = vst [vmem:[#allocation62_spill] sm:$0xff] %v11699_v61  ;;  %v7704_v36 = vpack.c.bf16 %v11691_v31, %v11699_v61  ;;  %v11705_v32 = vmul.f32 %v11699_v61, %v11699_v61  ;;  %v16164_v31 = vmov 1.0  }
 0x64d   :  { %v11707_v45 = vpop.f32.mrb[154].mxu0  ;;  %7705 = vmatprep.subr.bf16.mxu1 %v7704_v36 }
 0x64e   :  { %16151 = vst [vmem:[#allocation61_spill] sm:$0xff] %v11707_v45  ;;  %v11713_v13 = vmul.f32 %v11707_v45, %v11707_v45  ;;  %v11715_v51 = vpop.f32.mrb[155].mxu0  ;;  %7707 = vmatpush3.bf16.msra.mxu1 %v7706_v15 }
 0x64f   :  { %16152 = vst [vmem:[#allocation64_spill] sm:$0xff] %v11715_v51  ;;  %v7708_v54 = vpack.c.bf16 %v11707_v45, %v11715_v51  ;;  %v11721_v35 = vmul.f32 %v11715_v51, %v11715_v51 }
 0x651   :  { %v11723_v47 = vpop.f32.mrb[156].mxu0  ;;  %7709 = vmatprep.subr.bf16.mxu1 %v7708_v54 }
 0x652   :  { %16153 = vst [vmem:[#allocation63_spill] sm:$0xff] %v11723_v47  ;;  %v11729_v42 = vmul.f32 %v11723_v47, %v11723_v47  ;;  %v11731_v16 = vpop.f32.mrb[157].mxu0  ;;  %7711 = vmatpush3.bf16.msra.mxu1 %v7710_v17 }
 0x653   :  { %16154 = vst [vmem:[#allocation67_spill] sm:$0xff] %v11731_v16  ;;  %v7712_v15 = vpack.c.bf16 %v11723_v47, %v11731_v16  ;;  %v11737_v63 = vmul.f32 %v11731_v16, %v11731_v16 }
 0x655   :  { %v11739_v52 = vpop.f32.mrb[158].mxu0  ;;  %7713 = vmatprep.subr.bf16.mxu1 %v7712_v15 }
 0x656   :  { %16155 = vst [vmem:[#allocation65_spill] sm:$0xff] %v11739_v52  ;;  %v11745_v36 = vmul.f32 %v11739_v52, %v11739_v52  ;;  %v11747_v55 = vpop.f32.mrb[159].mxu0  ;;  %7715 = vmatpush3.bf16.msra.mxu1 %v7714_v1  ;;  %v16159_v1 = vpack.c.bf16 %v11613_v21, %v11619_v34 }
 0x657   :  { %16156 = vst [vmem:[#allocation14_spill] sm:$0xff] %v11747_v55  ;;  %v7716_v17 = vpack.c.bf16 %v11739_v52, %v11747_v55  ;;  %v11756_v30 = vmul.f32 %v11747_v55, %v11747_v55 }
 0x659   :  { %v11758_v15 = vpop.f32.mrb[160].mxu0  ;;  %7717 = vmatprep.subr.bf16.mxu1 %v7716_v17 }
 0x65a   :  { %16157 = vst [vmem:[#allocation9_spill] sm:$0xff] %v11758_v15  ;;  %v11764_v47 = vmul.f32 %v11758_v15, %v11758_v15  ;;  %v11766_v16 = vpop.f32.mrb[161].mxu0  ;;  %7719 = vmatpush3.bf16.msra.mxu1 %v16159_v1  ;;  %v16162_v1 = vpack.c.bf16 %v11629_v6, %v11635_v9 }
 0x65b   :  { %16158 = vst [vmem:[#allocation16_spill] sm:$0xff] %v11766_v16  ;;  %v7720_v52 = vpack.c.bf16 %v11758_v15, %v11766_v16  ;;  %v11775_v55 = vmul.f32 %v11766_v16, %v11766_v16 }
 0x65d   :  { %v11777_v17 = vpop.f32.mrb[162].mxu0  ;;  %7721 = vmatprep.subr.bf16.mxu1 %v7720_v52 }
 0x65e   :  { %16160 = vst [vmem:[#allocation13_spill] sm:$0xff] %v11777_v17  ;;  %v11783_v45 = vmul.f32 %v11777_v17, %v11777_v17  ;;  %v11785_v51 = vpop.f32.mrb[163].mxu0  ;;  %7723 = vmatpush3.bf16.msra.mxu1 %v16162_v1 }
 0x65f   :  { %16161 = vst [vmem:[#allocation18_spill] sm:$0xff] %v11785_v51  ;;  %v7726_v15 = vpack.c.bf16 %v11777_v17, %v11785_v51  ;;  %v11794_v16 = vmul.f32 %v11785_v51, %v11785_v51 }
 0x661   :  { %v11798_v54 = vpop.f32.mrb[164].mxu0  ;;  %6043 = vmatmul.mubr.msk.f32.vlgmr.msra.gmra.mrb[14].mxu1 %vm8760_vm3, %v16164_v31 }
 0x662   :  { %16163 = vst [vmem:[#allocation15_spill] sm:$0xff] %v11798_v54  ;;  %v11805_v11 = vmul.f32 %v11798_v54, %v11798_v54  ;;  %v11807_v1 = vpop.f32.mrb[165].mxu0  ;;  %6044 = vmatprep.mubr.msk.f32.mxu1 %vm8489_vm2, %v16164_v31 }
 0x663   :  { %16166 = vst [vmem:[#allocation17_spill] sm:$0xff] %v11807_v1  ;;  %v7730_v51 = vpack.c.bf16 %v11798_v54, %v11807_v1  ;;  %v11816_v52 = vmul.f32 %v11807_v1, %v11807_v1 }
 0x665   :  { %v11820_v7 = vpop.f32.mrb[166].mxu0 }
 0x666   :  { %16168 = vst [vmem:[#allocation69_spill] sm:$0xff] %v11820_v7  ;;  %v11824_v3 = vmul.f32 %v11820_v7, %v11820_v7  ;;  %v11826_v26 = vpop.f32.mrb[167].mxu0 }
 0x667   :  { %16170 = vst [vmem:[#allocation71_spill] sm:$0xff] %v11826_v26  ;;  %v7734_v29 = vpack.c.bf16 %v11820_v7, %v11826_v26  ;;  %v11832_v54 = vmul.f32 %v11826_v26, %v11826_v26 }
 0x668   :  { %16169 = vst [vmem:[#allocation58_spill] sm:$0xff] %v11824_v3 }
 0x669   :  { %16171 = vst [vmem:[#allocation68_spill] sm:$0xff] %v11832_v54  ;;  %v11836_v6 = vpop.f32.mrb[168].mxu0 }
 0x66a   :  { %16172 = vst [vmem:[#allocation74_spill] sm:$0xff] %v11836_v6  ;;  %v11840_v49 = vmul.f32 %v11836_v6, %v11836_v6  ;;  %v11842_v9 = vpop.f32.mrb[169].mxu0 }
 0x66b   :  { %16174 = vst [vmem:[#allocation77_spill] sm:$0xff] %v11842_v9  ;;  %v7738_v21 = vpack.c.bf16 %v11836_v6, %v11842_v9  ;;  %v11848_v7 = vmul.f32 %v11842_v9, %v11842_v9 }
 0x66c   :  { %16173 = vst [vmem:[#allocation70_spill] sm:$0xff] %v11840_v49 }
 0x66d   :  { %16175 = vst [vmem:[#allocation72_spill] sm:$0xff] %v11848_v7  ;;  %v11852_v34 = vpop.f32.mrb[170].mxu0 }
 0x66e   :  { %16176 = vst [vmem:[#allocation79_spill] sm:$0xff] %v11852_v34  ;;  %v11856_v1 = vmul.f32 %v11852_v34, %v11852_v34  ;;  %v11858_v46 = vpop.f32.mrb[171].mxu0 }
 0x66f   :  { %16178 = vst [vmem:[#allocation81_spill] sm:$0xff] %v11858_v46  ;;  %v7742_v14 = vpack.c.bf16 %v11852_v34, %v11858_v46  ;;  %v11864_v6 = vmul.f32 %v11858_v46, %v11858_v46 }
 0x670   :  { %16177 = vst [vmem:[#allocation76_spill] sm:$0xff] %v11856_v1 }
 0x671   :  { %16179 = vst [vmem:[#allocation78_spill] sm:$0xff] %v11864_v6  ;;  %v11868_v19 = vpop.f32.mrb[172].mxu0 }
 0x672   :  { %v11872_v26 = vmul.f32 %v11868_v19, %v11868_v19  ;;  %v11874_v48 = vpop.f32.mrb[173].mxu0 }
 0x673   :  { %v11880_v34 = vmul.f32 %v11874_v48, %v11874_v48 }
 0x674   :  { %16180 = vst [vmem:[#allocation83_spill] sm:$0xff] %v11872_v26 }
 0x675   :  { %16181 = vst [vmem:[#allocation34_spill] sm:$0xff] %v11880_v34  ;;  %v11884_v22 = vpop.f32.mrb[174].mxu0 }
 0x676   :  { %v11888_v9 = vmul.f32 %v11884_v22, %v11884_v22  ;;  %v11890_v62 = vpop.f32.mrb[175].mxu0 }
 0x677   :  { %v11896_v0 = vmul.f32 %v11890_v62, %v11890_v62  ;;  %v16204_v3 = vpack.c.bf16 %v11884_v22, %v11890_v62 }
 0x678   :  { %16182 = vst [vmem:[#allocation36_spill] sm:$0xff] %v11888_v9 }
 0x679   :  { %16183 = vst [vmem:[#allocation66_spill] sm:$0xff] %v11896_v0  ;;  %v11900_v25 = vpop.f32.mrb[176].mxu0 }
 0x67a   :  { %v11904_v46 = vmul.f32 %v11900_v25, %v11900_v25  ;;  %v11906_v38 = vpop.f32.mrb[177].mxu0 }
 0x67b   :  { %v11912_v23 = vmul.f32 %v11906_v38, %v11906_v38 }
 0x67c   :  { %16184 = vst [vmem:[#allocation10_spill] sm:$0xff] %v11904_v46 }
 0x67d   :  { %16185 = vst [vmem:[#allocation38_spill] sm:$0xff] %v11912_v23  ;;  %v11916_v26 = vpop.f32.mrb[178].mxu0 }
 0x67e   :  { %16186 = vst [vmem:[#allocation40_spill] sm:$0xff] %v11916_v26  ;;  %v11920_v24 = vmul.f32 %v11916_v26, %v11916_v26  ;;  %v11922_v0 = vpop.f32.mrb[179].mxu0 }
 0x67f   :  { %16187 = vst [vmem:[#allocation42_spill] sm:$0xff] %v11922_v0  ;;  %v7724_v9 = vpack.c.bf16 %v11916_v26, %v11922_v0  ;;  %v11928_v50 = vmul.f32 %v11922_v0, %v11922_v0 }
 0x681   :  { %v11930_v6 = vpop.f32.mrb[180].mxu0  ;;  %7725 = vmatprep.subr.bf16.mxu1 %v7724_v9 }
 0x682   :  { %16188 = vst [vmem:[#allocation44_spill] sm:$0xff] %v11930_v6  ;;  %v11936_v23 = vmul.f32 %v11930_v6, %v11930_v6  ;;  %v11938_v46 = vpop.f32.mrb[181].mxu0  ;;  %7727 = vmatpush3.bf16.msra.mxu1 %v7726_v15 }
 0x683   :  { %16189 = vst [vmem:[#allocation49_spill] sm:$0xff] %v11938_v46  ;;  %v7728_v26 = vpack.c.bf16 %v11930_v6, %v11938_v46  ;;  %v11944_v0 = vmul.f32 %v11938_v46, %v11938_v46 }
 0x685   :  { %v11946_v1 = vpop.f32.mrb[182].mxu0  ;;  %7729 = vmatprep.subr.bf16.mxu1 %v7728_v26 }
 0x686   :  { %16190 = vst [vmem:[#allocation73_spill] sm:$0xff] %v11946_v1  ;;  %v11952_v34 = vmul.f32 %v11946_v1, %v11946_v1  ;;  %v11954_v7 = vpop.f32.mrb[183].mxu0  ;;  %7731 = vmatpush3.bf16.msra.mxu1 %v7730_v51 }
 0x687   :  { %16191 = vst [vmem:[#allocation75_spill] sm:$0xff] %v11954_v7  ;;  %v7732_v15 = vpack.c.bf16 %v11946_v1, %v11954_v7  ;;  %v11960_v6 = vmul.f32 %v11954_v7, %v11954_v7 }
 0x689   :  { %v11962_v46 = vpop.f32.mrb[184].mxu0  ;;  %7733 = vmatprep.subr.bf16.mxu1 %v7732_v15 }
 0x68a   :  { %16192 = vst [vmem:[#allocation51_spill] sm:$0xff] %v11962_v46  ;;  %v11968_v9 = vmul.f32 %v11962_v46, %v11962_v46  ;;  %v11970_v49 = vpop.f32.mrb[185].mxu0  ;;  %7735 = vmatpush3.bf16.msra.mxu1 %v7734_v29 }
 0x68b   :  { %16194 = vst [vmem:[#allocation55_spill] sm:$0xff] %v11970_v49  ;;  %v7736_v51 = vpack.c.bf16 %v11962_v46, %v11970_v49  ;;  %v11976_v1 = vmul.f32 %v11970_v49, %v11970_v49 }
 0x68c   :  { %16193 = vst [vmem:[#allocation53_spill] sm:$0xff] %v11968_v9  ;;  %v16202_v9 = vpack.c.bf16 %v11868_v19, %v11874_v48 }
 0x68d   :  { %16195 = vst [vmem:[#allocation19_spill] sm:$0xff] %v11976_v1  ;;  %v11978_v7 = vpop.f32.mrb[186].mxu0  ;;  %7737 = vmatprep.subr.bf16.mxu1 %v7736_v51 }
 0x68e   :  { %16196 = vst [vmem:[#allocation20_spill] sm:$0xff] %v11978_v7  ;;  %v11984_v26 = vmul.f32 %v11978_v7, %v11978_v7  ;;  %v11986_v54 = vpop.f32.mrb[187].mxu0  ;;  %7739 = vmatpush3.bf16.msra.mxu1 %v7738_v21 }
 0x68f   :  { %16197 = vst [vmem:[#allocation21_spill] sm:$0xff] %v11986_v54  ;;  %v7740_v29 = vpack.c.bf16 %v11978_v7, %v11986_v54  ;;  %v11992_v46 = vmul.f32 %v11986_v54, %v11986_v54 }
 0x691   :  { %v11994_v49 = vpop.f32.mrb[188].mxu0  ;;  %7741 = vmatprep.subr.bf16.mxu1 %v7740_v29  ;;  %v7804_v51 = vpack.c.bf16 %v11984_v26, %v11992_v46 }
 0x692   :  { %16198 = vst [vmem:[#allocation22_spill] sm:$0xff] %v11994_v49  ;;  %v12000_v15 = vmul.f32 %v11994_v49, %v11994_v49  ;;  %v12002_v1 = vpop.f32.mrb[189].mxu0  ;;  %7743 = vmatpush3.bf16.msra.mxu1 %v7742_v14 }
 0x693   :  { %16199 = vst [vmem:[#allocation23_spill] sm:$0xff] %v12002_v1  ;;  %v7744_v21 = vpack.c.bf16 %v11994_v49, %v12002_v1  ;;  %v3519_v7 = vmul.f32 %v12002_v1, %v12002_v1 }
 0x695   :  { %v12008_v54 = vpop.f32.mrb[190].mxu0  ;;  %7745 = vmatprep.subr.bf16.mxu1 %v7744_v21  ;;  %v7808_v29 = vpack.c.bf16 %v12000_v15, %v3519_v7 }
 0x696   :  { %16200 = vst [vmem:[#allocation24_spill] sm:$0xff] %v12008_v54  ;;  %v3522_v46 = vmul.f32 %v12008_v54, %v12008_v54  ;;  %v12013_v26 = vpop.f32.mrb[191].mxu0  ;;  %7747 = vmatpush3.bf16.msra.mxu1 %v16202_v9 }
 0x697   :  { %16201 = vst [vmem:[#allocation25_spill] sm:$0xff] %v12013_v26  ;;  %v7748_v14 = vpack.c.bf16 %v12008_v54, %v12013_v26  ;;  %v3521_v49 = vmul.f32 %v12013_v26, %v12013_v26 }
 0x699   :  { %v12022_v1 = vpop.f32.mrb[192].mxu0  ;;  %7749 = vmatprep.subr.bf16.mxu1 %v7748_v14  ;;  %v7812_v21 = vpack.c.bf16 %v3522_v46, %v3521_v49  ;;  %v16205_v49 = vpack.c.bf16 %v11900_v25, %v11906_v38  ;;  %v16206_v46 = vpack.c.bf16 %v11649_v4, %v11657_v37  ;;  %v16211_v4 = vpack.c.bf16 %v11537_v41, %v11545_v56 }
 0x69a   :  { %16203 = vst [vmem:[#allocation26_spill] sm:$0xff] %v12022_v1  ;;  %v3524_v7 = vmul.f32 %v12022_v1, %v12022_v1  ;;  %v12026_v15 = vpop.f32.mrb[193].mxu0  ;;  %7751 = vmatpush3.bf16.msra.mxu1 %v16204_v3  ;;  %v16208_v3 = vpack.c.bf16 %v11521_v12, %v11529_v28  ;;  %v16212_v37 = vpack.c.bf16 %v11681_v58, %v11689_v43  ;;  %v16236_v58 = vld [vmem:[#allocation72_spill] sm:$0xff] }
 0x69b   :  { %v7752_v9 = vpack.c.bf16 %v12022_v1, %v12026_v15  ;;  %v3523_v54 = vmul.f32 %v12026_v15, %v12026_v15  ;;  %v16213_v12 = vpack.c.bf16 %v11553_v5, %v11561_v27  ;;  %v16214_v28 = vpack.c.bf16 %v11697_v18, %v11705_v32 }
 0x69c   :  { %v16216_v41 = vpack.c.bf16 %v11713_v13, %v11721_v35  ;;  %v16217_v56 = vpack.c.bf16 %v11585_v40, %v11593_v44  ;;  %v16218_v5 = vpack.c.bf16 %v11729_v42, %v11737_v63  ;;  %v16219_v27 = vpack.c.bf16 %v11601_v8, %v11609_v20  ;;  %v4014_v13 = vld [vmem:[%s15047_s11 + $0x10] sm:$0xff]  ;;  %v4015_v44 = vld [vmem:[%s15047_s11 + $0x18] sm:$0xff]  ;;  %v16244_v42 = vld [vmem:[#allocation36_spill] sm:$0xff] }
 0x69d   :  { %7753 = vmatprep.subr.bf16.mxu1 %v7752_v9  ;;  %v7816_v26 = vpack.c.bf16 %v3524_v7, %v3523_v54  ;;  %v16210_v54 = vpack.c.bf16 %v11665_v60, %v11673_v59  ;;  %v16215_v60 = vpack.c.bf16 %v11569_v10, %v11577_v33  ;;  %v4012_v10 = vld [vmem:[%s15047_s11] sm:$0xff]  ;;  %v4013_v33 = vld [vmem:[%s15047_s11 + $0x8] sm:$0xff]  ;;  %v16220_v63 = vpack.c.bf16 %v11745_v36, %v11756_v30  ;;  %v16245_v36 = vld [vmem:[#allocation66_spill] sm:$0xff] }
 0x69e   :  { %7755 = vmatpush3.bf16.msra.mxu1 %v16205_v49  ;;  %v7820_v40 = vpack.c.bf16 %v4013_v33, %v4012_v10  ;;  %v7824_v8 = vpack.c.bf16 %v4015_v44, %v4014_v13  ;;  %v16221_v20 = vpack.c.bf16 %v11617_v53, %v11625_v39  ;;  %v16222_v32 = vpack.c.bf16 %v11764_v47, %v11775_v55  ;;  %v16229_v39 = vld [vmem:[#allocation58_spill] sm:$0xff]  ;;  %v16232_v55 = vld [vmem:[#allocation53_spill] sm:$0xff] }
 0x69f   :  { %7757 = vmatprep.subr.bf16.mxu1 %v16206_v46  ;;  %v16223_v30 = vpack.c.bf16 %v11633_v57, %v11641_v2  ;;  %v16224_v18 = vpack.c.bf16 %v11920_v24, %v11928_v50  ;;  %v16225_v53 = vpack.c.bf16 %v11783_v45, %v11794_v16  ;;  %v16226_v47 = vpack.c.bf16 %v11936_v23, %v11944_v0  ;;  %v16230_v57 = vld [vmem:[#allocation68_spill] sm:$0xff]  ;;  %v16233_v2 = vld [vmem:[#allocation19_spill] sm:$0xff]  ;;  %v16235_v16 = vld [vmem:[#allocation70_spill] sm:$0xff] }
 0x6a0   :  { %7821 = vmatprep.subr.bf16.mxu0 %v7820_v40  ;;  %v16227_v50 = vpack.c.bf16 %v11805_v11, %v11816_v52  ;;  %v16228_v24 = vpack.c.bf16 %v11952_v34, %v11960_v6  ;;  %v16231_v45 = vpack.c.bf16 %v16229_v39, %v16230_v57  ;;  %v16234_v59 = vpack.c.bf16 %v16232_v55, %v16233_v2  ;;  %v16238_v0 = vld [vmem:[#allocation76_spill] sm:$0xff]  ;;  %v16239_v11 = vld [vmem:[#allocation78_spill] sm:$0xff]  ;;  %v16241_v34 = vld [vmem:[#allocation83_spill] sm:$0xff] }
 0x6a1   :  { %6045 = vmatmul.mubr.msk.f32.vlgmr.msra.gmra.mrb[16].mxu1 %vm8999_vm4, %v16164_v31  ;;  %7823 = vmatpush3.bf16.msra.mxu0 %v7820_v40  ;;  %v16237_v23 = vpack.c.bf16 %v16235_v16, %v16236_v58  ;;  %v16240_v43 = vpack.c.bf16 %v16238_v0, %v16239_v11  ;;  %v16242_v6 = vld [vmem:[#allocation34_spill] sm:$0xff]  ;;  %v16246_v52 = vpack.c.bf16 %v16244_v42, %v16245_v36  ;;  %v4025_v10 = vld [vmem:[%s15047_s11 + $0x68] sm:$0xff]  ;;  %v16253_v39 = vld [vmem:[#allocation27_spill] sm:$0xff] }
 0x6a2   :  { %7759 = vmatpush3.bf16.msra.mxu1 %v16208_v3  ;;  %6046 = vmatprep.mubr.msk.f32.mxu1 %vm8478_vm1, %v16164_v31  ;;  %v16243_v35 = vpack.c.bf16 %v16241_v34, %v16242_v6  ;;  %v16247_v7 = vld [vmem:[#allocation10_spill] sm:$0xff]  ;;  %v16255_v2 = vld [vmem:[#allocation29_spill] sm:$0xff]  ;;  %v16256_v16 = vld [vmem:[#allocation43_spill] sm:$0xff] }
 0x6a3   :  { %7761 = vmatprep.subr.bf16.mxu1 %v16210_v54  ;;  %7825 = vmatprep.subr.bf16.mxu0 %v7824_v8  ;;  %v16248_v9 = vld [vmem:[#allocation38_spill] sm:$0xff]  ;;  %v4020_v54 = vld [vmem:[%s15047_s11 + $0x40] sm:$0xff] }
 0x6a4   :  { %v16249_v49 = vpack.c.bf16 %v16247_v7, %v16248_v9  ;;  %v4019_v46 = vld [vmem:[%s15047_s11 + $0x38] sm:$0xff]  ;;  %v4026_v33 = vld [vmem:[%s15047_s11 + $0x70] sm:$0xff]  ;;  %v16259_v34 = vld [vmem:[#allocation52_spill] sm:$0xff] }
 0x6a5   :  { %7827 = vmatpush3.bf16.msra.mxu0 %v7824_v8  ;;  %v16258_v11 = vld [vmem:[#allocation46_spill] sm:$0xff]  ;;  %v16261_v36 = vld [vmem:[#allocation56_spill] sm:$0xff]  ;;  %v16289_v9 = vld [vmem:[#allocation69_spill] sm:$0xff] }
 0x6a6   :  { %7763 = vmatpush3.bf16.msra.mxu1 %v16211_v4  ;;  %v4021_v4 = vld [vmem:[%s15047_s11 + $0x48] sm:$0xff]  ;;  %v16262_v7 = vld [vmem:[#allocation54_spill] sm:$0xff] }
 0x6a7   :  { %7765 = vmatprep.subr.bf16.mxu1 %v16212_v37  ;;  %v7836_v37 = vpack.c.bf16 %v4021_v4, %v4020_v54  ;;  %v16267_v4 = vld [vmem:[#allocation82_spill] sm:$0xff]  ;;  %v16285_v54 = vld [vmem:[#allocation13_spill] sm:$0xff] }
 0x6a8   :  { %v16291_v42 = vld [vmem:[#allocation74_spill] sm:$0xff] }
 0x6aa   :  { %7767 = vmatpush3.bf16.msra.mxu1 %v16213_v12  ;;  %v4022_v12 = vld [vmem:[%s15047_s11 + $0x50] sm:$0xff] }
 0x6ab   :  { %7769 = vmatprep.subr.bf16.mxu1 %v16214_v28  ;;  %v4023_v28 = vld [vmem:[%s15047_s11 + $0x58] sm:$0xff] }
 0x6ae   :  { %7771 = vmatpush3.bf16.msra.mxu1 %v16215_v60  ;;  %v7840_v60 = vpack.c.bf16 %v4023_v28, %v4022_v12  ;;  %v16268_v12 = vld [vmem:[#allocation37_spill] sm:$0xff] }
 0x6af   :  { %7773 = vmatprep.subr.bf16.mxu1 %v16216_v41 }
 0x6b2   :  { %7775 = vmatpush3.bf16.msra.mxu1 %v16217_v56 }
 0x6b3   :  { %7777 = vmatprep.subr.bf16.mxu1 %v16218_v5 }
 0x6b6   :  { %7779 = vmatpush3.bf16.msra.mxu1 %v16219_v27  ;;  %v4024_v27 = vld [vmem:[%s15047_s11 + $0x60] sm:$0xff] }
 0x6b7   :  { %7781 = vmatprep.subr.bf16.mxu1 %v16220_v63  ;;  %v7844_v13 = vpack.c.bf16 %v4025_v10, %v4024_v27  ;;  %v4027_v63 = vld [vmem:[%s15047_s11 + $0x78] sm:$0xff] }
 0x6b8   :  { %v7848_v40 = vpack.c.bf16 %v4027_v63, %v4026_v33 }
 0x6ba   :  { %7783 = vmatpush3.bf16.msra.mxu1 %v16221_v20 }
 0x6bb   :  { %7785 = vmatprep.subr.bf16.mxu1 %v16222_v32 }
 0x6be   :  { %7787 = vmatpush3.bf16.msra.mxu1 %v16223_v30  ;;  %v16250_v30 = vld [vmem:[#allocation47_spill] sm:$0xff] }
 0x6bf   :  { %7789 = vmatprep.subr.bf16.mxu1 %v16224_v18 }
 0x6c1   :  { %6047 = vmatmul.mubr.msk.f32.vlgmr.msra.gmra.mrb[18].mxu1 %vm8760_vm3, %v16164_v31 }
 0x6c2   :  { %7791 = vmatpush3.bf16.msra.mxu1 %v16225_v53  ;;  %6048 = vmatprep.mubr.msk.f32.mxu1 %vm8489_vm2, %v16164_v31  ;;  %v16251_v53 = vld [vmem:[#allocation8_spill] sm:$0xff] }
 0x6c3   :  { %7793 = vmatprep.subr.bf16.mxu1 %v16226_v47 }
 0x6c6   :  { %7795 = vmatpush3.bf16.msra.mxu1 %v16227_v50  ;;  %v16252_v50 = vld [vmem:[#allocation28_spill] sm:$0xff] }
 0x6c7   :  { %7797 = vmatprep.subr.bf16.mxu1 %v16228_v24 }
 0x6ca   :  { %7799 = vmatpush3.bf16.msra.mxu1 %v16231_v45  ;;  %v16254_v45 = vld [vmem:[#allocation30_spill] sm:$0xff] }
 0x6cb   :  { %7801 = vmatprep.subr.bf16.mxu1 %v16234_v59 }
 0x6ce   :  { %7803 = vmatpush3.bf16.msra.mxu1 %v16237_v23  ;;  %v16257_v23 = vld [vmem:[#allocation48_spill] sm:$0xff] }
 0x6cf   :  { %7805 = vmatprep.subr.bf16.mxu1 %v7804_v51  ;;  %v4016_v51 = vld [vmem:[%s15047_s11 + $0x20] sm:$0xff] }
 0x6d2   :  { %7807 = vmatpush3.bf16.msra.mxu1 %v16240_v43 }
 0x6d3   :  { %7809 = vmatprep.subr.bf16.mxu1 %v7808_v29  ;;  %v4017_v29 = vld [vmem:[%s15047_s11 + $0x28] sm:$0xff] }
 0x6d6   :  { %7811 = vmatpush3.bf16.msra.mxu1 %v16243_v35  ;;  %v16260_v35 = vld [vmem:[#allocation50_spill] sm:$0xff] }
 0x6d7   :  { %7813 = vmatprep.subr.bf16.mxu1 %v7812_v21  ;;  %v7828_v21 = vpack.c.bf16 %v4017_v29, %v4016_v51  ;;  %v16264_v29 = vld [vmem:[#allocation32_spill] sm:$0xff]  ;;  %v16288_v51 = vld [vmem:[#allocation71_spill] sm:$0xff] }
 0x6d9   :  { %7829 = vmatprep.subr.bf16.mxu0 %v7828_v21 }
 0x6da   :  { %7815 = vmatpush3.bf16.msra.mxu1 %v16246_v52  ;;  %7831 = vmatpush3.bf16.msra.mxu0 %v7828_v21  ;;  %v16265_v21 = vld [vmem:[#allocation80_spill] sm:$0xff]  ;;  %v16290_v52 = vld [vmem:[#allocation77_spill] sm:$0xff] }
 0x6db   :  { %7817 = vmatprep.subr.bf16.mxu1 %v7816_v26  ;;  %v4018_v26 = vld [vmem:[%s15047_s11 + $0x30] sm:$0xff] }
 0x6dc   :  { %v7832_v3 = vpack.c.bf16 %v4019_v46, %v4018_v26  ;;  %v16286_v46 = vld [vmem:[#allocation17_spill] sm:$0xff]  ;;  %v16287_v26 = vld [vmem:[#allocation15_spill] sm:$0xff] }
 0x6de   :  { %7819 = vmatpush3.bf16.msra.mxu1 %v16249_v49  ;;  %7833 = vmatprep.subr.bf16.mxu0 %v7832_v3  ;;  %v16263_v49 = vld [vmem:[#allocation60_spill] sm:$0xff] }
 0x6df   :  { %7835 = vmatpush3.bf16.msra.mxu0 %v7832_v3  ;;  %v16266_v3 = vld [vmem:[#allocation33_spill] sm:$0xff] }
 0x6e0   :  { %7837 = vmatprep.subr.bf16.mxu0 %v7836_v37 }
 0x6e1   :  { %6049 = vmatmul.mubr.msk.f32.vlgmr.msra.gmra.mrb[20].mxu1 %vm8999_vm4, %v16164_v31 }
 0x6e2   :  { %6052 = vmatprep.mubr.msk.f32.mxu1 %vm8478_vm1, %v16164_v31 }
 0x6e3   :  { %7839 = vmatpush3.bf16.msra.mxu0 %v7836_v37 }
 0x6e4   :  { %7841 = vmatprep.subr.bf16.mxu0 %v7840_v60 }
 0x6e7   :  { %7843 = vmatpush3.bf16.msra.mxu0 %v7840_v60  ;;  %v16269_v60 = vld [vmem:[#allocation31_spill] sm:$0xff] }
 0x6e8   :  { %7845 = vmatprep.subr.bf16.mxu0 %v7844_v13 }
 0x6eb   :  { %7847 = vmatpush3.bf16.msra.mxu0 %v7844_v13 }
 0x6ec   :  { %7849 = vmatprep.subr.bf16.mxu0 %v7848_v40 }
 0x6ef   :  { %7851 = vmatpush3.bf16.msra.mxu0 %v7848_v40 }
 0x734   :  { %v6588_v41 = vpop.f32.mrb[14].mxu1 }
 0x735   :  { %v6589_v56 = vpop.f32.mrb[15].mxu1 }
 0x736   :  { %v6590_v5 = vadd.f32 %v6589_v56, %v6588_v41  ;;  %v16270_v56 = vld [vmem:[#allocation41_spill] sm:$0xff] }
 0x774   :  { %v6623_v44 = vpop.f32.mrb[16].mxu1 }
 0x775   :  { %v6624_v8 = vpop.f32.mrb[17].mxu1 }
 0x776   :  { %v6625_v20 = vadd.f32 %v6624_v8, %v6623_v44 }
 0x778   :  { %v3458_v32 = vadd.f32 %v6625_v20, %v6590_v5 }
 0x77a   :  { %v12189_v18 = vmul.f32 %v3458_v32, %v16250_v30 }
 0x77c   :  { %v12193_v47 = vrot.slane %v12189_v18, %v16251_v53 }
 0x77e   :  { %v3707_v6 = vsub.f32 %v16285_v54, %v12193_v47  ;;  %v3708_v43 = vsub.f32 %v16286_v46, %v12193_v47  ;;  %v3709_v0 = vsub.f32 %v16287_v26, %v12193_v47  ;;  %v3710_v58 = vsub.f32 %v16288_v51, %v12193_v47  ;;  %v16292_v54 = vld [vmem:[#allocation81_spill] sm:$0xff]  ;;  %v16293_v46 = vld [vmem:[#allocation79_spill] sm:$0xff] }
 0x77f   :  { %v3711_v59 = vsub.f32 %v16289_v9, %v12193_v47  ;;  %v3712_v55 = vsub.f32 %v16290_v52, %v12193_v47  ;;  %v3713_v57 = vsub.f32 %v16291_v42, %v12193_v47  ;;  %v3714_v24 = vsub.f32 %v16292_v54, %v12193_v47 }
 0x780   :  { %v3715_v1 = vsub.f32 %v16293_v46, %v12193_v47  ;;  %v3716_v26 = vsub.f32 %v11874_v48, %v12193_v47  ;;  %v3717_v51 = vsub.f32 %v11868_v19, %v12193_v47  ;;  %v3718_v9 = vsub.f32 %v11890_v62, %v12193_v47  ;;  %v16294_v46 = vld [vmem:[#allocation42_spill] sm:$0xff]  ;;  %v16295_v48 = vld [vmem:[#allocation40_spill] sm:$0xff]  ;;  %v16296_v19 = vld [vmem:[#allocation49_spill] sm:$0xff] }
 0x781   :  { %v3719_v52 = vsub.f32 %v11884_v22, %v12193_v47  ;;  %v3720_v42 = vsub.f32 %v11906_v38, %v12193_v47  ;;  %v3721_v54 = vsub.f32 %v11900_v25, %v12193_v47  ;;  %v3722_v14 = vsub.f32 %v16294_v46, %v12193_v47  ;;  %v16297_v62 = vld [vmem:[#allocation44_spill] sm:$0xff]  ;;  %v16298_v22 = vld [vmem:[#allocation75_spill] sm:$0xff]  ;;  %v16299_v38 = vld [vmem:[#allocation73_spill] sm:$0xff] }
 0x782   :  { %v3723_v17 = vsub.f32 %v16295_v48, %v12193_v47  ;;  %v3724_v61 = vsub.f32 %v16296_v19, %v12193_v47  ;;  %v3725_v31 = vsub.f32 %v16297_v62, %v12193_v47  ;;  %v3726_v37 = vsub.f32 %v16298_v22, %v12193_v47  ;;  %v16300_v25 = vld [vmem:[#allocation55_spill] sm:$0xff]  ;;  %v16302_v48 = vld [vmem:[#allocation21_spill] sm:$0xff]  ;;  %v16303_v19 = vld [vmem:[#allocation20_spill] sm:$0xff] }
 0x783   :  { %v3727_v28 = vsub.f32 %v16299_v38, %v12193_v47  ;;  %v3728_v32 = vsub.f32 %v16300_v25, %v12193_v47  ;;  %v16301_v46 = vld [vmem:[#allocation51_spill] sm:$0xff]  ;;  %v3730_v40 = vsub.f32 %v16302_v48, %v12193_v47  ;;  %v3731_v13 = vsub.f32 %v16303_v19, %v12193_v47  ;;  %v16305_v22 = vld [vmem:[#allocation22_spill] sm:$0xff]  ;;  %v16306_v38 = vld [vmem:[#allocation25_spill] sm:$0xff] }
 0x784   :  { %v3729_v8 = vsub.f32 %v16301_v46, %v12193_v47  ;;  %v16304_v62 = vld [vmem:[#allocation23_spill] sm:$0xff]  ;;  %v3733_v5 = vsub.f32 %v16305_v22, %v12193_v47  ;;  %v3734_v41 = vsub.f32 %v16306_v38, %v12193_v47  ;;  %v16307_v25 = vld [vmem:[#allocation24_spill] sm:$0xff]  ;;  %v3736_v46 = vsub.f32 %v12026_v15, %v12193_v47  ;;  %v16308_v48 = vld [vmem:[#allocation26_spill] sm:$0xff] }
 0x785   :  { %v3732_v10 = vsub.f32 %v16304_v62, %v12193_v47  ;;  %v3735_v20 = vsub.f32 %v16307_v25, %v12193_v47  ;;  %v3737_v44 = vsub.f32 %v16308_v48, %v12193_v47  ;;  %v12326_v19 = vld [vmem:[%s15045_s9] ss:$0 sm:$0xff] }
 0x786   :  { %v12329_v22 = vmul.f32 %v12326_v19, %v3707_v6  ;;  %v12332_v38 = vmul.f32 %v12326_v19, %v3708_v43  ;;  %v12335_v25 = vmul.f32 %v12326_v19, %v3709_v0  ;;  %v12338_v15 = vmul.f32 %v12326_v19, %v3710_v58 }
 0x787   :  { %v12341_v48 = vmul.f32 %v12326_v19, %v3711_v59  ;;  %v12344_v33 = vmul.f32 %v12326_v19, %v3712_v55  ;;  %v12347_v27 = vmul.f32 %v12326_v19, %v3713_v57  ;;  %v12350_v6 = vmul.f32 %v12326_v19, %v3714_v24 }
 0x788   :  { %v12353_v43 = vmul.f32 %v12326_v19, %v3715_v1  ;;  %v12356_v0 = vmul.f32 %v12326_v19, %v3716_v26  ;;  %v12359_v58 = vmul.f32 %v12326_v19, %v3717_v51  ;;  %v12362_v59 = vmul.f32 %v12326_v19, %v3718_v9 }
 0x789   :  { %v12365_v55 = vmul.f32 %v12326_v19, %v3719_v52  ;;  %v12368_v57 = vmul.f32 %v12326_v19, %v3720_v42  ;;  %v12371_v24 = vmul.f32 %v12326_v19, %v3721_v54  ;;  %v12374_v1 = vmul.f32 %v12326_v19, %v3722_v14 }
 0x78a   :  { %v12377_v26 = vmul.f32 %v12326_v19, %v3723_v17  ;;  %v12380_v51 = vmul.f32 %v12326_v19, %v3724_v61  ;;  %v12383_v9 = vmul.f32 %v12326_v19, %v3725_v31  ;;  %v12386_v52 = vmul.f32 %v12326_v19, %v3726_v37 }
 0x78b   :  { %v12389_v42 = vmul.f32 %v12326_v19, %v3727_v28  ;;  %v12392_v54 = vmul.f32 %v12326_v19, %v3728_v32  ;;  %v12395_v14 = vmul.f32 %v12326_v19, %v3729_v8  ;;  %v12398_v17 = vmul.f32 %v12326_v19, %v3730_v40 }
 0x78c   :  { %v12401_v61 = vmul.f32 %v12326_v19, %v3731_v13  ;;  %v12404_v31 = vmul.f32 %v12326_v19, %v3732_v10  ;;  %v12407_v37 = vmul.f32 %v12326_v19, %v3733_v5  ;;  %v12410_v28 = vmul.f32 %v12326_v19, %v3734_v41 }
 0x78d   :  { %16309 = vst [vmem:[#allocation58_spill] sm:$0xff] %v12395_v14  ;;  %16310 = vst [vmem:[#allocation68_spill] sm:$0xff] %v12398_v17  ;;  %v12413_v32 = vmul.f32 %v12326_v19, %v3735_v20  ;;  %v12416_v8 = vmul.f32 %v12326_v19, %v3736_v46  ;;  %v3807_v40 = vmul.f32 %v12326_v19, %v3737_v44 }
 0x78e   :  { %16311 = vst [vmem:[#allocation53_spill] sm:$0xff] %v12401_v61  ;;  %16312 = vst [vmem:[#allocation19_spill] sm:$0xff] %v12404_v31  ;;  %v3667_v5 = vmul.f32 %v12189_v18, %v12189_v18  ;;  %v16315_v46 = vsub.f32 %v16252_v50, %v12193_v47  ;;  %v16317_v18 = vsub.f32 %v16254_v45, %v12193_v47 }
 0x78f   :  { %16313 = vst [vmem:[#allocation70_spill] sm:$0xff] %v12407_v37  ;;  %16314 = vst [vmem:[#allocation72_spill] sm:$0xff] %v12410_v28  ;;  %v16319_v50 = vsub.f32 %v16256_v16, %v12193_v47  ;;  %v16320_v45 = vsub.f32 %v16257_v23, %v12193_v47 }
 0x790   :  { %v3744_v44 = vmul.f32 %v12326_v19, %v16315_v46 }
 0x794   :  { %v6658_v62 = vpop.f32.mrb[18].mxu1 }
 0x795   :  { %v6659_v63 = vpop.f32.mrb[19].mxu1 }
 0x796   :  { %v6660_v17 = vadd.f32 %v6659_v63, %v6658_v62  ;;  %v16316_v63 = vsub.f32 %v16253_v39, %v12193_v47  ;;  %v12448_v39 = vld [vmem:[%s15046_s10] ss:$0 sm:$0xff] }
 0x798   :  { %v3745_v62 = vmul.f32 %v12326_v19, %v16316_v63 }
 0x7b4   :  { %v6693_v13 = vpop.f32.mrb[20].mxu1 }
 0x7b5   :  { %v6694_v61 = vpop.f32.mrb[21].mxu1 }
 0x7b6   :  { %v6695_v14 = vadd.f32 %v6694_v61, %v6693_v13  ;;  %v16322_v13 = vsub.f32 %v16259_v34, %v12193_v47 }
 0x7b8   :  { %v3662_v10 = vadd.f32 %v6695_v14, %v6660_v17  ;;  %v3746_v14 = vmul.f32 %v12326_v19, %v16317_v18  ;;  %v16318_v17 = vsub.f32 %v16255_v2, %v12193_v47  ;;  %v3749_v2 = vmul.f32 %v12326_v19, %v16320_v45 }
 0x7b9   :  { %v16326_v45 = vsub.f32 %v16263_v49, %v12193_v47 }
 0x7ba   :  { %v3666_v37 = vmul.f32 %v3662_v10, %v16250_v30  ;;  %v3747_v61 = vmul.f32 %v12326_v19, %v16318_v17  ;;  %v3751_v10 = vmul.f32 %v12326_v19, %v16322_v13 }
 0x7bc   :  { %v3668_v41 = vsub.f32 %v3666_v37, %v3667_v5  ;;  %v16323_v5 = vsub.f32 %v16260_v35, %v12193_v47 }
 0x7be   :  { %v3669_v28 = vmax.f32 %v3668_v41, 0.0  ;;  %v3752_v41 = vmul.f32 %v12326_v19, %v16323_v5 }
 0x7c0   :  { %v3808_v31 = vadd.f32 1e-05, %v3669_v28  ;;  %v16321_v28 = vsub.f32 %v16258_v11, %v12193_v47 }
 0x7c2   :  { %8052 = vrsqrt.f32 %v3808_v31  ;;  %v3748_v31 = vmul.f32 %v12326_v19, %v16319_v50  ;;  %v3750_v16 = vmul.f32 %v12326_v19, %v16321_v28  ;;  %v16327_v28 = vsub.f32 %v16264_v29, %v12193_v47 }
 0x7cc   :  { %v8053_v20 = vpop.eup %8052 }
 0x7cd   :  { %v12443_v37 = vrot.slane %v8053_v20, %v16251_v53  ;;  %v16356_v53 = vld [vmem:[#allocation16_spill] sm:$0xff] }
 0x7cf   :  { %v3815_v20 = vmul.f32 %v12443_v37, %v3745_v62  ;;  %v3877_v23 = vmul.f32 %v12443_v37, %v3807_v40  ;;  %v3814_v46 = vmul.f32 %v12443_v37, %v3744_v44  ;;  %v3816_v11 = vmul.f32 %v12443_v37, %v3746_v14 }
 0x7d0   :  { %v3817_v63 = vmul.f32 %v12443_v37, %v3747_v61  ;;  %v3818_v18 = vmul.f32 %v12443_v37, %v3748_v31  ;;  %v3819_v34 = vmul.f32 %v12443_v37, %v3749_v2  ;;  %v3820_v17 = vmul.f32 %v12443_v37, %v3750_v16 }
 0x7d1   :  { %v3885_v35 = vadd.f32 %v12448_v39, %v3815_v20  ;;  %v12476_v50 = vadd.f32 %v12448_v39, %v3877_v23  ;;  %v3884_v62 = vadd.f32 %v12448_v39, %v3814_v46  ;;  %v3886_v40 = vadd.f32 %v12448_v39, %v3816_v11 }
 0x7d2   :  { %v16324_v44 = vsub.f32 %v16261_v36, %v12193_v47  ;;  %v16325_v61 = vsub.f32 %v16262_v7, %v12193_v47  ;;  %v3755_v2 = vmul.f32 %v12326_v19, %v16326_v45  ;;  %v3756_v16 = vmul.f32 %v12326_v19, %v16327_v28  ;;  %v16334_v28 = vld [vmem:[#allocation35_spill] sm:$0xff] }
 0x7d3   :  { %v16328_v36 = vsub.f32 %v16265_v21, %v12193_v47  ;;  %v16329_v7 = vsub.f32 %v16266_v3, %v12193_v47  ;;  %v3949_v20 = vmax.f32 %v3885_v35, 0.0  ;;  %v3948_v23 = vmax.f32 %v3884_v62, 0.0 }
 0x7d4   :  { %v3753_v14 = vmul.f32 %v12326_v19, %v16324_v44  ;;  %v3754_v31 = vmul.f32 %v12326_v19, %v16325_v61  ;;  %v3950_v49 = vmax.f32 %v3886_v40, 0.0  ;;  %v3887_v46 = vadd.f32 %v12448_v39, %v3817_v63 }
 0x7d5   :  { %v3757_v13 = vmul.f32 %v12326_v19, %v16328_v36  ;;  %v3758_v5 = vmul.f32 %v12326_v19, %v16329_v7  ;;  %v3888_v11 = vadd.f32 %v12448_v39, %v3818_v18  ;;  %v3889_v29 = vadd.f32 %v12448_v39, %v3819_v34  ;;  %7308 = vmatprep.mubr.f32.mxu0 %v3948_v23 }
 0x7d6   :  { %v3821_v44 = vmul.f32 %v12443_v37, %v3751_v10  ;;  %v3822_v21 = vmul.f32 %v12443_v37, %v3752_v41  ;;  %v3823_v61 = vmul.f32 %v12443_v37, %v3753_v14  ;;  %v3824_v3 = vmul.f32 %v12443_v37, %v3754_v31  ;;  %7309 = vmatmul.mubr.f32.vlgmr.msra.gmra.mrb[194].mxu0 %v3949_v20 }
 0x7d7   :  { %v3825_v35 = vmul.f32 %v12443_v37, %v3755_v2  ;;  %v3826_v62 = vmul.f32 %v12443_v37, %v3756_v16  ;;  %v3827_v63 = vmul.f32 %v12443_v37, %v3757_v13  ;;  %v3828_v18 = vmul.f32 %v12443_v37, %v3758_v5  ;;  %7311 = vmatprep.mubr.f32.mxu0 %v3950_v49  ;;  %v16338_v5 = vld [vmem:[#allocation39_spill] sm:$0xff]  ;;  %v16340_v49 = vld [vmem:[#allocation62_spill] sm:$0xff] }
 0x7d8   :  { %v16330_v34 = vsub.f32 %v16267_v4, %v12193_v47  ;;  %v16331_v41 = vsub.f32 %v16268_v12, %v12193_v47  ;;  %v16332_v14 = vsub.f32 %v16269_v60, %v12193_v47  ;;  %v16333_v45 = vsub.f32 %v16270_v56, %v12193_v47  ;;  %v16336_v12 = vld [vmem:[#allocation59_spill] sm:$0xff] }
 0x7d9   :  { %v16335_v4 = vsub.f32 %v16334_v28, %v12193_v47  ;;  %v3951_v36 = vmax.f32 %v3887_v46, 0.0  ;;  %v16337_v13 = vsub.f32 %v16336_v12, %v12193_v47  ;;  %v16339_v60 = vsub.f32 %v16338_v5, %v12193_v47  ;;  %v16346_v5 = vld [vmem:[#allocation61_spill] sm:$0xff] }
 0x7da   :  { %v3759_v10 = vmul.f32 %v12326_v19, %v16330_v34  ;;  %v3760_v40 = vmul.f32 %v12326_v19, %v16331_v41  ;;  %v3761_v31 = vmul.f32 %v12326_v19, %v16332_v14  ;;  %v3762_v2 = vmul.f32 %v12326_v19, %v16333_v45 }
 0x7db   :  { %v3763_v16 = vmul.f32 %v12326_v19, %v16335_v4  ;;  %v3764_v7 = vmul.f32 %v12326_v19, %v16337_v13  ;;  %v3765_v20 = vmul.f32 %v12326_v19, %v16339_v60  ;;  %v3952_v23 = vmax.f32 %v3888_v11, 0.0  ;;  %7312 = vmatmul.mubr.f32.gmra.mrb[196].mxu0 %v3951_v36 }
 0x7dc   :  { %v3890_v56 = vadd.f32 %v12448_v39, %v3820_v17  ;;  %v16341_v34 = vsub.f32 %v16340_v49, %v12193_v47  ;;  %v3953_v46 = vmax.f32 %v3889_v29, 0.0  ;;  %v3891_v14 = vadd.f32 %v12448_v39, %v3821_v44 }
 0x7dd   :  { %v3892_v45 = vadd.f32 %v12448_v39, %v3822_v21  ;;  %7314 = vmatprep.mubr.f32.mxu0 %v3952_v23  ;;  %v3829_v28 = vmul.f32 %v12443_v37, %v3759_v10  ;;  %v12552_v4 = vmul.f32 %v12443_v37, %v3760_v40  ;;  %v12555_v11 = vmul.f32 %v12443_v37, %v3761_v31  ;;  %v16342_v10 = vld [vmem:[#allocation57_spill] sm:$0xff] }
 0x7de   :  { %v3766_v41 = vmul.f32 %v12326_v19, %v16341_v34  ;;  %v12558_v17 = vmul.f32 %v12443_v37, %v3762_v2  ;;  %v12561_v12 = vmul.f32 %v12443_v37, %v3763_v16  ;;  %v12564_v29 = vmul.f32 %v12443_v37, %v3764_v7  ;;  %v16344_v2 = vld [vmem:[#allocation64_spill] sm:$0xff]  ;;  %v16350_v34 = vld [vmem:[#allocation63_spill] sm:$0xff] }
 0x7df   :  { %v12567_v44 = vmul.f32 %v12443_v37, %v3765_v20  ;;  %v16343_v40 = vsub.f32 %v16342_v10, %v12193_v47  ;;  %v3954_v36 = vmax.f32 %v3890_v56, 0.0  ;;  %v16345_v13 = vsub.f32 %v16344_v2, %v12193_v47  ;;  %v16348_v20 = vld [vmem:[#allocation67_spill] sm:$0xff]  ;;  %7315 = vmatmul.mubr.f32.gmra.mrb[198].mxu0 %v3953_v46  ;;  %v16352_v10 = vld [vmem:[#allocation14_spill] sm:$0xff] }
 0x7e0   :  { %v12570_v21 = vmul.f32 %v12443_v37, %v3766_v41  ;;  %v16347_v7 = vsub.f32 %v16346_v5, %v12193_v47  ;;  %v16349_v23 = vsub.f32 %v16348_v20, %v12193_v47  ;;  %v16351_v41 = vsub.f32 %v16350_v34, %v12193_v47 }
 0x7e1   :  { %v3767_v31 = vmul.f32 %v12326_v19, %v16343_v40  ;;  %v3768_v16 = vmul.f32 %v12326_v19, %v16345_v13  ;;  %v16353_v40 = vsub.f32 %v16352_v10, %v12193_v47  ;;  %v16354_v13 = vld [vmem:[#allocation65_spill] sm:$0xff]  ;;  %v16357_v20 = vsub.f32 %v16356_v53, %v12193_v47  ;;  %7317 = vmatprep.mubr.f32.mxu0 %v3954_v36 }
 0x7e2   :  { %v3769_v60 = vmul.f32 %v12326_v19, %v16347_v7  ;;  %v3770_v49 = vmul.f32 %v12326_v19, %v16349_v23  ;;  %v3771_v56 = vmul.f32 %v12326_v19, %v16351_v41  ;;  %v16355_v5 = vsub.f32 %v16354_v13, %v12193_v47 }
 0x7e3   :  { %v3772_v2 = vmul.f32 %v12326_v19, %v16353_v40  ;;  %v3774_v23 = vmul.f32 %v12326_v19, %v16357_v20  ;;  %v3893_v34 = vadd.f32 %v12448_v39, %v3823_v61  ;;  %v3955_v41 = vmax.f32 %v3891_v14, 0.0 }
 0x7e4   :  { %v3773_v7 = vmul.f32 %v12326_v19, %v16355_v5  ;;  %v3956_v46 = vmax.f32 %v3892_v45, 0.0  ;;  %v3894_v30 = vadd.f32 %v12448_v39, %v3824_v3  ;;  %v3895_v10 = vadd.f32 %v12448_v39, %v3825_v35 }
 0x7e5   :  { %v12608_v40 = vmul.f32 %v12443_v37, %v3767_v31  ;;  %v12611_v13 = vmul.f32 %v12443_v37, %v3768_v16  ;;  %v12614_v5 = vmul.f32 %v12443_v37, %v3769_v60  ;;  %v12617_v53 = vmul.f32 %v12443_v37, %v3770_v49  ;;  %7318 = vmatmul.mubr.f32.gmra.mrb[200].mxu0 %v3955_v41  ;;  %v16358_v31 = vld [vmem:[#allocation9_spill] sm:$0xff]  ;;  %v16360_v60 = vld [vmem:[#allocation18_spill] sm:$0xff] }
 0x7e6   :  { %v12620_v61 = vmul.f32 %v12443_v37, %v3771_v56  ;;  %v12623_v3 = vmul.f32 %v12443_v37, %v3772_v2  ;;  %v12626_v35 = vmul.f32 %v12443_v37, %v3773_v7  ;;  %v12629_v14 = vmul.f32 %v12443_v37, %v3774_v23  ;;  %7320 = vmatprep.mubr.f32.mxu0 %v3956_v46 }
 0x7e7   :  { %v3957_v45 = vmax.f32 %v3893_v34, 0.0  ;;  %v16359_v36 = vsub.f32 %v16358_v31, %v12193_v47  ;;  %v16361_v49 = vsub.f32 %v16360_v60, %v12193_v47  ;;  %v3958_v2 = vmax.f32 %v3894_v30, 0.0 }
 0x7e8   :  { %v3896_v20 = vadd.f32 %v12448_v39, %v3826_v62  ;;  %v3959_v7 = vmax.f32 %v3895_v10, 0.0  ;;  %v3897_v23 = vadd.f32 %v12448_v39, %v3827_v63  ;;  %v3898_v41 = vadd.f32 %v12448_v39, %v3828_v18 }
 0x7e9   :  { %v3775_v16 = vmul.f32 %v12326_v19, %v16359_v36  ;;  %v3776_v56 = vmul.f32 %v12326_v19, %v16361_v49  ;;  %7321 = vmatmul.mubr.f32.gmra.mrb[202].mxu0 %v3957_v45  ;;  %v3899_v34 = vadd.f32 %v12448_v39, %v3829_v28  ;;  %v3847_v30 = vmul.f32 %v12443_v37, %v12329_v22 }
 0x7ea   :  { %7323 = vmatprep.mubr.f32.mxu0 %v3958_v2  ;;  %v3848_v47 = vmul.f32 %v12443_v37, %v12332_v38  ;;  %v3849_v19 = vmul.f32 %v12443_v37, %v12335_v25  ;;  %v3850_v62 = vmul.f32 %v12443_v37, %v12338_v15  ;;  %v3851_v63 = vmul.f32 %v12443_v37, %v12341_v48 }
 0x7eb   :  { %v12644_v46 = vmul.f32 %v12443_v37, %v3775_v16  ;;  %v12647_v31 = vmul.f32 %v12443_v37, %v3776_v56  ;;  %v3852_v18 = vmul.f32 %v12443_v37, %v12344_v33  ;;  %v3960_v28 = vmax.f32 %v3896_v20, 0.0 }
 0x7ec   :  { %v12662_v10 = vadd.f32 %v12448_v39, %v3847_v30  ;;  %v12665_v22 = vadd.f32 %v12448_v39, %v3848_v47  ;;  %v12668_v38 = vadd.f32 %v12448_v39, %v3849_v19  ;;  %v12671_v25 = vadd.f32 %v12448_v39, %v3850_v62 }
 0x7ed   :  { %7324 = vmatmul.mubr.f32.gmra.mrb[204].mxu0 %v3959_v7  ;;  %v12674_v15 = vadd.f32 %v12448_v39, %v3851_v63  ;;  %v12677_v48 = vadd.f32 %v12448_v39, %v3852_v18  ;;  %v3961_v33 = vmax.f32 %v3897_v23, 0.0  ;;  %v3962_v45 = vmax.f32 %v3898_v41, 0.0 }
 0x7ee   :  { %7326 = vmatprep.mubr.f32.mxu0 %v3960_v28  ;;  %v3963_v36 = vmax.f32 %v3899_v34, 0.0  ;;  %v3900_v16 = vadd.f32 %v12448_v39, %v12552_v4  ;;  %v3901_v60 = vadd.f32 %v12448_v39, %v12555_v11  ;;  %v3902_v49 = vadd.f32 %v12448_v39, %v12558_v17 }
 0x7ef   :  { %v3853_v56 = vmul.f32 %v12443_v37, %v12347_v27  ;;  %v3854_v2 = vmul.f32 %v12443_v37, %v12350_v6  ;;  %v3855_v20 = vmul.f32 %v12443_v37, %v12353_v43  ;;  %v3856_v7 = vmul.f32 %v12443_v37, %v12356_v0 }
 0x7f0   :  { %v3857_v4 = vmul.f32 %v12443_v37, %v12359_v58  ;;  %v3858_v11 = vmul.f32 %v12443_v37, %v12362_v59  ;;  %v3859_v17 = vmul.f32 %v12443_v37, %v12365_v55  ;;  %v3860_v27 = vmul.f32 %v12443_v37, %v12368_v57 }
 0x7f1   :  { %7327 = vmatmul.mubr.f32.gmra.mrb[206].mxu0 %v3961_v33  ;;  %v12702_v6 = vadd.f32 %v12448_v39, %v3853_v56  ;;  %v12705_v43 = vadd.f32 %v12448_v39, %v3854_v2  ;;  %v12708_v0 = vadd.f32 %v12448_v39, %v3855_v20  ;;  %v12711_v58 = vadd.f32 %v12448_v39, %v3856_v7  ;;  %v16362_v2 = vld [vmem:[#allocation58_spill] sm:$0xff]  ;;  %v16363_v7 = vld [vmem:[#allocation68_spill] sm:$0xff] }
 0x7f2   :  { %7329 = vmatprep.mubr.f32.mxu0 %v3962_v45  ;;  %v12714_v59 = vadd.f32 %v12448_v39, %v3857_v4  ;;  %v12717_v55 = vadd.f32 %v12448_v39, %v3858_v11  ;;  %v12720_v57 = vadd.f32 %v12448_v39, %v3859_v17  ;;  %v12723_v23 = vadd.f32 %v12448_v39, %v3860_v27  ;;  %v16364_v11 = vld [vmem:[#allocation53_spill] sm:$0xff]  ;;  %v16365_v27 = vld [vmem:[#allocation19_spill] sm:$0xff] }
 0x7f3   :  { %v3964_v41 = vmax.f32 %v3900_v16, 0.0  ;;  %v3903_v34 = vadd.f32 %v12448_v39, %v12561_v12  ;;  %v3965_v30 = vmax.f32 %v3901_v60, 0.0  ;;  %v3966_v47 = vmax.f32 %v3902_v49, 0.0 }
 0x7f4   :  { %v3904_v19 = vadd.f32 %v12448_v39, %v12564_v29  ;;  %v3905_v62 = vadd.f32 %v12448_v39, %v12567_v44  ;;  %v3861_v63 = vmul.f32 %v12443_v37, %v12371_v24  ;;  %v3862_v18 = vmul.f32 %v12443_v37, %v12374_v1 }
 0x7f5   :  { %7330 = vmatmul.mubr.f32.gmra.mrb[208].mxu0 %v3963_v36  ;;  %v3863_v28 = vmul.f32 %v12443_v37, %v12377_v26  ;;  %v3864_v12 = vmul.f32 %v12443_v37, %v12380_v51  ;;  %v3865_v33 = vmul.f32 %v12443_v37, %v12383_v9  ;;  %v3866_v29 = vmul.f32 %v12443_v37, %v12386_v52 }
 0x7f6   :  { %7332 = vmatprep.mubr.f32.mxu0 %v3964_v41  ;;  %v3867_v44 = vmul.f32 %v12443_v37, %v12389_v42  ;;  %v3868_v24 = vmul.f32 %v12443_v37, %v12392_v54  ;;  %v12748_v1 = vadd.f32 %v12448_v39, %v3861_v63  ;;  %v12751_v26 = vadd.f32 %v12448_v39, %v3862_v18 }
 0x7f7   :  { %v12754_v51 = vadd.f32 %v12448_v39, %v3863_v28  ;;  %v12757_v9 = vadd.f32 %v12448_v39, %v3864_v12  ;;  %v12760_v52 = vadd.f32 %v12448_v39, %v3865_v33  ;;  %v12763_v42 = vadd.f32 %v12448_v39, %v3866_v29 }
 0x7f8   :  { %v12766_v54 = vadd.f32 %v12448_v39, %v3867_v44  ;;  %v12769_v45 = vadd.f32 %v12448_v39, %v3868_v24  ;;  %v3906_v36 = vadd.f32 %v12448_v39, %v12570_v21  ;;  %v3967_v16 = vmax.f32 %v3903_v34, 0.0  ;;  %v16366_v21 = vld [vmem:[#allocation70_spill] sm:$0xff] }
 0x7f9   :  { %7333 = vmatmul.mubr.f32.gmra.mrb[210].mxu0 %v3965_v30  ;;  %v3968_v60 = vmax.f32 %v3904_v19, 0.0  ;;  %v3969_v49 = vmax.f32 %v3905_v62, 0.0  ;;  %v3907_v56 = vadd.f32 %v12448_v39, %v12608_v40  ;;  %v3869_v20 = vmul.f32 %v12443_v37, %v16362_v2  ;;  %v16367_v30 = vld [vmem:[#allocation72_spill] sm:$0xff] }
 0x7fa   :  { %7335 = vmatprep.mubr.f32.mxu0 %v3966_v47  ;;  %v3870_v4 = vmul.f32 %v12443_v37, %v16363_v7  ;;  %v3871_v17 = vmul.f32 %v12443_v37, %v16364_v11  ;;  %v3872_v41 = vmul.f32 %v12443_v37, %v16365_v27  ;;  %v3873_v34 = vmul.f32 %v12443_v37, %v16366_v21 }
 0x7fb   :  { %v3874_v47 = vmul.f32 %v12443_v37, %v16367_v30  ;;  %v3875_v40 = vmul.f32 %v12443_v37, %v12413_v32  ;;  %v3876_v19 = vmul.f32 %v12443_v37, %v12416_v8  ;;  %v12792_v62 = vadd.f32 %v12448_v39, %v3869_v20 }
 0x7fc   :  { %v12795_v63 = vadd.f32 %v12448_v39, %v3870_v4  ;;  %v12798_v18 = vadd.f32 %v12448_v39, %v3871_v17  ;;  %v12801_v28 = vadd.f32 %v12448_v39, %v3872_v41  ;;  %v12804_v12 = vadd.f32 %v12448_v39, %v3873_v34 }
 0x7fd   :  { %7336 = vmatmul.mubr.f32.gmra.mrb[212].mxu0 %v3967_v16  ;;  %v12807_v32 = vadd.f32 %v12448_v39, %v3874_v47  ;;  %v12810_v8 = vadd.f32 %v12448_v39, %v3875_v40  ;;  %v12813_v37 = vadd.f32 %v12448_v39, %v3876_v19  ;;  %v3970_v33 = vmax.f32 %v3906_v36, 0.0 }
 0x7fe   :  { %7338 = vmatprep.mubr.f32.mxu0 %v3968_v60  ;;  %v3908_v29 = vadd.f32 %v12448_v39, %v12611_v13  ;;  %v3971_v44 = vmax.f32 %v3907_v56, 0.0  ;;  %v3909_v24 = vadd.f32 %v12448_v39, %v12614_v5  ;;  %v3910_v60 = vadd.f32 %v12448_v39, %v12617_v53 }
 0x7ff   :  { %v3911_v20 = vadd.f32 %v12448_v39, %v12620_v61  ;;  %v3912_v13 = vadd.f32 %v12448_v39, %v12623_v3  ;;  %v3913_v5 = vadd.f32 %v12448_v39, %v12626_v35  ;;  %v3914_v53 = vadd.f32 %v12448_v39, %v12629_v14 }
 0x800   :  { %v3972_v16 = vmax.f32 %v3908_v29, 0.0  ;;  %v3973_v2 = vmax.f32 %v3909_v24, 0.0  ;;  %v3974_v36 = vmax.f32 %v3910_v60, 0.0  ;;  %v3915_v61 = vadd.f32 %v12448_v39, %v12644_v46 }
 0x801   :  { %7339 = vmatmul.mubr.f32.gmra.mrb[214].mxu0 %v3969_v49  ;;  %v3975_v49 = vmax.f32 %v3911_v20, 0.0  ;;  %v3976_v56 = vmax.f32 %v3912_v13, 0.0  ;;  %v3977_v7 = vmax.f32 %v3913_v5, 0.0  ;;  %v3978_v4 = vmax.f32 %v3914_v53, 0.0 }
 0x802   :  { %7341 = vmatprep.mubr.f32.mxu0 %v3970_v33  ;;  %v3916_v3 = vadd.f32 %v12448_v39, %v12647_v31  ;;  %v3979_v11 = vmax.f32 %v3915_v61, 0.0  ;;  %v3981_v35 = vmax.f32 %v12662_v10, 0.0  ;;  %v3982_v14 = vmax.f32 %v12665_v22, 0.0 }
 0x803   :  { %v3983_v27 = vmax.f32 %v12668_v38, 0.0  ;;  %v3984_v46 = vmax.f32 %v12671_v25, 0.0  ;;  %v3985_v39 = vmax.f32 %v12674_v15, 0.0  ;;  %v3986_v31 = vmax.f32 %v12677_v48, 0.0 }
 0x804   :  { %v3980_v17 = vmax.f32 %v3916_v3, 0.0  ;;  %v3987_v41 = vmax.f32 %v12702_v6, 0.0  ;;  %v3988_v10 = vmax.f32 %v12705_v43, 0.0  ;;  %v3989_v22 = vmax.f32 %v12708_v0, 0.0 }
 0x805   :  { %7342 = vmatmul.mubr.f32.gmra.mrb[216].mxu0 %v3971_v44  ;;  %v3990_v38 = vmax.f32 %v12711_v58, 0.0  ;;  %v3991_v25 = vmax.f32 %v12714_v59, 0.0  ;;  %v3992_v15 = vmax.f32 %v12717_v55, 0.0  ;;  %v3993_v48 = vmax.f32 %v12720_v57, 0.0 }
 0x806   :  { %7344 = vmatprep.mubr.f32.mxu0 %v3972_v16  ;;  %v3994_v6 = vmax.f32 %v12723_v23, 0.0  ;;  %v3995_v43 = vmax.f32 %v12748_v1, 0.0  ;;  %v3996_v0 = vmax.f32 %v12751_v26, 0.0  ;;  %v3997_v58 = vmax.f32 %v12754_v51, 0.0 }
 0x807   :  { %v3998_v59 = vmax.f32 %v12757_v9, 0.0  ;;  %v3999_v55 = vmax.f32 %v12760_v52, 0.0  ;;  %v4000_v57 = vmax.f32 %v12763_v42, 0.0  ;;  %v4001_v23 = vmax.f32 %v12766_v54, 0.0 }
 0x808   :  { %v4002_v1 = vmax.f32 %v12769_v45, 0.0  ;;  %v4003_v26 = vmax.f32 %v12792_v62, 0.0  ;;  %v4004_v51 = vmax.f32 %v12795_v63, 0.0  ;;  %v4005_v9 = vmax.f32 %v12798_v18, 0.0 }
 0x809   :  { %7345 = vmatmul.mubr.f32.gmra.mrb[218].mxu0 %v3973_v2  ;;  %v4006_v52 = vmax.f32 %v12801_v28, 0.0  ;;  %v4007_v42 = vmax.f32 %v12804_v12, 0.0  ;;  %v4008_v54 = vmax.f32 %v12807_v32, 0.0  ;;  %v4009_v45 = vmax.f32 %v12810_v8, 0.0 }
 0x80a   :  { %7347 = vmatprep.mubr.f32.mxu0 %v3974_v36  ;;  %v4010_v21 = vmax.f32 %v12813_v37, 0.0  ;;  %v4011_v34 = vmax.f32 %v12476_v50, 0.0 }
 0x80d   :  { %7348 = vmatmul.mubr.f32.gmra.mrb[220].mxu0 %v3975_v49 }
 0x80e   :  { %7350 = vmatprep.mubr.f32.mxu0 %v3976_v56 }
 0x811   :  { %7351 = vmatmul.mubr.f32.gmra.mrb[222].mxu0 %v3977_v7 }
 0x812   :  { %7353 = vmatprep.mubr.f32.mxu0 %v3978_v4 }
 0x815   :  { %7354 = vmatmul.mubr.f32.gmra.mrb[224].mxu0 %v3979_v11 }
 0x816   :  { %7356 = vmatprep.mubr.f32.mxu0 %v3980_v17 }
 0x819   :  { %7357 = vmatmul.mubr.f32.gmra.mrb[226].mxu0 %v3981_v35 }
 0x81a   :  { %7359 = vmatprep.mubr.f32.mxu0 %v3982_v14 }
 0x81d   :  { %7360 = vmatmul.mubr.f32.gmra.mrb[228].mxu0 %v3983_v27 }
 0x81e   :  { %7362 = vmatprep.mubr.f32.mxu0 %v3984_v46 }
 0x821   :  { %7363 = vmatmul.mubr.f32.gmra.mrb[230].mxu0 %v3985_v39 }
 0x822   :  { %7365 = vmatprep.mubr.f32.mxu0 %v3986_v31 }
 0x825   :  { %7366 = vmatmul.mubr.f32.gmra.mrb[232].mxu0 %v3987_v41 }
 0x826   :  { %7368 = vmatprep.mubr.f32.mxu0 %v3988_v10 }
 0x829   :  { %7369 = vmatmul.mubr.f32.gmra.mrb[234].mxu0 %v3989_v22 }
 0x82a   :  { %7371 = vmatprep.mubr.f32.mxu0 %v3990_v38 }
 0x82d   :  { %7372 = vmatmul.mubr.f32.gmra.mrb[236].mxu0 %v3991_v25 }
 0x82e   :  { %7374 = vmatprep.mubr.f32.mxu0 %v3992_v15 }
 0x831   :  { %7375 = vmatmul.mubr.f32.gmra.mrb[238].mxu0 %v3993_v48 }
 0x832   :  { %7377 = vmatprep.mubr.f32.mxu0 %v3994_v6 }
 0x835   :  { %7378 = vmatmul.mubr.f32.gmra.mrb[240].mxu0 %v3995_v43 }
 0x836   :  { %7380 = vmatprep.mubr.f32.mxu0 %v3996_v0 }
 0x839   :  { %7381 = vmatmul.mubr.f32.gmra.mrb[242].mxu0 %v3997_v58 }
 0x83a   :  { %7383 = vmatprep.mubr.f32.mxu0 %v3998_v59 }
 0x83d   :  { %7384 = vmatmul.mubr.f32.gmra.mrb[244].mxu0 %v3999_v55 }
 0x83e   :  { %7386 = vmatprep.mubr.f32.mxu0 %v4000_v57 }
 0x841   :  { %7387 = vmatmul.mubr.f32.gmra.mrb[246].mxu0 %v4001_v23 }
 0x842   :  { %7389 = vmatprep.mubr.f32.mxu0 %v4002_v1 }
 0x845   :  { %7390 = vmatmul.mubr.f32.gmra.mrb[248].mxu0 %v4003_v26 }
 0x846   :  { %7392 = vmatprep.mubr.f32.mxu0 %v4004_v51 }
 0x849   :  { %7393 = vmatmul.mubr.f32.gmra.mrb[250].mxu0 %v4005_v9 }
 0x84a   :  { %7395 = vmatprep.mubr.f32.mxu0 %v4006_v52 }
 0x84d   :  { %7396 = vmatmul.mubr.f32.gmra.mrb[252].mxu0 %v4007_v42 }
 0x84e   :  { %7398 = vmatprep.mubr.f32.mxu0 %v4008_v54 }
 0x851   :  { %7399 = vmatmul.mubr.f32.gmra.mrb[254].mxu0 %v4009_v45 }
 0x852   :  { %7401 = vmatprep.mubr.f32.mxu0 %v4010_v21 }
 0x855   :  { %7402 = vmatmul.mubr.f32.gmra.mrb[0].mxu0 %v4011_v34 }
 0x8a9   :  { %v12864_v30 = vpop.f32.mrb[194].mxu0 }
 0x8aa   :  { %16368 = vst [vmem:[#allocation76_spill] sm:$0xff] %v12864_v30  ;;  %v12868_v47 = vmul.f32 %v12864_v30, %v12864_v30  ;;  %v12870_v40 = vpop.f32.mrb[195].mxu0 }
 0x8ab   :  { %16369 = vst [vmem:[#allocation78_spill] sm:$0xff] %v12870_v40  ;;  %v7854_v19 = vpack.c.bf16 %v12864_v30, %v12870_v40  ;;  %v12876_v62 = vmul.f32 %v12870_v40, %v12870_v40 }
 0x8ae   :  { %v12880_v50 = vpop.f32.mrb[196].mxu0 }
 0x8af   :  { %16370 = vst [vmem:[#allocation83_spill] sm:$0xff] %v12880_v50  ;;  %v12884_v18 = vmul.f32 %v12880_v50, %v12880_v50  ;;  %v12886_v28 = vpop.f32.mrb[197].mxu0 }
 0x8b0   :  { %16371 = vst [vmem:[#allocation34_spill] sm:$0xff] %v12886_v28  ;;  %v7858_v12 = vpack.c.bf16 %v12880_v50, %v12886_v28  ;;  %v12892_v32 = vmul.f32 %v12886_v28, %v12886_v28 }
 0x8b2   :  { %v12896_v37 = vpop.f32.mrb[198].mxu0 }
 0x8b3   :  { %16372 = vst [vmem:[#allocation36_spill] sm:$0xff] %v12896_v37  ;;  %v12900_v33 = vmul.f32 %v12896_v37, %v12896_v37  ;;  %v12902_v29 = vpop.f32.mrb[199].mxu0 }
 0x8b4   :  { %16373 = vst [vmem:[#allocation66_spill] sm:$0xff] %v12902_v29  ;;  %v7862_v44 = vpack.c.bf16 %v12896_v37, %v12902_v29  ;;  %v12908_v24 = vmul.f32 %v12902_v29, %v12902_v29 }
 0x8b8   :  { %v12912_v60 = vpop.f32.mrb[200].mxu0 }
 0x8b9   :  { %16374 = vst [vmem:[#allocation10_spill] sm:$0xff] %v12912_v60  ;;  %v12916_v2 = vmul.f32 %v12912_v60, %v12912_v60  ;;  %v12918_v20 = vpop.f32.mrb[201].mxu0 }
 0x8ba   :  { %16375 = vst [vmem:[#allocation38_spill] sm:$0xff] %v12918_v20  ;;  %v7866_v36 = vpack.c.bf16 %v12912_v60, %v12918_v20  ;;  %v12924_v13 = vmul.f32 %v12918_v20, %v12918_v20 }
 0x8bc   :  { %v12928_v5 = vpop.f32.mrb[202].mxu0 }
 0x8bd   :  { %16376 = vst [vmem:[#allocation28_spill] sm:$0xff] %v12928_v5  ;;  %v12932_v56 = vmul.f32 %v12928_v5, %v12928_v5  ;;  %v12934_v53 = vpop.f32.mrb[203].mxu0 }
 0x8be   :  { %16377 = vst [vmem:[#allocation27_spill] sm:$0xff] %v12934_v53  ;;  %v7870_v7 = vpack.c.bf16 %v12928_v5, %v12934_v53  ;;  %v12940_v61 = vmul.f32 %v12934_v53, %v12934_v53 }
 0x8c0   :  { %v12944_v3 = vpop.f32.mrb[204].mxu0 }
 0x8c1   :  { %16378 = vst [vmem:[#allocation30_spill] sm:$0xff] %v12944_v3  ;;  %v12948_v11 = vmul.f32 %v12944_v3, %v12944_v3  ;;  %v12950_v17 = vpop.f32.mrb[205].mxu0 }
 0x8c2   :  { %16379 = vst [vmem:[#allocation29_spill] sm:$0xff] %v12950_v17  ;;  %v7874_v35 = vpack.c.bf16 %v12944_v3, %v12950_v17  ;;  %v12956_v14 = vmul.f32 %v12950_v17, %v12950_v17 }
 0x8c4   :  { %v12960_v46 = vpop.f32.mrb[206].mxu0 }
 0x8c5   :  { %16380 = vst [vmem:[#allocation43_spill] sm:$0xff] %v12960_v46  ;;  %v12964_v39 = vmul.f32 %v12960_v46, %v12960_v46  ;;  %v12966_v31 = vpop.f32.mrb[207].mxu0 }
 0x8c6   :  { %16381 = vst [vmem:[#allocation48_spill] sm:$0xff] %v12966_v31  ;;  %v12972_v10 = vmul.f32 %v12966_v31, %v12966_v31 }
 0x8c8   :  { %v12976_v38 = vpop.f32.mrb[208].mxu0 }
 0x8c9   :  { %16382 = vst [vmem:[#allocation46_spill] sm:$0xff] %v12976_v38  ;;  %v12980_v25 = vmul.f32 %v12976_v38, %v12976_v38  ;;  %v12982_v15 = vpop.f32.mrb[209].mxu0 }
 0x8ca   :  { %16383 = vst [vmem:[#allocation52_spill] sm:$0xff] %v12982_v15  ;;  %v12988_v6 = vmul.f32 %v12982_v15, %v12982_v15 }
 0x8cc   :  { %v12992_v0 = vpop.f32.mrb[210].mxu0 }
 0x8cd   :  { %16384 = vst [vmem:[#allocation50_spill] sm:$0xff] %v12992_v0  ;;  %v12996_v58 = vmul.f32 %v12992_v0, %v12992_v0  ;;  %v12998_v59 = vpop.f32.mrb[211].mxu0 }
 0x8ce   :  { %16385 = vst [vmem:[#allocation56_spill] sm:$0xff] %v12998_v59  ;;  %v7852_v55 = vpack.c.bf16 %v12992_v0, %v12998_v59  ;;  %v13004_v57 = vmul.f32 %v12998_v59, %v12998_v59 }
 0x8d0   :  { %v13006_v23 = vpop.f32.mrb[212].mxu0  ;;  %7853 = vmatprep.subr.bf16.mxu1 %v7852_v55 }
 0x8d1   :  { %16386 = vst [vmem:[#allocation54_spill] sm:$0xff] %v13006_v23  ;;  %v13012_v26 = vmul.f32 %v13006_v23, %v13006_v23  ;;  %v13014_v51 = vpop.f32.mrb[213].mxu0  ;;  %7855 = vmatpush3.bf16.msra.mxu1 %v7854_v19 }
 0x8d2   :  { %16387 = vst [vmem:[#allocation60_spill] sm:$0xff] %v13014_v51  ;;  %v7856_v9 = vpack.c.bf16 %v13006_v23, %v13014_v51  ;;  %v13020_v52 = vmul.f32 %v13014_v51, %v13014_v51 }
 0x8d4   :  { %v13022_v42 = vpop.f32.mrb[214].mxu0  ;;  %7857 = vmatprep.subr.bf16.mxu1 %v7856_v9 }
 0x8d5   :  { %16388 = vst [vmem:[#allocation32_spill] sm:$0xff] %v13022_v42  ;;  %v13028_v45 = vmul.f32 %v13022_v42, %v13022_v42  ;;  %v13030_v21 = vpop.f32.mrb[215].mxu0  ;;  %7859 = vmatpush3.bf16.msra.mxu1 %v7858_v12 }
 0x8d6   :  { %16389 = vst [vmem:[#allocation80_spill] sm:$0xff] %v13030_v21  ;;  %v7860_v34 = vpack.c.bf16 %v13022_v42, %v13030_v21  ;;  %v13036_v19 = vmul.f32 %v13030_v21, %v13030_v21 }
 0x8d8   :  { %v13038_v55 = vpop.f32.mrb[216].mxu0  ;;  %7861 = vmatprep.subr.bf16.mxu1 %v7860_v34 }
 0x8d9   :  { %16390 = vst [vmem:[#allocation33_spill] sm:$0xff] %v13038_v55  ;;  %v13044_v43 = vmul.f32 %v13038_v55, %v13038_v55  ;;  %v13046_v22 = vpop.f32.mrb[217].mxu0  ;;  %7863 = vmatpush3.bf16.msra.mxu1 %v7862_v44 }
 0x8da   :  { %16391 = vst [vmem:[#allocation82_spill] sm:$0xff] %v13046_v22  ;;  %v7864_v12 = vpack.c.bf16 %v13038_v55, %v13046_v22  ;;  %v13052_v27 = vmul.f32 %v13046_v22, %v13046_v22  ;;  %v16405_v55 = vmov 1.0  }
 0x8dc   :  { %v13054_v4 = vpop.f32.mrb[218].mxu0  ;;  %7865 = vmatprep.subr.bf16.mxu1 %v7864_v12 }
 0x8dd   :  { %16392 = vst [vmem:[#allocation37_spill] sm:$0xff] %v13054_v4  ;;  %v13060_v49 = vmul.f32 %v13054_v4, %v13054_v4  ;;  %v13062_v16 = vpop.f32.mrb[219].mxu0  ;;  %7867 = vmatpush3.bf16.msra.mxu1 %v7866_v36 }
 0x8de   :  { %16393 = vst [vmem:[#allocation31_spill] sm:$0xff] %v13062_v16  ;;  %v7868_v44 = vpack.c.bf16 %v13054_v4, %v13062_v16  ;;  %v13068_v9 = vmul.f32 %v13062_v16, %v13062_v16 }
 0x8e0   :  { %v13070_v8 = vpop.f32.mrb[220].mxu0  ;;  %7869 = vmatprep.subr.bf16.mxu1 %v7868_v44 }
 0x8e1   :  { %16394 = vst [vmem:[#allocation41_spill] sm:$0xff] %v13070_v8  ;;  %v13076_v34 = vmul.f32 %v13070_v8, %v13070_v8  ;;  %v13078_v54 = vpop.f32.mrb[221].mxu0  ;;  %7871 = vmatpush3.bf16.msra.mxu1 %v7870_v7 }
 0x8e2   :  { %16395 = vst [vmem:[#allocation13_spill] sm:$0xff] %v13078_v54  ;;  %v7872_v36 = vpack.c.bf16 %v13070_v8, %v13078_v54  ;;  %v13084_v63 = vmul.f32 %v13078_v54, %v13078_v54 }
 0x8e4   :  { %v13086_v1 = vpop.f32.mrb[222].mxu0  ;;  %7873 = vmatprep.subr.bf16.mxu1 %v7872_v36 }
 0x8e5   :  { %16396 = vst [vmem:[#allocation17_spill] sm:$0xff] %v13086_v1  ;;  %v13092_v12 = vmul.f32 %v13086_v1, %v13086_v1  ;;  %v13094_v48 = vpop.f32.mrb[223].mxu0  ;;  %7875 = vmatpush3.bf16.msra.mxu1 %v7874_v35  ;;  %v16400_v35 = vpack.c.bf16 %v12960_v46, %v12966_v31 }
 0x8e6   :  { %16397 = vst [vmem:[#allocation15_spill] sm:$0xff] %v13094_v48  ;;  %v7876_v7 = vpack.c.bf16 %v13086_v1, %v13094_v48  ;;  %v13103_v41 = vmul.f32 %v13094_v48, %v13094_v48 }
 0x8e8   :  { %v13105_v36 = vpop.f32.mrb[224].mxu0  ;;  %7877 = vmatprep.subr.bf16.mxu1 %v7876_v7 }
 0x8e9   :  { %16398 = vst [vmem:[#allocation71_spill] sm:$0xff] %v13105_v36  ;;  %v13111_v8 = vmul.f32 %v13105_v36, %v13105_v36  ;;  %v13113_v54 = vpop.f32.mrb[225].mxu0  ;;  %7879 = vmatpush3.bf16.msra.mxu1 %v16400_v35  ;;  %v16403_v35 = vpack.c.bf16 %v12976_v38, %v12982_v15 }
 0x8ea   :  { %16399 = vst [vmem:[#allocation69_spill] sm:$0xff] %v13113_v54  ;;  %v7880_v1 = vpack.c.bf16 %v13105_v36, %v13113_v54  ;;  %v13122_v48 = vmul.f32 %v13113_v54, %v13113_v54 }
 0x8ec   :  { %v13124_v7 = vpop.f32.mrb[226].mxu0  ;;  %7881 = vmatprep.subr.bf16.mxu1 %v7880_v1 }
 0x8ed   :  { %16401 = vst [vmem:[#allocation77_spill] sm:$0xff] %v13124_v7  ;;  %v13130_v4 = vmul.f32 %v13124_v7, %v13124_v7  ;;  %v13132_v16 = vpop.f32.mrb[227].mxu0  ;;  %7883 = vmatpush3.bf16.msra.mxu1 %v16403_v35 }
 0x8ee   :  { %16402 = vst [vmem:[#allocation74_spill] sm:$0xff] %v13132_v16  ;;  %v7886_v36 = vpack.c.bf16 %v13124_v7, %v13132_v16  ;;  %v13141_v54 = vmul.f32 %v13132_v16, %v13132_v16 }
 0x8f0   :  { %v13145_v44 = vpop.f32.mrb[228].mxu0  ;;  %6053 = vmatmul.mubr.msk.f32.vlgmr.msra.gmra.mrb[22].mxu1 %vm8760_vm3, %v16405_v55 }
 0x8f1   :  { %16404 = vst [vmem:[#allocation81_spill] sm:$0xff] %v13145_v44  ;;  %v13152_v42 = vmul.f32 %v13145_v44, %v13145_v44  ;;  %v13154_v35 = vpop.f32.mrb[229].mxu0  ;;  %6054 = vmatprep.mubr.msk.f32.mxu1 %vm8489_vm2, %v16405_v55 }
 0x8f2   :  { %16407 = vst [vmem:[#allocation79_spill] sm:$0xff] %v13154_v35  ;;  %v7890_v16 = vpack.c.bf16 %v13145_v44, %v13154_v35  ;;  %v13163_v1 = vmul.f32 %v13154_v35, %v13154_v35 }
 0x8f4   :  { %v13167_v23 = vpop.f32.mrb[230].mxu0 }
 0x8f5   :  { %16409 = vst [vmem:[#allocation42_spill] sm:$0xff] %v13167_v23  ;;  %v13171_v51 = vmul.f32 %v13167_v23, %v13167_v23  ;;  %v13173_v0 = vpop.f32.mrb[231].mxu0 }
 0x8f6   :  { %16411 = vst [vmem:[#allocation49_spill] sm:$0xff] %v13173_v0  ;;  %v7894_v59 = vpack.c.bf16 %v13167_v23, %v13173_v0  ;;  %v13179_v44 = vmul.f32 %v13173_v0, %v13173_v0 }
 0x8f7   :  { %16410 = vst [vmem:[#allocation40_spill] sm:$0xff] %v13171_v51 }
 0x8f8   :  { %16412 = vst [vmem:[#allocation44_spill] sm:$0xff] %v13179_v44  ;;  %v13183_v38 = vpop.f32.mrb[232].mxu0 }
 0x8f9   :  { %16413 = vst [vmem:[#allocation75_spill] sm:$0xff] %v13183_v38  ;;  %v13187_v21 = vmul.f32 %v13183_v38, %v13183_v38  ;;  %v13189_v15 = vpop.f32.mrb[233].mxu0 }
 0x8fa   :  { %16415 = vst [vmem:[#allocation55_spill] sm:$0xff] %v13189_v15  ;;  %v7898_v46 = vpack.c.bf16 %v13183_v38, %v13189_v15  ;;  %v13195_v23 = vmul.f32 %v13189_v15, %v13189_v15 }
 0x8fb   :  { %16414 = vst [vmem:[#allocation73_spill] sm:$0xff] %v13187_v21 }
 0x8fc   :  { %16416 = vst [vmem:[#allocation51_spill] sm:$0xff] %v13195_v23  ;;  %v13199_v31 = vpop.f32.mrb[234].mxu0 }
 0x8fd   :  { %16417 = vst [vmem:[#allocation21_spill] sm:$0xff] %v13199_v31  ;;  %v13203_v35 = vmul.f32 %v13199_v31, %v13199_v31  ;;  %v13205_v3 = vpop.f32.mrb[235].mxu0 }
 0x8fe   :  { %16419 = vst [vmem:[#allocation23_spill] sm:$0xff] %v13205_v3  ;;  %v7902_v17 = vpack.c.bf16 %v13199_v31, %v13205_v3  ;;  %v13211_v38 = vmul.f32 %v13205_v3, %v13205_v3 }
 0x8ff   :  { %16418 = vst [vmem:[#allocation20_spill] sm:$0xff] %v13203_v35 }
 0x900   :  { %16420 = vst [vmem:[#allocation22_spill] sm:$0xff] %v13211_v38  ;;  %v13215_v5 = vpop.f32.mrb[236].mxu0 }
 0x901   :  { %v13219_v0 = vmul.f32 %v13215_v5, %v13215_v5  ;;  %v13221_v53 = vpop.f32.mrb[237].mxu0 }
 0x902   :  { %v13227_v31 = vmul.f32 %v13221_v53, %v13221_v53 }
 0x903   :  { %16421 = vst [vmem:[#allocation25_spill] sm:$0xff] %v13219_v0 }
 0x904   :  { %16422 = vst [vmem:[#allocation24_spill] sm:$0xff] %v13227_v31  ;;  %v13231_v20 = vpop.f32.mrb[238].mxu0 }
 0x905   :  { %16423 = vst [vmem:[#allocation26_spill] sm:$0xff] %v13231_v20  ;;  %v13235_v15 = vmul.f32 %v13231_v20, %v13231_v20  ;;  %v13237_v37 = vpop.f32.mrb[239].mxu0 }
 0x906   :  { %v13243_v60 = vmul.f32 %v13237_v37, %v13237_v37 }
 0x907   :  { %16424 = vst [vmem:[#allocation35_spill] sm:$0xff] %v13235_v15 }
 0x908   :  { %16425 = vst [vmem:[#allocation59_spill] sm:$0xff] %v13243_v60  ;;  %v13247_v28 = vpop.f32.mrb[240].mxu0 }
 0x909   :  { %16426 = vst [vmem:[#allocation39_spill] sm:$0xff] %v13247_v28  ;;  %v13251_v3 = vmul.f32 %v13247_v28, %v13247_v28  ;;  %v13253_v30 = vpop.f32.mrb[241].mxu0 }
 0x90a   :  { %16428 = vst [vmem:[#allocation57_spill] sm:$0xff] %v13253_v30  ;;  %v13259_v29 = vmul.f32 %v13253_v30, %v13253_v30 }
 0x90b   :  { %16427 = vst [vmem:[#allocation62_spill] sm:$0xff] %v13251_v3 }
 0x90c   :  { %16429 = vst [vmem:[#allocation64_spill] sm:$0xff] %v13259_v29  ;;  %v13263_v0 = vpop.f32.mrb[242].mxu0 }
 0x90d   :  { %16430 = vst [vmem:[#allocation61_spill] sm:$0xff] %v13263_v0  ;;  %v13267_v50 = vmul.f32 %v13263_v0, %v13263_v0  ;;  %v13269_v60 = vpop.f32.mrb[243].mxu0 }
 0x90e   :  { %16431 = vst [vmem:[#allocation67_spill] sm:$0xff] %v13269_v60  ;;  %v7884_v15 = vpack.c.bf16 %v13263_v0, %v13269_v60  ;;  %v13275_v40 = vmul.f32 %v13269_v60, %v13269_v60 }
 0x910   :  { %v13277_v38 = vpop.f32.mrb[244].mxu0  ;;  %7885 = vmatprep.subr.bf16.mxu1 %v7884_v15 }
 0x911   :  { %16432 = vst [vmem:[#allocation63_spill] sm:$0xff] %v13277_v38  ;;  %v13283_v29 = vmul.f32 %v13277_v38, %v13277_v38  ;;  %v13285_v3 = vpop.f32.mrb[245].mxu0  ;;  %7887 = vmatpush3.bf16.msra.mxu1 %v7886_v36 }
 0x912   :  { %16433 = vst [vmem:[#allocation14_spill] sm:$0xff] %v13285_v3  ;;  %v7888_v0 = vpack.c.bf16 %v13277_v38, %v13285_v3  ;;  %v13291_v60 = vmul.f32 %v13285_v3, %v13285_v3 }
 0x914   :  { %v13293_v35 = vpop.f32.mrb[246].mxu0  ;;  %7889 = vmatprep.subr.bf16.mxu1 %v7888_v0 }
 0x915   :  { %16434 = vst [vmem:[#allocation65_spill] sm:$0xff] %v13293_v35  ;;  %v13299_v31 = vmul.f32 %v13293_v35, %v13293_v35  ;;  %v13301_v23 = vpop.f32.mrb[247].mxu0  ;;  %7891 = vmatpush3.bf16.msra.mxu1 %v7890_v16 }
 0x916   :  { %16435 = vst [vmem:[#allocation16_spill] sm:$0xff] %v13301_v23  ;;  %v7892_v36 = vpack.c.bf16 %v13293_v35, %v13301_v23  ;;  %v13307_v38 = vmul.f32 %v13301_v23, %v13301_v23 }
 0x918   :  { %16436 = vst [vmem:[#allocation9_spill] sm:$0xff] %v13307_v38  ;;  %v13309_v3 = vpop.f32.mrb[248].mxu0  ;;  %7893 = vmatprep.subr.bf16.mxu1 %v7892_v36  ;;  %v16448_v38 = vpack.c.bf16 %v13231_v20, %v13237_v37 }
 0x919   :  { %16437 = vst [vmem:[#allocation18_spill] sm:$0xff] %v13309_v3  ;;  %v13315_v15 = vmul.f32 %v13309_v3, %v13309_v3  ;;  %v13317_v21 = vpop.f32.mrb[249].mxu0  ;;  %7895 = vmatpush3.bf16.msra.mxu1 %v7894_v59 }
 0x91a   :  { %16438 = vst [vmem:[#allocation58_spill] sm:$0xff] %v13317_v21  ;;  %v7896_v16 = vpack.c.bf16 %v13309_v3, %v13317_v21  ;;  %v4609_v35 = vmul.f32 %v13317_v21, %v13317_v21 }
 0x91c   :  { %v13323_v23 = vpop.f32.mrb[250].mxu0  ;;  %7897 = vmatprep.subr.bf16.mxu1 %v7896_v16  ;;  %v7960_v36 = vpack.c.bf16 %v13315_v15, %v4609_v35 }
 0x91d   :  { %16439 = vst [vmem:[#allocation68_spill] sm:$0xff] %v13323_v23  ;;  %v4612_v0 = vmul.f32 %v13323_v23, %v13323_v23  ;;  %v13328_v44 = vpop.f32.mrb[251].mxu0  ;;  %7899 = vmatpush3.bf16.msra.mxu1 %v7898_v46 }
 0x91e   :  { %16440 = vst [vmem:[#allocation53_spill] sm:$0xff] %v13328_v44  ;;  %v7900_v59 = vpack.c.bf16 %v13323_v23, %v13328_v44  ;;  %v4611_v3 = vmul.f32 %v13328_v44, %v13328_v44 }
 0x920   :  { %v13334_v51 = vpop.f32.mrb[252].mxu0  ;;  %7901 = vmatprep.subr.bf16.mxu1 %v7900_v59  ;;  %v7964_v21 = vpack.c.bf16 %v4612_v0, %v4611_v3  ;;  %v16445_v0 = vpack.c.bf16 %v13215_v5, %v13221_v53 }
 0x921   :  { %16441 = vst [vmem:[#allocation19_spill] sm:$0xff] %v13334_v51  ;;  %v4614_v16 = vmul.f32 %v13334_v51, %v13334_v51  ;;  %v13338_v35 = vpop.f32.mrb[253].mxu0  ;;  %7903 = vmatpush3.bf16.msra.mxu1 %v7902_v17 }
 0x922   :  { %16442 = vst [vmem:[#allocation70_spill] sm:$0xff] %v13338_v35  ;;  %v7904_v15 = vpack.c.bf16 %v13334_v51, %v13338_v35  ;;  %v4613_v46 = vmul.f32 %v13338_v35, %v13338_v35 }
 0x924   :  { %v13344_v23 = vpop.f32.mrb[254].mxu0  ;;  %7905 = vmatprep.subr.bf16.mxu1 %v7904_v15  ;;  %v7968_v44 = vpack.c.bf16 %v4614_v16, %v4613_v46 }
 0x925   :  { %16443 = vst [vmem:[#allocation72_spill] sm:$0xff] %v13344_v23  ;;  %v4616_v59 = vmul.f32 %v13344_v23, %v13344_v23  ;;  %v13348_v3 = vpop.f32.mrb[255].mxu0  ;;  %7907 = vmatpush3.bf16.msra.mxu1 %v16445_v0 }
 0x926   :  { %16444 = vst [vmem:[#allocation45_spill] sm:$0xff] %v13348_v3  ;;  %v7908_v17 = vpack.c.bf16 %v13344_v23, %v13348_v3  ;;  %v4615_v51 = vmul.f32 %v13348_v3, %v13348_v3 }
 0x928   :  { %v13357_v35 = vpop.f32.mrb[0].mxu0  ;;  %7909 = vmatprep.subr.bf16.mxu1 %v7908_v17  ;;  %v7972_v15 = vpack.c.bf16 %v4616_v59, %v4615_v51  ;;  %v16449_v51 = vpack.c.bf16 %v13247_v28, %v13253_v30  ;;  %v16450_v59 = vpack.c.bf16 %v12996_v58, %v13004_v57  ;;  %v16455_v58 = vpack.c.bf16 %v12884_v18, %v12892_v32  ;;  %v16497_v17 = vld [vmem:[#allocation83_spill] sm:$0xff]  ;;  %v5323_v28 = vld [vmem:[%s15050_s14 + $0x48] sm:$0xff] }
 0x929   :  { %16446 = vst [vmem:[#allocation12_spill] sm:$0xff] %v13357_v35  ;;  %v4618_v16 = vmul.f32 %v13357_v35, %v13357_v35  ;;  %v13361_v46 = vpop.f32.mrb[1].mxu0  ;;  %7911 = vmatpush3.bf16.msra.mxu1 %v16448_v38  ;;  %v16452_v38 = vpack.c.bf16 %v12868_v47, %v12876_v62  ;;  %v16456_v57 = vpack.c.bf16 %v13028_v45, %v13036_v19  ;;  %v5325_v30 = vld [vmem:[%s15050_s14 + $0x58] sm:$0xff] }
 0x92a   :  { %16447 = vst [vmem:[#allocation85_spill] sm:$0xff] %v13361_v46  ;;  %v7912_v0 = vpack.c.bf16 %v13357_v35, %v13361_v46  ;;  %v4617_v23 = vmul.f32 %v13361_v46, %v13361_v46  ;;  %v16457_v47 = vpack.c.bf16 %v12900_v33, %v12908_v24  ;;  %v16458_v62 = vpack.c.bf16 %v13044_v43, %v13052_v27  ;;  %v16475_v27 = vld [vmem:[#allocation44_spill] sm:$0xff]  ;;  %v16487_v43 = vld [vmem:[#allocation59_spill] sm:$0xff] }
 0x92b   :  { %v16460_v18 = vpack.c.bf16 %v13060_v49, %v13068_v9  ;;  %v16461_v32 = vpack.c.bf16 %v12932_v56, %v12940_v61  ;;  %v16462_v33 = vpack.c.bf16 %v13076_v34, %v13084_v63  ;;  %v16463_v24 = vpack.c.bf16 %v12948_v11, %v12956_v14  ;;  %v16474_v14 = vld [vmem:[#allocation40_spill] sm:$0xff] }
 0x92c   :  { %7913 = vmatprep.subr.bf16.mxu1 %v7912_v0  ;;  %v7976_v3 = vpack.c.bf16 %v4618_v16, %v4617_v23  ;;  %v16454_v23 = vpack.c.bf16 %v13012_v26, %v13020_v52  ;;  %v16459_v26 = vpack.c.bf16 %v12916_v2, %v12924_v13  ;;  %v16464_v2 = vpack.c.bf16 %v13092_v12, %v13103_v41  ;;  %v16478_v41 = vld [vmem:[#allocation51_spill] sm:$0xff]  ;;  %v16493_v35 = vld [vmem:[#allocation8_spill] sm:$0xff] }
 0x92d   :  { %7915 = vmatpush3.bf16.msra.mxu1 %v16449_v51  ;;  %v16465_v13 = vpack.c.bf16 %v12964_v39, %v12972_v10  ;;  %v16466_v49 = vpack.c.bf16 %v13111_v8, %v13122_v48  ;;  %v16467_v63 = vpack.c.bf16 %v12980_v25, %v12988_v6  ;;  %v16468_v56 = vpack.c.bf16 %v13267_v50, %v13275_v40  ;;  %v16472_v50 = vld [vmem:[#allocation9_spill] sm:$0xff]  ;;  %v16484_v48 = vld [vmem:[#allocation24_spill] sm:$0xff]  ;;  %v16496_v51 = vld [vmem:[#allocation34_spill] sm:$0xff] }
 0x92e   :  { %7917 = vmatprep.subr.bf16.mxu1 %v16450_v59  ;;  %v16469_v61 = vpack.c.bf16 %v13130_v4, %v13141_v54  ;;  %v16470_v8 = vpack.c.bf16 %v13283_v29, %v13291_v60  ;;  %v16471_v40 = vpack.c.bf16 %v13152_v42, %v13163_v1  ;;  %v16473_v11 = vpack.c.bf16 %v13299_v31, %v16472_v50  ;;  %v16477_v39 = vld [vmem:[#allocation73_spill] sm:$0xff]  ;;  %v16480_v29 = vld [vmem:[#allocation20_spill] sm:$0xff]  ;;  %v16481_v60 = vld [vmem:[#allocation22_spill] sm:$0xff] }
 0x92f   :  { %v16476_v4 = vpack.c.bf16 %v16474_v14, %v16475_v27  ;;  %v16479_v10 = vpack.c.bf16 %v16477_v39, %v16478_v41  ;;  %v16482_v22 = vpack.c.bf16 %v16480_v29, %v16481_v60  ;;  %v16483_v25 = vld [vmem:[#allocation25_spill] sm:$0xff]  ;;  %v16486_v31 = vld [vmem:[#allocation35_spill] sm:$0xff]  ;;  %v16489_v42 = vld [vmem:[#allocation62_spill] sm:$0xff] }
 0x930   :  { %6055 = vmatmul.mubr.msk.f32.vlgmr.msra.gmra.mrb[24].mxu1 %vm8999_vm4, %v16405_v55  ;;  %v16485_v6 = vpack.c.bf16 %v16483_v25, %v16484_v48  ;;  %v16488_v52 = vpack.c.bf16 %v16486_v31, %v16487_v43  ;;  %v16490_v54 = vld [vmem:[#allocation64_spill] sm:$0xff]  ;;  %v16492_v1 = vld [vmem:[#allocation47_spill] sm:$0xff]  ;;  %v16511_v29 = vld [vmem:[#allocation50_spill] sm:$0xff] }
 0x931   :  { %7919 = vmatpush3.bf16.msra.mxu1 %v16452_v38  ;;  %6056 = vmatprep.mubr.msk.f32.mxu1 %vm8478_vm1, %v16405_v55  ;;  %v16491_v45 = vpack.c.bf16 %v16489_v42, %v16490_v54  ;;  %v16495_v0 = vld [vmem:[#allocation76_spill] sm:$0xff]  ;;  %v16507_v50 = vld [vmem:[#allocation43_spill] sm:$0xff]  ;;  %v16513_v48 = vld [vmem:[#allocation54_spill] sm:$0xff] }
 0x932   :  { %7921 = vmatprep.subr.bf16.mxu1 %v16454_v23  ;;  %v16498_v23 = vld [vmem:[#allocation66_spill] sm:$0xff]  ;;  %v16508_v14 = vld [vmem:[#allocation52_spill] sm:$0xff]  ;;  %v16521_v43 = vld [vmem:[#allocation41_spill] sm:$0xff] }
 0x933   :  { %v16510_v41 = vld [vmem:[#allocation56_spill] sm:$0xff]  ;;  %v16516_v54 = vld [vmem:[#allocation82_spill] sm:$0xff]  ;;  %v16522_v42 = vld [vmem:[#allocation15_spill] sm:$0xff] }
 0x934   :  { %v16514_v31 = vld [vmem:[#allocation80_spill] sm:$0xff]  ;;  %v16528_v25 = vld [vmem:[#allocation79_spill] sm:$0xff]  ;;  %v16529_v60 = vld [vmem:[#allocation81_spill] sm:$0xff] }
 0x935   :  { %7923 = vmatpush3.bf16.msra.mxu1 %v16455_v58  ;;  %v16531_v39 = vld [vmem:[#allocation42_spill] sm:$0xff]  ;;  %v16532_v27 = vld [vmem:[#allocation55_spill] sm:$0xff]  ;;  %v15532_v58 = vmov 0.0  }
 0x936   :  { %7925 = vmatprep.subr.bf16.mxu1 %v16456_v57  ;;  %v16499_v57 = vld [vmem:[#allocation36_spill] sm:$0xff]  ;;  %v5316_v59 = vld [vmem:[%s15050_s14 + $0x10] sm:$0xff] }
 0x939   :  { %7927 = vmatpush3.bf16.msra.mxu1 %v16457_v47  ;;  %v5314_v47 = vld [vmem:[%s15050_s14] sm:$0xff] }
 0x93a   :  { %7929 = vmatprep.subr.bf16.mxu1 %v16458_v62  ;;  %v16500_v62 = vld [vmem:[#allocation38_spill] sm:$0xff] }
 0x93d   :  { %7931 = vmatpush3.bf16.msra.mxu1 %v16459_v26  ;;  %v5317_v26 = vld [vmem:[%s15050_s14 + $0x18] sm:$0xff] }
 0x93e   :  { %7933 = vmatprep.subr.bf16.mxu1 %v16460_v18  ;;  %v16501_v18 = vld [vmem:[#allocation10_spill] sm:$0xff] }
 0x941   :  { %7935 = vmatpush3.bf16.msra.mxu1 %v16461_v32 }
 0x942   :  { %7937 = vmatprep.subr.bf16.mxu1 %v16462_v33  ;;  %v16502_v33 = vld [vmem:[#allocation27_spill] sm:$0xff] }
 0x945   :  { %7939 = vmatpush3.bf16.msra.mxu1 %v16463_v24  ;;  %v5315_v24 = vld [vmem:[%s15050_s14 + $0x8] sm:$0xff] }
 0x946   :  { %7941 = vmatprep.subr.bf16.mxu1 %v16464_v2  ;;  %v16503_v2 = vld [vmem:[#allocation28_spill] sm:$0xff]  ;;  %v7980_v32 = vpack.c.bf16 %v5317_v26, %v5315_v24  ;;  %v5320_v24 = vld [vmem:[%s15050_s14 + $0x30] sm:$0xff] }
 0x947   :  { %v5318_v26 = vld [vmem:[%s15050_s14 + $0x20] sm:$0xff] }
 0x949   :  { %7943 = vmatpush3.bf16.msra.mxu1 %v16465_v13 }
 0x94a   :  { %7945 = vmatprep.subr.bf16.mxu1 %v16466_v49  ;;  %v16504_v49 = vld [vmem:[#allocation29_spill] sm:$0xff] }
 0x94d   :  { %7947 = vmatpush3.bf16.msra.mxu1 %v16467_v63  ;;  %v7982_v63 = vpack.c.bf16 %v5316_v59, %v5314_v47  ;;  %v7986_v59 = vpack.c.bf16 %v5320_v24, %v5318_v26  ;;  %v7988_v47 = vpack.c.bf16 %v5325_v30, %v5323_v28  ;;  %v5326_v28 = vld [vmem:[%s15050_s14 + $0x60] sm:$0xff] }
 0x94e   :  { %7949 = vmatprep.subr.bf16.mxu1 %v16468_v56  ;;  %v16505_v56 = vld [vmem:[#allocation30_spill] sm:$0xff] }
 0x950   :  { %6057 = vmatmul.mubr.msk.f32.vlgmr.msra.gmra.mrb[26].mxu1 %vm8760_vm3, %v16405_v55 }
 0x951   :  { %7951 = vmatpush3.bf16.msra.mxu1 %v16469_v61  ;;  %6058 = vmatprep.mubr.msk.f32.mxu1 %vm8489_vm2, %v16405_v55  ;;  %v16535_v61 = vld [vmem:[#allocation21_spill] sm:$0xff] }
 0x952   :  { %7953 = vmatprep.subr.bf16.mxu1 %v16470_v8  ;;  %v16506_v8 = vld [vmem:[#allocation48_spill] sm:$0xff] }
 0x955   :  { %7955 = vmatpush3.bf16.msra.mxu1 %v16471_v40  ;;  %v16534_v40 = vld [vmem:[#allocation23_spill] sm:$0xff] }
 0x956   :  { %7957 = vmatprep.subr.bf16.mxu1 %v16473_v11  ;;  %v16533_v11 = vld [vmem:[#allocation75_spill] sm:$0xff] }
 0x959   :  { %7959 = vmatpush3.bf16.msra.mxu1 %v16476_v4  ;;  %v16509_v4 = vld [vmem:[#allocation46_spill] sm:$0xff] }
 0x95a   :  { %7961 = vmatprep.subr.bf16.mxu1 %v7960_v36 }
 0x95d   :  { %7963 = vmatpush3.bf16.msra.mxu1 %v16479_v10  ;;  %v16530_v10 = vld [vmem:[#allocation49_spill] sm:$0xff] }
 0x95e   :  { %7965 = vmatprep.subr.bf16.mxu1 %v7964_v21 }
 0x961   :  { %7967 = vmatpush3.bf16.msra.mxu1 %v16482_v22  ;;  %v16512_v22 = vld [vmem:[#allocation60_spill] sm:$0xff] }
 0x962   :  { %7969 = vmatprep.subr.bf16.mxu1 %v7968_v44 }
 0x965   :  { %7971 = vmatpush3.bf16.msra.mxu1 %v16485_v6  ;;  %v16527_v6 = vld [vmem:[#allocation77_spill] sm:$0xff] }
 0x966   :  { %7973 = vmatprep.subr.bf16.mxu1 %v7972_v15  ;;  %v16494_v15 = vld [vmem:[#allocation78_spill] sm:$0xff] }
 0x969   :  { %7975 = vmatpush3.bf16.msra.mxu1 %v16488_v52  ;;  %v16515_v52 = vld [vmem:[#allocation32_spill] sm:$0xff] }
 0x96a   :  { %7977 = vmatprep.subr.bf16.mxu1 %v7976_v3 }
 0x96d   :  { %7979 = vmatpush3.bf16.msra.mxu1 %v16491_v45  ;;  %v16523_v45 = vld [vmem:[#allocation17_spill] sm:$0xff] }
 0x96e   :  { %7981 = vmatprep.subr.bf16.mxu1 %v7980_v32  ;;  %v5327_v32 = vld [vmem:[%s15050_s14 + $0x68] sm:$0xff] }
 0x970   :  { %6059 = vmatmul.mubr.msk.f32.vlgmr.msra.gmra.mrb[28].mxu1 %vm8999_vm4, %v16405_v55 }
 0x971   :  { %5447 = vmatprep.mubr.f32.mxu1 %v15532_v58  ;;  %7983 = vmatpush1.bf16.msra.mxu1 %v7982_v63  ;;  %v5329_v58 = vld [vmem:[%s15050_s14 + $0x78] sm:$0xff] }
 0x972   :  { %v7992_v30 = vpack.c.bf16 %v5329_v58, %v5327_v32 }
 0x9c3   :  { %v6808_v21 = vpop.f32.mrb[22].mxu1 }
 0x9c4   :  { %v6809_v19 = vpop.f32.mrb[23].mxu1 }
 0x9c5   :  { %v6810_v9 = vadd.f32 %v6809_v19, %v6808_v21  ;;  %v16517_v21 = vld [vmem:[#allocation33_spill] sm:$0xff] }
 0x9c6   :  { %v16524_v19 = vld [vmem:[#allocation69_spill] sm:$0xff] }
 0xa03   :  { %v6843_v34 = vpop.f32.mrb[24].mxu1 }
 0xa04   :  { %v6844_v12 = vpop.f32.mrb[25].mxu1 }
 0xa05   :  { %v6845_v44 = vadd.f32 %v6844_v12, %v6843_v34  ;;  %v16519_v12 = vld [vmem:[#allocation37_spill] sm:$0xff]  ;;  %v16525_v34 = vld [vmem:[#allocation71_spill] sm:$0xff] }
 0xa07   :  { %v4552_v7 = vadd.f32 %v6845_v44, %v6810_v9  ;;  %v16518_v9 = vld [vmem:[#allocation31_spill] sm:$0xff]  ;;  %v16526_v44 = vld [vmem:[#allocation74_spill] sm:$0xff] }
 0xa09   :  { %v13470_v36 = vmul.f32 %v4552_v7, %v16492_v1  ;;  %v16520_v7 = vld [vmem:[#allocation13_spill] sm:$0xff] }
 0xa0b   :  { %v13474_v3 = vrot.slane %v13470_v36, %v16493_v35 }
 0xa23   :  { %v6878_v38 = vpop.f32.mrb[26].mxu1 }
 0xa24   :  { %v6879_v13 = vpop.f32.mrb[27].mxu1 }
 0xa25   :  { %v6880_v55 = vadd.f32 %v6879_v13, %v6878_v38  ;;  %v5319_v38 = vld [vmem:[%s15050_s14 + $0x28] sm:$0xff]  ;;  %v5321_v13 = vld [vmem:[%s15050_s14 + $0x38] sm:$0xff] }
 0xa26   :  { %v7984_v46 = vpack.c.bf16 %v5321_v13, %v5319_v38  ;;  %v5322_v38 = vld [vmem:[%s15050_s14 + $0x40] sm:$0xff]  ;;  %v5324_v13 = vld [vmem:[%s15050_s14 + $0x50] sm:$0xff] }
 0xa27   :  { %v7990_v63 = vpack.c.bf16 %v5324_v13, %v5322_v38  ;;  %v16551_v13 = vsub.f32 %v16494_v15, %v13474_v3 }
 0xa28   :  { %7985 = vmatprep.subr.bf16.mxu1 %v7984_v46  ;;  %v5328_v46 = vld [vmem:[%s15050_s14 + $0x70] sm:$0xff] }
 0xa29   :  { %7987 = vmatpush1.bf16.msra.mxu1 %v7986_v59  ;;  %v7994_v24 = vpack.c.bf16 %v5328_v46, %v5326_v28  ;;  %v4761_v59 = vmul.f32 %v13470_v36, %v13470_v36  ;;  %v16557_v28 = vsub.f32 %v16500_v62, %v13474_v3  ;;  %v16558_v46 = vsub.f32 %v16501_v18, %v13474_v3 }
 0xa2a   :  { %7989 = vmatprep.subr.bf16.mxu1 %v7988_v47  ;;  %v13659_v47 = vld [vmem:[%s15048_s12] ss:$0 sm:$0xff] }
 0xa2b   :  { %v13665_v32 = vmul.f32 %v13659_v47, %v16551_v13  ;;  %v16563_v13 = vsub.f32 %v16506_v8, %v13474_v3 }
 0xa2d   :  { %7991 = vmatpush1.bf16.msra.mxu1 %v7990_v63  ;;  %v16555_v63 = vsub.f32 %v16498_v23, %v13474_v3  ;;  %v13707_v23 = vmul.f32 %v13659_v47, %v16558_v46  ;;  %v16571_v46 = vsub.f32 %v16514_v31, %v13474_v3 }
 0xa2e   :  { %7993 = vmatprep.subr.bf16.mxu1 %v7992_v30  ;;  %v16556_v30 = vsub.f32 %v16499_v57, %v13474_v3 }
 0xa31   :  { %7995 = vmatpush1.bf16.msra.mxu1 %v7994_v24  ;;  %v16560_v24 = vsub.f32 %v16503_v2, %v13474_v3  ;;  %v13737_v2 = vmul.f32 %v13659_v47, %v16563_v13  ;;  %v16577_v13 = vsub.f32 %v16520_v7, %v13474_v3 }
 0xa33   :  { %v13719_v62 = vmul.f32 %v13659_v47, %v16560_v24  ;;  %v16573_v24 = vsub.f32 %v16516_v54, %v13474_v3 }
 0xa43   :  { %v6913_v26 = vpop.f32.mrb[28].mxu1 }
 0xa44   :  { %v6914_v35 = vpop.f32.mrb[29].mxu1 }
 0xa45   :  { %v6915_v16 = vadd.f32 %v6914_v35, %v6913_v26  ;;  %v16552_v35 = vsub.f32 %v16495_v0, %v13474_v3  ;;  %v13689_v0 = vmul.f32 %v13659_v47, %v16555_v63  ;;  %v16559_v26 = vsub.f32 %v16502_v33, %v13474_v3 }
 0xa46   :  { %v16568_v63 = vsub.f32 %v16511_v29, %v13474_v3  ;;  %v13785_v29 = vmul.f32 %v13659_v47, %v16571_v46  ;;  %v16585_v46 = vsub.f32 %v16528_v25, %v13474_v3 }
 0xa47   :  { %v4756_v20 = vadd.f32 %v6915_v16, %v6880_v55  ;;  %v13671_v16 = vmul.f32 %v13659_v47, %v16552_v35  ;;  %v16554_v55 = vsub.f32 %v16497_v17, %v13474_v3  ;;  %v13701_v17 = vmul.f32 %v13659_v47, %v16557_v28 }
 0xa48   :  { %v13713_v57 = vmul.f32 %v13659_v47, %v16559_v26  ;;  %v16564_v35 = vsub.f32 %v16507_v50, %v13474_v3  ;;  %v16570_v28 = vsub.f32 %v16513_v48, %v13474_v3  ;;  %v16572_v26 = vsub.f32 %v16515_v52, %v13474_v3 }
 0xa49   :  { %v4760_v58 = vmul.f32 %v4756_v20, %v16492_v1  ;;  %v16553_v20 = vsub.f32 %v16496_v51, %v13474_v3  ;;  %v13683_v15 = vmul.f32 %v13659_v47, %v16554_v55  ;;  %v13695_v51 = vmul.f32 %v13659_v47, %v16556_v30 }
 0xa4a   :  { %v16567_v55 = vsub.f32 %v16510_v41, %v13474_v3  ;;  %v16569_v30 = vsub.f32 %v16512_v22, %v13474_v3  ;;  %v13779_v41 = vmul.f32 %v13659_v47, %v16570_v28  ;;  %v13791_v22 = vmul.f32 %v13659_v47, %v16572_v26 }
 0xa4b   :  { %v4762_v38 = vsub.f32 %v4760_v58, %v4761_v59  ;;  %v13677_v1 = vmul.f32 %v13659_v47, %v16553_v20  ;;  %v16561_v58 = vsub.f32 %v16504_v49, %v13474_v3  ;;  %v13743_v49 = vmul.f32 %v13659_v47, %v16564_v35 }
 0xa4c   :  { %v16565_v20 = vsub.f32 %v16508_v14, %v13474_v3  ;;  %v13761_v50 = vmul.f32 %v13659_v47, %v16567_v55  ;;  %v13767_v14 = vmul.f32 %v13659_v47, %v16568_v63  ;;  %v13797_v48 = vmul.f32 %v13659_v47, %v16573_v24 }
 0xa4d   :  { %v4763_v36 = vmax.f32 %v4762_v38, 0.0  ;;  %v13725_v18 = vmul.f32 %v13659_v47, %v16561_v58  ;;  %v16562_v38 = vsub.f32 %v16505_v56, %v13474_v3  ;;  %v16575_v58 = vsub.f32 %v16518_v9, %v13474_v3 }
 0xa4e   :  { %v13749_v56 = vmul.f32 %v13659_v47, %v16565_v20  ;;  %v16578_v35 = vsub.f32 %v16521_v43, %v13474_v3  ;;  %v16579_v20 = vsub.f32 %v16522_v42, %v13474_v3  ;;  %v16581_v55 = vsub.f32 %v16524_v19, %v13474_v3 }
 0xa4f   :  { %v4902_v59 = vadd.f32 1e-05, %v4763_v36  ;;  %v13731_v33 = vmul.f32 %v13659_v47, %v16562_v38  ;;  %v16566_v36 = vsub.f32 %v16509_v4, %v13474_v3  ;;  %v13773_v4 = vmul.f32 %v13659_v47, %v16569_v30 }
 0xa50   :  { %v13809_v52 = vmul.f32 %v13659_v47, %v16575_v58  ;;  %v16576_v38 = vsub.f32 %v16519_v12, %v13474_v3  ;;  %v13827_v9 = vmul.f32 %v13659_v47, %v16578_v35  ;;  %v13833_v12 = vmul.f32 %v13659_v47, %v16579_v20 }
 0xa51   :  { %v13755_v8 = vmul.f32 %v13659_v47, %v16566_v36  ;;  %8054 = vrsqrt.f32 %v4902_v59  ;;  %v16574_v59 = vsub.f32 %v16517_v21, %v13474_v3  ;;  %v13821_v21 = vmul.f32 %v13659_v47, %v16577_v13 }
 0xa52   :  { %v13815_v54 = vmul.f32 %v13659_v47, %v16576_v38  ;;  %v16580_v36 = vsub.f32 %v16523_v45, %v13474_v3  ;;  %v13845_v43 = vmul.f32 %v13659_v47, %v16581_v55  ;;  %v16582_v63 = vsub.f32 %v16525_v34, %v13474_v3 }
 0xa53   :  { %v13803_v31 = vmul.f32 %v13659_v47, %v16574_v59  ;;  %v16583_v30 = vsub.f32 %v16526_v44, %v13474_v3  ;;  %v16584_v28 = vsub.f32 %v16527_v6, %v13474_v3  ;;  %v13869_v34 = vmul.f32 %v13659_v47, %v16585_v46 }
 0xa54   :  { %v13839_v7 = vmul.f32 %v13659_v47, %v16580_v36  ;;  %v13851_v42 = vmul.f32 %v13659_v47, %v16582_v63  ;;  %v16586_v26 = vsub.f32 %v16529_v60, %v13474_v3  ;;  %v16587_v24 = vsub.f32 %v16530_v10, %v13474_v3  ;;  %v16596_v63 = vld [vmem:[#allocation26_spill] sm:$0xff] }
 0xa55   :  { %v13857_v45 = vmul.f32 %v13659_v47, %v16583_v30  ;;  %v13863_v19 = vmul.f32 %v13659_v47, %v16584_v28  ;;  %v16588_v59 = vsub.f32 %v16531_v39, %v13474_v3  ;;  %v16589_v58 = vsub.f32 %v16532_v27, %v13474_v3  ;;  %v16598_v28 = vld [vmem:[#allocation57_spill] sm:$0xff] }
 0xa56   :  { %v13875_v44 = vmul.f32 %v13659_v47, %v16586_v26  ;;  %v13881_v6 = vmul.f32 %v13659_v47, %v16587_v24  ;;  %v16590_v38 = vsub.f32 %v16533_v11, %v13474_v3  ;;  %v16591_v13 = vsub.f32 %v16534_v40, %v13474_v3  ;;  %v16600_v26 = vld [vmem:[#allocation39_spill] sm:$0xff] }
 0xa57   :  { %v13887_v25 = vmul.f32 %v13659_v47, %v16588_v59  ;;  %v13893_v60 = vmul.f32 %v13659_v47, %v16589_v58  ;;  %v16592_v35 = vsub.f32 %v16535_v61, %v13474_v3  ;;  %v16593_v20 = vsub.f32 %v13221_v53, %v13474_v3  ;;  %v16602_v59 = vld [vmem:[#allocation67_spill] sm:$0xff] }
 0xa58   :  { %v13899_v10 = vmul.f32 %v13659_v47, %v16590_v38  ;;  %v13905_v39 = vmul.f32 %v13659_v47, %v16591_v13  ;;  %v16594_v36 = vsub.f32 %v13215_v5, %v13474_v3  ;;  %v16595_v55 = vsub.f32 %v13237_v37, %v13474_v3  ;;  %v16604_v13 = vld [vmem:[#allocation61_spill] sm:$0xff] }
 0xa59   :  { %v13911_v27 = vmul.f32 %v13659_v47, %v16592_v35  ;;  %v13917_v11 = vmul.f32 %v13659_v47, %v16593_v20  ;;  %v16597_v30 = vsub.f32 %v16596_v63, %v13474_v3  ;;  %v16599_v46 = vsub.f32 %v16598_v28, %v13474_v3 }
 0xa5a   :  { %v13923_v40 = vmul.f32 %v13659_v47, %v16594_v36  ;;  %v13929_v61 = vmul.f32 %v13659_v47, %v16595_v55  ;;  %v16601_v24 = vsub.f32 %v16600_v26, %v13474_v3  ;;  %v16603_v58 = vsub.f32 %v16602_v59, %v13474_v3  ;;  %v16607_v36 = vld [vmem:[#allocation14_spill] sm:$0xff]  ;;  %v16613_v26 = vld [vmem:[#allocation16_spill] sm:$0xff] }
 0xa5b   :  { %v13935_v53 = vmul.f32 %v13659_v47, %v16597_v30  ;;  %v13941_v5 = vmul.f32 %v13659_v47, %v16599_v46  ;;  %v16605_v35 = vsub.f32 %v16604_v13, %v13474_v3  ;;  %v16608_v55 = vsub.f32 %v16607_v36, %v13474_v3  ;;  %v16610_v30 = vld [vmem:[#allocation63_spill] sm:$0xff]  ;;  %v16616_v13 = vld [vmem:[#allocation65_spill] sm:$0xff] }
 0xa5c   :  { %v13947_v37 = vmul.f32 %v13659_v47, %v16601_v24  ;;  %v13953_v38 = vmul.f32 %v13659_v47, %v16603_v58  ;;  %v16611_v28 = vsub.f32 %v16610_v30, %v13474_v3  ;;  %v16614_v24 = vsub.f32 %v16613_v26, %v13474_v3  ;;  %v8055_v58 = vpop.eup %8054 }
 0xa5d   :  { %v13959_v20 = vmul.f32 %v13659_v47, %v16605_v35  ;;  %v13965_v63 = vmul.f32 %v13659_v47, %v16608_v55  ;;  %v16617_v35 = vsub.f32 %v16616_v13, %v13474_v3  ;;  %v16619_v55 = vld [vmem:[#allocation58_spill] sm:$0xff] }
 0xa5e   :  { %v13971_v46 = vmul.f32 %v13659_v47, %v16611_v28  ;;  %v13977_v59 = vmul.f32 %v13659_v47, %v16614_v24  ;;  %v16622_v28 = vld [vmem:[#allocation18_spill] sm:$0xff]  ;;  %v16625_v24 = vld [vmem:[#allocation53_spill] sm:$0xff] }
 0xa5f   :  { %16606 = vst [vmem:[#allocation84_spill] sm:$0xff] %v13959_v20  ;;  %16609 = vst [vmem:[#allocation11_spill] sm:$0xff] %v13965_v63  ;;  %v13983_v36 = vmul.f32 %v13659_v47, %v16617_v35  ;;  %v16620_v63 = vsub.f32 %v16619_v55, %v13474_v3  ;;  %v16628_v35 = vld [vmem:[#allocation68_spill] sm:$0xff]  ;;  %v16637_v20 = vld [vmem:[#allocation45_spill] sm:$0xff] }
 0xa60   :  { %16612 = vst [vmem:[#allocation9_spill] sm:$0xff] %v13971_v46  ;;  %16615 = vst [vmem:[#allocation40_spill] sm:$0xff] %v13977_v59  ;;  %v16623_v46 = vsub.f32 %v16622_v28, %v13474_v3  ;;  %v16626_v59 = vsub.f32 %v16625_v24, %v13474_v3 }
 0xa61   :  { %16618 = vst [vmem:[#allocation44_spill] sm:$0xff] %v13983_v36  ;;  %v13989_v30 = vmul.f32 %v13659_v47, %v16620_v63  ;;  %v16629_v36 = vsub.f32 %v16628_v35, %v13474_v3  ;;  %v16631_v63 = vld [vmem:[#allocation70_spill] sm:$0xff]  ;;  %v16638_v35 = vsub.f32 %v16637_v20, %v13474_v3 }
 0xa62   :  { %v13995_v26 = vmul.f32 %v13659_v47, %v16623_v46  ;;  %v14001_v13 = vmul.f32 %v13659_v47, %v16626_v59  ;;  %v16634_v46 = vld [vmem:[#allocation19_spill] sm:$0xff]  ;;  %v16636_v59 = vld [vmem:[#allocation8_spill] sm:$0xff] }
 0xa63   :  { %16621 = vst [vmem:[#allocation73_spill] sm:$0xff] %v13989_v30  ;;  %v14007_v55 = vmul.f32 %v13659_v47, %v16629_v36  ;;  %v16632_v30 = vsub.f32 %v16631_v63, %v13474_v3  ;;  %v14028_v36 = vmul.f32 %v13659_v47, %v16638_v35 }
 0xa64   :  { %16624 = vst [vmem:[#allocation51_spill] sm:$0xff] %v13995_v26  ;;  %16627 = vst [vmem:[#allocation20_spill] sm:$0xff] %v14001_v13  ;;  %v16635_v26 = vsub.f32 %v16634_v46, %v13474_v3  ;;  %v14022_v13 = vrot.slane %v8055_v58, %v16636_v59  ;;  %v16643_v58 = vld [vmem:[#allocation12_spill] sm:$0xff] }
 0xa65   :  { %16630 = vst [vmem:[#allocation22_spill] sm:$0xff] %v14007_v55  ;;  %v14013_v28 = vmul.f32 %v13659_v47, %v16632_v30  ;;  %v16639_v55 = vld [vmem:[#allocation72_spill] sm:$0xff]  ;;  %v16644_v59 = vsub.f32 %v16643_v58, %v13474_v3 }
 0xa66   :  { %v14019_v24 = vmul.f32 %v13659_v47, %v16635_v26  ;;  %v16640_v63 = vsub.f32 %v16639_v55, %v13474_v3  ;;  %v14050_v35 = vmul.f32 %v14022_v13, %v13665_v32  ;;  %v14054_v55 = vmul.f32 %v14022_v13, %v13671_v16 }
 0xa67   :  { %16633 = vst [vmem:[#allocation25_spill] sm:$0xff] %v14013_v28  ;;  %v16641_v28 = vld [vmem:[#allocation85_spill] sm:$0xff]  ;;  %v14046_v20 = vmul.f32 %v13659_v47, %v16644_v59  ;;  %v14074_v32 = vmul.f32 %v14022_v13, %v13701_v17  ;;  %v14078_v16 = vmul.f32 %v14022_v13, %v13707_v23  ;;  %v14098_v17 = vmul.f32 %v14022_v13, %v13737_v2  ;;  %v16650_v59 = vld [vmem:[#allocation11_spill] sm:$0xff]  ;;  %v16654_v58 = vld [vmem:[#allocation40_spill] sm:$0xff] }
 0xa68   :  { %v14034_v30 = vmul.f32 %v13659_v47, %v16640_v63  ;;  %v16642_v46 = vsub.f32 %v16641_v28, %v13474_v3  ;;  %v14058_v28 = vmul.f32 %v14022_v13, %v13677_v1  ;;  %v14062_v63 = vmul.f32 %v14022_v13, %v13683_v15 }
 0xa69   :  { %v14066_v3 = vmul.f32 %v14022_v13, %v13689_v0  ;;  %v14082_v1 = vmul.f32 %v14022_v13, %v13713_v57  ;;  %v14086_v15 = vmul.f32 %v14022_v13, %v13719_v62  ;;  %v14090_v0 = vmul.f32 %v14022_v13, %v13725_v18 }
 0xa6a   :  { %v14040_v26 = vmul.f32 %v13659_v47, %v16642_v46  ;;  %v14070_v47 = vmul.f32 %v14022_v13, %v13695_v51  ;;  %v14094_v51 = vmul.f32 %v14022_v13, %v13731_v33  ;;  %v14102_v23 = vmul.f32 %v14022_v13, %v13743_v49  ;;  %v16652_v46 = vld [vmem:[#allocation9_spill] sm:$0xff] }
 0xa6b   :  { %v14106_v57 = vmul.f32 %v14022_v13, %v13749_v56  ;;  %v14110_v62 = vmul.f32 %v14022_v13, %v13755_v8  ;;  %v14114_v18 = vmul.f32 %v14022_v13, %v13761_v50  ;;  %v14118_v33 = vmul.f32 %v14022_v13, %v13767_v14 }
 0xa6c   :  { %v14122_v2 = vmul.f32 %v14022_v13, %v13773_v4  ;;  %v14126_v49 = vmul.f32 %v14022_v13, %v13779_v41  ;;  %v14130_v56 = vmul.f32 %v14022_v13, %v13785_v29  ;;  %v14134_v8 = vmul.f32 %v14022_v13, %v13791_v22 }
 0xa6d   :  { %v14138_v50 = vmul.f32 %v14022_v13, %v13797_v48  ;;  %v14142_v14 = vmul.f32 %v14022_v13, %v13803_v31  ;;  %v14146_v4 = vmul.f32 %v14022_v13, %v13809_v52  ;;  %v14150_v41 = vmul.f32 %v14022_v13, %v13815_v54 }
 0xa6e   :  { %v14154_v29 = vmul.f32 %v14022_v13, %v13821_v21  ;;  %v14158_v22 = vmul.f32 %v14022_v13, %v13827_v9  ;;  %v14162_v48 = vmul.f32 %v14022_v13, %v13833_v12  ;;  %v14166_v31 = vmul.f32 %v14022_v13, %v13839_v7 }
 0xa6f   :  { %v14170_v52 = vmul.f32 %v14022_v13, %v13845_v43  ;;  %v14174_v54 = vmul.f32 %v14022_v13, %v13851_v42  ;;  %v14178_v21 = vmul.f32 %v14022_v13, %v13857_v45  ;;  %v14182_v9 = vmul.f32 %v14022_v13, %v13863_v19 }
 0xa70   :  { %v14186_v12 = vmul.f32 %v14022_v13, %v13869_v34  ;;  %v14190_v7 = vmul.f32 %v14022_v13, %v13875_v44  ;;  %v14194_v43 = vmul.f32 %v14022_v13, %v13881_v6  ;;  %v14198_v42 = vmul.f32 %v14022_v13, %v13887_v25 }
 0xa71   :  { %v14202_v45 = vmul.f32 %v14022_v13, %v13893_v60  ;;  %v14206_v19 = vmul.f32 %v14022_v13, %v13899_v10  ;;  %v14210_v34 = vmul.f32 %v14022_v13, %v13905_v39  ;;  %v14214_v44 = vmul.f32 %v14022_v13, %v13911_v27 }
 0xa72   :  { %v14218_v6 = vmul.f32 %v14022_v13, %v13917_v11  ;;  %v14222_v25 = vmul.f32 %v14022_v13, %v13923_v40  ;;  %v14226_v60 = vmul.f32 %v14022_v13, %v13929_v61  ;;  %v14230_v10 = vmul.f32 %v14022_v13, %v13935_v53  ;;  %v16648_v40 = vld [vmem:[#allocation84_spill] sm:$0xff] }
 0xa73   :  { %v14234_v39 = vmul.f32 %v14022_v13, %v13941_v5  ;;  %v14238_v27 = vmul.f32 %v14022_v13, %v13947_v37  ;;  %v14242_v11 = vmul.f32 %v14022_v13, %v13953_v38  ;;  %v14246_v61 = vmul.f32 %v14022_v13, %v16648_v40  ;;  %v14259_v37 = vld [vmem:[%s15049_s13] ss:$0 sm:$0xff] }
 0xa74   :  { %v14250_v53 = vmul.f32 %v14022_v13, %v16650_v59  ;;  %v14254_v5 = vmul.f32 %v14022_v13, %v16652_v46  ;;  %v14263_v38 = vmul.f32 %v14022_v13, %v16654_v58 }
 0xa75   :  { %16645 = vst [vmem:[#allocation24_spill] sm:$0xff] %v14234_v39  ;;  %16646 = vst [vmem:[#allocation35_spill] sm:$0xff] %v14238_v27  ;;  %v16660_v39 = vld [vmem:[#allocation22_spill] sm:$0xff] }
 0xa76   :  { %16647 = vst [vmem:[#allocation59_spill] sm:$0xff] %v14242_v11  ;;  %16649 = vst [vmem:[#allocation62_spill] sm:$0xff] %v14246_v61  ;;  %v16656_v11 = vld [vmem:[#allocation44_spill] sm:$0xff]  ;;  %v16657_v61 = vld [vmem:[#allocation73_spill] sm:$0xff]  ;;  %v14283_v58 = vmul.f32 %v14022_v13, %v16660_v39  ;;  %v14303_v39 = vmul.f32 %v14022_v13, %v14040_v26  ;;  %v14323_v26 = vadd.f32 %v14259_v37, %v14062_v63 }
 0xa77   :  { %16651 = vst [vmem:[#allocation64_spill] sm:$0xff] %v14250_v53  ;;  %16653 = vst [vmem:[#allocation47_spill] sm:$0xff] %v14254_v5  ;;  %v14267_v40 = vmul.f32 %v14022_v13, %v16656_v11  ;;  %v14271_v59 = vmul.f32 %v14022_v13, %v16657_v61  ;;  %v16658_v53 = vld [vmem:[#allocation51_spill] sm:$0xff]  ;;  %v16659_v5 = vld [vmem:[#allocation20_spill] sm:$0xff]  ;;  %v14291_v61 = vmul.f32 %v14022_v13, %v14019_v24 }
 0xa78   :  { %16655 = vst [vmem:[#allocation78_spill] sm:$0xff] %v14263_v38  ;;  %v14275_v46 = vmul.f32 %v14022_v13, %v16658_v53  ;;  %v14279_v27 = vmul.f32 %v14022_v13, %v16659_v5  ;;  %v16661_v38 = vld [vmem:[#allocation25_spill] sm:$0xff]  ;;  %v14295_v53 = vmul.f32 %v14022_v13, %v14028_v36  ;;  %v14299_v5 = vmul.f32 %v14022_v13, %v14034_v30 }
 0xa79   :  { %v14287_v11 = vmul.f32 %v14022_v13, %v16661_v38  ;;  %v14307_v38 = vmul.f32 %v14022_v13, %v14046_v20  ;;  %v14311_v24 = vadd.f32 %v14259_v37, %v14050_v35  ;;  %v14315_v36 = vadd.f32 %v14259_v37, %v14054_v55 }
 0xa7a   :  { %v14319_v30 = vadd.f32 %v14259_v37, %v14058_v28  ;;  %v14327_v13 = vadd.f32 %v14259_v37, %v14066_v3  ;;  %v14331_v20 = vadd.f32 %v14259_v37, %v14070_v47  ;;  %v14335_v35 = vadd.f32 %v14259_v37, %v14074_v32 }
 0xa7b   :  { %v14339_v55 = vadd.f32 %v14259_v37, %v14078_v16  ;;  %v14343_v28 = vadd.f32 %v14259_v37, %v14082_v1  ;;  %v14347_v63 = vadd.f32 %v14259_v37, %v14086_v15  ;;  %v14351_v3 = vadd.f32 %v14259_v37, %v14090_v0 }
 0xa7c   :  { %v14355_v47 = vadd.f32 %v14259_v37, %v14094_v51  ;;  %v14359_v32 = vadd.f32 %v14259_v37, %v14098_v17  ;;  %v14363_v16 = vadd.f32 %v14259_v37, %v14102_v23  ;;  %v14367_v1 = vadd.f32 %v14259_v37, %v14106_v57 }
 0xa7d   :  { %v14371_v15 = vadd.f32 %v14259_v37, %v14110_v62  ;;  %v14375_v0 = vadd.f32 %v14259_v37, %v14114_v18  ;;  %v14379_v51 = vadd.f32 %v14259_v37, %v14118_v33  ;;  %v14383_v17 = vadd.f32 %v14259_v37, %v14122_v2 }
 0xa7e   :  { %v14387_v23 = vadd.f32 %v14259_v37, %v14126_v49  ;;  %v14391_v57 = vadd.f32 %v14259_v37, %v14130_v56  ;;  %v14395_v62 = vadd.f32 %v14259_v37, %v14134_v8  ;;  %v14399_v18 = vadd.f32 %v14259_v37, %v14138_v50 }
 0xa7f   :  { %v14403_v33 = vadd.f32 %v14259_v37, %v14142_v14  ;;  %v14407_v2 = vadd.f32 %v14259_v37, %v14146_v4  ;;  %v14411_v49 = vadd.f32 %v14259_v37, %v14150_v41  ;;  %v14415_v56 = vadd.f32 %v14259_v37, %v14154_v29 }
 0xa80   :  { %v14419_v8 = vadd.f32 %v14259_v37, %v14158_v22  ;;  %v14423_v50 = vadd.f32 %v14259_v37, %v14162_v48  ;;  %v14427_v14 = vadd.f32 %v14259_v37, %v14166_v31  ;;  %v14431_v4 = vadd.f32 %v14259_v37, %v14170_v52 }
 0xa81   :  { %v14435_v41 = vadd.f32 %v14259_v37, %v14174_v54  ;;  %v14439_v29 = vadd.f32 %v14259_v37, %v14178_v21  ;;  %v14443_v22 = vadd.f32 %v14259_v37, %v14182_v9  ;;  %v14447_v48 = vadd.f32 %v14259_v37, %v14186_v12 }
 0xa82   :  { %v14451_v31 = vadd.f32 %v14259_v37, %v14190_v7  ;;  %v14455_v52 = vadd.f32 %v14259_v37, %v14194_v43  ;;  %v14459_v54 = vadd.f32 %v14259_v37, %v14198_v42  ;;  %v14463_v21 = vadd.f32 %v14259_v37, %v14202_v45 }
 0xa83   :  { %16662 = vst [vmem:[#allocation76_spill] sm:$0xff] %v14435_v41  ;;  %16663 = vst [vmem:[#allocation34_spill] sm:$0xff] %v14439_v29  ;;  %v14467_v9 = vadd.f32 %v14259_v37, %v14206_v19  ;;  %v14471_v12 = vadd.f32 %v14259_v37, %v14210_v34  ;;  %v14475_v7 = vadd.f32 %v14259_v37, %v14214_v44  ;;  %v16672_v34 = vld [vmem:[#allocation24_spill] sm:$0xff] }
 0xa84   :  { %16664 = vst [vmem:[#allocation83_spill] sm:$0xff] %v14443_v22  ;;  %16665 = vst [vmem:[#allocation66_spill] sm:$0xff] %v14447_v48  ;;  %v14479_v43 = vadd.f32 %v14259_v37, %v14218_v6  ;;  %v14483_v42 = vadd.f32 %v14259_v37, %v14222_v25  ;;  %v14487_v45 = vadd.f32 %v14259_v37, %v14226_v60 }
 0xa85   :  { %16666 = vst [vmem:[#allocation36_spill] sm:$0xff] %v14451_v31  ;;  %16667 = vst [vmem:[#allocation38_spill] sm:$0xff] %v14475_v7  ;;  %v14491_v19 = vadd.f32 %v14259_v37, %v14230_v10  ;;  %v14495_v44 = vadd.f32 %v14259_v37, %v16672_v34  ;;  %v16674_v7 = vld [vmem:[#allocation35_spill] sm:$0xff] }
 0xa86   :  { %16668 = vst [vmem:[#allocation10_spill] sm:$0xff] %v14479_v43  ;;  %16669 = vst [vmem:[#allocation27_spill] sm:$0xff] %v14483_v42  ;;  %v14499_v6 = vadd.f32 %v14259_v37, %v16674_v7  ;;  %v16676_v43 = vld [vmem:[#allocation59_spill] sm:$0xff]  ;;  %v16678_v42 = vld [vmem:[#allocation62_spill] sm:$0xff] }
 0xa87   :  { %16670 = vst [vmem:[#allocation28_spill] sm:$0xff] %v14487_v45  ;;  %16671 = vst [vmem:[#allocation29_spill] sm:$0xff] %v14491_v19  ;;  %v14503_v25 = vadd.f32 %v14259_v37, %v16676_v43  ;;  %v14507_v60 = vadd.f32 %v14259_v37, %v16678_v42  ;;  %v16680_v45 = vld [vmem:[#allocation64_spill] sm:$0xff]  ;;  %v16682_v19 = vld [vmem:[#allocation47_spill] sm:$0xff]  ;;  %v14523_v43 = vadd.f32 %v14259_v37, %v14267_v40 }
 0xa88   :  { %16673 = vst [vmem:[#allocation30_spill] sm:$0xff] %v14495_v44  ;;  %16675 = vst [vmem:[#allocation48_spill] sm:$0xff] %v14499_v6  ;;  %v14511_v10 = vadd.f32 %v14259_v37, %v16680_v45  ;;  %v14515_v34 = vadd.f32 %v14259_v37, %v16682_v19  ;;  %v16684_v44 = vld [vmem:[#allocation78_spill] sm:$0xff]  ;;  %v14527_v42 = vadd.f32 %v14259_v37, %v14271_v59 }
 0xa89   :  { %16677 = vst [vmem:[#allocation43_spill] sm:$0xff] %v14503_v25  ;;  %16679 = vst [vmem:[#allocation52_spill] sm:$0xff] %v14507_v60  ;;  %v14519_v7 = vadd.f32 %v14259_v37, %v16684_v44  ;;  %v14531_v45 = vadd.f32 %v14259_v37, %v14275_v46  ;;  %v14535_v19 = vadd.f32 %v14259_v37, %v14279_v27 }
 0xa8a   :  { %16681 = vst [vmem:[#allocation46_spill] sm:$0xff] %v14511_v10  ;;  %16683 = vst [vmem:[#allocation56_spill] sm:$0xff] %v14515_v34  ;;  %v14539_v44 = vadd.f32 %v14259_v37, %v14283_v58  ;;  %v14543_v40 = vadd.f32 %v14259_v37, %v14287_v11  ;;  %v14547_v59 = vadd.f32 %v14259_v37, %v14291_v61 }
 0xa8b   :  { %v14551_v46 = vadd.f32 %v14259_v37, %v14295_v53  ;;  %v14555_v27 = vadd.f32 %v14259_v37, %v14299_v5  ;;  %v14559_v58 = vadd.f32 %v14259_v37, %v14303_v39  ;;  %v14563_v11 = vadd.f32 %v14259_v37, %v14307_v38 }
 0xa8c   :  { %16685 = vst [vmem:[#allocation50_spill] sm:$0xff] %v14543_v40  ;;  %16686 = vst [vmem:[#allocation60_spill] sm:$0xff] %v14547_v59  ;;  %v16690_v40 = vld [vmem:[#allocation38_spill] sm:$0xff]  ;;  %v16697_v25 = vmov %v14547_v59  ;;  %v16704_v38 = vmax.f32 %v14323_v26, 0.0  ;;  %v16705_v59 = vmax.f32 %v14327_v13, 0.0  ;;  %v16710_v13 = vmax.f32 %v14347_v63, 0.0 }
 0xa8d   :  { %16687 = vst [vmem:[#allocation54_spill] sm:$0xff] %v14551_v46  ;;  %16688 = vst [vmem:[#allocation80_spill] sm:$0xff] %v14555_v27  ;;  %v16691_v41 = vld [vmem:[#allocation10_spill] sm:$0xff]  ;;  %v16692_v29 = vld [vmem:[#allocation27_spill] sm:$0xff]  ;;  %v16698_v60 = vmov %v14551_v46  ;;  %v16700_v34 = vmov %v14559_v58  ;;  %v16701_v46 = vmax.f32 %v14311_v24, 0.0  ;;  %v16702_v27 = vmax.f32 %v14315_v36, 0.0 }
 0xa8e   :  { %16689 = vst [vmem:[#allocation32_spill] sm:$0xff] %v14559_v58  ;;  %v16693_v22 = vld [vmem:[#allocation28_spill] sm:$0xff]  ;;  %v16694_v48 = vld [vmem:[#allocation29_spill] sm:$0xff]  ;;  %v16703_v58 = vmax.f32 %v14319_v30, 0.0  ;;  %v5111_v61 = vsel %vm1463_vm5, %v16704_v38, -inf  ;;  %v5119_v53 = vsel %vm1463_vm5, %v16705_v59, -inf }
 0xa8f   :  { %v16695_v31 = vld [vmem:[#allocation30_spill] sm:$0xff]  ;;  %v5106_v5 = vsel %vm1463_vm5, %v16701_v46, -inf  ;;  %v5107_v39 = vsel %vm1463_vm5, %v16702_v27, -inf  ;;  %v16706_v24 = vmax.f32 %v14331_v20, 0.0  ;;  %v16707_v36 = vmax.f32 %v14335_v35, 0.0 }
 0xa90   :  { %v5109_v37 = vsel %vm1463_vm5, %v16703_v58, -inf  ;;  %v5108_v10 = vmax.f32 %v5106_v5, %v5107_v39  ;;  %v16708_v58 = vmax.f32 %v14339_v55, 0.0  ;;  %v16709_v38 = vmax.f32 %v14343_v28, 0.0 }
 0xa91   :  { %v5120_v46 = vsel %vm1463_vm5, %v16706_v24, -inf  ;;  %v5122_v27 = vsel %vm1463_vm5, %v16707_v36, -inf  ;;  %v5133_v59 = vsel %vm1463_vm5, %v16710_v13, -inf  ;;  %v16711_v24 = vmax.f32 %v14351_v3, 0.0 }
 0xa92   :  { %v5121_v30 = vmax.f32 %v5119_v53, %v5120_v46  ;;  %v5124_v26 = vsel %vm1463_vm5, %v16708_v58, -inf  ;;  %v5132_v5 = vsel %vm1463_vm5, %v16709_v38, -inf  ;;  %v5110_v20 = vmax.f32 %v5108_v10, %v5109_v37 }
 0xa93   :  { %v16696_v6 = vld [vmem:[#allocation50_spill] sm:$0xff]  ;;  %v5134_v39 = vmax.f32 %v5132_v5, %v5133_v59  ;;  %v5135_v35 = vsel %vm1463_vm5, %v16711_v24, -inf  ;;  %v16712_v53 = vmax.f32 %v14355_v47, 0.0  ;;  %v16713_v36 = vmax.f32 %v14359_v32, 0.0 }
 0xa94   :  { %v5123_v46 = vmax.f32 %v5121_v30, %v5122_v27  ;;  %v16714_v58 = vmax.f32 %v14363_v16, 0.0  ;;  %v16715_v10 = vmax.f32 %v14367_v1, 0.0  ;;  %v5112_v3 = vmax.f32 %v5110_v20, %v5111_v61 }
 0xa95   :  { %v5137_v55 = vsel %vm1463_vm5, %v16712_v53, -inf  ;;  %v5145_v28 = vsel %vm1463_vm5, %v16713_v36, -inf  ;;  %v5136_v38 = vmax.f32 %v5134_v39, %v5135_v35  ;;  %v16716_v47 = vmax.f32 %v14371_v15, 0.0 }
 0xa96   :  { %v5146_v63 = vsel %vm1463_vm5, %v16714_v58, -inf  ;;  %v5148_v37 = vsel %vm1463_vm5, %v16715_v10, -inf  ;;  %v5125_v27 = vmax.f32 %v5123_v46, %v5124_v26  ;;  %v16717_v32 = vmax.f32 %v14375_v0, 0.0 }
 0xa97   :  { %v5147_v5 = vmax.f32 %v5145_v28, %v5146_v63  ;;  %v5150_v13 = vsel %vm1463_vm5, %v16716_v47, -inf  ;;  %v16718_v16 = vmax.f32 %v14379_v51, 0.0  ;;  %v16719_v1 = vmax.f32 %v14383_v17, 0.0 }
 0xa98   :  { %v5158_v30 = vsel %vm1463_vm5, %v16717_v32, -inf  ;;  %v5113_v61 = vrot.slane %v5112_v3, 4  ;;  %v5138_v20 = vmax.f32 %v5136_v38, %v5137_v55  ;;  %v5126_v15 = vrot.slane %v5125_v27, 4 }
 0xa99   :  { %v5159_v59 = vsel %vm1463_vm5, %v16718_v16, -inf  ;;  %v5161_v24 = vsel %vm1463_vm5, %v16719_v1, -inf  ;;  %v5149_v39 = vmax.f32 %v5147_v5, %v5148_v37  ;;  %v16720_v53 = vmax.f32 %v14387_v23, 0.0 }
 0xa9a   :  { %v5160_v35 = vmax.f32 %v5158_v30, %v5159_v59  ;;  %v16721_v0 = vmax.f32 %v14391_v57, 0.0  ;;  %v16722_v51 = vmax.f32 %v14395_v62, 0.0  ;;  %v5114_v17 = vmax.f32 %v5112_v3, %v5113_v61 }
 0xa9b   :  { %v5163_v26 = vsel %vm1463_vm5, %v16720_v53, -inf  ;;  %v5139_v28 = vrot.slane %v5138_v20, 4  ;;  %v5151_v58 = vmax.f32 %v5149_v39, %v5150_v13  ;;  %v5127_v55 = vmax.f32 %v5125_v27, %v5126_v15 }
 0xa9c   :  { %v5171_v46 = vsel %vm1463_vm5, %v16721_v0, -inf  ;;  %v5172_v36 = vsel %vm1463_vm5, %v16722_v51, -inf  ;;  %v5162_v63 = vmax.f32 %v5160_v35, %v5161_v24  ;;  %v16723_v37 = vmax.f32 %v14399_v18, 0.0 }
 0xa9d   :  { %v5173_v10 = vmax.f32 %v5171_v46, %v5172_v36  ;;  %v16724_v38 = vmax.f32 %v14403_v33, 0.0  ;;  %v5115_v5 = vrot.slane %v5114_v17, 2  ;;  %v5140_v47 = vmax.f32 %v5138_v20, %v5139_v28 }
 0xa9e   :  { %v5174_v23 = vsel %vm1463_vm5, %v16723_v37, -inf  ;;  %v5152_v32 = vrot.slane %v5151_v58, 4  ;;  %v5164_v62 = vmax.f32 %v5162_v63, %v5163_v26  ;;  %v5128_v30 = vrot.slane %v5127_v55, 2 }
 0xa9f   :  { %v5176_v57 = vsel %vm1463_vm5, %v16724_v38, -inf  ;;  %v5175_v16 = vmax.f32 %v5173_v10, %v5174_v23  ;;  %v16725_v3 = vmax.f32 %v14407_v2, 0.0  ;;  %v16726_v27 = vmax.f32 %v14411_v49, 0.0 }
 0xaa0   :  { %v5116_v59 = vmax.f32 %v5114_v17, %v5115_v5  ;;  %v5141_v1 = vrot.slane %v5140_v47, 2  ;;  %v5153_v24 = vmax.f32 %v5151_v58, %v5152_v32  ;;  %v5165_v33 = vrot.slane %v5164_v62, 4 }
 0xaa1   :  { %v5184_v13 = vsel %vm1463_vm5, %v16725_v3, -inf  ;;  %v5185_v18 = vsel %vm1463_vm5, %v16726_v27, -inf  ;;  %v5129_v61 = vmax.f32 %v5127_v55, %v5128_v30  ;;  %v5177_v39 = vmax.f32 %v5175_v16, %v5176_v57  ;;  %v16732_v3 = vld [vmem:[#allocation76_spill] sm:$0xff]  ;;  %v16734_v27 = vld [vmem:[#allocation34_spill] sm:$0xff] }
 0xaa2   :  { %v5186_v35 = vmax.f32 %v5184_v13, %v5185_v18  ;;  %v16727_v20 = vmax.f32 %v14415_v56, 0.0  ;;  %v5117_v53 = vrot.slane %v5116_v59, 1  ;;  %v5142_v26 = vmax.f32 %v5140_v47, %v5141_v1  ;;  %v16736_v1 = vld [vmem:[#allocation83_spill] sm:$0xff] }
 0xaa3   :  { %v5154_v2 = vrot.slane %v5153_v24, 2  ;;  %v14710_v0 = vmax.f32 %v5164_v62, %v5165_v33  ;;  %v5130_v46 = vrot.slane %v5129_v61, 1  ;;  %v5178_v49 = vrot.slane %v5177_v39, 4  ;;  %v16738_v33 = vld [vmem:[#allocation66_spill] sm:$0xff] }
 0xaa4   :  { %v5187_v15 = vsel %vm1463_vm5, %v16727_v20, -inf  ;;  %v16728_v36 = vmax.f32 %v14419_v8, 0.0  ;;  %v14715_v28 = vmax.f32 %v5116_v59, %v5117_v53  ;;  %v5143_v58 = vrot.slane %v5142_v26, 1 }
 0xaa5   :  { %v5188_v51 = vmax.f32 %v5186_v35, %v5187_v15  ;;  %v14717_v63 = vmax.f32 %v5153_v24, %v5154_v2  ;;  %v5167_v56 = vrot.slane %v14710_v0, 2  ;;  %v14720_v55 = vmax.f32 %v5129_v61, %v5130_v46 }
 0xaa6   :  { %v5189_v17 = vsel %vm1463_vm5, %v16728_v36, -inf  ;;  %v14722_v10 = vmax.f32 %v5177_v39, %v5178_v49  ;;  %v16729_v23 = vmax.f32 %v14423_v50, 0.0  ;;  %v14729_v8 = vmax.f32 %v5142_v26, %v5143_v58  ;;  %v16740_v39 = vld [vmem:[#allocation36_spill] sm:$0xff] }
 0xaa7   :  { %v14724_v37 = vmax.f32 %v5188_v51, %v5189_v17  ;;  %v5156_v57 = vrot.slane %v14717_v63, 1  ;;  %v16730_v5 = vmax.f32 %v14427_v14, 0.0  ;;  %v16731_v32 = vmax.f32 %v14431_v4, 0.0 }
 0xaa8   :  { %v5197_v38 = vsel %vm1463_vm5, %v16729_v23, -inf  ;;  %v16733_v13 = vmax.f32 %v16732_v3, 0.0  ;;  %v16735_v18 = vmax.f32 %v16734_v27, 0.0  ;;  %v16737_v24 = vmax.f32 %v16736_v1, 0.0 }
 0xaa9   :  { %v5198_v47 = vsel %vm1463_vm5, %v16730_v5, -inf  ;;  %v5200_v62 = vsel %vm1463_vm5, %v16731_v32, -inf  ;;  %v5191_v30 = vrot.slane %v14724_v37, 4  ;;  %v16739_v61 = vmax.f32 %v16738_v33, 0.0  ;;  %v16753_v33 = vld [vmem:[#allocation48_spill] sm:$0xff] }
 0xaaa   :  { %v5199_v16 = vmax.f32 %v5197_v38, %v5198_v47  ;;  %v5202_v50 = vsel %vm1463_vm5, %v16733_v13, -inf  ;;  %v5210_v59 = vsel %vm1463_vm5, %v16735_v18, -inf  ;;  %v5211_v14 = vsel %vm1463_vm5, %v16737_v24, -inf }
 0xaab   :  { %v5213_v4 = vsel %vm1463_vm5, %v16739_v61, -inf  ;;  %v16741_v35 = vmax.f32 %v16740_v39, 0.0  ;;  %v16742_v15 = vmax.f32 %v14455_v52, 0.0  ;;  %v5212_v2 = vmax.f32 %v5210_v59, %v5211_v14 }
 0xaac   :  { %v5201_v26 = vmax.f32 %v5199_v16, %v5200_v62  ;;  %v16743_v46 = vmax.f32 %v14459_v54, 0.0  ;;  %v16744_v51 = vmax.f32 %v14463_v21, 0.0  ;;  %v16745_v58 = vmax.f32 %v14467_v9, 0.0 }
 0xaad   :  { %v5215_v20 = vsel %vm1463_vm5, %v16741_v35, -inf  ;;  %v5223_v53 = vsel %vm1463_vm5, %v16742_v15, -inf  ;;  %v16746_v38 = vmax.f32 %v14471_v12, 0.0  ;;  %v16747_v5 = vmax.f32 %v16690_v40, 0.0  ;;  %v16757_v35 = vld [vmem:[#allocation52_spill] sm:$0xff] }
 0xaae   :  { %v5224_v49 = vsel %vm1463_vm5, %v16743_v46, -inf  ;;  %v5226_v36 = vsel %vm1463_vm5, %v16744_v51, -inf  ;;  %v5228_v23 = vsel %vm1463_vm5, %v16745_v58, -inf  ;;  %v14772_v54 = vmax.f32 %v5201_v26, %v5202_v50  ;;  %v16759_v46 = vld [vmem:[#allocation46_spill] sm:$0xff] }
 0xaaf   :  { %v5225_v17 = vmax.f32 %v5223_v53, %v5224_v49  ;;  %v5236_v52 = vsel %vm1463_vm5, %v16746_v38, -inf  ;;  %v5237_v47 = vsel %vm1463_vm5, %v16747_v5, -inf  ;;  %v5214_v32 = vmax.f32 %v5212_v2, %v5213_v4  ;;  %v16755_v4 = vld [vmem:[#allocation43_spill] sm:$0xff] }
 0xab0   :  { %v5238_v62 = vmax.f32 %v5236_v52, %v5237_v47  ;;  %v16748_v21 = vmax.f32 %v16691_v41, 0.0  ;;  %v16749_v9 = vmax.f32 %v16692_v29, 0.0  ;;  %v16750_v12 = vmax.f32 %v16693_v22, 0.0 }
 0xab1   :  { %v5227_v3 = vmax.f32 %v5225_v17, %v5226_v36  ;;  %v16751_v40 = vmax.f32 %v16694_v48, 0.0  ;;  %v5216_v18 = vmax.f32 %v5214_v32, %v5215_v20  ;;  %v16752_v41 = vmax.f32 %v16695_v31, 0.0  ;;  %v16761_v36 = vld [vmem:[#allocation56_spill] sm:$0xff] }
 0xab2   :  { %v5239_v16 = vsel %vm1463_vm5, %v16748_v21, -inf  ;;  %v5241_v13 = vsel %vm1463_vm5, %v16749_v9, -inf  ;;  %v5249_v27 = vsel %vm1463_vm5, %v16750_v12, -inf  ;;  %v16754_v29 = vmax.f32 %v16753_v33, 0.0 }
 0xab3   :  { %v5250_v50 = vsel %vm1463_vm5, %v16751_v40, -inf  ;;  %v5240_v59 = vmax.f32 %v5238_v62, %v5239_v16  ;;  %v5252_v24 = vsel %vm1463_vm5, %v16752_v41, -inf  ;;  %v5229_v14 = vmax.f32 %v5227_v3, %v5228_v23 }
 0xab4   :  { %v5251_v1 = vmax.f32 %v5249_v27, %v5250_v50  ;;  %v5254_v61 = vsel %vm1463_vm5, %v16754_v29, -inf  ;;  %v16756_v22 = vmax.f32 %v16755_v4, 0.0  ;;  %v16758_v48 = vmax.f32 %v16757_v35, 0.0 }
 0xab5   :  { %v5217_v20 = vrot.slane %v5216_v18, 4  ;;  %v5242_v53 = vmax.f32 %v5240_v59, %v5241_v13  ;;  %v5230_v31 = vrot.slane %v5229_v14, 4  ;;  %v16760_v49 = vmax.f32 %v16759_v46, 0.0 }
 0xab6   :  { %v5262_v39 = vsel %vm1463_vm5, %v16756_v22, -inf  ;;  %v5263_v15 = vsel %vm1463_vm5, %v16758_v48, -inf  ;;  %v5253_v26 = vmax.f32 %v5251_v1, %v5252_v24  ;;  %v16762_v17 = vmax.f32 %v16761_v36, 0.0 }
 0xab7   :  { %v5264_v2 = vmax.f32 %v5262_v39, %v5263_v15  ;;  %v5265_v51 = vsel %vm1463_vm5, %v16760_v49, -inf  ;;  %v16763_v23 = vmax.f32 %v14519_v7, 0.0  ;;  %v5218_v52 = vmax.f32 %v5216_v18, %v5217_v20 }
 0xab8   :  { %v5267_v58 = vsel %vm1463_vm5, %v16762_v17, -inf  ;;  %v5243_v5 = vrot.slane %v5242_v53, 4  ;;  %v5255_v47 = vmax.f32 %v5253_v26, %v5254_v61  ;;  %v5231_v62 = vmax.f32 %v5229_v14, %v5230_v31 }
 0xab9   :  { %v5275_v38 = vsel %vm1463_vm5, %v16763_v23, -inf  ;;  %v5266_v32 = vmax.f32 %v5264_v2, %v5265_v51  ;;  %v16764_v21 = vmax.f32 %v14523_v43, 0.0  ;;  %v16765_v3 = vmax.f32 %v14527_v42, 0.0  ;;  %v16772_v51 = vld [vmem:[#allocation80_spill] sm:$0xff] }
 0xaba   :  { %v16766_v13 = vmax.f32 %v14531_v45, 0.0  ;;  %v5219_v7 = vrot.slane %v5218_v52, 2  ;;  %v5244_v27 = vmax.f32 %v5242_v53, %v5243_v5  ;;  %v5256_v40 = vrot.slane %v5255_v47, 4 }
 0xabb   :  { %v5276_v16 = vsel %vm1463_vm5, %v16764_v21, -inf  ;;  %v5278_v9 = vsel %vm1463_vm5, %v16765_v3, -inf  ;;  %v5268_v50 = vmax.f32 %v5266_v32, %v5267_v58  ;;  %v5232_v18 = vrot.slane %v5231_v62, 2 }
 0xabc   :  { %v5280_v12 = vsel %vm1463_vm5, %v16766_v13, -inf  ;;  %v5277_v59 = vmax.f32 %v5275_v38, %v5276_v16  ;;  %v16767_v43 = vmax.f32 %v14535_v19, 0.0  ;;  %v16768_v42 = vmax.f32 %v14539_v44, 0.0 }
 0xabd   :  { %v5220_v45 = vmax.f32 %v5218_v52, %v5219_v7  ;;  %v5245_v24 = vrot.slane %v5244_v27, 2  ;;  %v5257_v14 = vmax.f32 %v5255_v47, %v5256_v40  ;;  %v5269_v33 = vrot.slane %v5268_v50, 4 }
 0xabe   :  { %v5288_v1 = vsel %vm1463_vm5, %v16767_v43, -inf  ;;  %v5289_v41 = vsel %vm1463_vm5, %v16768_v42, -inf  ;;  %v5233_v29 = vmax.f32 %v5231_v62, %v5232_v18  ;;  %v5279_v61 = vmax.f32 %v5277_v59, %v5278_v9 }
 0xabf   :  { %v5290_v4 = vmax.f32 %v5288_v1, %v5289_v41  ;;  %v16769_v22 = vmax.f32 %v16696_v6, 0.0  ;;  %v5221_v19 = vrot.slane %v5220_v45, 1  ;;  %v5246_v35 = vmax.f32 %v5244_v27, %v5245_v24 }
 0xac0   :  { %v5258_v48 = vrot.slane %v5257_v14, 2  ;;  %v5270_v15 = vmax.f32 %v5268_v50, %v5269_v33  ;;  %v5234_v44 = vrot.slane %v5233_v29, 1  ;;  %v5281_v20 = vmax.f32 %v5279_v61, %v5280_v12 }
 0xac1   :  { %v5291_v39 = vsel %vm1463_vm5, %v16769_v22, -inf  ;;  %v16770_v26 = vmax.f32 %v16697_v25, 0.0  ;;  %v5222_v31 = vmax.f32 %v5220_v45, %v5221_v19  ;;  %v5247_v46 = vrot.slane %v5246_v35, 1 }
 0xac2   :  { %v5292_v53 = vmax.f32 %v5290_v4, %v5291_v39  ;;  %v16771_v49 = vmax.f32 %v16698_v60, 0.0  ;;  %v16773_v36 = vmax.f32 %v16772_v51, 0.0  ;;  %v5235_v58 = vmax.f32 %v5233_v29, %v5234_v44 }
 0xac3   :  { %v5293_v2 = vsel %vm1463_vm5, %v16770_v26, -inf  ;;  %v5282_v23 = vrot.slane %v5281_v20, 4  ;;  %v16774_v5 = vmax.f32 %v16700_v34, 0.0  ;;  %v16775_v47 = vmax.f32 %v14563_v11, 0.0 }
 0xac4   :  { %v5301_v6 = vsel %vm1463_vm5, %v16771_v49, -inf  ;;  %v5302_v17 = vsel %vm1463_vm5, %v16773_v36, -inf  ;;  %v5294_v38 = vmax.f32 %v5292_v53, %v5293_v2  ;;  %v5157_v60 = vmax.f32 %v14717_v63, %v5156_v57 }
 0xac5   :  { %v5303_v52 = vmax.f32 %v5301_v6, %v5302_v17  ;;  %v5304_v25 = vsel %vm1463_vm5, %v16774_v5, -inf  ;;  %v5306_v32 = vsel %vm1463_vm5, %v16775_v47, -inf  ;;  %v5168_v62 = vmax.f32 %v14710_v0, %v5167_v56  ;;  %v5710_v47 = vld [vmem:[%s15054_s18 + $0x88] sm:$0xff] }
 0xac6   :  { %v5180_v16 = vrot.slane %v14722_v10, 2  ;;  %v5192_v34 = vmax.f32 %v14724_v37, %v5191_v30  ;;  %v5204_v11 = vrot.slane %v14772_v54, 4  ;;  %v5359_v9 = vsel %vm5358_vm6, %v14720_v55, %v14715_v28 }
 0xac7   :  { %v5305_v21 = vmax.f32 %v5303_v52, %v5304_v25  ;;  %v5169_v3 = vrot.slane %v5168_v62, 1  ;;  %v5248_v63 = vmax.f32 %v5246_v35, %v5247_v46  ;;  %v5259_v57 = vmax.f32 %v5257_v14, %v5258_v48  ;;  %v5709_v25 = vld [vmem:[%s15054_s18 + $0x80] sm:$0xff] }
 0xac8   :  { %v5181_v0 = vmax.f32 %v14722_v10, %v5180_v16  ;;  %v5193_v56 = vrot.slane %v5192_v34, 2  ;;  %v5205_v13 = vmax.f32 %v14772_v54, %v5204_v11  ;;  %v5361_v12 = vsel %vm5360_vm7, %v14729_v8, %v5359_v9  ;;  %v5712_v16 = vld [vmem:[%s15054_s18 + $0x98] sm:$0xff] }
 0xac9   :  { %v5170_v7 = vmax.f32 %v5168_v62, %v5169_v3  ;;  %v5363_v37 = vsel %vm5362_vm8, %v5157_v60, %v5361_v12  ;;  %v5260_v30 = vrot.slane %v5259_v57, 1  ;;  %v5271_v27 = vrot.slane %v5270_v15, 2  ;;  %v5694_v62 = vld [vmem:[%s15054_s18 + $0x8] sm:$0xff]  ;;  %v5695_v3 = vld [vmem:[%s15054_s18 + $0x10] sm:$0xff]  ;;  %v5696_v9 = vld [vmem:[%s15054_s18 + $0x18] sm:$0xff] }
 0xaca   :  { %v5182_v40 = vrot.slane %v5181_v0, 1  ;;  %v5194_v50 = vmax.f32 %v5192_v34, %v5193_v56  ;;  %v5206_v18 = vrot.slane %v5205_v13, 2  ;;  %v5283_v28 = vmax.f32 %v5281_v20, %v5282_v23  ;;  %v5698_v12 = vld [vmem:[%s15054_s18 + $0x28] sm:$0xff] }
 0xacb   :  { %v5365_v55 = vsel %vm5364_vm9, %v5170_v7, %v5363_v37  ;;  %v5261_v59 = vmax.f32 %v5259_v57, %v5260_v30  ;;  %v5272_v43 = vmax.f32 %v5270_v15, %v5271_v27  ;;  %v5295_v10 = vrot.slane %v5294_v38, 4  ;;  %v5714_v57 = vld [vmem:[%s15054_s18 + $0xa8] sm:$0xff]  ;;  %v5715_v7 = vld [vmem:[%s15054_s18 + $0xb0] sm:$0xff]  ;;  %v5716_v37 = vld [vmem:[%s15054_s18 + $0xb8] sm:$0xff] }
 0xacc   :  { %v5183_v1 = vmax.f32 %v5181_v0, %v5182_v40  ;;  %v5195_v42 = vrot.slane %v5194_v50, 1  ;;  %v5207_v54 = vmax.f32 %v5205_v13, %v5206_v18  ;;  %v5284_v41 = vrot.slane %v5283_v28, 2  ;;  %v5697_v13 = vld [vmem:[%s15054_s18 + $0x20] sm:$0xff]  ;;  %v5699_v40 = vld [vmem:[%s15054_s18 + $0x30] sm:$0xff] }
 0xacd   :  { %v5273_v45 = vrot.slane %v5272_v43, 1  ;;  %v5296_v8 = vmax.f32 %v5294_v38, %v5295_v10  ;;  %v5307_v24 = vmax.f32 %v5305_v21, %v5306_v32  ;;  %v5372_v14 = vsel %vm5358_vm6, %v5235_v58, %v5222_v31  ;;  %v5693_v32 = vld [vmem:[%s15054_s18] sm:$0xff]  ;;  %v5711_v21 = vld [vmem:[%s15054_s18 + $0x90] sm:$0xff]  ;;  %v5702_v10 = vld [vmem:[%s15054_s18 + $0x48] sm:$0xff] }
 0xace   :  { %v5196_v33 = vmax.f32 %v5194_v50, %v5195_v42  ;;  %v5208_v29 = vrot.slane %v5207_v54, 1  ;;  %v5367_v61 = vsel %vm5366_vm10, %v5183_v1, %v5365_v55  ;;  %v5285_v4 = vmax.f32 %v5283_v28, %v5284_v41  ;;  %v5700_v50 = vld [vmem:[%s15054_s18 + $0x38] sm:$0xff]  ;;  %v5717_v18 = vld [vmem:[%s15054_s18 + $0xc0] sm:$0xff]  ;;  %v5718_v28 = vld [vmem:[%s15054_s18 + $0xc8] sm:$0xff] }
 0xacf   :  { %v5274_v22 = vmax.f32 %v5272_v43, %v5273_v45  ;;  %v5297_v39 = vrot.slane %v5296_v8, 2  ;;  %v5308_v19 = vrot.slane %v5307_v24, 4  ;;  %v5373_v35 = vsel %vm5360_vm7, %v5248_v63, %v5372_v14  ;;  %v5713_v63 = vld [vmem:[%s15054_s18 + $0xa0] sm:$0xff]  ;;  %v5719_v1 = vld [vmem:[%s15054_s18 + $0xd0] sm:$0xff]  ;;  %v5720_v42 = vld [vmem:[%s15054_s18 + $0xd8] sm:$0xff] }
 0xad0   :  { %v5209_v48 = vmax.f32 %v5207_v54, %v5208_v29  ;;  %v5369_v15 = vsel %vm5368_vm11, %v5196_v33, %v5367_v61  ;;  %v5286_v44 = vrot.slane %v5285_v4, 1  ;;  %v5374_v20 = vsel %vm5362_vm8, %v5261_v59, %v5373_v35  ;;  %v5701_v43 = vld [vmem:[%s15054_s18 + $0x40] sm:$0xff]  ;;  %v5703_v45 = vld [vmem:[%s15054_s18 + $0x50] sm:$0xff]  ;;  %v102_v35 = vpop.permute.xlu1 %101 }
 0xad1   :  { %v5298_v53 = vmax.f32 %v5296_v8, %v5297_v39  ;;  %v5309_v26 = vmax.f32 %v5307_v24, %v5308_v19  ;;  %v5375_v2 = vsel %vm5364_vm9, %v5274_v22, %v5374_v20  ;;  %v16776_v51 = vmov 0.0   ;;  %v5704_v8 = vld [vmem:[%s15054_s18 + $0x58] sm:$0xff]  ;;  %v16778_v39 = vld [vmem:[#allocation8_spill] sm:$0xff] }
 0xad2   :  { %v5371_v31 = vsel %vm5370_vm12, %v5209_v48, %v5369_v15  ;;  %v5287_v46 = vmax.f32 %v5285_v4, %v5286_v44  ;;  %v8004_v60 = vpack.c.bf16 %v5710_v47, %v5709_v25  ;;  %v8006_v34 = vpack.c.bf16 %v5694_v62, %v5693_v32  ;;  %v16777_v33 = vld [vmem:[#allocation6_spill] sm:$0xff]  ;;  %v5330_v4 = vld [vmem:[%s15051_s15] sm:$0x3]  ;;  %v5722_v25 = vld [vmem:[%s15054_s18 + $0xe8] sm:$0xff] }
 0xad3   :  { %6062 = vmatmul.mubr.msk.f32.vlgmr.msra.gmra.mrb[30].mxu1 %vm1463_vm5, %v5371_v31  ;;  %v5299_v49 = vrot.slane %v5298_v53, 1  ;;  %v5310_v6 = vrot.slane %v5309_v26, 2  ;;  %v8008_v11 = vpack.c.bf16 %v5712_v16, %v5711_v21  ;;  %v8010_v0 = vpack.c.bf16 %v5696_v9, %v5695_v3  ;;  %v5705_v47 = vld [vmem:[%s15054_s18 + $0x60] sm:$0xff]  ;;  %v5724_v62 = vld [vmem:[%s15054_s18 + $0xf8] sm:$0xff] }
 0xad4   :  { %5453 = vmatprep.mubr.f32.mxu1 %v16776_v51  ;;  %v5376_v36 = vsel %vm5366_vm10, %v5287_v46, %v5375_v2  ;;  %8005 = vmatprep.subr.bf16.mxu0 %v8004_v60  ;;  %v8012_v56 = vpack.c.bf16 %v5714_v57, %v5713_v63  ;;  %v8014_v30 = vpack.c.bf16 %v5698_v12, %v5697_v13  ;;  %v14947_v29 = vsub.s32 1, %v16777_v33  ;;  %v5706_v60 = vld [vmem:[%s15054_s18 + $0x68] sm:$0xff]  ;;  %v5615_v9 = vpop.permute.xlu1 %5614  ;;  %v5461_v33 = vld [vmem:[%s15053_s17] sm:$0x3] }
 0xad5   :  { %v5300_v17 = vmax.f32 %v5298_v53, %v5299_v49  ;;  %v5311_v58 = vmax.f32 %v5309_v26, %v5310_v6  ;;  %8007 = vmatpush3.bf16.msra.mxu0 %v8006_v34  ;;  %v8016_v27 = vpack.c.bf16 %v5716_v37, %v5715_v7  ;;  %v8018_v55 = vpack.c.bf16 %v5700_v50, %v5699_v40  ;;  %v16779_v49 = vld [vmem:[#allocation7_spill] sm:$0xff]  ;;  %v5707_v34 = vld [vmem:[%s15054_s18 + $0x70] sm:$0xff] }
 0xad6   :  { %8009 = vmatprep.subr.bf16.mxu0 %v8008_v11  ;;  %v8020_v59 = vpack.c.bf16 %v5718_v28, %v5717_v18  ;;  %v8022_v54 = vpack.c.bf16 %v5702_v10, %v5701_v43  ;;  %v8024_v41 = vpack.c.bf16 %v5720_v42, %v5719_v1  ;;  %v8026_v24 = vpack.c.bf16 %v5704_v8, %v5703_v45  ;;  %v5708_v11 = vld [vmem:[%s15054_s18 + $0x78] sm:$0xff]  ;;  %v5460_v1 = vld [vmem:[%s15052_s16] sm:$0x3] }
 0xad7   :  { %v5312_v23 = vrot.slane %v5311_v58, 1  ;;  %v5377_v38 = vsel %vm5368_vm11, %v5300_v17, %v5376_v36  ;;  %v5339_v22 = vrot.slane %v5330_v4, %v14947_v29  ;;  %v5335_v19 = vrot.slane %v5330_v4, %v16778_v39 }
 0xad8   :  { %v106_v44 = vrot.slane %v102_v35, %v16778_v39  ;;  %v8030_v21 = vpack.c.bf16 %v5706_v60, %v5705_v47  ;;  %v8034_v3 = vpack.c.bf16 %v5708_v11, %v5707_v34  ;;  %v5620_v63 = vrot.slane %v5615_v9, %v16778_v39 }
 0xad9   :  { %v5313_v52 = vmax.f32 %v5311_v58, %v5312_v23  ;;  %8011 = vmatpush3.bf16.msra.mxu0 %v8010_v0  ;;  %v5647_v45 = vrot.slane %v5460_v1, %v16778_v39 }
 0xada   :  { %8013 = vmatprep.subr.bf16.mxu0 %v8012_v56  ;;  %vm107_vm13 = vcmp.lt.s32.totalorder %v16779_v49, %v106_v44 }
 0xadb   :  { %v5378_v5 = vsel %vm5370_vm12, %v5313_v52, %v5377_v38  ;;  %v5829_v38 = vsel %vm107_vm13, 1.0, %v16776_v51 }
 0xadc   :  { %6063 = vmatmul.mubr.msk.f32.gmra.mrb[32].mxu1 %vm1463_vm5, %v5378_v5  ;;  %v5721_v5 = vld [vmem:[%s15054_s18 + $0xe0] sm:$0xff] }
 0xadd   :  { %5530 = vmatprep.mubr.f32.mxu1 %v16776_v51  ;;  %8015 = vmatpush3.bf16.msra.mxu0 %v8014_v30  ;;  %v8028_v32 = vpack.c.bf16 %v5722_v25, %v5721_v5 }
 0xade   :  { %8017 = vmatprep.subr.bf16.mxu0 %v8016_v27 }
 0xae1   :  { %8019 = vmatpush3.bf16.msra.mxu0 %v8018_v55 }
 0xae2   :  { %8021 = vmatprep.subr.bf16.mxu0 %v8020_v59 }
 0xae5   :  { %8023 = vmatpush3.bf16.msra.mxu0 %v8022_v54 }
 0xae6   :  { %8025 = vmatprep.subr.bf16.mxu0 %v8024_v41 }
 0xae9   :  { %8027 = vmatpush3.bf16.msra.mxu0 %v8026_v24 }
 0xaea   :  { %8029 = vmatprep.subr.bf16.mxu0 %v8028_v32 }
 0xaed   :  { %8031 = vmatpush3.bf16.msra.mxu0 %v8030_v21 }
 0xba6   :  { %v5449_v14 = vpop.f32.mrb[30].mxu1 }
 0xba7   :  { %v5451_v61 = vpop.f32.mrb[31].mxu1  ;;  %v14961_v2 = vadd.f32 %v5449_v14, %v5335_v19  ;;  %v5651_v14 = vrot.slane %v5460_v1, %v14947_v29 }
 0xba8   :  { %v14954_v48 = vadd.f32 %v5451_v61, %v5339_v22 }
 0xba9   :  { %v5537_v23 = vmul.f32 %v14961_v2, %v14961_v2 }
 0xbaa   :  { %v5538_v31 = vmul.f32 %v14954_v48, %v14954_v48 }
 0xbaf   :  { %v5455_v15 = vpop.f32.mrb[32].mxu1 }
 0xbb0   :  { %v14957_v20 = vadd.f32 %v5455_v15, %v5335_v19  ;;  %v5457_v53 = vpop.f32.mrb[33].mxu1  ;;  %v5678_v15 = vrot.slane %v5461_v33, %v16778_v39 }
 0xbb1   :  { %v14959_v26 = vadd.f32 %v5457_v53, %v5339_v22  ;;  %v5682_v53 = vrot.slane %v5461_v33, %v14947_v29  ;;  %v6066_v29 = vld [vmem:[%s15055_s19] ss:$0 sm:$0xff] }
 0xbb2   :  { %v7998_v36 = vpack.c.bf16 %v14957_v20, %v14961_v2  ;;  %v5539_v17 = vmul.f32 %v14957_v20, %v14957_v20 }
 0xbb3   :  { %v5540_v46 = vmul.f32 %v14959_v26, %v14959_v26  ;;  %v7996_v6 = vpack.c.bf16 %v14959_v26, %v14954_v48 }
 0xbb4   :  { %v8002_v52 = vpack.c.bf16 %v5539_v17, %v5537_v23 }
 0xbb5   :  { %7997 = vmatprep.subr.bf16.mxu1 %v7996_v6  ;;  %v8000_v58 = vpack.c.bf16 %v5540_v46, %v5538_v31 }
 0xbb6   :  { %7999 = vmatpush1.bf16.msra.mxu1 %v7998_v36 }
 0xbb7   :  { %8001 = vmatprep.subr.bf16.mxu1 %v8000_v58 }
 0xbb9   :  { %6064 = vmatmul.mubr.msk.f32.vlgmr.msra.gmra.mrb[34].mxu1 %vm5462_vm14, %v5829_v38 }
 0xbba   :  { %8003 = vmatpush1.bf16.msra.mxu1 %v8002_v52  ;;  %5605 = vmatprep.mubr.f32.mxu1 %v16776_v51  ;;  %v5723_v51 = vld [vmem:[%s15054_s18 + $0xf0] sm:$0xff] }
 0xbbb   :  { %v8032_v16 = vpack.c.bf16 %v5724_v62, %v5723_v51 }
 0xbbd   :  { %6065 = vmatmul.mubr.msk.f32.vlgmr.msra.gmra.mrb[36].mxu1 %vm5462_vm14, %v5829_v38  ;;  %8033 = vmatprep.subr.bf16.mxu0 %v8032_v16 }
 0xbbe   :  { %8035 = vmatpush3.bf16.msra.mxu0 %v8034_v3 }
 0xc8c   :  { %v5532_v57 = vpop.f32.mrb[34].mxu1 }
 0xc8d   :  { %v5621_v0 = vmul.f32 %v5620_v63, %v5532_v57  ;;  %v5534_v56 = vpop.f32.mrb[35].mxu1 }
 0xc8e   :  { %v5622_v13 = vmul.f32 %v5620_v63, %v5534_v56 }
 0xc8f   :  { %v5625_v7 = vmul.f32 %v5621_v0, %v5621_v0  ;;  %v5634_v10 = vrot.slane %v5621_v0, %v16778_v39 }
 0xc90   :  { %v5607_v12 = vpop.f32.mrb[36].mxu1  ;;  %v5626_v27 = vmul.f32 %v5622_v13, %v5622_v13  ;;  %v5638_v42 = vrot.slane %v5622_v13, %v16778_v39 }
 0xc91   :  { %v5623_v37 = vmul.f32 %v5620_v63, %v5607_v12  ;;  %v5609_v30 = vpop.f32.mrb[37].mxu1  ;;  %v5639_v54 = vsub.f32 %v14961_v2, %v5634_v10  ;;  %v5641_v41 = vsub.f32 %v14957_v20, %v5634_v10 }
 0xc92   :  { %v5624_v40 = vmul.f32 %v5620_v63, %v5609_v30  ;;  %v5640_v8 = vsub.f32 %v14954_v48, %v5638_v42  ;;  %v5642_v24 = vsub.f32 %v14959_v26, %v5638_v42 }
 0xc93   :  { %v5627_v50 = vsub.f32 %v5623_v37, %v5625_v7  ;;  %v5654_v22 = vmul.f32 %v5647_v45, %v5639_v54  ;;  %v5656_v19 = vmul.f32 %v5647_v45, %v5641_v41 }
 0xc94   :  { %v5628_v18 = vsub.f32 %v5624_v40, %v5626_v27  ;;  %v5655_v44 = vmul.f32 %v5651_v14, %v5640_v8  ;;  %v5657_v20 = vmul.f32 %v5651_v14, %v5642_v24 }
 0xc95   :  { %v5629_v28 = vmax.f32 %v5627_v50, 0.0 }
 0xc96   :  { %v5630_v55 = vmax.f32 %v5628_v18, 0.0 }
 0xc97   :  { %v5658_v59 = vadd.f32 1e-05, %v5629_v28 }
 0xc98   :  { %v5659_v43 = vadd.f32 1e-05, %v5630_v55 }
 0xc99   :  { %8056 = vrsqrt.f32 %v5658_v59 }
 0xc9a   :  { %8058 = vrsqrt.f32 %v5659_v43 }
 0xca3   :  { %v8057_v61 = vpop.eup %8056 }
 0xca4   :  { %v8059_v4 = vpop.eup %8058  ;;  %v5665_v35 = vrot.slane %v8057_v61, %v16778_v39 }
 0xca5   :  { %v5669_v48 = vrot.slane %v8059_v4, %v16778_v39 }
 0xca6   :  { %v5670_v26 = vmul.f32 %v5665_v35, %v5654_v22  ;;  %v5672_v2 = vmul.f32 %v5665_v35, %v5656_v19 }
 0xca7   :  { %v5671_v31 = vmul.f32 %v5669_v48, %v5655_v44  ;;  %v5673_v46 = vmul.f32 %v5669_v48, %v5657_v20 }
 0xca8   :  { %v5685_v49 = vadd.f32 %v5678_v15, %v5670_v26  ;;  %v5687_v58 = vadd.f32 %v5678_v15, %v5672_v2 }
 0xca9   :  { %v5686_v6 = vadd.f32 %v5682_v53, %v5671_v31  ;;  %v5688_v36 = vadd.f32 %v5682_v53, %v5673_v46 }
 0xcaa   :  { %v5689_v23 = vmax.f32 %v5685_v49, 0.0  ;;  %v5691_v52 = vmax.f32 %v5687_v58, 0.0 }
 0xcab   :  { %v5690_v17 = vmax.f32 %v5686_v6, 0.0  ;;  %v5692_v38 = vmax.f32 %v5688_v36, 0.0 }
 0xcad   :  { %5796 = vmatprep.mubr.f32.mxu0 %v5690_v17 }
 0xcae   :  { %5797 = vmatmul.mubr.f32.vlgmr.msra.gmra.mrb[2].mxu0 %v5689_v23 }
 0xcaf   :  { %5801 = vmatprep.mubr.f32.mxu0 %v5692_v38 }
 0xcb2   :  { %5802 = vmatmul.mubr.f32.gmra.mrb[4].mxu0 %v5691_v52 }
 0xd81   :  { %v6948_v5 = vpop.f32.mrb[2].mxu0 }
 0xd82   :  { %v6949_v39 = vpop.f32.mrb[3].mxu0 }
 0xd83   :  { %v6950_v25 = vadd.f32 %v6949_v39, %v6948_v5 }
 0xd85   :  { %v5799_v47 = vadd.f32 %v6950_v25, %v6066_v29  ;;  %v6951_v32 = vpop.f32.mrb[4].mxu0 }
 0xd86   :  { %v6952_v60 = vpop.f32.mrb[5].mxu0 }
 0xd87   :  { %5807 = vst [vmem:[#allocation3] sm:$0xff] %v5799_v47  ;;  %v6953_v51 = vadd.f32 %v6952_v60, %v6951_v32 }
 0xd89   :  { %v5804_v62 = vadd.f32 %v6953_v51, %v6066_v29 }
 0xd8b   :  { %5808 = vst [vmem:[#allocation3 + $0x8] sm:$0xff] %v5804_v62 }
 0xd8c   :  { %8071 = shalt.err (!%p8068_p4)
}
 0xd8d   :  { %s8072_s3 = scalar_lea.hbm %s15056_s20, 256 }
 0xd8e   :  { %p8073_p5 = scmp.ne.s32.totalorder %s15056_s20, %s8072_s3  ;;  %p8076_p6 = scmp.lt.u32.totalorder %s8072_s3, %s15056_s20 }
 0xd90   :  { %p8078_p7 = pnand %p8076_p6, %p8073_p5 }
 0xd92   :  { %8081 = shalt.err (!%p8078_p7)
}
 0xd93   :  { %s8088_s26 = smov 128   ;;  %s8089_s27 = smov 8  }
 0xd94   :  { %5820 = dma.vmem_to_hbm [thread:$0]  %s5815_s24, 256, %s15056_s20, [#allocation4], %s8088_s26, %s8088_s26, %s8089_s27  }
 0xd95   :  { %8082 = dma.done.wait [#allocation4], 256  }
 0xd96   :  { %8083 = vsyncadd [#allocation4], 4294967040 }
 0xd97   :  { %5824 = vsyncpa [#allocation4], 1 }

</bundles_post_ra>
